<compile_context>
chip_gen: v7x
topology: tpu7x:2x2x1
jax: 0.10.0
libtpu: 0.0.40
codegen_flags: <defaults>
</compile_context>

<pallas_src>
import jax
import jax.numpy as jnp
from jax.experimental import pallas as pl
from jax.experimental.pallas import tpu as pltpu


def _layer_dims(length):
    return [(length, 800), (800, 200), (200, 40), (40, 8),
            (8, 40), (40, 200), (200, 800), (800, length)]


def _choose_tb(batch):
    # Fill MXU rows (128 on v5e, 256 on v6e/v7x) when the batch allows it;
    # fall back to the smallest sublane-aligned tile for tiny batches.
    for tb in (256, 128, 64, 32, 16, 8):
        if batch >= tb:
            return tb
    return 8


def _ae_kernel(alpha_ref, x_ref, *refs):
    """Fused 8x (Linear + PReLU) forward pass for one (TB, length) batch tile.

    refs = (w1, b1, w2, b2, ..., w8, b8, out_ref)
    alpha_ref : (1,) f32 in SMEM -- the single shared PReLU slope.
    Weights are (in, out) bf16 (so y = x @ W + b == PyTorch x @ W.T + b),
    biases are (1, out) f32.
    """
    out_ref = refs[-1]
    wb_refs = refs[:-1]

    a = alpha_ref[0]                      # scalar PReLU slope (SMEM)

    def prelu(v):                         # f32 compare/select/mul on the VPU
        return jnp.where(v > 0, v, a * v)

    h = x_ref[...].astype(jnp.float32)
    for i in range(8):
        w = wb_refs[2 * i][...]           # (in, out) bf16, VMEM-resident
        b = wb_refs[2 * i + 1][...]       # (1, out)  f32
        # bf16 MXU inputs, f32 accumulation; bias + PReLU in f32.
        h = jnp.dot(h.astype(jnp.bfloat16), w,
                    preferred_element_type=jnp.float32) + b
        h = prelu(h)
    out_ref[...] = h.astype(out_ref.dtype)


@jax.jit
def ae_forward(x, params, alpha):
    """x: (B, length) f32. params: list of (W (in,out) f32, b (1,out) f32).
    alpha: (1,) f32 shared PReLU slope."""
    B, length = x.shape
    TB = _choose_tb(B)
    B_pad = ((B + TB - 1) // TB) * TB
    if B_pad != B:
        x = jnp.pad(x, ((0, B_pad - B), (0, 0)))

    flat_wb = []
    wb_specs = []
    for w, b in params:
        flat_wb.append(w.astype(jnp.bfloat16))       # MXU-native weights
        flat_wb.append(b.astype(jnp.float32))
        # Constant block index -> weights/biases stay resident in VMEM.
        wb_specs.append(pl.BlockSpec(w.shape, lambda i: (0, 0)))
        wb_specs.append(pl.BlockSpec(b.shape, lambda i: (0, 0)))

    x_spec = pl.BlockSpec((TB, length), lambda i: (i, 0))
    out_spec = pl.BlockSpec((TB, length), lambda i: (i, 0))
    smem_spec = pl.BlockSpec(memory_space=pltpu.MemorySpace.SMEM)

    dims = _layer_dims(length)
    flops = 2 * B_pad * sum(di * do for di, do in dims)
    bytes_accessed = (2 * B_pad * length * 4                       # x + out
                      + sum(di * do * 2 + do * 4 for di, do in dims)  # W + b
                      + 4)                                          # alpha

    out = pl.pallas_call(
        _ae_kernel,
        out_shape=jax.ShapeDtypeStruct((B_pad, length), jnp.float32),
        grid=(B_pad // TB,),
        in_specs=[smem_spec, x_spec] + wb_specs,
        out_specs=out_spec,
        compiler_params=pltpu.CompilerParams(
            dimension_semantics=("parallel",)),      # 2x on v7x (2 TCs)
        cost_estimate=pl.CostEstimate(
            flops=flops, transcendentals=0, bytes_accessed=bytes_accessed),
    )(alpha, x, *flat_wb)
    return out[:B]


def _ref_forward(x, params, alpha):
    """Pure-JAX reference with identical bf16-matmul / f32-accumulate semantics."""
    a = alpha[0]
    h = x.astype(jnp.float32)
    for w, b in params:
        h = jnp.dot(h.astype(jnp.bfloat16), w.astype(jnp.bfloat16),
                    preferred_element_type=jnp.float32) + b[0]
        h = jnp.where(h > 0, h, a * h)
    return h


def _init_params(key, length):
    """Deterministic synthetic parameter init (shapes from AE.__init__)."""
    params = []
    for (d_in, d_out) in _layer_dims(length):
        key, kw, kb = jax.random.split(key, 3)
        scale = 1.0 / jnp.sqrt(jnp.float32(d_in))
        w = jax.random.uniform(kw, (d_in, d_out), jnp.float32, -scale, scale)
        b = jax.random.uniform(kb, (1, d_out), jnp.float32, -scale, scale)
        params.append((w, b))
    return params


if __name__ == "__main__":
    # 2 grid steps of TB=256: exercises batch tiling, pipelining, and the
    # parallel dimension semantic, while staying small.
    B, length = 512, 64

    key = jax.random.PRNGKey(0)
    key, kx = jax.random.split(key)
    x = jax.random.normal(kx, (B, length), jnp.float32)

    params = _init_params(key, length)
    alpha = jnp.array([0.25], dtype=jnp.float32)     # nn.PReLU() default init

    out = jax.block_until_ready(ae_forward(x, params, alpha))
    ref = _ref_forward(x, params, alpha)

    assert out.shape == (B, length)
    assert bool(jnp.all(jnp.isfinite(out)))
    assert jnp.allclose(out, ref, atol=2e-3, rtol=2e-3), \
        float(jnp.max(jnp.abs(out - ref)))

    print("KERNEL_OK")
</pallas_src>

<mosaic_0001>
module attributes {stable_mosaic.version = 11 : i64} {
  func.func @_ae_kernel(%arg0: i32, %arg1: memref<1xf32, #tpu.memory_space<smem>>, %arg2: memref<256x64xf32, #tpu.memory_space<vmem>>, %arg3: memref<64x800xbf16, #tpu.memory_space<vmem>>, %arg4: memref<1x800xf32, #tpu.memory_space<vmem>>, %arg5: memref<800x200xbf16, #tpu.memory_space<vmem>>, %arg6: memref<1x200xf32, #tpu.memory_space<vmem>>, %arg7: memref<200x40xbf16, #tpu.memory_space<vmem>>, %arg8: memref<1x40xf32, #tpu.memory_space<vmem>>, %arg9: memref<40x8xbf16, #tpu.memory_space<vmem>>, %arg10: memref<1x8xf32, #tpu.memory_space<vmem>>, %arg11: memref<8x40xbf16, #tpu.memory_space<vmem>>, %arg12: memref<1x40xf32, #tpu.memory_space<vmem>>, %arg13: memref<40x200xbf16, #tpu.memory_space<vmem>>, %arg14: memref<1x200xf32, #tpu.memory_space<vmem>>, %arg15: memref<200x800xbf16, #tpu.memory_space<vmem>>, %arg16: memref<1x800xf32, #tpu.memory_space<vmem>>, %arg17: memref<800x64xbf16, #tpu.memory_space<vmem>>, %arg18: memref<1x64xf32, #tpu.memory_space<vmem>>, %arg19: memref<256x64xf32, #tpu.memory_space<vmem>>) attributes {dimension_semantics = [#tpu.dimension_semantics<parallel>], iteration_bounds = array<i64: 2>, scalar_prefetch = 0 : i64, scratch_operands = 0 : i64, tpu.core_type = #tpu.core_type<tc>, window_params = [{transform_indices = @transform_0, window_bounds = array<i64: 1>}, {transform_indices = @transform_1, window_bounds = array<i64: 256, 64>}, {pipeline_mode = #tpu.pipeline_mode<synchronous>, transform_indices = @transform_2, window_bounds = array<i64: 64, 800>}, {pipeline_mode = #tpu.pipeline_mode<synchronous>, transform_indices = @transform_3, window_bounds = array<i64: 1, 800>}, {pipeline_mode = #tpu.pipeline_mode<synchronous>, transform_indices = @transform_4, window_bounds = array<i64: 800, 200>}, {pipeline_mode = #tpu.pipeline_mode<synchronous>, transform_indices = @transform_5, window_bounds = array<i64: 1, 200>}, {pipeline_mode = #tpu.pipeline_mode<synchronous>, transform_indices = @transform_6, window_bounds = array<i64: 200, 40>}, {pipeline_mode = #tpu.pipeline_mode<synchronous>, transform_indices = @transform_7, window_bounds = array<i64: 1, 40>}, {pipeline_mode = #tpu.pipeline_mode<synchronous>, transform_indices = @transform_8, window_bounds = array<i64: 40, 8>}, {pipeline_mode = #tpu.pipeline_mode<synchronous>, transform_indices = @transform_9, window_bounds = array<i64: 1, 8>}, {pipeline_mode = #tpu.pipeline_mode<synchronous>, transform_indices = @transform_10, window_bounds = array<i64: 8, 40>}, {pipeline_mode = #tpu.pipeline_mode<synchronous>, transform_indices = @transform_11, window_bounds = array<i64: 1, 40>}, {pipeline_mode = #tpu.pipeline_mode<synchronous>, transform_indices = @transform_12, window_bounds = array<i64: 40, 200>}, {pipeline_mode = #tpu.pipeline_mode<synchronous>, transform_indices = @transform_13, window_bounds = array<i64: 1, 200>}, {pipeline_mode = #tpu.pipeline_mode<synchronous>, transform_indices = @transform_14, window_bounds = array<i64: 200, 800>}, {pipeline_mode = #tpu.pipeline_mode<synchronous>, transform_indices = @transform_15, window_bounds = array<i64: 1, 800>}, {pipeline_mode = #tpu.pipeline_mode<synchronous>, transform_indices = @transform_16, window_bounds = array<i64: 800, 64>}, {pipeline_mode = #tpu.pipeline_mode<synchronous>, transform_indices = @transform_17, window_bounds = array<i64: 1, 64>}, {transform_indices = @transform_18, window_bounds = array<i64: 256, 64>}]} {
    %c0 = arith.constant 0 : index
    %0 = memref.load %arg1[%c0] : memref<1xf32, #tpu.memory_space<smem>>
    %c0_0 = arith.constant 0 : index
    %c0_1 = arith.constant 0 : index
    %1 = vector.load %arg2[%c0_0, %c0_1] : memref<256x64xf32, #tpu.memory_space<vmem>>, vector<256x64xf32>
    %c0_2 = arith.constant 0 : index
    %c0_3 = arith.constant 0 : index
    %2 = vector.load %arg3[%c0_2, %c0_3] : memref<64x800xbf16, #tpu.memory_space<vmem>>, vector<64x800xbf16>
    %c0_4 = arith.constant 0 : index
    %c0_5 = arith.constant 0 : index
    %3 = vector.load %arg4[%c0_4, %c0_5] : memref<1x800xf32, #tpu.memory_space<vmem>>, vector<1x800xf32>
    %4 = arith.truncf %1 : vector<256x64xf32> to vector<256x64xbf16>
    %cst = arith.constant dense<0.000000e+00> : vector<256x800xf32>
    %5 = tpu.matmul %4, %2, %cst {dimension_numbers = #tpu.dot_dimension_numbers<[1], [0], [0], [1], [0, 0, 1, 1], [], []>} : vector<256x64xbf16>, vector<64x800xbf16>, vector<256x800xf32> -> vector<256x800xf32>
    %6 = vector.broadcast %3 : vector<1x800xf32> to vector<256x800xf32>
    %7 = arith.addf %5, %6 : vector<256x800xf32>
    %cst_6 = arith.constant 0.000000e+00 : f32
    %8 = vector.broadcast %cst_6 : f32 to vector<256x800xf32>
    %9 = arith.cmpf ogt, %7, %8 : vector<256x800xf32>
    %10 = vector.broadcast %0 : f32 to vector<256x800xf32>
    %11 = arith.mulf %10, %7 : vector<256x800xf32>
    %12 = arith.select %9, %7, %11 : vector<256x800xi1>, vector<256x800xf32>
    %c0_7 = arith.constant 0 : index
    %c0_8 = arith.constant 0 : index
    %13 = vector.load %arg5[%c0_7, %c0_8] : memref<800x200xbf16, #tpu.memory_space<vmem>>, vector<800x200xbf16>
    %c0_9 = arith.constant 0 : index
    %c0_10 = arith.constant 0 : index
    %14 = vector.load %arg6[%c0_9, %c0_10] : memref<1x200xf32, #tpu.memory_space<vmem>>, vector<1x200xf32>
    %15 = arith.truncf %12 : vector<256x800xf32> to vector<256x800xbf16>
    %cst_11 = arith.constant dense<0.000000e+00> : vector<256x200xf32>
    %16 = tpu.matmul %15, %13, %cst_11 {dimension_numbers = #tpu.dot_dimension_numbers<[1], [0], [0], [1], [0, 0, 1, 1], [], []>} : vector<256x800xbf16>, vector<800x200xbf16>, vector<256x200xf32> -> vector<256x200xf32>
    %17 = vector.broadcast %14 : vector<1x200xf32> to vector<256x200xf32>
    %18 = arith.addf %16, %17 : vector<256x200xf32>
    %cst_12 = arith.constant 0.000000e+00 : f32
    %19 = vector.broadcast %cst_12 : f32 to vector<256x200xf32>
    %20 = arith.cmpf ogt, %18, %19 : vector<256x200xf32>
    %21 = vector.broadcast %0 : f32 to vector<256x200xf32>
    %22 = arith.mulf %21, %18 : vector<256x200xf32>
    %23 = arith.select %20, %18, %22 : vector<256x200xi1>, vector<256x200xf32>
    %c0_13 = arith.constant 0 : index
    %c0_14 = arith.constant 0 : index
    %24 = vector.load %arg7[%c0_13, %c0_14] : memref<200x40xbf16, #tpu.memory_space<vmem>>, vector<200x40xbf16>
    %c0_15 = arith.constant 0 : index
    %c0_16 = arith.constant 0 : index
    %25 = vector.load %arg8[%c0_15, %c0_16] : memref<1x40xf32, #tpu.memory_space<vmem>>, vector<1x40xf32>
    %26 = arith.truncf %23 : vector<256x200xf32> to vector<256x200xbf16>
    %cst_17 = arith.constant dense<0.000000e+00> : vector<256x40xf32>
    %27 = tpu.matmul %26, %24, %cst_17 {dimension_numbers = #tpu.dot_dimension_numbers<[1], [0], [0], [1], [0, 0, 1, 1], [], []>} : vector<256x200xbf16>, vector<200x40xbf16>, vector<256x40xf32> -> vector<256x40xf32>
    %28 = vector.broadcast %25 : vector<1x40xf32> to vector<256x40xf32>
    %29 = arith.addf %27, %28 : vector<256x40xf32>
    %cst_18 = arith.constant 0.000000e+00 : f32
    %30 = vector.broadcast %cst_18 : f32 to vector<256x40xf32>
    %31 = arith.cmpf ogt, %29, %30 : vector<256x40xf32>
    %32 = vector.broadcast %0 : f32 to vector<256x40xf32>
    %33 = arith.mulf %32, %29 : vector<256x40xf32>
    %34 = arith.select %31, %29, %33 : vector<256x40xi1>, vector<256x40xf32>
    %c0_19 = arith.constant 0 : index
    %c0_20 = arith.constant 0 : index
    %35 = vector.load %arg9[%c0_19, %c0_20] : memref<40x8xbf16, #tpu.memory_space<vmem>>, vector<40x8xbf16>
    %c0_21 = arith.constant 0 : index
    %c0_22 = arith.constant 0 : index
    %36 = vector.load %arg10[%c0_21, %c0_22] : memref<1x8xf32, #tpu.memory_space<vmem>>, vector<1x8xf32>
    %37 = arith.truncf %34 : vector<256x40xf32> to vector<256x40xbf16>
    %cst_23 = arith.constant dense<0.000000e+00> : vector<256x8xf32>
    %38 = tpu.matmul %37, %35, %cst_23 {dimension_numbers = #tpu.dot_dimension_numbers<[1], [0], [0], [1], [0, 0, 1, 1], [], []>} : vector<256x40xbf16>, vector<40x8xbf16>, vector<256x8xf32> -> vector<256x8xf32>
    %39 = vector.broadcast %36 : vector<1x8xf32> to vector<256x8xf32>
    %40 = arith.addf %38, %39 : vector<256x8xf32>
    %cst_24 = arith.constant 0.000000e+00 : f32
    %41 = vector.broadcast %cst_24 : f32 to vector<256x8xf32>
    %42 = arith.cmpf ogt, %40, %41 : vector<256x8xf32>
    %43 = vector.broadcast %0 : f32 to vector<256x8xf32>
    %44 = arith.mulf %43, %40 : vector<256x8xf32>
    %45 = arith.select %42, %40, %44 : vector<256x8xi1>, vector<256x8xf32>
    %c0_25 = arith.constant 0 : index
    %c0_26 = arith.constant 0 : index
    %46 = vector.load %arg11[%c0_25, %c0_26] : memref<8x40xbf16, #tpu.memory_space<vmem>>, vector<8x40xbf16>
    %c0_27 = arith.constant 0 : index
    %c0_28 = arith.constant 0 : index
    %47 = vector.load %arg12[%c0_27, %c0_28] : memref<1x40xf32, #tpu.memory_space<vmem>>, vector<1x40xf32>
    %48 = arith.truncf %45 : vector<256x8xf32> to vector<256x8xbf16>
    %cst_29 = arith.constant dense<0.000000e+00> : vector<256x40xf32>
    %49 = tpu.matmul %48, %46, %cst_29 {dimension_numbers = #tpu.dot_dimension_numbers<[1], [0], [0], [1], [0, 0, 1, 1], [], []>} : vector<256x8xbf16>, vector<8x40xbf16>, vector<256x40xf32> -> vector<256x40xf32>
    %50 = vector.broadcast %47 : vector<1x40xf32> to vector<256x40xf32>
    %51 = arith.addf %49, %50 : vector<256x40xf32>
    %cst_30 = arith.constant 0.000000e+00 : f32
    %52 = vector.broadcast %cst_30 : f32 to vector<256x40xf32>
    %53 = arith.cmpf ogt, %51, %52 : vector<256x40xf32>
    %54 = vector.broadcast %0 : f32 to vector<256x40xf32>
    %55 = arith.mulf %54, %51 : vector<256x40xf32>
    %56 = arith.select %53, %51, %55 : vector<256x40xi1>, vector<256x40xf32>
    %c0_31 = arith.constant 0 : index
    %c0_32 = arith.constant 0 : index
    %57 = vector.load %arg13[%c0_31, %c0_32] : memref<40x200xbf16, #tpu.memory_space<vmem>>, vector<40x200xbf16>
    %c0_33 = arith.constant 0 : index
    %c0_34 = arith.constant 0 : index
    %58 = vector.load %arg14[%c0_33, %c0_34] : memref<1x200xf32, #tpu.memory_space<vmem>>, vector<1x200xf32>
    %59 = arith.truncf %56 : vector<256x40xf32> to vector<256x40xbf16>
    %cst_35 = arith.constant dense<0.000000e+00> : vector<256x200xf32>
    %60 = tpu.matmul %59, %57, %cst_35 {dimension_numbers = #tpu.dot_dimension_numbers<[1], [0], [0], [1], [0, 0, 1, 1], [], []>} : vector<256x40xbf16>, vector<40x200xbf16>, vector<256x200xf32> -> vector<256x200xf32>
    %61 = vector.broadcast %58 : vector<1x200xf32> to vector<256x200xf32>
    %62 = arith.addf %60, %61 : vector<256x200xf32>
    %cst_36 = arith.constant 0.000000e+00 : f32
    %63 = vector.broadcast %cst_36 : f32 to vector<256x200xf32>
    %64 = arith.cmpf ogt, %62, %63 : vector<256x200xf32>
    %65 = vector.broadcast %0 : f32 to vector<256x200xf32>
    %66 = arith.mulf %65, %62 : vector<256x200xf32>
    %67 = arith.select %64, %62, %66 : vector<256x200xi1>, vector<256x200xf32>
    %c0_37 = arith.constant 0 : index
    %c0_38 = arith.constant 0 : index
    %68 = vector.load %arg15[%c0_37, %c0_38] : memref<200x800xbf16, #tpu.memory_space<vmem>>, vector<200x800xbf16>
    %c0_39 = arith.constant 0 : index
    %c0_40 = arith.constant 0 : index
    %69 = vector.load %arg16[%c0_39, %c0_40] : memref<1x800xf32, #tpu.memory_space<vmem>>, vector<1x800xf32>
    %70 = arith.truncf %67 : vector<256x200xf32> to vector<256x200xbf16>
    %cst_41 = arith.constant dense<0.000000e+00> : vector<256x800xf32>
    %71 = tpu.matmul %70, %68, %cst_41 {dimension_numbers = #tpu.dot_dimension_numbers<[1], [0], [0], [1], [0, 0, 1, 1], [], []>} : vector<256x200xbf16>, vector<200x800xbf16>, vector<256x800xf32> -> vector<256x800xf32>
    %72 = vector.broadcast %69 : vector<1x800xf32> to vector<256x800xf32>
    %73 = arith.addf %71, %72 : vector<256x800xf32>
    %cst_42 = arith.constant 0.000000e+00 : f32
    %74 = vector.broadcast %cst_42 : f32 to vector<256x800xf32>
    %75 = arith.cmpf ogt, %73, %74 : vector<256x800xf32>
    %76 = vector.broadcast %0 : f32 to vector<256x800xf32>
    %77 = arith.mulf %76, %73 : vector<256x800xf32>
    %78 = arith.select %75, %73, %77 : vector<256x800xi1>, vector<256x800xf32>
    %c0_43 = arith.constant 0 : index
    %c0_44 = arith.constant 0 : index
    %79 = vector.load %arg17[%c0_43, %c0_44] : memref<800x64xbf16, #tpu.memory_space<vmem>>, vector<800x64xbf16>
    %c0_45 = arith.constant 0 : index
    %c0_46 = arith.constant 0 : index
    %80 = vector.load %arg18[%c0_45, %c0_46] : memref<1x64xf32, #tpu.memory_space<vmem>>, vector<1x64xf32>
    %81 = arith.truncf %78 : vector<256x800xf32> to vector<256x800xbf16>
    %cst_47 = arith.constant dense<0.000000e+00> : vector<256x64xf32>
    %82 = tpu.matmul %81, %79, %cst_47 {dimension_numbers = #tpu.dot_dimension_numbers<[1], [0], [0], [1], [0, 0, 1, 1], [], []>} : vector<256x800xbf16>, vector<800x64xbf16>, vector<256x64xf32> -> vector<256x64xf32>
    %83 = vector.broadcast %80 : vector<1x64xf32> to vector<256x64xf32>
    %84 = arith.addf %82, %83 : vector<256x64xf32>
    %cst_48 = arith.constant 0.000000e+00 : f32
    %85 = vector.broadcast %cst_48 : f32 to vector<256x64xf32>
    %86 = arith.cmpf ogt, %84, %85 : vector<256x64xf32>
    %87 = vector.broadcast %0 : f32 to vector<256x64xf32>
    %88 = arith.mulf %87, %84 : vector<256x64xf32>
    %89 = arith.select %86, %84, %88 : vector<256x64xi1>, vector<256x64xf32>
    %c0_49 = arith.constant 0 : index
    %c0_50 = arith.constant 0 : index
    %90 = vector.load %arg19[%c0_49, %c0_50] : memref<256x64xf32, #tpu.memory_space<vmem>>, vector<256x64xf32>
    tpu.vector_store %arg19[%c0_49, %c0_50], %89 {strides = array<i32>} : memref<256x64xf32, #tpu.memory_space<vmem>>, vector<256x64xf32>,
    return
  }
  func.func @transform_0(%arg0: i32) -> i32 {
    %c0_i32 = arith.constant 0 : i32
    %c0_i32_0 = arith.constant 0 : i32
    return %c0_i32 : i32
  }
  func.func @transform_1(%arg0: i32) -> (i32, i32) {
    %c0_i32 = arith.constant 0 : i32
    %c0_i32_0 = arith.constant 0 : i32
    return %arg0, %c0_i32 : i32, i32
  }
  func.func @transform_2(%arg0: i32) -> (i32, i32) {
    %c0_i32 = arith.constant 0 : i32
    %c0_i32_0 = arith.constant 0 : i32
    %c0_i32_1 = arith.constant 0 : i32
    return %c0_i32, %c0_i32_0 : i32, i32
  }
  func.func @transform_3(%arg0: i32) -> (i32, i32) {
    %c0_i32 = arith.constant 0 : i32
    %c0_i32_0 = arith.constant 0 : i32
    %c0_i32_1 = arith.constant 0 : i32
    return %c0_i32, %c0_i32_0 : i32, i32
  }
  func.func @transform_4(%arg0: i32) -> (i32, i32) {
    %c0_i32 = arith.constant 0 : i32
    %c0_i32_0 = arith.constant 0 : i32
    %c0_i32_1 = arith.constant 0 : i32
    return %c0_i32, %c0_i32_0 : i32, i32
  }
  func.func @transform_5(%arg0: i32) -> (i32, i32) {
    %c0_i32 = arith.constant 0 : i32
    %c0_i32_0 = arith.constant 0 : i32
    %c0_i32_1 = arith.constant 0 : i32
    return %c0_i32, %c0_i32_0 : i32, i32
  }
  func.func @transform_6(%arg0: i32) -> (i32, i32) {
    %c0_i32 = arith.constant 0 : i32
    %c0_i32_0 = arith.constant 0 : i32
    %c0_i32_1 = arith.constant 0 : i32
    return %c0_i32, %c0_i32_0 : i32, i32
  }
  func.func @transform_7(%arg0: i32) -> (i32, i32) {
    %c0_i32 = arith.constant 0 : i32
    %c0_i32_0 = arith.constant 0 : i32
    %c0_i32_1 = arith.constant 0 : i32
    return %c0_i32, %c0_i32_0 : i32, i32
  }
  func.func @transform_8(%arg0: i32) -> (i32, i32) {
    %c0_i32 = arith.constant 0 : i32
    %c0_i32_0 = arith.constant 0 : i32
    %c0_i32_1 = arith.constant 0 : i32
    return %c0_i32, %c0_i32_0 : i32, i32
  }
  func.func @transform_9(%arg0: i32) -> (i32, i32) {
    %c0_i32 = arith.constant 0 : i32
    %c0_i32_0 = arith.constant 0 : i32
    %c0_i32_1 = arith.constant 0 : i32
    return %c0_i32, %c0_i32_0 : i32, i32
  }
  func.func @transform_10(%arg0: i32) -> (i32, i32) {
    %c0_i32 = arith.constant 0 : i32
    %c0_i32_0 = arith.constant 0 : i32
    %c0_i32_1 = arith.constant 0 : i32
    return %c0_i32, %c0_i32_0 : i32, i32
  }
  func.func @transform_11(%arg0: i32) -> (i32, i32) {
    %c0_i32 = arith.constant 0 : i32
    %c0_i32_0 = arith.constant 0 : i32
    %c0_i32_1 = arith.constant 0 : i32
    return %c0_i32, %c0_i32_0 : i32, i32
  }
  func.func @transform_12(%arg0: i32) -> (i32, i32) {
    %c0_i32 = arith.constant 0 : i32
    %c0_i32_0 = arith.constant 0 : i32
    %c0_i32_1 = arith.constant 0 : i32
    return %c0_i32, %c0_i32_0 : i32, i32
  }
  func.func @transform_13(%arg0: i32) -> (i32, i32) {
    %c0_i32 = arith.constant 0 : i32
    %c0_i32_0 = arith.constant 0 : i32
    %c0_i32_1 = arith.constant 0 : i32
    return %c0_i32, %c0_i32_0 : i32, i32
  }
  func.func @transform_14(%arg0: i32) -> (i32, i32) {
    %c0_i32 = arith.constant 0 : i32
    %c0_i32_0 = arith.constant 0 : i32
    %c0_i32_1 = arith.constant 0 : i32
    return %c0_i32, %c0_i32_0 : i32, i32
  }
  func.func @transform_15(%arg0: i32) -> (i32, i32) {
    %c0_i32 = arith.constant 0 : i32
    %c0_i32_0 = arith.constant 0 : i32
    %c0_i32_1 = arith.constant 0 : i32
    return %c0_i32, %c0_i32_0 : i32, i32
  }
  func.func @transform_16(%arg0: i32) -> (i32, i32) {
    %c0_i32 = arith.constant 0 : i32
    %c0_i32_0 = arith.constant 0 : i32
    %c0_i32_1 = arith.constant 0 : i32
    return %c0_i32, %c0_i32_0 : i32, i32
  }
  func.func @transform_17(%arg0: i32) -> (i32, i32) {
    %c0_i32 = arith.constant 0 : i32
    %c0_i32_0 = arith.constant 0 : i32
    %c0_i32_1 = arith.constant 0 : i32
    return %c0_i32, %c0_i32_0 : i32, i32
  }
  func.func @transform_18(%arg0: i32) -> (i32, i32) {
    %c0_i32 = arith.constant 0 : i32
    %c0_i32_0 = arith.constant 0 : i32
    return %arg0, %c0_i32 : i32, i32
  }
}

</mosaic_0001>

<bundles_post_ra>
// kernel: ae_forward.1
= control target key start
LH: loop header
LB: loop body
LE: loop exit
PB: predicated region body
PF: predicated region fallthrough
CT: control target
= control target key end

     0   :  { %s11027_s30 = smov 0   ;;  %s17431_s0 = inlined_call_operand.<no memory space> [shape: f32[1], index: 0, kind: input, shape index: {}]   ;;  %s17432_s1 = inlined_call_operand.vmem [shape: f32[512,64], index: 1, kind: input, shape index: {}]   ;;  %s17433_s2 = inlined_call_operand.vmem [shape: bf16[64,800], index: 2, kind: input, shape index: {}]   ;;  %s17434_s3 = inlined_call_operand.vmem [shape: f32[1,800], index: 3, kind: input, shape index: {}]   ;;  %s17435_s4 = inlined_call_operand.vmem [shape: bf16[800,200], index: 4, kind: input, shape index: {}]   ;;  %s17436_s5 = inlined_call_operand.vmem [shape: f32[1,200], index: 5, kind: input, shape index: {}]   ;;  %s17437_s6 = inlined_call_operand.vmem [shape: bf16[200,40], index: 6, kind: input, shape index: {}]   ;;  %s17438_s7 = inlined_call_operand.vmem [shape: f32[1,40], index: 7, kind: input, shape index: {}]   ;;  %s17439_s8 = inlined_call_operand.vmem [shape: bf16[40,8], index: 8, kind: input, shape index: {}]   ;;  %s17440_s9 = inlined_call_operand.vmem [shape: f32[1,8], index: 9, kind: input, shape index: {}]   ;;  %s17441_s10 = inlined_call_operand.vmem [shape: bf16[8,40], index: 10, kind: input, shape index: {}]   ;;  %s17442_s11 = inlined_call_operand.vmem [shape: f32[1,40], index: 11, kind: input, shape index: {}]   ;;  %s17443_s12 = inlined_call_operand.vmem [shape: bf16[40,200], index: 12, kind: input, shape index: {}]   ;;  %s17444_s13 = inlined_call_operand.vmem [shape: f32[1,200], index: 13, kind: input, shape index: {}]   ;;  %s17445_s14 = inlined_call_operand.vmem [shape: bf16[200,800], index: 14, kind: input, shape index: {}]   ;;  %s17446_s15 = inlined_call_operand.vmem [shape: f32[1,800], index: 15, kind: input, shape index: {}]   ;;  %s17447_s16 = inlined_call_operand.vmem [shape: bf16[800,64], index: 16, kind: input, shape index: {}]   ;;  %s17448_s17 = inlined_call_operand.vmem [shape: f32[1,64], index: 17, kind: input, shape index: {}]   ;;  %s17449_s18 = inlined_call_operand.vmem [shape: f32[512,64], index: 18, kind: output, shape index: {}]  }
   0x1   :  { %17603 = sst [smem:[#allocation68_spill]] %s17431_s0 }
   0x2   :  { %17604 = sst [smem:[#allocation69_spill]] %s17432_s1  ;;  %s17606_s29 = sld [smem:[#allocation68_spill]] }
   0x3   :  { %17605 = sst [smem:[#allocation70_spill]] %s17433_s2 }
   0x8   :  { %23 = sst [smem:[#allocation2]] %s17606_s29 }
   0x9 LB: > { %s9168_s0 = sadd.s32 4294967295, %s10926_s30   ;;  %p9172_p0 = scmp.ge.s32.totalorder %s10926_s30, 1  ;;  %s10926_s30 = sphi %s11027_s30, %s29_s30  }
   0xa   : > { %p514_p1 = scmp.lt.s32.totalorder %s10926_s30, 3 }
   0xc   : > { %p515_p2 = pnand %p9172_p0, %p514_p1 }
   0xe   : > { %518 = sbr.rel (%p515_p2) target bundleno = 2522 (0x9da), region = 92 }
  0x15   : > { %s17607_s20 = sld [smem:[#allocation70_spill]]  ;;  %s9173_s21 = sshll.u32 %s9168_s0, 5  ;;  %v17453_v2 = vmov 0   ;;  %vm843_vm0 = vcmask 523264   ;;  %v10560_v36 = vld [vmem:[%s17435_s4 + $0x4] ss:$8 sps:$4 sm:$0xff]  }
  0x16   : > { %924 = vmatprep.mubr.bf16.mxu0 %v17453_v2  ;;  %p569_p3 = scmp.lt.s32.totalorder %s9173_s21, 63  ;;  %1117 = vmatprep.mubr.bf16.mxu1 %v17453_v2  ;;  %s17608_s1 = sld [smem:[#allocation69_spill]] }
  0x17   : > { %s581_s28 = sld [smem:[#allocation2]] }
  0x18   : > { %s18031_s21 = smov (!%p569_p3, %s9173_s21), 63 }
  0x19   : > { %s9174_s29 = sshll.u32 %s18031_s21, 3 }
  0x1b   : > { %v10527_v0 = vld [vmem:[%s17607_s20 + $0x4] ss:$28 sps:$4 sm:$0xff]   ;;  %v10530_v3 = vld [vmem:[%s17607_s20 + $0x3c] ss:$28 sps:$4 sm:$0xff]   ;;  %v10533_v5 = vld [vmem:[%s17607_s20 + $0x74] ss:$28 sps:$4 sm:$0xff]  }
  0x1c   : > { %v10529_v1 = vld [vmem:[%s17607_s20] ss:$28 sps:$4 sm:$0xff]   ;;  %892 = vmatprep.subr.bf16.mxu0 %v10527_v0  ;;  %v10532_v4 = vld [vmem:[%s17607_s20 + $0x38] ss:$28 sps:$4 sm:$0xff]   ;;  %s11060_s22 = scalar_lea.vmem %s17608_s1, %s9174_s29  ;;  %v10539_v6 = vld [vmem:[%s17607_s20 + $0xc] ss:$28 sps:$4 sm:$0xff]   ;;  %s17234_s1 = scalar_lea.vmem %s17449_s18, %s9174_s29 }
  0x1d   : > { %893 = vmatpush1.bf16.msra.mxu0 %v10529_v1  ;;  %v10541_v7 = vld [vmem:[%s17607_s20 + $0x8] ss:$28 sps:$4 sm:$0xff]   ;;  %v10535_v8 = vld [vmem:[%s17607_s20 + $0x70] ss:$28 sps:$4 sm:$0xff]   ;;  %1085 = vmatprep.subr.bf16.mxu1 %v10539_v6  ;;  %v10544_v13 = vld [vmem:[%s17607_s20 + $0x40] ss:$28 sps:$4 sm:$0xff]  }
  0x1e   : > { %894 = vmatprep.subr.bf16.mxu0 %v10530_v3  ;;  %v10536_v9 = vld [vmem:[%s17607_s20 + $0xac] ss:$28 sps:$4 sm:$0xff]   ;;  %v10542_v10 = vld [vmem:[%s17607_s20 + $0x44] ss:$28 sps:$4 sm:$0xff]   ;;  %1086 = vmatpush1.bf16.msra.mxu1 %v10541_v7  ;;  %v10545_v14 = vld [vmem:[%s17607_s20 + $0x7c] ss:$28 sps:$4 sm:$0xff]  }
  0x1f   : > { %v10538_v11 = vld [vmem:[%s17607_s20 + $0xa8] ss:$28 sps:$4 sm:$0xff]   ;;  %1087 = vmatprep.subr.bf16.mxu1 %v10542_v10  ;;  %v10547_v16 = vld [vmem:[%s17607_s20 + $0x78] ss:$28 sps:$4 sm:$0xff]   ;;  %v10550_v19 = vld [vmem:[%s17607_s20 + $0xb0] ss:$28 sps:$4 sm:$0xff]  }
  0x20   : > { %v582_v12 = vld [vmem:[%s11060_s22] sm:$0xff]  ;;  %v583_v15 = vld [vmem:[%s11060_s22 + $0x8] sm:$0xff]  ;;  %v10548_v18 = vld [vmem:[%s17607_s20 + $0xb4] ss:$28 sps:$4 sm:$0xff]  }
  0x21   : > { %895 = vmatpush1.bf16.msra.mxu0 %v10532_v4  ;;  %v11091_v17 = vpack.c.bf16 %v583_v15, %v582_v12  ;;  %v10551_v20 = vld [vmem:[%s17607_s20 + $0x18] ss:$28 sps:$4 sm:$0xff]   ;;  %v10552_v24 = vld [vmem:[%s17607_s20 + $0x50] ss:$28 sps:$4 sm:$0xff]   ;;  %v10553_v25 = vld [vmem:[%s17607_s20 + $0x88] ss:$28 sps:$4 sm:$0xff]  }
  0x22   : > { %896 = vmatprep.subr.bf16.mxu0 %v10533_v5  ;;  %1088 = vmatpush1.bf16.msra.mxu1 %v10544_v13  ;;  %v584_v21 = vld [vmem:[%s11060_s22 + $0x10] sm:$0xff]  ;;  %v585_v22 = vld [vmem:[%s11060_s22 + $0x18] sm:$0xff]  ;;  %v586_v28 = vld [vmem:[%s11060_s22 + $0x20] sm:$0xff] }
  0x23   : > { %1089 = vmatprep.subr.bf16.mxu1 %v10545_v14  ;;  %v11107_v23 = vpack.c.bf16 %v585_v22, %v584_v21  ;;  %v10555_v26 = vld [vmem:[%s17607_s20 + $0x10] ss:$28 sps:$4 sm:$0xff]   ;;  %v10554_v30 = vld [vmem:[%s17607_s20 + $0xc0] ss:$28 sps:$4 sm:$0xff]   ;;  %v10561_v31 = vld [vmem:[%s17607_s20 + $0x48] ss:$28 sps:$4 sm:$0xff]  }
  0x24   : > { %v10557_v27 = vld [vmem:[%s17607_s20 + $0x14] ss:$28 sps:$4 sm:$0xff]   ;;  %v587_v29 = vld [vmem:[%s11060_s22 + $0x28] sm:$0xff]  ;;  %v589_v35 = vld [vmem:[%s11060_s22 + $0x38] sm:$0xff] }
  0x25   : > { %897 = vmatpush1.bf16.msra.mxu0 %v10535_v8  ;;  %v10563_v32 = vld [vmem:[%s17607_s20 + $0x4c] ss:$28 sps:$4 sm:$0xff]   ;;  %v11138_v33 = vpack.c.bf16 %v587_v29, %v586_v28  ;;  %v588_v34 = vld [vmem:[%s11060_s22 + $0x30] sm:$0xff]  ;;  %v590_v38 = vld [vmem:[%s11060_s22 + $0x40] sm:$0xff] }
  0x26   : > { %898 = vmatprep.subr.bf16.mxu0 %v10536_v9  ;;  %1090 = vmatpush1.bf16.msra.mxu1 %v10547_v16  ;;  %v11151_v37 = vpack.c.bf16 %v589_v35, %v588_v34  ;;  %v591_v39 = vld [vmem:[%s11060_s22 + $0x48] sm:$0xff]  ;;  %v592_v41 = vld [vmem:[%s11060_s22 + $0x50] sm:$0xff]  ;;  %v593_v42 = vld [vmem:[%s11060_s22 + $0x58] sm:$0xff] }
  0x27   : > { %1091 = vmatprep.subr.bf16.mxu1 %v10548_v18  ;;  %v11161_v40 = vpack.c.bf16 %v591_v39, %v590_v38  ;;  %v11171_v43 = vpack.c.bf16 %v593_v42, %v592_v41  ;;  %v594_v44 = vld [vmem:[%s11060_s22 + $0x60] sm:$0xff]  ;;  %v595_v45 = vld [vmem:[%s11060_s22 + $0x68] sm:$0xff]  ;;  %v596_v49 = vld [vmem:[%s11060_s22 + $0x70] sm:$0xff] }
  0x28   : > { %v10588_v46 = vld [vmem:[%s17607_s20 + $0x80] ss:$28 sps:$4 sm:$0xff]   ;;  %v11187_v48 = vpack.c.bf16 %v595_v45, %v594_v44  ;;  %v599_v53 = vld [vmem:[%s11060_s22 + $0x88] sm:$0xff]  ;;  %v600_v55 = vld [vmem:[%s11060_s22 + $0x90] sm:$0xff] }
  0x29   : > { %899 = vmatpush1.bf16.msra.mxu0 %v10538_v11  ;;  %v10590_v47 = vld [vmem:[%s17607_s20 + $0x84] ss:$28 sps:$4 sm:$0xff]   ;;  %v597_v50 = vld [vmem:[%s11060_s22 + $0x78] sm:$0xff]  ;;  %v603_v59 = vld [vmem:[%s11060_s22 + $0xa8] sm:$0xff] }
  0x2a   : > { %1092 = vmatpush1.bf16.msra.mxu1 %v10550_v19  ;;  %1278 = vmatprep.subr.bf16.mxu0 %v10557_v27  ;;  %v11197_v51 = vpack.c.bf16 %v597_v50, %v596_v49  ;;  %v598_v52 = vld [vmem:[%s11060_s22 + $0x80] sm:$0xff]  ;;  %v601_v56 = vld [vmem:[%s11060_s22 + $0x98] sm:$0xff]  ;;  %v604_v61 = vld [vmem:[%s11060_s22 + $0xb0] sm:$0xff] }
  0x2b   : > { %10112 = vmatprep.subr.bf16.mxu1 %v10551_v20  ;;  %v11207_v54 = vpack.c.bf16 %v599_v53, %v598_v52  ;;  %v11217_v57 = vpack.c.bf16 %v601_v56, %v600_v55  ;;  %v602_v58 = vld [vmem:[%s11060_s22 + $0xa0] sm:$0xff]  ;;  %v605_v62 = vld [vmem:[%s11060_s22 + $0xb8] sm:$0xff]  ;;  %v607_v1 = vld [vmem:[%s11060_s22 + $0xc8] sm:$0xff]  ;;  %v11477_v56 = vstv %s581_s28 }
  0x2c   : > { %9205 = vmatmul.mubr.msk.bf16.vlgmr.msra.gmra.mrb[0].mxu0 %vm843_vm0, %v11091_v17  ;;  %v11227_v60 = vpack.c.bf16 %v603_v59, %v602_v58  ;;  %v11237_v63 = vpack.c.bf16 %v605_v62, %v604_v61  ;;  %v606_v0 = vld [vmem:[%s11060_s22 + $0xc0] sm:$0xff]  ;;  %v608_v4 = vld [vmem:[%s11060_s22 + $0xd0] sm:$0xff]  ;;  %v609_v5 = vld [vmem:[%s11060_s22 + $0xd8] sm:$0xff]  ;;  %17612 = vst [vmem:[#allocation6_spill] sm:$0xff] %v11477_v56 }
  0x2d   : > { %934 = vmatprep.mubr.bf16.mxu0 %v17453_v2  ;;  %9221 = vmatmul.mubr.msk.bf16.vlgmr.msra.gmra.mrb[0].mxu1 %vm843_vm0, %v11091_v17  ;;  %v11247_v3 = vpack.c.bf16 %v607_v1, %v606_v0  ;;  %v10615_v6 = vld [vmem:[%s17607_s20 + $0xb8] ss:$28 sps:$4 sm:$0xff]   ;;  %v11263_v8 = vpack.c.bf16 %v609_v5, %v608_v4  ;;  %v610_v9 = vld [vmem:[%s11060_s22 + $0xe0] sm:$0xff]  ;;  %v611_v10 = vld [vmem:[%s11060_s22 + $0xe8] sm:$0xff] }
  0x2e   : > { %10113 = vmatpush3.bf16.msra.mxu1 %v10551_v20  ;;  %1127 = vmatprep.mubr.bf16.mxu1 %v17453_v2  ;;  %v10617_v7 = vld [vmem:[%s17607_s20 + $0xbc] ss:$28 sps:$4 sm:$0xff]   ;;  %v11274_v11 = vpack.c.bf16 %v611_v10, %v610_v9  ;;  %v612_v12 = vld [vmem:[%s11060_s22 + $0xf0] sm:$0xff]  ;;  %v10558_v15 = vld [vmem:[%s17435_s4] ss:$8 sps:$4 sm:$0xff]  }
  0x2f   : > { %10114 = vmatprep.subr.bf16.mxu1 %v10552_v24  ;;  %1279 = vmatpush1.bf16.msra.mxu0 %v10555_v26  ;;  %v613_v13 = vld [vmem:[%s11060_s22 + $0xf8] sm:$0xff]  ;;  %v10567_v19 = vld [vmem:[%s17435_s4 + $0x20] ss:$8 sps:$4 sm:$0xff]   ;;  %v10575_v22 = vld [vmem:[%s17435_s4 + $0x44] ss:$8 sps:$4 sm:$0xff]  }
  0x30   : > { %1280 = vmatprep.subr.bf16.mxu0 %v10563_v32  ;;  %v11284_v14 = vpack.c.bf16 %v613_v13, %v612_v12  ;;  %v10566_v16 = vld [vmem:[%s17435_s4 + $0x14] ss:$8 sps:$4 sm:$0xff]   ;;  %v10564_v18 = vld [vmem:[%s17435_s4 + $0x10] ss:$8 sps:$4 sm:$0xff]   ;;  %v10581_v26 = vld [vmem:[%s17435_s4 + $0x64] ss:$8 sps:$4 sm:$0xff]  }
  0x31   : > { %v10572_v20 = vld [vmem:[%s17435_s4 + $0x34] ss:$8 sps:$4 sm:$0xff]   ;;  %v10570_v21 = vld [vmem:[%s17435_s4 + $0x30] ss:$8 sps:$4 sm:$0xff]   ;;  %v10579_v27 = vld [vmem:[%s17435_s4 + $0x60] ss:$8 sps:$4 sm:$0xff]  }
  0x32   : > { %10115 = vmatpush3.bf16.msra.mxu1 %v10552_v24  ;;  %v10578_v24 = vld [vmem:[%s17435_s4 + $0x54] ss:$8 sps:$4 sm:$0xff]   ;;  %v10582_v29 = vld [vmem:[%s17435_s4 + $0x70] ss:$8 sps:$4 sm:$0xff]   ;;  %v10596_v34 = vld [vmem:[%s17435_s4 + $0xa4] ss:$8 sps:$4 sm:$0xff]  }
  0x33   : > { %10116 = vmatprep.subr.bf16.mxu1 %v10553_v25  ;;  %1281 = vmatpush1.bf16.msra.mxu0 %v10561_v31  ;;  %v10584_v28 = vld [vmem:[%s17435_s4 + $0x74] ss:$8 sps:$4 sm:$0xff]   ;;  %v10585_v31 = vld [vmem:[%s17435_s4 + $0x80] ss:$8 sps:$4 sm:$0xff]   ;;  %v10602_v38 = vld [vmem:[%s17435_s4 + $0xc4] ss:$8 sps:$4 sm:$0xff]  }
  0x34   : > { %9206 = vmatmul.mubr.msk.bf16.gmra.mrb[4].mxu0 %vm843_vm0, %v11107_v23  ;;  %1282 = vmatprep.subr.bf16.mxu0 %v10590_v47  ;;  %v10593_v32 = vld [vmem:[%s17435_s4 + $0x94] ss:$8 sps:$4 sm:$0xff]   ;;  %v10594_v35 = vld [vmem:[%s17435_s4 + $0xa0] ss:$8 sps:$4 sm:$0xff]   ;;  %v10603_v41 = vld [vmem:[%s17435_s4 + $0xd0] ss:$8 sps:$4 sm:$0xff]   ;;  %v664_v47 = vlaneseq }
  0x35   : > { %944 = vmatprep.mubr.bf16.mxu0 %v17453_v2  ;;  %9222 = vmatmul.mubr.msk.bf16.gmra.mrb[4].mxu1 %vm843_vm0, %v11107_v23  ;;  %v10600_v39 = vld [vmem:[%s17435_s4 + $0xc0] ss:$8 sps:$4 sm:$0xff]   ;;  %v10608_v42 = vld [vmem:[%s17435_s4 + $0xe4] ss:$8 sps:$4 sm:$0xff]   ;;  %v10611_v44 = vld [vmem:[%s17435_s4 + $0xf4] ss:$8 sps:$4 sm:$0xff]  }
  0x36   : > { %1137 = vmatprep.mubr.bf16.mxu1 %v17453_v2  ;;  %10117 = vmatpush3.bf16.msra.mxu1 %v10553_v25  ;;  %v10576_v25 = vld [vmem:[%s17435_s4 + $0x50] ss:$8 sps:$4 sm:$0xff]   ;;  %v11460_v50 = vld [vmem:[%s17434_s3] sm:$0x7f] }
  0x37   : > { %10118 = vmatprep.subr.bf16.mxu1 %v10554_v30  ;;  %1283 = vmatpush1.bf16.msra.mxu0 %v10588_v46  ;;  %v10609_v45 = vld [vmem:[%s17435_s4 + $0xf0] ss:$8 sps:$4 sm:$0xff]   ;;  %v10614_v46 = vld [vmem:[%s17435_s4 + $0x104] ss:$8 sps:$4 sm:$0xff]  }
  0x38   : > { %1284 = vmatprep.subr.bf16.mxu0 %v10617_v7 }
  0x3a   : > { %10119 = vmatpush3.bf16.msra.mxu1 %v10554_v30  ;;  %v10587_v30 = vld [vmem:[%s17435_s4 + $0x84] ss:$8 sps:$4 sm:$0xff]  }
  0x3b   : > { %3078 = vmatprep.subr.bf16.mxu1 %v10560_v36  ;;  %1285 = vmatpush1.bf16.msra.mxu0 %v10615_v6  ;;  %v10599_v36 = vld [vmem:[%s17435_s4 + $0xb4] ss:$8 sps:$4 sm:$0xff]  }
  0x3c   : > { %9207 = vmatmul.mubr.msk.bf16.gmra.mrb[8].mxu0 %vm843_vm0, %v11138_v33  ;;  %4234 = vmatprep.subr.bf16.mxu0 %v17453_v2 }
  0x3d   : > { %954 = vmatprep.mubr.bf16.mxu0 %v17453_v2  ;;  %9223 = vmatmul.mubr.msk.bf16.gmra.mrb[8].mxu1 %vm843_vm0, %v11138_v33 }
  0x3e   : > { %1147 = vmatprep.mubr.bf16.mxu1 %v17453_v2 }
  0x44   : > { %9208 = vmatmul.mubr.msk.bf16.gmra.mrb[12].mxu0 %vm843_vm0, %v11151_v37 }
  0x45   : > { %964 = vmatprep.mubr.bf16.mxu0 %v17453_v2  ;;  %9224 = vmatmul.mubr.msk.bf16.gmra.mrb[12].mxu1 %vm843_vm0, %v11151_v37 }
  0x46   : > { %1157 = vmatprep.mubr.bf16.mxu1 %v17453_v2 }
  0x4c   : > { %9209 = vmatmul.mubr.msk.bf16.gmra.mrb[16].mxu0 %vm843_vm0, %v11161_v40 }
  0x4d   : > { %974 = vmatprep.mubr.bf16.mxu0 %v17453_v2  ;;  %9225 = vmatmul.mubr.msk.bf16.gmra.mrb[16].mxu1 %vm843_vm0, %v11161_v40 }
  0x4e   : > { %1167 = vmatprep.mubr.bf16.mxu1 %v17453_v2 }
  0x54   : > { %9210 = vmatmul.mubr.msk.bf16.gmra.mrb[20].mxu0 %vm843_vm0, %v11171_v43 }
  0x55   : > { %984 = vmatprep.mubr.bf16.mxu0 %v17453_v2  ;;  %9226 = vmatmul.mubr.msk.bf16.gmra.mrb[20].mxu1 %vm843_vm0, %v11171_v43 }
  0x56   : > { %1177 = vmatprep.mubr.bf16.mxu1 %v17453_v2 }
  0x5c   : > { %9211 = vmatmul.mubr.msk.bf16.gmra.mrb[24].mxu0 %vm843_vm0, %v11187_v48 }
  0x5d   : > { %994 = vmatprep.mubr.bf16.mxu0 %v17453_v2  ;;  %9227 = vmatmul.mubr.msk.bf16.gmra.mrb[24].mxu1 %vm843_vm0, %v11187_v48 }
  0x5e   : > { %1187 = vmatprep.mubr.bf16.mxu1 %v17453_v2 }
  0x64   : > { %9212 = vmatmul.mubr.msk.bf16.gmra.mrb[28].mxu0 %vm843_vm0, %v11197_v51 }
  0x65   : > { %1004 = vmatprep.mubr.bf16.mxu0 %v17453_v2  ;;  %9228 = vmatmul.mubr.msk.bf16.gmra.mrb[28].mxu1 %vm843_vm0, %v11197_v51 }
  0x66   : > { %1197 = vmatprep.mubr.bf16.mxu1 %v17453_v2 }
  0x6c   : > { %9213 = vmatmul.mubr.msk.bf16.gmra.mrb[32].mxu0 %vm843_vm0, %v11207_v54 }
  0x6d   : > { %1014 = vmatprep.mubr.bf16.mxu0 %v17453_v2  ;;  %9229 = vmatmul.mubr.msk.bf16.gmra.mrb[32].mxu1 %vm843_vm0, %v11207_v54 }
  0x6e   : > { %1207 = vmatprep.mubr.bf16.mxu1 %v17453_v2 }
  0x74   : > { %9214 = vmatmul.mubr.msk.bf16.gmra.mrb[36].mxu0 %vm843_vm0, %v11217_v57 }
  0x75   : > { %1024 = vmatprep.mubr.bf16.mxu0 %v17453_v2  ;;  %9230 = vmatmul.mubr.msk.bf16.gmra.mrb[36].mxu1 %vm843_vm0, %v11217_v57 }
  0x76   : > { %1217 = vmatprep.mubr.bf16.mxu1 %v17453_v2 }
  0x7c   : > { %9215 = vmatmul.mubr.msk.bf16.gmra.mrb[40].mxu0 %vm843_vm0, %v11227_v60 }
  0x7d   : > { %1034 = vmatprep.mubr.bf16.mxu0 %v17453_v2  ;;  %9231 = vmatmul.mubr.msk.bf16.gmra.mrb[40].mxu1 %vm843_vm0, %v11227_v60 }
  0x7e   : > { %1227 = vmatprep.mubr.bf16.mxu1 %v17453_v2 }
  0x84   : > { %9216 = vmatmul.mubr.msk.bf16.gmra.mrb[44].mxu0 %vm843_vm0, %v11237_v63 }
  0x85   : > { %1044 = vmatprep.mubr.bf16.mxu0 %v17453_v2  ;;  %9232 = vmatmul.mubr.msk.bf16.gmra.mrb[44].mxu1 %vm843_vm0, %v11237_v63 }
  0x86   : > { %1237 = vmatprep.mubr.bf16.mxu1 %v17453_v2 }
  0x8c   : > { %9217 = vmatmul.mubr.msk.bf16.gmra.mrb[48].mxu0 %vm843_vm0, %v11247_v3 }
  0x8d   : > { %1054 = vmatprep.mubr.bf16.mxu0 %v17453_v2  ;;  %9233 = vmatmul.mubr.msk.bf16.gmra.mrb[48].mxu1 %vm843_vm0, %v11247_v3 }
  0x8e   : > { %1247 = vmatprep.mubr.bf16.mxu1 %v17453_v2 }
  0x94   : > { %9218 = vmatmul.mubr.msk.bf16.gmra.mrb[52].mxu0 %vm843_vm0, %v11263_v8 }
  0x95   : > { %1064 = vmatprep.mubr.bf16.mxu0 %v17453_v2  ;;  %9234 = vmatmul.mubr.msk.bf16.gmra.mrb[52].mxu1 %vm843_vm0, %v11263_v8 }
  0x96   : > { %1257 = vmatprep.mubr.bf16.mxu1 %v17453_v2 }
  0x9c   : > { %9219 = vmatmul.mubr.msk.bf16.gmra.mrb[56].mxu0 %vm843_vm0, %v11274_v11 }
  0x9d   : > { %1074 = vmatprep.mubr.bf16.mxu0 %v17453_v2  ;;  %9235 = vmatmul.mubr.msk.bf16.gmra.mrb[56].mxu1 %vm843_vm0, %v11274_v11 }
  0x9e   : > { %1267 = vmatprep.mubr.bf16.mxu1 %v17453_v2 }
  0xa4   : > { %9220 = vmatmul.mubr.msk.bf16.gmra.mrb[60].mxu0 %vm843_vm0, %v11284_v14 }
  0xa5   : > { %1310 = vmatprep.mubr.bf16.mxu0 %v17453_v2  ;;  %9236 = vmatmul.mubr.msk.bf16.gmra.mrb[60].mxu1 %vm843_vm0, %v11284_v14 }
  0xa6   : > { %10120 = vmatprep.mubr.msk.bf16.mxu1 %vm843_vm0, %v11091_v17 }
  0xac   : > { %9237 = vmatmul.mubr.msk.bf16.vlgmr.msra.gmra.mrb[64].mxu0 %vm843_vm0, %v11091_v17  ;;  %v10569_v17 = vld [vmem:[%s17435_s4 + $0x24] ss:$8 sps:$4 sm:$0xff]  }
  0xad   : > { %1320 = vmatprep.mubr.bf16.mxu0 %v17453_v2  ;;  %10121 = vmatmul.mubr.msk.bf16.vlgmr.msra.gmra.mrb[64].mxu1 %vm843_vm0, %v11107_v23 }
  0xae   : > { %3079 = vmatpush1.bf16.msra.mxu1 %v10558_v15  ;;  %10124 = vmatprep.mubr.msk.bf16.mxu1 %vm843_vm0, %v11138_v33 }
  0xaf   : > { %3080 = vmatprep.subr.bf16.mxu1 %v10566_v16 }
  0xb2   : > { %3081 = vmatpush1.bf16.msra.mxu1 %v10564_v18 }
  0xb3   : > { %3082 = vmatprep.subr.bf16.mxu1 %v10569_v17 }
  0xb4   : > { %9238 = vmatmul.mubr.msk.bf16.gmra.mrb[68].mxu0 %vm843_vm0, %v11107_v23  ;;  %v10573_v23 = vld [vmem:[%s17435_s4 + $0x40] ss:$8 sps:$4 sm:$0xff]  }
  0xb5   : > { %1330 = vmatprep.mubr.bf16.mxu0 %v17453_v2  ;;  %10125 = vmatmul.mubr.msk.bf16.gmra.mrb[68].mxu1 %vm843_vm0, %v11151_v37 }
  0xb6   : > { %3083 = vmatpush1.bf16.msra.mxu1 %v10567_v19  ;;  %10128 = vmatprep.mubr.msk.bf16.mxu1 %vm843_vm0, %v11161_v40 }
  0xb7   : > { %3084 = vmatprep.subr.bf16.mxu1 %v10572_v20 }
  0xba   : > { %3085 = vmatpush1.bf16.msra.mxu1 %v10570_v21 }
  0xbb   : > { %3086 = vmatprep.subr.bf16.mxu1 %v10575_v22 }
  0xbc   : > { %9239 = vmatmul.mubr.msk.bf16.gmra.mrb[72].mxu0 %vm843_vm0, %v11138_v33  ;;  %v10591_v33 = vld [vmem:[%s17435_s4 + $0x90] ss:$8 sps:$4 sm:$0xff]  }
  0xbd   : > { %1340 = vmatprep.mubr.bf16.mxu0 %v17453_v2  ;;  %10129 = vmatmul.mubr.msk.bf16.gmra.mrb[72].mxu1 %vm843_vm0, %v11171_v43 }
  0xbe   : > { %3087 = vmatpush1.bf16.msra.mxu1 %v10573_v23  ;;  %10132 = vmatprep.mubr.msk.bf16.mxu1 %vm843_vm0, %v11187_v48 }
  0xbf   : > { %3088 = vmatprep.subr.bf16.mxu1 %v10578_v24 }
  0xc2   : > { %3089 = vmatpush1.bf16.msra.mxu1 %v10576_v25 }
  0xc3   : > { %3090 = vmatprep.subr.bf16.mxu1 %v10581_v26  ;;  %v10612_v26 = vld [vmem:[%s17435_s4 + $0x100] ss:$8 sps:$4 sm:$0xff]  }
  0xc4   : > { %9240 = vmatmul.mubr.msk.bf16.gmra.mrb[76].mxu0 %vm843_vm0, %v11151_v37  ;;  %v10597_v37 = vld [vmem:[%s17435_s4 + $0xb0] ss:$8 sps:$4 sm:$0xff]  }
  0xc5   : > { %1350 = vmatprep.mubr.bf16.mxu0 %v17453_v2  ;;  %10133 = vmatmul.mubr.msk.bf16.gmra.mrb[76].mxu1 %vm843_vm0, %v11197_v51 }
  0xc6   : > { %3091 = vmatpush1.bf16.msra.mxu1 %v10579_v27  ;;  %10136 = vmatprep.mubr.msk.bf16.mxu1 %vm843_vm0, %v11207_v54 }
  0xc7   : > { %3092 = vmatprep.subr.bf16.mxu1 %v10584_v28 }
  0xca   : > { %3093 = vmatpush1.bf16.msra.mxu1 %v10582_v29 }
  0xcb   : > { %3094 = vmatprep.subr.bf16.mxu1 %v10587_v30 }
  0xcc   : > { %9241 = vmatmul.mubr.msk.bf16.gmra.mrb[80].mxu0 %vm843_vm0, %v11161_v40  ;;  %v10605_v40 = vld [vmem:[%s17435_s4 + $0xd4] ss:$8 sps:$4 sm:$0xff]  }
  0xcd   : > { %1360 = vmatprep.mubr.bf16.mxu0 %v17453_v2  ;;  %10137 = vmatmul.mubr.msk.bf16.gmra.mrb[80].mxu1 %vm843_vm0, %v11217_v57 }
  0xce   : > { %3095 = vmatpush1.bf16.msra.mxu1 %v10585_v31  ;;  %10140 = vmatprep.mubr.msk.bf16.mxu1 %vm843_vm0, %v11227_v60  ;;  %v10620_v31 = vld [vmem:[%s17435_s4 + $0x114] ss:$8 sps:$4 sm:$0xff]  }
  0xcf   : > { %3096 = vmatprep.subr.bf16.mxu1 %v10593_v32 }
  0xd2   : > { %3097 = vmatpush1.bf16.msra.mxu1 %v10591_v33 }
  0xd3   : > { %3098 = vmatprep.subr.bf16.mxu1 %v10596_v34 }
  0xd4   : > { %9242 = vmatmul.mubr.msk.bf16.gmra.mrb[84].mxu0 %vm843_vm0, %v11171_v43  ;;  %v10606_v43 = vld [vmem:[%s17435_s4 + $0xe0] ss:$8 sps:$4 sm:$0xff]  }
  0xd5   : > { %1370 = vmatprep.mubr.bf16.mxu0 %v17453_v2  ;;  %10141 = vmatmul.mubr.msk.bf16.gmra.mrb[84].mxu1 %vm843_vm0, %v11237_v63 }
  0xd6   : > { %3099 = vmatpush1.bf16.msra.mxu1 %v10594_v35  ;;  %10144 = vmatprep.mubr.msk.bf16.mxu1 %vm843_vm0, %v11247_v3 }
  0xd7   : > { %3100 = vmatprep.subr.bf16.mxu1 %v10599_v36 }
  0xda   : > { %3101 = vmatpush1.bf16.msra.mxu1 %v10597_v37 }
  0xdb   : > { %3102 = vmatprep.subr.bf16.mxu1 %v10602_v38 }
  0xdc   : > { %9243 = vmatmul.mubr.msk.bf16.gmra.mrb[88].mxu0 %vm843_vm0, %v11187_v48  ;;  %v11449_v48 = vshrl.u32 %v664_v47, 7  ;;  %v10623_v47 = vld [vmem:[%s17435_s4 + $0x124] ss:$8 sps:$4 sm:$0xff]  }
  0xdd   : > { %1380 = vmatprep.mubr.bf16.mxu0 %v17453_v2  ;;  %10145 = vmatmul.mubr.msk.bf16.gmra.mrb[88].mxu1 %vm843_vm0, %v11263_v8 }
  0xde   : > { %3103 = vmatpush1.bf16.msra.mxu1 %v10600_v39  ;;  %10148 = vmatprep.mubr.msk.bf16.mxu1 %vm843_vm0, %v11274_v11  ;;  %17609 = vst [vmem:[#allocation3_spill] sm:$0xff] %v11449_v48  ;;  %v11455_v49 = vsub.s32 0, %v11449_v48 }
  0xdf   : > { %3104 = vmatprep.subr.bf16.mxu1 %v10605_v40 }
  0xe0   : > { %17610 = vst [vmem:[#allocation4_spill] sm:$0xff] %v11455_v49  ;;  %v11467_v52 = vrot.slane %v11460_v50, %v11455_v49  ;;  %v10659_v49 = vld [vmem:[%s17435_s4 + $0x1e4] ss:$8 sps:$4 sm:$0xff]  }
  0xe2   : > { %3105 = vmatpush1.bf16.msra.mxu1 %v10603_v41 }
  0xe3   : > { %3106 = vmatprep.subr.bf16.mxu1 %v10608_v42  ;;  %v10618_v42 = vld [vmem:[%s17435_s4 + $0x110] ss:$8 sps:$4 sm:$0xff]  }
  0xe4   : > { %9244 = vmatmul.mubr.msk.bf16.gmra.mrb[92].mxu0 %vm843_vm0, %v11197_v51  ;;  %v11463_v51 = vsub.s32 1, %v11449_v48 }
  0xe5   : > { %1390 = vmatprep.mubr.bf16.mxu0 %v17453_v2  ;;  %10149 = vmatmul.mubr.msk.bf16.gmra.mrb[92].mxu1 %vm843_vm0, %v11284_v14 }
  0xe6   : > { %3107 = vmatpush1.bf16.msra.mxu1 %v10606_v43  ;;  %17611 = vst [vmem:[#allocation5_spill] sm:$0xff] %v11463_v51  ;;  %v11473_v53 = vrot.slane %v11460_v50, %v11463_v51 }
  0xe7   : > { %3108 = vmatprep.subr.bf16.mxu1 %v10611_v44 }
  0xea   : > { %3109 = vmatpush1.bf16.msra.mxu1 %v10609_v45 }
  0xeb   : > { %3271 = vmatprep.subr.bf16.mxu1 %v10614_v46 }
  0xec   : > { %9245 = vmatmul.mubr.msk.bf16.gmra.mrb[96].mxu0 %vm843_vm0, %v11207_v54  ;;  %v17452_v54 = vsub.s32 2, %v11449_v48 }
  0xed   : > { %1400 = vmatprep.mubr.bf16.mxu0 %v17453_v2 }
  0xee   : > { %v11487_v4 = vrot.slane %v11460_v50, %v17452_v54 }
  0xf4   : > { %9246 = vmatmul.mubr.msk.bf16.gmra.mrb[100].mxu0 %vm843_vm0, %v11217_v57  ;;  %v17451_v57 = vsub.s32 3, %v11449_v48 }
  0xf5   : > { %1410 = vmatprep.mubr.bf16.mxu0 %v17453_v2 }
  0xf6   : > { %v11494_v7 = vrot.slane %v11460_v50, %v17451_v57 }
  0xfc   : > { %9247 = vmatmul.mubr.msk.bf16.gmra.mrb[104].mxu0 %vm843_vm0, %v11227_v60 }
  0xfd   : > { %1420 = vmatprep.mubr.bf16.mxu0 %v17453_v2 }
  0xff   : > { %v926_v55 = vpop.f32.mrb[0].mxu0 }
 0x100   : > { %v927_v58 = vadd.f32 %v926_v55, %v11467_v52  ;;  %v928_v59 = vpop.f32.mrb[1].mxu0  ;;  %v1119_v12 = vpop.f32.mrb[0].mxu1 }
 0x101   : > { %v929_v61 = vadd.f32 %v928_v59, %v11473_v53  ;;  %v930_v62 = vpop.f32.mrb[2].mxu0  ;;  %v1120_v16 = vadd.f32 %v1119_v12, %v11487_v4  ;;  %v1121_v18 = vpop.f32.mrb[1].mxu1 }
 0x102   : > { %v1857_v60 = vmul.f32 %v11477_v56, %v927_v58  ;;  %v931_v0 = vadd.f32 %v930_v62, %v11467_v52  ;;  %v932_v1 = vpop.f32.mrb[3].mxu0  ;;  %vm1632_vm1 = vcmp.gt.f32.partialorder %v927_v58, 0.0  ;;  %v11503_v22 = vadd.f32 %v1121_v18, %v11494_v7  ;;  %v1123_v23 = vpop.f32.mrb[2].mxu1 }
 0x103   : > { %v1858_v5 = vmul.f32 %v11477_v56, %v929_v61  ;;  %v933_v6 = vadd.f32 %v932_v1, %v11473_v53  ;;  %vm1633_vm3 = vcmp.gt.f32.partialorder %v929_v61, 0.0  ;;  %vm1634_vm5 = vcmp.gt.f32.partialorder %v1120_v16, 0.0  ;;  %v1125_v28 = vpop.f32.mrb[3].mxu1 }
 0x104   : > { %vm1639_vm2 = vcmp.gt.f32.partialorder %v931_v0, 0.0  ;;  %v1864_v9 = vmul.f32 %v11477_v56, %v931_v0  ;;  %9248 = vmatmul.mubr.msk.bf16.gmra.mrb[108].mxu0 %vm843_vm0, %v11237_v63  ;;  %v2081_v13 = vsel %vm1632_vm1, %v927_v58, %v1857_v60  ;;  %v1859_v27 = vmul.f32 %v11477_v56, %v1120_v16 }
 0x105   : > { %v1865_v10 = vmul.f32 %v11477_v56, %v933_v6  ;;  %vm1640_vm4 = vcmp.gt.f32.partialorder %v933_v6, 0.0  ;;  %1430 = vmatprep.mubr.bf16.mxu0 %v17453_v2  ;;  %v2082_v20 = vsel %vm1633_vm3, %v929_v61, %v1858_v5  ;;  %v11516_v32 = vmul.f32 %v11477_v56, %v11503_v22 }
 0x106   : > { %v2088_v15 = vsel %vm1639_vm2, %v931_v0, %v1864_v9  ;;  %v1124_v33 = vadd.f32 %v1123_v23, %v11487_v4  ;;  %v11520_v34 = vadd.f32 %v1125_v28, %v11494_v7  ;;  %v11524_v38 = vsel %vm1634_vm5, %v1120_v16, %v1859_v27  ;;  %v10626_v23 = vld [vmem:[%s17435_s4 + $0x134] ss:$8 sps:$4 sm:$0xff]  }
 0x107   : > { %v2406_v17 = vpack.c.bf16 %v2088_v15, %v2081_v13  ;;  %v936_v19 = vpop.f32.mrb[4].mxu0  ;;  %v2089_v21 = vsel %vm1640_vm4, %v933_v6, %v1865_v10  ;;  %17613 = vst [vmem:[#allocation7_spill] sm:$0xff] %v11524_v38  ;;  %vm1635_vm11 = vcmp.gt.f32.partialorder %v11503_v22, 0.0  ;;  %v10621_v15 = vld [vmem:[%s17435_s4 + $0x120] ss:$8 sps:$4 sm:$0xff]  }
 0x108   : > { %v937_v63 = vadd.f32 %v936_v19, %v11467_v52  ;;  %v938_v24 = vpop.f32.mrb[5].mxu0  ;;  %v2407_v25 = vpack.c.bf16 %v2089_v21, %v2082_v20  ;;  %vm1641_vm8 = vcmp.gt.f32.partialorder %v1124_v33, 0.0  ;;  %v1866_v44 = vmul.f32 %v11477_v56, %v1124_v33  ;;  %v1129_v58 = vpop.f32.mrb[4].mxu1 }
 0x109   : > { %v939_v29 = vadd.f32 %v938_v24, %v11473_v53  ;;  %v940_v30 = vpop.f32.mrb[6].mxu0  ;;  %v1867_v55 = vmul.f32 %v11477_v56, %v11520_v34  ;;  %v1131_v62 = vpop.f32.mrb[5].mxu1  ;;  %vm1642_vm12 = vcmp.gt.f32.partialorder %v11520_v34, 0.0 }
 0x10a   : > { %v1871_v35 = vmul.f32 %v11477_v56, %v937_v63  ;;  %v941_v36 = vadd.f32 %v940_v30, %v11467_v52  ;;  %v942_v37 = vpop.f32.mrb[7].mxu0  ;;  %3110 = vmatprep.mubr.bf16.mxu1 %v2407_v25  ;;  %vm1646_vm6 = vcmp.gt.f32.partialorder %v937_v63, 0.0  ;;  %v11543_v61 = vsel %vm1641_vm8, %v1124_v33, %v1866_v44  ;;  %v1133_v9 = vpop.f32.mrb[6].mxu1 }
 0x10b   : > { %v1872_v39 = vmul.f32 %v11477_v56, %v939_v29  ;;  %v943_v40 = vadd.f32 %v942_v37, %v11473_v53  ;;  %3111 = vmatmul.mubr.bf16.vlgmr.msra.gmra.mrb[96].mxu1 %v2406_v17  ;;  %vm1647_vm7 = vcmp.gt.f32.partialorder %v939_v29, 0.0  ;;  %17614 = vst [vmem:[#allocation8_spill] sm:$0xff] %v11543_v61  ;;  %v11552_v6 = vadd.f32 %v1131_v62, %v11494_v7  ;;  %v1135_v17 = vpop.f32.mrb[7].mxu1 }
 0x10c   : > { %v1878_v41 = vmul.f32 %v11477_v56, %v941_v36  ;;  %3272 = vmatpush1.bf16.msra.mxu1 %v10612_v26  ;;  %vm1653_vm9 = vcmp.gt.f32.partialorder %v941_v36, 0.0  ;;  %v2095_v43 = vsel %vm1646_vm6, %v937_v63, %v1871_v35  ;;  %9249 = vmatmul.mubr.msk.bf16.gmra.mrb[112].mxu0 %vm843_vm0, %v11247_v3  ;;  %v11546_v3 = vadd.f32 %v1129_v58, %v11487_v4  ;;  %v10624_v35 = vld [vmem:[%s17435_s4 + $0x130] ss:$8 sps:$4 sm:$0xff]  }
 0x10d   : > { %v1879_v45 = vmul.f32 %v11477_v56, %v943_v40  ;;  %vm1654_vm10 = vcmp.gt.f32.partialorder %v943_v40, 0.0  ;;  %v2096_v46 = vsel %vm1647_vm7, %v939_v29, %v1872_v39  ;;  %3273 = vmatprep.subr.bf16.mxu1 %v10620_v31  ;;  %1440 = vmatprep.mubr.bf16.mxu0 %v17453_v2  ;;  %v11563_v18 = vadd.f32 %v1133_v9, %v11487_v4 }
 0x10e   : > { %v2102_v59 = vsel %vm1653_vm9, %v941_v36, %v1878_v41  ;;  %v11560_v16 = vmul.f32 %v11477_v56, %v11546_v3  ;;  %v1874_v21 = vmul.f32 %v11477_v56, %v11552_v6  ;;  %v11572_v63 = vadd.f32 %v1135_v17, %v11494_v7  ;;  %v10629_v41 = vld [vmem:[%s17435_s4 + $0x144] ss:$8 sps:$4 sm:$0xff]  }
 0x10f   : > { %v946_v60 = vpop.f32.mrb[8].mxu0  ;;  %v2103_v0 = vsel %vm1654_vm10, %v943_v40, %v1879_v45  ;;  %v2413_v1 = vpack.c.bf16 %v2102_v59, %v2095_v43  ;;  %v11579_v27 = vmul.f32 %v11477_v56, %v11563_v18  ;;  %v11593_v36 = vsel %vm1635_vm11, %v11503_v22, %v11516_v32 }
 0x110   : > { %v947_v10 = vadd.f32 %v946_v60, %v11467_v52  ;;  %v948_v12 = vpop.f32.mrb[9].mxu0  ;;  %v2414_v13 = vpack.c.bf16 %v2103_v0, %v2096_v46  ;;  %3274 = vmatpush1.bf16.msra.mxu1 %v10618_v42  ;;  %v1881_v30 = vmul.f32 %v11477_v56, %v11572_v63  ;;  %v1139_v40 = vpop.f32.mrb[8].mxu1  ;;  %v11604_v42 = vsel %vm1642_vm12, %v11520_v34, %v1867_v55  ;;  %v10627_v60 = vld [vmem:[%s17435_s4 + $0x140] ss:$8 sps:$4 sm:$0xff]  }
 0x111   : > { %v949_v19 = vadd.f32 %v948_v12, %v11473_v53  ;;  %v950_v20 = vpop.f32.mrb[10].mxu0  ;;  %3275 = vmatprep.subr.bf16.mxu1 %v10623_v47  ;;  %v1141_v32 = vpop.f32.mrb[9].mxu1  ;;  %vm1649_vm2 = vcmp.gt.f32.partialorder %v11552_v6, 0.0  ;;  %vm1656_vm3 = vcmp.gt.f32.partialorder %v11572_v63, 0.0  ;;  %vm1648_vm8 = vcmp.gt.f32.partialorder %v11546_v3, 0.0 }
 0x112   : > { %v1885_v24 = vmul.f32 %v11477_v56, %v947_v10  ;;  %v951_v25 = vadd.f32 %v950_v20, %v11467_v52  ;;  %v952_v26 = vpop.f32.mrb[11].mxu0  ;;  %3120 = vmatprep.mubr.bf16.mxu1 %v2414_v13  ;;  %vm1660_vm13 = vcmp.gt.f32.partialorder %v947_v10, 0.0  ;;  %v11614_v47 = vadd.f32 %v1141_v32, %v11494_v7  ;;  %v1143_v34 = vpop.f32.mrb[10].mxu1 }
 0x113   : > { %v1886_v28 = vmul.f32 %v11477_v56, %v949_v19  ;;  %v953_v29 = vadd.f32 %v952_v26, %v11473_v53  ;;  %3121 = vmatmul.mubr.bf16.gmra.mrb[100].mxu1 %v2413_v1  ;;  %vm1661_vm14 = vcmp.gt.f32.partialorder %v949_v19, 0.0  ;;  %v11626_v0 = vadd.f32 %v1143_v34, %v11487_v4  ;;  %v1145_v1 = vpop.f32.mrb[11].mxu1 }
 0x114   : > { %v1892_v31 = vmul.f32 %v11477_v56, %v951_v25  ;;  %vm1667_vm15 = vcmp.gt.f32.partialorder %v951_v25, 0.0  ;;  %v2109_v33 = vsel %vm1660_vm13, %v947_v10, %v1885_v24  ;;  %3276 = vmatpush1.bf16.msra.mxu1 %v10621_v15  ;;  %9250 = vmatmul.mubr.msk.bf16.gmra.mrb[116].mxu0 %vm843_vm0, %v11263_v8  ;;  %v11608_v8 = vadd.f32 %v1139_v40, %v11487_v4  ;;  %v10632_v15 = vld [vmem:[%s17435_s4 + $0x154] ss:$8 sps:$4 sm:$0xff]  }
 0x115   : > { %v1893_v37 = vmul.f32 %v11477_v56, %v953_v29  ;;  %vm1668_vm1 = vcmp.gt.f32.partialorder %v953_v29, 0.0  ;;  %v2110_v39 = vsel %vm1661_vm14, %v949_v19, %v1886_v28  ;;  %3277 = vmatprep.subr.bf16.mxu1 %v10626_v23  ;;  %1450 = vmatprep.mubr.bf16.mxu0 %v17453_v2  ;;  %v11631_v12 = vmul.f32 %v11477_v56, %v11614_v47 }
 0x116   : > { %v2116_v22 = vsel %vm1667_vm15, %v951_v25, %v1892_v31  ;;  %v11620_v62 = vmul.f32 %v11477_v56, %v11608_v8  ;;  %v11634_v13 = vadd.f32 %v1145_v1, %v11494_v7  ;;  %v11642_v17 = vsel %vm1649_vm2, %v11552_v6, %v1874_v21 }
 0x117   : > { %v956_v44 = vpop.f32.mrb[12].mxu0  ;;  %v2117_v45 = vsel %vm1668_vm1, %v953_v29, %v1893_v37  ;;  %v2420_v46 = vpack.c.bf16 %v2116_v22, %v2109_v33  ;;  %17615 = vst [vmem:[#allocation9_spill] sm:$0xff] %v11642_v17  ;;  %v11648_v24 = vmul.f32 %v11477_v56, %v11626_v0  ;;  %v10630_v29 = vld [vmem:[%s17435_s4 + $0x150] ss:$8 sps:$4 sm:$0xff]   ;;  %v11663_v31 = vsel %vm1656_vm3, %v11572_v63, %v1881_v30 }
 0x118   : > { %v957_v55 = vadd.f32 %v956_v44, %v11467_v52  ;;  %v958_v58 = vpop.f32.mrb[13].mxu0  ;;  %v2421_v59 = vpack.c.bf16 %v2117_v45, %v2110_v39  ;;  %3278 = vmatpush1.bf16.msra.mxu1 %v10624_v35  ;;  %v11654_v6 = vmul.f32 %v11477_v56, %v11634_v13  ;;  %17616 = vst [vmem:[#allocation10_spill] sm:$0xff] %v11663_v31  ;;  %v1149_v37 = vpop.f32.mrb[12].mxu1  ;;  %v10635_v39 = vld [vmem:[%s17435_s4 + $0x164] ss:$8 sps:$4 sm:$0xff]   ;;  %vm1655_vm9 = vcmp.gt.f32.partialorder %v11563_v18, 0.0 }
 0x119   : > { %v959_v9 = vadd.f32 %v958_v58, %v11473_v53  ;;  %v960_v10 = vpop.f32.mrb[14].mxu0  ;;  %3279 = vmatprep.subr.bf16.mxu1 %v10629_v41  ;;  %v11675_v30 = vadd.f32 %v1149_v37, %v11487_v4  ;;  %vm1663_vm14 = vcmp.gt.f32.partialorder %v11614_v47, 0.0  ;;  %vm1670_vm15 = vcmp.gt.f32.partialorder %v11634_v13, 0.0  ;;  %v10653_v37 = vld [vmem:[%s17435_s4 + $0x1c4] ss:$8 sps:$4 sm:$0xff]  }
 0x11a   : > { %v1899_v19 = vmul.f32 %v11477_v56, %v957_v55  ;;  %v961_v20 = vadd.f32 %v960_v10, %v11467_v52  ;;  %v962_v23 = vpop.f32.mrb[15].mxu0  ;;  %3130 = vmatprep.mubr.bf16.mxu1 %v2421_v59  ;;  %vm1674_vm4 = vcmp.gt.f32.partialorder %v957_v55, 0.0 }
 0x11b   : > { %v1900_v25 = vmul.f32 %v11477_v56, %v959_v9  ;;  %v963_v26 = vadd.f32 %v962_v23, %v11473_v53  ;;  %3131 = vmatmul.mubr.bf16.gmra.mrb[104].mxu1 %v2420_v46  ;;  %vm1675_vm5 = vcmp.gt.f32.partialorder %v959_v9, 0.0  ;;  %v11684_v46 = vsel %vm1648_vm8, %v11546_v3, %v11560_v16 }
 0x11c   : > { %v1906_v21 = vmul.f32 %v11477_v56, %v961_v20  ;;  %vm1681_vm6 = vcmp.gt.f32.partialorder %v961_v20, 0.0  ;;  %v2123_v28 = vsel %vm1674_vm4, %v957_v55, %v1899_v19  ;;  %3280 = vmatpush1.bf16.msra.mxu1 %v10627_v60  ;;  %9251 = vmatmul.mubr.msk.bf16.gmra.mrb[120].mxu0 %vm843_vm0, %v11274_v11  ;;  %v1151_v11 = vpop.f32.mrb[13].mxu1  ;;  %17617 = vst [vmem:[#allocation11_spill] sm:$0xff] %v11684_v46  ;;  %v10638_v19 = vld [vmem:[%s17435_s4 + $0x174] ss:$8 sps:$4 sm:$0xff]  }
 0x11d   : > { %v1907_v33 = vmul.f32 %v11477_v56, %v963_v26  ;;  %vm1682_vm7 = vcmp.gt.f32.partialorder %v963_v26, 0.0  ;;  %v2124_v35 = vsel %vm1675_vm5, %v959_v9, %v1900_v25  ;;  %3281 = vmatprep.subr.bf16.mxu1 %v10632_v15  ;;  %1460 = vmatprep.mubr.bf16.mxu0 %v17453_v2  ;;  %v11680_v44 = vadd.f32 %v1151_v11, %v11494_v7  ;;  %v1153_v45 = vpop.f32.mrb[14].mxu1  ;;  %v10633_v9 = vld [vmem:[%s17435_s4 + $0x160] ss:$8 sps:$4 sm:$0xff]  }
 0x11e   : > { %v2130_v63 = vsel %vm1681_vm6, %v961_v20, %v1906_v21  ;;  %v11689_v59 = vmul.f32 %v11477_v56, %v11675_v30  ;;  %v11692_v60 = vadd.f32 %v1153_v45, %v11487_v4  ;;  %v1155_v1 = vpop.f32.mrb[15].mxu1  ;;  %v11712_v20 = vsel %vm1655_vm9, %v11563_v18, %v11579_v27 }
 0x11f   : > { %v966_v41 = vpop.f32.mrb[16].mxu0  ;;  %v2131_v22 = vsel %vm1682_vm7, %v963_v26, %v1907_v33  ;;  %v2427_v32 = vpack.c.bf16 %v2130_v63, %v2123_v28  ;;  %v11700_v10 = vmul.f32 %v11477_v56, %v11680_v44  ;;  %v11703_v15 = vadd.f32 %v1155_v1, %v11494_v7  ;;  %17618 = vst [vmem:[#allocation12_spill] sm:$0xff] %v11712_v20 }
 0x120   : > { %v967_v34 = vadd.f32 %v966_v41, %v11467_v52  ;;  %v968_v55 = vpop.f32.mrb[17].mxu0  ;;  %v2428_v58 = vpack.c.bf16 %v2131_v22, %v2124_v35  ;;  %3282 = vmatpush1.bf16.msra.mxu1 %v10630_v29  ;;  %v11718_v21 = vmul.f32 %v11477_v56, %v11692_v60  ;;  %v10636_v35 = vld [vmem:[%s17435_s4 + $0x170] ss:$8 sps:$4 sm:$0xff]   ;;  %v1159_v11 = vpop.f32.mrb[16].mxu1  ;;  %v10641_v41 = vld [vmem:[%s17435_s4 + $0x184] ss:$8 sps:$4 sm:$0xff]  }
 0x121   : > { %v969_v3 = vadd.f32 %v968_v55, %v11473_v53  ;;  %v970_v16 = vpop.f32.mrb[18].mxu0  ;;  %3283 = vmatprep.subr.bf16.mxu1 %v10635_v39  ;;  %v11724_v18 = vmul.f32 %v11477_v56, %v11703_v15  ;;  %v1161_v45 = vpop.f32.mrb[17].mxu1  ;;  %vm1662_vm5 = vcmp.gt.f32.partialorder %v11608_v8, 0.0  ;;  %vm1669_vm6 = vcmp.gt.f32.partialorder %v11626_v0, 0.0 }
 0x122   : > { %v1913_v23 = vmul.f32 %v11477_v56, %v967_v34  ;;  %v971_v25 = vadd.f32 %v970_v16, %v11467_v52  ;;  %v972_v26 = vpop.f32.mrb[19].mxu0  ;;  %3140 = vmatprep.mubr.bf16.mxu1 %v2428_v58  ;;  %vm1688_vm10 = vcmp.gt.f32.partialorder %v967_v34, 0.0  ;;  %v11748_v1 = vadd.f32 %v1161_v45, %v11494_v7 }
 0x123   : > { %v1914_v28 = vmul.f32 %v11477_v56, %v969_v3  ;;  %v973_v29 = vadd.f32 %v972_v26, %v11473_v53  ;;  %3141 = vmatmul.mubr.bf16.gmra.mrb[108].mxu1 %v2427_v32  ;;  %vm1689_vm11 = vcmp.gt.f32.partialorder %v969_v3, 0.0  ;;  %v11740_v32 = vadd.f32 %v1159_v11, %v11487_v4  ;;  %v10639_v26 = vld [vmem:[%s17435_s4 + $0x180] ss:$8 sps:$4 sm:$0xff]  }
 0x124   : > { %v1920_v27 = vmul.f32 %v11477_v56, %v971_v25  ;;  %vm1695_vm12 = vcmp.gt.f32.partialorder %v971_v25, 0.0  ;;  %v2137_v33 = vsel %vm1688_vm10, %v967_v34, %v1913_v23  ;;  %3284 = vmatpush1.bf16.msra.mxu1 %v10633_v9  ;;  %9252 = vmatmul.mubr.msk.bf16.gmra.mrb[124].mxu0 %vm843_vm0, %v11284_v14  ;;  %v11745_v14 = vsel %vm1663_vm14, %v11614_v47, %v11631_v12  ;;  %v1163_v9 = vpop.f32.mrb[18].mxu1 }
 0x125   : > { %v1921_v39 = vmul.f32 %v11477_v56, %v973_v29  ;;  %vm1696_vm13 = vcmp.gt.f32.partialorder %v973_v29, 0.0  ;;  %v2138_v63 = vsel %vm1689_vm11, %v969_v3, %v1914_v28  ;;  %3285 = vmatprep.subr.bf16.mxu1 %v10638_v19  ;;  %17619 = vst [vmem:[#allocation13_spill] sm:$0xff] %v11745_v14  ;;  %v11752_v3 = vsel %vm1670_vm15, %v11634_v13, %v11654_v6  ;;  %v1165_v12 = vpop.f32.mrb[19].mxu1 }
 0x126   : > { %v2144_v22 = vsel %vm1695_vm12, %v971_v25, %v1920_v27  ;;  %17620 = vst [vmem:[#allocation14_spill] sm:$0xff] %v11752_v3  ;;  %v11757_v25 = vmul.f32 %v11477_v56, %v11740_v32  ;;  %v11760_v47 = vadd.f32 %v1163_v9, %v11487_v4  ;;  %v11768_v28 = vmul.f32 %v11477_v56, %v11748_v1  ;;  %v10644_v27 = vld [vmem:[%s17435_s4 + $0x194] ss:$8 sps:$4 sm:$0xff]   ;;  %v10642_v9 = vld [vmem:[%s17435_s4 + $0x190] ss:$8 sps:$4 sm:$0xff]  }
 0x127   : > { %v976_v34 = vpop.f32.mrb[20].mxu0  ;;  %v2145_v55 = vsel %vm1696_vm13, %v973_v29, %v1921_v39  ;;  %v2434_v58 = vpack.c.bf16 %v2144_v22, %v2137_v33  ;;  %v11771_v29 = vadd.f32 %v1165_v12, %v11494_v7  ;;  %vm1677_vm11 = vcmp.gt.f32.partialorder %v11680_v44, 0.0 }
 0x128   : > { %v977_v16 = vadd.f32 %v976_v34, %v11467_v52  ;;  %v978_v19 = vpop.f32.mrb[21].mxu0  ;;  %v2435_v23 = vpack.c.bf16 %v2145_v55, %v2138_v63  ;;  %3286 = vmatpush1.bf16.msra.mxu1 %v10636_v35  ;;  %v11782_v11 = vmul.f32 %v11477_v56, %v11760_v47  ;;  %v1169_v12 = vpop.f32.mrb[20].mxu1  ;;  %vm1684_vm12 = vcmp.gt.f32.partialorder %v11703_v15, 0.0 }
 0x129   : > { %v979_v13 = vadd.f32 %v978_v19, %v11473_v53  ;;  %v980_v6 = vpop.f32.mrb[22].mxu0  ;;  %3287 = vmatprep.subr.bf16.mxu1 %v10641_v41  ;;  %v11788_v45 = vmul.f32 %v11477_v56, %v11771_v29  ;;  %v17455_v19 = vsub.s32 6, %v11449_v48 }
 0x12a   : > { %v1927_v35 = vmul.f32 %v11477_v56, %v977_v16  ;;  %v981_v39 = vadd.f32 %v980_v6, %v11467_v52  ;;  %v982_v63 = vpop.f32.mrb[23].mxu0  ;;  %3150 = vmatprep.mubr.bf16.mxu1 %v2435_v23  ;;  %vm1702_vm1 = vcmp.gt.f32.partialorder %v977_v16, 0.0  ;;  %v10647_v6 = vld [vmem:[%s17435_s4 + $0x1a4] ss:$8 sps:$4 sm:$0xff]  }
 0x12b   : > { %v1928_v41 = vmul.f32 %v11477_v56, %v979_v13  ;;  %v983_v22 = vadd.f32 %v982_v63, %v11473_v53  ;;  %3151 = vmatmul.mubr.bf16.gmra.mrb[112].mxu1 %v2434_v58  ;;  %vm1703_vm2 = vcmp.gt.f32.partialorder %v979_v13, 0.0  ;;  %v11806_v63 = vrot.slane %v11460_v50, %v17455_v19 }
 0x12c   : > { %v1934_v34 = vmul.f32 %v11477_v56, %v981_v39  ;;  %vm1709_vm3 = vcmp.gt.f32.partialorder %v981_v39, 0.0  ;;  %v2151_v55 = vsel %vm1702_vm1, %v977_v16, %v1927_v35  ;;  %3288 = vmatpush1.bf16.msra.mxu1 %v10639_v26  ;;  %v11801_v26 = vadd.f32 %v1169_v12, %v11487_v4  ;;  %v1171_v35 = vpop.f32.mrb[21].mxu1 }
 0x12d   : > { %v1935_v23 = vmul.f32 %v11477_v56, %v983_v22  ;;  %vm1710_vm4 = vcmp.gt.f32.partialorder %v983_v22, 0.0  ;;  %v2152_v58 = vsel %vm1703_vm2, %v979_v13, %v1928_v41  ;;  %3289 = vmatprep.subr.bf16.mxu1 %v10644_v27  ;;  %v11810_v57 = vadd.f32 %v1171_v35, %v11494_v7  ;;  %v1173_v54 = vpop.f32.mrb[22].mxu1 }
 0x12e   : > { %v2158_v16 = vsel %vm1709_vm3, %v981_v39, %v1934_v34  ;;  %v11814_v39 = vsel %vm1662_vm5, %v11608_v8, %v11620_v62  ;;  %v11819_v50 = vmul.f32 %v11477_v56, %v11801_v26  ;;  %v11822_v19 = vadd.f32 %v1173_v54, %v11487_v4  ;;  %v10650_v54 = vld [vmem:[%s17435_s4 + $0x1b4] ss:$8 sps:$4 sm:$0xff]  }
 0x12f   : > { %v986_v13 = vpop.f32.mrb[24].mxu0  ;;  %v2159_v27 = vsel %vm1710_vm4, %v983_v22, %v1935_v23  ;;  %v2441_v41 = vpack.c.bf16 %v2158_v16, %v2151_v55  ;;  %17621 = vst [vmem:[#allocation15_spill] sm:$0xff] %v11814_v39  ;;  %v1175_v22 = vpop.f32.mrb[23].mxu1  ;;  %v10645_v55 = vld [vmem:[%s17435_s4 + $0x1a0] ss:$8 sps:$4 sm:$0xff]   ;;  %v11830_v23 = vmul.f32 %v11477_v56, %v11810_v57  ;;  %vm1676_vm1 = vcmp.gt.f32.partialorder %v11675_v30, 0.0 }
 0x130   : > { %v987_v34 = vadd.f32 %v986_v13, %v11467_v52  ;;  %v988_v12 = vpop.f32.mrb[25].mxu0  ;;  %v2442_v2 = vpack.c.bf16 %v2159_v27, %v2152_v58  ;;  %3290 = vmatpush1.bf16.msra.mxu1 %v10642_v9  ;;  %v11833_v58 = vadd.f32 %v1175_v22, %v11494_v7  ;;  %v11842_v9 = vsel %vm1669_vm6, %v11626_v0, %v11648_v24  ;;  %v1179_v33 = vpop.f32.mrb[24].mxu1 }
 0x131   : > { %v989_v8 = vadd.f32 %v988_v12, %v11473_v53  ;;  %v990_v62 = vpop.f32.mrb[26].mxu0  ;;  %3291 = vmatprep.subr.bf16.mxu1 %v10647_v6  ;;  %17622 = vst [vmem:[#allocation16_spill] sm:$0xff] %v11842_v9  ;;  %v11848_v6 = vmul.f32 %v11477_v56, %v11822_v19  ;;  %vm1683_vm3 = vcmp.gt.f32.partialorder %v11692_v60, 0.0  ;;  %vm1691_vm4 = vcmp.gt.f32.partialorder %v11748_v1, 0.0 }
 0x132   : > { %v1941_v16 = vmul.f32 %v11477_v56, %v987_v34  ;;  %v991_v35 = vadd.f32 %v990_v62, %v11467_v52  ;;  %v992_v13 = vpop.f32.mrb[27].mxu0  ;;  %3160 = vmatprep.mubr.bf16.mxu1 %v2442_v2  ;;  %vm1716_vm7 = vcmp.gt.f32.partialorder %v987_v34, 0.0  ;;  %v11854_v0 = vmul.f32 %v11477_v56, %v11833_v58  ;;  %v10648_v2 = vld [vmem:[%s17435_s4 + $0x1b0] ss:$8 sps:$4 sm:$0xff]  }
 0x133   : > { %v1942_v27 = vmul.f32 %v11477_v56, %v989_v8  ;;  %v993_v12 = vadd.f32 %v992_v13, %v11473_v53  ;;  %3161 = vmatmul.mubr.bf16.gmra.mrb[116].mxu1 %v2441_v41  ;;  %vm1717_vm8 = vcmp.gt.f32.partialorder %v989_v8, 0.0  ;;  %v11873_v62 = vsel %vm1677_vm11, %v11680_v44, %v11700_v10 }
 0x134   : > { %v1948_v24 = vmul.f32 %v11477_v56, %v991_v35  ;;  %vm1723_vm9 = vcmp.gt.f32.partialorder %v991_v35, 0.0  ;;  %v2165_v22 = vsel %vm1716_vm7, %v987_v34, %v1941_v16  ;;  %3292 = vmatpush1.bf16.msra.mxu1 %v10645_v55  ;;  %v11868_v55 = vadd.f32 %v1179_v33, %v11487_v4  ;;  %v1181_v16 = vpop.f32.mrb[25].mxu1  ;;  %17623 = vst [vmem:[#allocation17_spill] sm:$0xff] %v11873_v62 }
 0x135   : > { %v1949_v13 = vmul.f32 %v11477_v56, %v993_v12  ;;  %vm1724_vm10 = vcmp.gt.f32.partialorder %v993_v12, 0.0  ;;  %v2166_v41 = vsel %vm1717_vm8, %v989_v8, %v1942_v27  ;;  %3293 = vmatprep.subr.bf16.mxu1 %v10650_v54  ;;  %v11876_v40 = vadd.f32 %v1181_v16, %v11494_v7  ;;  %v1183_v5 = vpop.f32.mrb[26].mxu1 }
 0x136   : > { %v2172_v34 = vsel %vm1723_vm9, %v991_v35, %v1948_v24  ;;  %v11880_v35 = vsel %vm1684_vm12, %v11703_v15, %v11724_v18  ;;  %v11885_v51 = vmul.f32 %v11477_v56, %v11868_v55  ;;  %v11888_v44 = vadd.f32 %v1183_v5, %v11487_v4  ;;  %v1185_v10 = vpop.f32.mrb[27].mxu1  ;;  %v10656_v5 = vld [vmem:[%s17435_s4 + $0x1d4] ss:$8 sps:$4 sm:$0xff]  }
 0x137   : > { %v996_v8 = vpop.f32.mrb[28].mxu0  ;;  %v2173_v27 = vsel %vm1724_vm10, %v993_v12, %v1949_v13  ;;  %v2448_v54 = vpack.c.bf16 %v2172_v34, %v2165_v22  ;;  %17624 = vst [vmem:[#allocation18_spill] sm:$0xff] %v11880_v35  ;;  %v10651_v12 = vld [vmem:[%s17435_s4 + $0x1c0] ss:$8 sps:$4 sm:$0xff]   ;;  %v11896_v22 = vmul.f32 %v11477_v56, %v11876_v40  ;;  %v11899_v13 = vadd.f32 %v1185_v10, %v11494_v7 }
 0x138   : > { %v997_v33 = vadd.f32 %v996_v8, %v11467_v52  ;;  %v998_v24 = vpop.f32.mrb[29].mxu0  ;;  %v2449_v43 = vpack.c.bf16 %v2173_v27, %v2166_v41  ;;  %3294 = vmatpush1.bf16.msra.mxu1 %v10648_v2  ;;  %v11910_v8 = vmul.f32 %v11477_v56, %v11888_v44  ;;  %v11933_v62 = vsel %vm1676_vm1, %v11675_v30, %v11689_v59 }
 0x139   : > { %v999_v15 = vadd.f32 %v998_v24, %v11473_v53  ;;  %v1000_v18 = vpop.f32.mrb[30].mxu0  ;;  %3295 = vmatprep.subr.bf16.mxu1 %v10653_v37  ;;  %v11916_v24 = vmul.f32 %v11477_v56, %v11899_v13  ;;  %17625 = vst [vmem:[#allocation19_spill] sm:$0xff] %v11933_v62  ;;  %vm1698_vm8 = vcmp.gt.f32.partialorder %v11771_v29, 0.0  ;;  %v10665_v62 = vld [vmem:[%s17435_s4 + $0x204] ss:$8 sps:$4 sm:$0xff]   ;;  %vm1690_vm10 = vcmp.gt.f32.partialorder %v11740_v32, 0.0 }
 0x13a   : > { %v1955_v41 = vmul.f32 %v11477_v56, %v997_v33  ;;  %v1001_v34 = vadd.f32 %v1000_v18, %v11467_v52  ;;  %v1002_v16 = vpop.f32.mrb[31].mxu0  ;;  %3170 = vmatprep.mubr.bf16.mxu1 %v2449_v43  ;;  %vm1730_vm13 = vcmp.gt.f32.partialorder %v997_v33, 0.0  ;;  %v10654_v43 = vld [vmem:[%s17435_s4 + $0x1d0] ss:$8 sps:$4 sm:$0xff]   ;;  %vm1697_vm11 = vcmp.gt.f32.partialorder %v11760_v47, 0.0 }
 0x13b   : > { %v1956_v37 = vmul.f32 %v11477_v56, %v999_v15  ;;  %v1003_v27 = vadd.f32 %v1002_v16, %v11473_v53  ;;  %3171 = vmatmul.mubr.bf16.gmra.mrb[120].mxu1 %v2448_v54  ;;  %vm1731_vm14 = vcmp.gt.f32.partialorder %v999_v15, 0.0  ;;  %v1189_v16 = vpop.f32.mrb[28].mxu1  ;;  %vm1705_vm1 = vcmp.gt.f32.partialorder %v11810_v57, 0.0 }
 0x13c   : > { %v1962_v10 = vmul.f32 %v11477_v56, %v1001_v34  ;;  %vm1737_vm15 = vcmp.gt.f32.partialorder %v1001_v34, 0.0  ;;  %v2179_v18 = vsel %vm1730_vm13, %v997_v33, %v1955_v41  ;;  %3296 = vmatpush1.bf16.msra.mxu1 %v10651_v12  ;;  %v11929_v12 = vadd.f32 %v1189_v16, %v11487_v4  ;;  %v1191_v41 = vpop.f32.mrb[29].mxu1 }
 0x13d   : > { %v1963_v2 = vmul.f32 %v11477_v56, %v1003_v27  ;;  %vm1738_vm2 = vcmp.gt.f32.partialorder %v1003_v27, 0.0  ;;  %v2180_v54 = vsel %vm1731_vm14, %v999_v15, %v1956_v37  ;;  %3297 = vmatprep.subr.bf16.mxu1 %v10656_v5  ;;  %v11937_v15 = vsel %vm1683_vm3, %v11692_v60, %v11718_v21  ;;  %v1193_v39 = vpop.f32.mrb[30].mxu1  ;;  %v10657_v21 = vld [vmem:[%s17435_s4 + $0x1e0] ss:$8 sps:$4 sm:$0xff]  }
 0x13e   : > { %v2186_v33 = vsel %vm1737_vm15, %v1001_v34, %v1962_v10  ;;  %17626 = vst [vmem:[#allocation20_spill] sm:$0xff] %v11937_v15  ;;  %v11940_v48 = vadd.f32 %v1191_v41, %v11494_v7  ;;  %v11947_v30 = vmul.f32 %v11477_v56, %v11929_v12  ;;  %v11950_v59 = vadd.f32 %v1193_v39, %v11487_v4  ;;  %v1195_v60 = vpop.f32.mrb[31].mxu1  ;;  %v10662_v39 = vld [vmem:[%s17435_s4 + $0x1f4] ss:$8 sps:$4 sm:$0xff]  }
 0x13f   : > { %v1006_v5 = vpop.f32.mrb[32].mxu0  ;;  %v2187_v37 = vsel %vm1738_vm2, %v1003_v27, %v1963_v2  ;;  %v2455_v35 = vpack.c.bf16 %v2186_v33, %v2179_v18  ;;  %vm1712_vm2 = vcmp.gt.f32.partialorder %v11833_v58, 0.0 }
 0x140   : > { %v1007_v10 = vadd.f32 %v1006_v5, %v11467_v52  ;;  %v1008_v16 = vpop.f32.mrb[33].mxu0  ;;  %v2456_v9 = vpack.c.bf16 %v2187_v37, %v2180_v54  ;;  %3298 = vmatpush1.bf16.msra.mxu1 %v10654_v43  ;;  %v11958_v18 = vmul.f32 %v11477_v56, %v11940_v48  ;;  %v11961_v54 = vadd.f32 %v1195_v60, %v11494_v7 }
 0x141   : > { %v1009_v2 = vadd.f32 %v1008_v16, %v11473_v53  ;;  %v1010_v27 = vpop.f32.mrb[34].mxu0  ;;  %3299 = vmatprep.subr.bf16.mxu1 %v10659_v49  ;;  %v11971_v5 = vmul.f32 %v11477_v56, %v11950_v59 }
 0x142   : > { %v1969_v43 = vmul.f32 %v11477_v56, %v1007_v10  ;;  %v1011_v33 = vadd.f32 %v1010_v27, %v11467_v52  ;;  %v1012_v41 = vpop.f32.mrb[35].mxu0  ;;  %3180 = vmatprep.mubr.bf16.mxu1 %v2456_v9  ;;  %vm1744_vm5 = vcmp.gt.f32.partialorder %v1007_v10, 0.0  ;;  %v11977_v16 = vmul.f32 %v11477_v56, %v11961_v54  ;;  %v10660_v9 = vld [vmem:[%s17435_s4 + $0x1f0] ss:$8 sps:$4 sm:$0xff]  }
 0x143   : > { %v1970_v37 = vmul.f32 %v11477_v56, %v1009_v2  ;;  %v1013_v49 = vadd.f32 %v1012_v41, %v11473_v53  ;;  %3181 = vmatmul.mubr.bf16.gmra.mrb[124].mxu1 %v2455_v35  ;;  %vm1745_vm6 = vcmp.gt.f32.partialorder %v1009_v2, 0.0  ;;  %v1199_v41 = vpop.f32.mrb[32].mxu1 }
 0x144   : > { %v1976_v60 = vmul.f32 %v11477_v56, %v1011_v33  ;;  %vm1751_vm7 = vcmp.gt.f32.partialorder %v1011_v33, 0.0  ;;  %v2193_v27 = vsel %vm1744_vm5, %v1007_v10, %v1969_v43  ;;  %3300 = vmatpush1.bf16.msra.mxu1 %v10657_v21  ;;  %v11992_v10 = vsel %vm1691_vm4, %v11748_v1, %v11768_v28  ;;  %v1201_v15 = vpop.f32.mrb[33].mxu1 }
 0x145   : > { %v1977_v34 = vmul.f32 %v11477_v56, %v1013_v49  ;;  %vm1752_vm9 = vcmp.gt.f32.partialorder %v1013_v49, 0.0  ;;  %v2194_v35 = vsel %vm1745_vm6, %v1009_v2, %v1970_v37  ;;  %3301 = vmatprep.subr.bf16.mxu1 %v10662_v39  ;;  %17627 = vst [vmem:[#allocation21_spill] sm:$0xff] %v11992_v10  ;;  %v11995_v43 = vadd.f32 %v1199_v41, %v11487_v4  ;;  %v1203_v46 = vpop.f32.mrb[34].mxu1 }
 0x146   : > { %v2200_v21 = vsel %vm1751_vm7, %v1011_v33, %v1976_v60  ;;  %v11999_v2 = vsel %vm1698_vm8, %v11771_v29, %v11788_v45  ;;  %v12003_v3 = vadd.f32 %v1201_v15, %v11494_v7  ;;  %v12013_v45 = vadd.f32 %v1203_v46, %v11487_v4 }
 0x147   : > { %17628 = vst [vmem:[#allocation22_spill] sm:$0xff] %v11999_v2  ;;  %v1016_v39 = vpop.f32.mrb[36].mxu0  ;;  %v2201_v37 = vsel %vm1752_vm9, %v1013_v49, %v1977_v34  ;;  %v2462_v14 = vpack.c.bf16 %v2200_v21, %v2193_v27  ;;  %v12010_v29 = vmul.f32 %v11477_v56, %v11995_v43  ;;  %v1205_v34 = vpop.f32.mrb[35].mxu1  ;;  %v12048_v1 = vsel %vm1697_vm11, %v11760_v47, %v11782_v11 }
 0x148   : > { %v1017_v28 = vadd.f32 %v1016_v39, %v11467_v52  ;;  %v1018_v33 = vpop.f32.mrb[37].mxu0  ;;  %v2463_v60 = vpack.c.bf16 %v2201_v37, %v2194_v35  ;;  %3302 = vmatpush1.bf16.msra.mxu1 %v10660_v9  ;;  %v12018_v27 = vmul.f32 %v11477_v56, %v12003_v3  ;;  %v12021_v41 = vadd.f32 %v1205_v34, %v11494_v7 }
 0x149   : > { %v1019_v15 = vadd.f32 %v1018_v33, %v11473_v53  ;;  %v1020_v49 = vpop.f32.mrb[38].mxu0  ;;  %3464 = vmatprep.subr.bf16.mxu1 %v10665_v62  ;;  %v12028_v9 = vmul.f32 %v11477_v56, %v12013_v45  ;;  %17630 = vst [vmem:[#allocation24_spill] sm:$0xff] %v12048_v1  ;;  %vm1704_vm7 = vcmp.gt.f32.partialorder %v11801_v26, 0.0  ;;  %vm1711_vm8 = vcmp.gt.f32.partialorder %v11822_v19, 0.0 }
 0x14a   : > { %v1983_v35 = vmul.f32 %v11477_v56, %v1017_v28  ;;  %v1021_v46 = vadd.f32 %v1020_v49, %v11467_v52  ;;  %v1022_v21 = vpop.f32.mrb[39].mxu0  ;;  %3190 = vmatprep.mubr.bf16.mxu1 %v2463_v60  ;;  %vm1758_vm12 = vcmp.gt.f32.partialorder %v1017_v28, 0.0  ;;  %v12034_v62 = vmul.f32 %v11477_v56, %v12021_v41 }
 0x14b   : > { %v1984_v39 = vmul.f32 %v11477_v56, %v1019_v15  ;;  %v1023_v37 = vadd.f32 %v1022_v21, %v11473_v53  ;;  %3191 = vmatmul.mubr.bf16.gmra.mrb[128].mxu1 %v2462_v14  ;;  %vm1759_vm13 = vcmp.gt.f32.partialorder %v1019_v15, 0.0  ;;  %v12041_v60 = vsel %vm1690_vm10, %v11740_v32, %v11757_v25  ;;  %v1209_v14 = vpop.f32.mrb[36].mxu1 }
 0x14c   : > { %v1990_v33 = vmul.f32 %v11477_v56, %v1021_v46  ;;  %vm1765_vm14 = vcmp.gt.f32.partialorder %v1021_v46, 0.0  ;;  %v2207_v34 = vsel %vm1758_vm12, %v1017_v28, %v1983_v35  ;;  %17629 = vst [vmem:[#allocation23_spill] sm:$0xff] %v12041_v60  ;;  %v12051_v28 = vadd.f32 %v1209_v14, %v11487_v4  ;;  %v1211_v35 = vpop.f32.mrb[37].mxu1 }
 0x14d   : > { %v1991_v49 = vmul.f32 %v11477_v56, %v1023_v37  ;;  %vm1766_vm15 = vcmp.gt.f32.partialorder %v1023_v37, 0.0  ;;  %v2208_v21 = vsel %vm1759_vm13, %v1019_v15, %v1984_v39  ;;  %v12057_v39 = vadd.f32 %v1211_v35, %v11494_v7  ;;  %v1213_v20 = vpop.f32.mrb[38].mxu1 }
 0x14e   : > { %v2214_v10 = vsel %vm1765_vm14, %v1021_v46, %v1990_v33  ;;  %v12063_v33 = vmul.f32 %v11477_v56, %v12051_v28  ;;  %v12066_v14 = vadd.f32 %v1213_v20, %v11487_v4  ;;  %v1215_v32 = vpop.f32.mrb[39].mxu1  ;;  %vm1719_vm13 = vcmp.gt.f32.partialorder %v11876_v40, 0.0 }
 0x14f   : > { %v1026_v25 = vpop.f32.mrb[40].mxu0  ;;  %v2215_v2 = vsel %vm1766_vm15, %v1023_v37, %v1991_v49  ;;  %v2469_v15 = vpack.c.bf16 %v2214_v10, %v2207_v34  ;;  %v12071_v34 = vmul.f32 %v11477_v56, %v12057_v39  ;;  %v12074_v49 = vadd.f32 %v1215_v32, %v11494_v7 }
 0x150   : > { %v1027_v47 = vadd.f32 %v1026_v25, %v11467_v52  ;;  %v1028_v11 = vpop.f32.mrb[41].mxu0  ;;  %v2470_v46 = vpack.c.bf16 %v2215_v2, %v2208_v21  ;;  %v12080_v2 = vsel %vm1705_vm1, %v11810_v57, %v11830_v23  ;;  %v12086_v25 = vmul.f32 %v11477_v56, %v12066_v14 }
 0x151   : > { %v1029_v10 = vadd.f32 %v1028_v11, %v11473_v53  ;;  %v1030_v37 = vpop.f32.mrb[42].mxu0  ;;  %17631 = vst [vmem:[#allocation25_spill] sm:$0xff] %v12080_v2  ;;  %v12092_v57 = vmul.f32 %v11477_v56, %v12074_v49  ;;  %vm1726_vm14 = vcmp.gt.f32.partialorder %v11899_v13, 0.0 }
 0x152   : > { %v1997_v20 = vmul.f32 %v11477_v56, %v1027_v47  ;;  %v1031_v21 = vadd.f32 %v1030_v37, %v11467_v52  ;;  %v1032_v35 = vpop.f32.mrb[43].mxu0  ;;  %3200 = vmatprep.mubr.bf16.mxu1 %v2470_v46  ;;  %vm1772_vm3 = vcmp.gt.f32.partialorder %v1027_v47, 0.0  ;;  %v12099_v46 = vsel %vm1712_vm2, %v11833_v58, %v11854_v0 }
 0x153   : > { %v1998_v32 = vmul.f32 %v11477_v56, %v1029_v10  ;;  %v1033_v11 = vadd.f32 %v1032_v35, %v11473_v53  ;;  %3201 = vmatmul.mubr.bf16.gmra.mrb[132].mxu1 %v2469_v15  ;;  %vm1773_vm4 = vcmp.gt.f32.partialorder %v1029_v10, 0.0  ;;  %17632 = vst [vmem:[#allocation26_spill] sm:$0xff] %v12099_v46  ;;  %v1219_v15 = vpop.f32.mrb[40].mxu1 }
 0x154   : > { %v2004_v23 = vmul.f32 %v11477_v56, %v1031_v21  ;;  %vm1779_vm5 = vcmp.gt.f32.partialorder %v1031_v21, 0.0  ;;  %v2221_v37 = vsel %vm1772_vm3, %v1027_v47, %v1997_v20  ;;  %v12105_v31 = vadd.f32 %v1219_v15, %v11487_v4  ;;  %v1221_v38 = vpop.f32.mrb[41].mxu1 }
 0x155   : > { %v2005_v60 = vmul.f32 %v11477_v56, %v1033_v11  ;;  %vm1780_vm6 = vcmp.gt.f32.partialorder %v1033_v11, 0.0  ;;  %v2222_v35 = vsel %vm1773_vm4, %v1029_v10, %v1998_v32  ;;  %v12110_v20 = vadd.f32 %v1221_v38, %v11494_v7  ;;  %v1223_v10 = vpop.f32.mrb[42].mxu1 }
 0x156   : > { %v2228_v17 = vsel %vm1779_vm5, %v1031_v21, %v2004_v23  ;;  %v12114_v32 = vsel %vm1704_vm7, %v11801_v26, %v11819_v50  ;;  %v12119_v1 = vmul.f32 %v11477_v56, %v12105_v31  ;;  %v12122_v2 = vadd.f32 %v1223_v10, %v11487_v4 }
 0x157   : > { %v1036_v47 = vpop.f32.mrb[44].mxu0  ;;  %v2229_v58 = vsel %vm1780_vm6, %v1033_v11, %v2005_v60  ;;  %v2476_v0 = vpack.c.bf16 %v2228_v17, %v2221_v37  ;;  %17633 = vst [vmem:[#allocation27_spill] sm:$0xff] %v12114_v32  ;;  %v1225_v17 = vpop.f32.mrb[43].mxu1  ;;  %v12127_v11 = vmul.f32 %v11477_v56, %v12110_v20  ;;  %v12136_v50 = vsel %vm1711_vm8, %v11822_v19, %v11848_v6 }
 0x158   : > { %v1037_v21 = vadd.f32 %v1036_v47, %v11467_v52  ;;  %v1038_v23 = vpop.f32.mrb[45].mxu0  ;;  %v2477_v15 = vpack.c.bf16 %v2229_v58, %v2222_v35  ;;  %17634 = vst [vmem:[#allocation28_spill] sm:$0xff] %v12119_v1  ;;  %v12130_v26 = vadd.f32 %v1225_v17, %v11494_v7  ;;  %17635 = vst [vmem:[#allocation29_spill] sm:$0xff] %v12136_v50  ;;  %v1229_v61 = vpop.f32.mrb[44].mxu1  ;;  %vm1718_vm3 = vcmp.gt.f32.partialorder %v11868_v55, 0.0 }
 0x159   : > { %v1039_v38 = vadd.f32 %v1038_v23, %v11473_v53  ;;  %v1040_v60 = vpop.f32.mrb[46].mxu0  ;;  %v12142_v58 = vmul.f32 %v11477_v56, %v12122_v2  ;;  %vm1725_vm5 = vcmp.gt.f32.partialorder %v11888_v44, 0.0  ;;  %vm1733_vm6 = vcmp.gt.f32.partialorder %v11940_v48, 0.0 }
 0x15a   : > { %v2011_v37 = vmul.f32 %v11477_v56, %v1037_v21  ;;  %v1041_v35 = vadd.f32 %v1040_v60, %v11467_v52  ;;  %v1042_v47 = vpop.f32.mrb[47].mxu0  ;;  %3210 = vmatprep.mubr.bf16.mxu1 %v2477_v15  ;;  %vm1786_vm9 = vcmp.gt.f32.partialorder %v1037_v21, 0.0  ;;  %v12148_v19 = vmul.f32 %v11477_v56, %v12130_v26 }
 0x15b   : > { %17636 = vst [vmem:[#allocation30_spill] sm:$0xff] %v12142_v58  ;;  %v2012_v10 = vmul.f32 %v11477_v56, %v1039_v38  ;;  %v1043_v23 = vadd.f32 %v1042_v47, %v11473_v53  ;;  %3211 = vmatmul.mubr.bf16.gmra.mrb[136].mxu1 %v2476_v0  ;;  %vm1787_vm10 = vcmp.gt.f32.partialorder %v1039_v38, 0.0  ;;  %v12156_v47 = vadd.f32 %v1229_v61, %v11487_v4  ;;  %v1231_v58 = vpop.f32.mrb[45].mxu1 }
 0x15c   : > { %v2018_v6 = vmul.f32 %v11477_v56, %v1041_v35  ;;  %vm1793_vm11 = vcmp.gt.f32.partialorder %v1041_v35, 0.0  ;;  %v2235_v17 = vsel %vm1786_vm9, %v1037_v21, %v2011_v37  ;;  %v12161_v21 = vsel %vm1719_vm13, %v11876_v40, %v11896_v22 }
 0x15d   : > { %v2019_v60 = vmul.f32 %v11477_v56, %v1043_v23  ;;  %vm1794_vm12 = vcmp.gt.f32.partialorder %v1043_v23, 0.0  ;;  %v2236_v46 = vsel %vm1787_vm10, %v1039_v38, %v2012_v10  ;;  %17637 = vst [vmem:[#allocation31_spill] sm:$0xff] %v12156_v47  ;;  %17638 = vst [vmem:[#allocation32_spill] sm:$0xff] %v12161_v21  ;;  %v12164_v50 = vadd.f32 %v1231_v58, %v11494_v7  ;;  %v1233_v38 = vpop.f32.mrb[46].mxu1 }
 0x15e   : > { %v2242_v0 = vsel %vm1793_vm11, %v1041_v35, %v2018_v6  ;;  %v12168_v35 = vsel %vm1726_vm14, %v11899_v13, %v11916_v24  ;;  %v12173_v1 = vmul.f32 %v11477_v56, %v12156_v47  ;;  %v12176_v40 = vadd.f32 %v1233_v38, %v11487_v4  ;;  %v1235_v22 = vpop.f32.mrb[47].mxu1 }
 0x15f   : > { %v1046_v37 = vpop.f32.mrb[48].mxu0  ;;  %v2243_v15 = vsel %vm1794_vm12, %v1043_v23, %v2019_v60  ;;  %v2483_v32 = vpack.c.bf16 %v2242_v0, %v2235_v17  ;;  %17639 = vst [vmem:[#allocation33_spill] sm:$0xff] %v12168_v35  ;;  %v12181_v17 = vmul.f32 %v11477_v56, %v12164_v50  ;;  %v12184_v13 = vadd.f32 %v1235_v22, %v11494_v7 }
 0x160   : > { %v1047_v61 = vadd.f32 %v1046_v37, %v11467_v52  ;;  %v1048_v10 = vpop.f32.mrb[49].mxu0  ;;  %v2484_v6 = vpack.c.bf16 %v2243_v15, %v2236_v46  ;;  %17640 = vst [vmem:[#allocation34_spill] sm:$0xff] %v12173_v1  ;;  %17641 = vst [vmem:[#allocation35_spill] sm:$0xff] %v12176_v40  ;;  %v12192_v0 = vmul.f32 %v11477_v56, %v12176_v40  ;;  %v1239_v21 = vpop.f32.mrb[48].mxu1  ;;  %vm1740_vm10 = vcmp.gt.f32.partialorder %v11961_v54, 0.0 }
 0x161   : > { %v1049_v58 = vadd.f32 %v1048_v10, %v11473_v53  ;;  %v1050_v23 = vpop.f32.mrb[50].mxu0  ;;  %v12198_v10 = vmul.f32 %v11477_v56, %v12184_v13  ;;  %v1241_v35 = vpop.f32.mrb[49].mxu1  ;;  %vm1732_vm12 = vcmp.gt.f32.partialorder %v11929_v12, 0.0  ;;  %vm1739_vm13 = vcmp.gt.f32.partialorder %v11950_v59, 0.0 }
 0x162   : > { %v2025_v46 = vmul.f32 %v11477_v56, %v1047_v61  ;;  %v1051_v15 = vadd.f32 %v1050_v23, %v11467_v52  ;;  %v1052_v60 = vpop.f32.mrb[51].mxu0  ;;  %3220 = vmatprep.mubr.bf16.mxu1 %v2484_v6  ;;  %vm1800_vm15 = vcmp.gt.f32.partialorder %v1047_v61, 0.0  ;;  %17642 = vst [vmem:[#allocation36_spill] sm:$0xff] %v12192_v0  ;;  %v12209_v0 = vsel %vm1718_vm3, %v11868_v55, %v11885_v51 }
 0x163   : > { %v2026_v37 = vmul.f32 %v11477_v56, %v1049_v58  ;;  %v1053_v38 = vadd.f32 %v1052_v60, %v11473_v53  ;;  %3221 = vmatmul.mubr.bf16.gmra.mrb[140].mxu1 %v2483_v32  ;;  %vm1801_vm1 = vcmp.gt.f32.partialorder %v1049_v58, 0.0  ;;  %v12205_v32 = vadd.f32 %v1239_v21, %v11487_v4  ;;  %17643 = vst [vmem:[#allocation37_spill] sm:$0xff] %v12209_v0 }
 0x164   : > { %v2032_v22 = vmul.f32 %v11477_v56, %v1051_v15  ;;  %vm1807_vm2 = vcmp.gt.f32.partialorder %v1051_v15, 0.0  ;;  %v2249_v23 = vsel %vm1800_vm15, %v1047_v61, %v2025_v46  ;;  %v12213_v61 = vsel %vm1725_vm5, %v11888_v44, %v11910_v8 }
 0x165   : > { %v2033_v6 = vmul.f32 %v11477_v56, %v1053_v38  ;;  %vm1808_vm4 = vcmp.gt.f32.partialorder %v1053_v38, 0.0  ;;  %v2250_v24 = vsel %vm1801_vm1, %v1049_v58, %v2026_v37  ;;  %17644 = vst [vmem:[#allocation38_spill] sm:$0xff] %v12213_v61  ;;  %v12216_v58 = vadd.f32 %v1241_v35, %v11494_v7  ;;  %v1243_v37 = vpop.f32.mrb[50].mxu1 }
 0x166   : > { %v2256_v60 = vsel %vm1807_vm2, %v1051_v15, %v2032_v22  ;;  %v12223_v51 = vmul.f32 %v11477_v56, %v12205_v32  ;;  %v12226_v55 = vadd.f32 %v1243_v37, %v11487_v4  ;;  %v1245_v44 = vpop.f32.mrb[51].mxu1  ;;  %vm1747_vm3 = vcmp.gt.f32.partialorder %v12003_v3, 0.0 }
 0x167   : > { %v1056_v46 = vpop.f32.mrb[52].mxu0  ;;  %v2257_v1 = vsel %vm1808_vm4, %v1053_v38, %v2033_v6  ;;  %v2490_v40 = vpack.c.bf16 %v2256_v60, %v2249_v23  ;;  %v12231_v38 = vmul.f32 %v11477_v56, %v12216_v58  ;;  %v12234_v23 = vadd.f32 %v1245_v44, %v11494_v7 }
 0x168   : > { %v1057_v15 = vadd.f32 %v1056_v46, %v11467_v52  ;;  %v1058_v22 = vpop.f32.mrb[53].mxu0  ;;  %v2491_v47 = vpack.c.bf16 %v2257_v1, %v2250_v24  ;;  %17645 = vst [vmem:[#allocation39_spill] sm:$0xff] %v12223_v51  ;;  %17646 = vst [vmem:[#allocation40_spill] sm:$0xff] %v12226_v55  ;;  %v12241_v60 = vmul.f32 %v11477_v56, %v12226_v55  ;;  %v1249_v0 = vpop.f32.mrb[52].mxu1  ;;  %vm1754_vm4 = vcmp.gt.f32.partialorder %v12021_v41, 0.0 }
 0x169   : > { %v1059_v8 = vadd.f32 %v1058_v22, %v11473_v53  ;;  %v1060_v35 = vpop.f32.mrb[54].mxu0  ;;  %v12247_v22 = vmul.f32 %v11477_v56, %v12234_v23  ;;  %v12259_v61 = vadd.f32 %v1249_v0, %v11487_v4 }
 0x16a   : > { %v2039_v1 = vmul.f32 %v11477_v56, %v1057_v15  ;;  %v1061_v24 = vadd.f32 %v1060_v35, %v11467_v52  ;;  %v1062_v6 = vpop.f32.mrb[55].mxu0  ;;  %3230 = vmatprep.mubr.bf16.mxu1 %v2491_v47  ;;  %vm1814_vm7 = vcmp.gt.f32.partialorder %v1057_v15, 0.0  ;;  %17647 = vst [vmem:[#allocation41_spill] sm:$0xff] %v12241_v60  ;;  %v1251_v60 = vpop.f32.mrb[53].mxu1 }
 0x16b   : > { %v2040_v46 = vmul.f32 %v11477_v56, %v1059_v8  ;;  %v1063_v37 = vadd.f32 %v1062_v6, %v11473_v53  ;;  %3231 = vmatmul.mubr.bf16.gmra.mrb[144].mxu1 %v2490_v40  ;;  %vm1815_vm8 = vcmp.gt.f32.partialorder %v1059_v8, 0.0  ;;  %v12256_v40 = vsel %vm1733_vm6, %v11940_v48, %v11958_v18  ;;  %v1253_v55 = vpop.f32.mrb[54].mxu1 }
 0x16c   : > { %v2046_v44 = vmul.f32 %v11477_v56, %v1061_v24  ;;  %vm1821_vm9 = vcmp.gt.f32.partialorder %v1061_v24, 0.0  ;;  %v2263_v35 = vsel %vm1814_vm7, %v1057_v15, %v2039_v1  ;;  %17648 = vst [vmem:[#allocation42_spill] sm:$0xff] %v12256_v40  ;;  %v12263_v15 = vsel %vm1740_vm10, %v11961_v54, %v11977_v16 }
 0x16d   : > { %v2047_v47 = vmul.f32 %v11477_v56, %v1063_v37  ;;  %vm1822_vm11 = vcmp.gt.f32.partialorder %v1063_v37, 0.0  ;;  %v2264_v21 = vsel %vm1815_vm8, %v1059_v8, %v2040_v46  ;;  %17649 = vst [vmem:[#allocation43_spill] sm:$0xff] %v12263_v15  ;;  %v12267_v51 = vadd.f32 %v1251_v60, %v11494_v7 }
 0x16e   : > { %v2270_v6 = vsel %vm1821_vm9, %v1061_v24, %v2046_v44  ;;  %v12274_v54 = vmul.f32 %v11477_v56, %v12259_v61  ;;  %v12277_v16 = vadd.f32 %v1253_v55, %v11487_v4  ;;  %v12312_v15 = vsel %vm1739_vm13, %v11950_v59, %v11971_v5 }
 0x16f   : > { %v1066_v1 = vpop.f32.mrb[56].mxu0  ;;  %v2271_v8 = vsel %vm1822_vm11, %v1063_v37, %v2047_v47  ;;  %v2497_v46 = vpack.c.bf16 %v2270_v6, %v2263_v35  ;;  %v1255_v37 = vpop.f32.mrb[55].mxu1  ;;  %v12282_v35 = vmul.f32 %v11477_v56, %v12267_v51  ;;  %17654 = vst [vmem:[#allocation48_spill] sm:$0xff] %v12312_v15  ;;  %vm1746_vm9 = vcmp.gt.f32.partialorder %v11995_v43, 0.0 }
 0x170   : > { %v1067_v18 = vadd.f32 %v1066_v1, %v11467_v52  ;;  %v1068_v0 = vpop.f32.mrb[57].mxu0  ;;  %v2498_v24 = vpack.c.bf16 %v2271_v8, %v2264_v21  ;;  %17650 = vst [vmem:[#allocation44_spill] sm:$0xff] %v12274_v54  ;;  %17651 = vst [vmem:[#allocation45_spill] sm:$0xff] %v12277_v16  ;;  %v12285_v47 = vadd.f32 %v1255_v37, %v11494_v7  ;;  %vm1753_vm10 = vcmp.gt.f32.partialorder %v12013_v45, 0.0 }
 0x171   : > { %v1069_v44 = vadd.f32 %v1068_v0, %v11473_v53  ;;  %v1070_v60 = vpop.f32.mrb[58].mxu0  ;;  %v12292_v55 = vmul.f32 %v11477_v56, %v12277_v16  ;;  %vm1761_vm11 = vcmp.gt.f32.partialorder %v12057_v39, 0.0  ;;  %vm1760_vm13 = vcmp.gt.f32.partialorder %v12051_v28, 0.0 }
 0x172   : > { %v2053_v21 = vmul.f32 %v11477_v56, %v1067_v18  ;;  %v1071_v6 = vadd.f32 %v1070_v60, %v11467_v52  ;;  %v1072_v1 = vpop.f32.mrb[59].mxu0  ;;  %3240 = vmatprep.mubr.bf16.mxu1 %v2498_v24  ;;  %vm1828_vm14 = vcmp.gt.f32.partialorder %v1067_v18, 0.0  ;;  %v12298_v37 = vmul.f32 %v11477_v56, %v12285_v47 }
 0x173   : > { %17652 = vst [vmem:[#allocation46_spill] sm:$0xff] %v12292_v55  ;;  %v2054_v8 = vmul.f32 %v11477_v56, %v1069_v44  ;;  %v1073_v0 = vadd.f32 %v1072_v1, %v11473_v53  ;;  %3241 = vmatmul.mubr.bf16.gmra.mrb[148].mxu1 %v2497_v46  ;;  %vm1829_vm15 = vcmp.gt.f32.partialorder %v1069_v44, 0.0  ;;  %v12305_v24 = vsel %vm1732_vm12, %v11929_v12, %v11947_v30  ;;  %v1259_v46 = vpop.f32.mrb[56].mxu1 }
 0x174   : > { %v2060_v48 = vmul.f32 %v11477_v56, %v1071_v6  ;;  %vm1835_vm1 = vcmp.gt.f32.partialorder %v1071_v6, 0.0  ;;  %v2277_v60 = vsel %vm1828_vm14, %v1067_v18, %v2053_v21  ;;  %17653 = vst [vmem:[#allocation47_spill] sm:$0xff] %v12305_v24  ;;  %v12315_v18 = vadd.f32 %v1259_v46, %v11487_v4  ;;  %v1261_v21 = vpop.f32.mrb[57].mxu1 }
 0x175   : > { %v2061_v40 = vmul.f32 %v11477_v56, %v1073_v0  ;;  %vm1836_vm2 = vcmp.gt.f32.partialorder %v1073_v0, 0.0  ;;  %v2278_v1 = vsel %vm1829_vm15, %v1069_v44, %v2054_v8  ;;  %v12321_v8 = vadd.f32 %v1261_v21, %v11494_v7  ;;  %v1263_v16 = vpop.f32.mrb[58].mxu1 }
 0x176   : > { %v2284_v55 = vsel %vm1835_vm1, %v1071_v6, %v2060_v48  ;;  %v12327_v6 = vmul.f32 %v11477_v56, %v12315_v18  ;;  %v12330_v46 = vadd.f32 %v1263_v16, %v11487_v4  ;;  %v1265_v12 = vpop.f32.mrb[59].mxu1  ;;  %vm1768_vm12 = vcmp.gt.f32.partialorder %v12074_v49, 0.0 }
 0x177   : > { %v1076_v30 = vpop.f32.mrb[60].mxu0  ;;  %v2285_v54 = vsel %vm1836_vm2, %v1073_v0, %v2061_v40  ;;  %v2504_v44 = vpack.c.bf16 %v2284_v55, %v2277_v60  ;;  %v12335_v0 = vmul.f32 %v11477_v56, %v12321_v8  ;;  %v12338_v60 = vadd.f32 %v1265_v12, %v11494_v7 }
 0x178   : > { %v1077_v59 = vadd.f32 %v1076_v30, %v11467_v52  ;;  %v1078_v5 = vpop.f32.mrb[61].mxu0  ;;  %v2505_v48 = vpack.c.bf16 %v2285_v54, %v2278_v1  ;;  %v12344_v54 = vsel %vm1747_vm3, %v12003_v3, %v12018_v27  ;;  %v12350_v30 = vmul.f32 %v11477_v56, %v12330_v46 }
 0x179   : > { %v1079_v40 = vadd.f32 %v1078_v5, %v11473_v53  ;;  %v1080_v55 = vpop.f32.mrb[62].mxu0  ;;  %v12356_v3 = vmul.f32 %v11477_v56, %v12338_v60  ;;  %vm1767_vm14 = vcmp.gt.f32.partialorder %v12066_v14, 0.0  ;;  %vm1775_vm15 = vcmp.gt.f32.partialorder %v12110_v20, 0.0 }
 0x17a   : > { %v2067_v16 = vmul.f32 %v11477_v56, %v1077_v59  ;;  %v1081_v1 = vadd.f32 %v1080_v55, %v11467_v52  ;;  %v1082_v21 = vpop.f32.mrb[63].mxu0  ;;  %3250 = vmatprep.mubr.bf16.mxu1 %v2505_v48  ;;  %vm1842_vm5 = vcmp.gt.f32.partialorder %v1077_v59, 0.0  ;;  %17655 = vst [vmem:[#allocation49_spill] sm:$0xff] %v12350_v30  ;;  %v12363_v48 = vsel %vm1754_vm4, %v12021_v41, %v12034_v62 }
 0x17b   : > { %v2068_v12 = vmul.f32 %v11477_v56, %v1079_v40  ;;  %v1083_v5 = vadd.f32 %v1082_v21, %v11473_v53  ;;  %3251 = vmatmul.mubr.bf16.gmra.mrb[152].mxu1 %v2504_v44  ;;  %vm1843_vm6 = vcmp.gt.f32.partialorder %v1079_v40, 0.0  ;;  %v1269_v44 = vpop.f32.mrb[60].mxu1  ;;  %vm1782_vm1 = vcmp.gt.f32.partialorder %v12130_v26, 0.0 }
 0x17c   : > { %v2074_v27 = vmul.f32 %v11477_v56, %v1081_v1  ;;  %vm1849_vm7 = vcmp.gt.f32.partialorder %v1081_v1, 0.0  ;;  %v2291_v52 = vsel %vm1842_vm5, %v1077_v59, %v2067_v16  ;;  %v12369_v15 = vadd.f32 %v1269_v44, %v11487_v4  ;;  %v1271_v30 = vpop.f32.mrb[61].mxu1 }
 0x17d   : > { %v2075_v55 = vmul.f32 %v11477_v56, %v1083_v5  ;;  %vm1850_vm8 = vcmp.gt.f32.partialorder %v1083_v5, 0.0  ;;  %v2292_v53 = vsel %vm1843_vm6, %v1079_v40, %v2068_v12  ;;  %v12374_v62 = vadd.f32 %v1271_v30, %v11494_v7  ;;  %v1273_v16 = vpop.f32.mrb[62].mxu1 }
 0x17e   : > { %v2298_v24 = vsel %vm1849_vm7, %v1081_v1, %v2074_v27  ;;  %v12378_v40 = vsel %vm1746_vm9, %v11995_v43, %v12010_v29  ;;  %v12384_v27 = vmul.f32 %v11477_v56, %v12369_v15  ;;  %v12387_v44 = vadd.f32 %v1273_v16, %v11487_v4 }
 0x17f   : > { %v2299_v59 = vsel %vm1850_vm8, %v1083_v5, %v2075_v55  ;;  %v2511_v41 = vpack.c.bf16 %v2298_v24, %v2291_v52  ;;  %v12380_v12 = vpop.f32.mrb[64].mxu0  ;;  %v1275_v5 = vpop.f32.mrb[63].mxu1  ;;  %v12391_v24 = vsel %vm1753_vm10, %v12013_v45, %v12028_v9  ;;  %v12397_v43 = vmul.f32 %v11477_v56, %v12374_v62 }
 0x180   : > { %v2512_v1 = vpack.c.bf16 %v2299_v59, %v2292_v53  ;;  %v12393_v30 = vpop.f32.mrb[65].mxu0  ;;  %v12400_v29 = vadd.f32 %v1275_v5, %v11494_v7  ;;  %v12409_v45 = vmul.f32 %v11477_v56, %v12387_v44  ;;  %v12414_v9 = vsel %vm1761_vm11, %v12057_v39, %v12071_v34  ;;  %v10663_v5 = vld [vmem:[%s17435_s4 + $0x200] ss:$8 sps:$4 sm:$0xff]  }
 0x181   : > { %v12405_v4 = vpop.f32.mrb[66].mxu0  ;;  %v12425_v53 = vsel %vm1768_vm12, %v12074_v49, %v12092_v57  ;;  %v12430_v59 = vsel %vm1760_vm13, %v12051_v28, %v12063_v33  ;;  %v17656_v39 = vpack.c.bf16 %v11604_v42, %v11593_v36  ;;  %v10122_v49 = vpop.f32.mrb[64].mxu1  ;;  %v12447_v33 = vsel %vm1775_vm15, %v12110_v20, %v12127_v11  ;;  %v17658_v57 = vld [vmem:[#allocation28_spill] sm:$0xff] }
 0x182   : > { %3260 = vmatprep.mubr.bf16.mxu1 %v2512_v1  ;;  %v12417_v7 = vpop.f32.mrb[67].mxu0  ;;  %v12421_v55 = vmul.f32 %v11477_v56, %v12400_v29  ;;  %17657 = vst [vmem:[#allocation50_spill] sm:$0xff] %v12447_v33  ;;  %v12451_v36 = vsel %vm1782_vm1, %v12130_v26, %v12148_v19  ;;  %vm1774_vm2 = vcmp.gt.f32.partialorder %v12105_v31, 0.0  ;;  %v1514_v42 = vadd.f32 %v10122_v49, %v11806_v63  ;;  %v17660_v1 = vld [vmem:[#allocation30_spill] sm:$0xff] }
 0x183   : > { %3261 = vmatmul.mubr.bf16.gmra.mrb[156].mxu1 %v2511_v41  ;;  %v12439_v41 = vsel %vm1767_vm14, %v12066_v14, %v12086_v25  ;;  %v1505_v14 = vpop.f32.mrb[65].mxu1  ;;  %vm1781_vm3 = vcmp.gt.f32.partialorder %v12122_v2, 0.0  ;;  %v12460_v16 = vsel %vm1774_vm2, %v12105_v31, %v17658_v57  ;;  %vm1789_vm4 = vcmp.gt.f32.partialorder %v12164_v50, 0.0  ;;  %v10668_v57 = vld [vmem:[%s17435_s4 + $0x214] ss:$8 sps:$4 sm:$0xff]  }
 0x184   : > { %3303 = vmatprep.mubr.bf16.mxu1 %v17656_v39  ;;  %17659 = vst [vmem:[#allocation28_spill] sm:$0xff] %v12460_v16  ;;  %v1506_v20 = vadd.f32 %v1505_v14, %v11806_v63  ;;  %v10123_v11 = vpop.f32.mrb[66].mxu1  ;;  %v12465_v26 = vsel %vm1781_vm3, %v12122_v2, %v17660_v1  ;;  %vm1796_vm5 = vcmp.gt.f32.partialorder %v12184_v13, 0.0  ;;  %vm1652_vm6 = vcmp.gt.f32.partialorder %v1514_v42, 0.0  ;;  %v17666_v16 = vld [vmem:[#allocation7_spill] sm:$0xff] }
 0x185   : > { %17661 = vst [vmem:[#allocation30_spill] sm:$0xff] %v12465_v26  ;;  %v1877_v31 = vmul.f32 %v11477_v56, %v1514_v42  ;;  %v1517_v39 = vadd.f32 %v10123_v11, %v11806_v63  ;;  %v1508_v49 = vpop.f32.mrb[67].mxu1  ;;  %v12487_v28 = vsel %vm1789_vm4, %v12164_v50, %v12181_v17  ;;  %v12498_v52 = vsel %vm1796_vm5, %v12184_v13, %v12198_v10  ;;  %v10666_v13 = vld [vmem:[%s17435_s4 + $0x210] ss:$8 sps:$4 sm:$0xff]  }
 0x186   : > { %vm1638_vm7 = vcmp.gt.f32.partialorder %v1506_v20, 0.0  ;;  %v1863_v1 = vmul.f32 %v11477_v56, %v1506_v20  ;;  %v1509_v25 = vadd.f32 %v1508_v49, %v11806_v63  ;;  %17662 = vst [vmem:[#allocation51_spill] sm:$0xff] %v12487_v28  ;;  %17664 = vst [vmem:[#allocation53_spill] sm:$0xff] %v12498_v52  ;;  %v17665_v49 = vld [vmem:[#allocation8_spill] sm:$0xff]  ;;  %vm1803_vm12 = vcmp.gt.f32.partialorder %v12216_v58, 0.0 }
 0x187   : > { %v12469_v19 = vpop.f32.mrb[68].mxu0  ;;  %v12491_v34 = vsel %vm1652_vm6, %v1514_v42, %v1877_v31  ;;  %vm1659_vm8 = vcmp.gt.f32.partialorder %v1517_v39, 0.0  ;;  %v1884_v2 = vmul.f32 %v11477_v56, %v1517_v39  ;;  %v17667_v26 = vpack.c.bf16 %v17665_v49, %v17666_v16  ;;  %v17669_v31 = vld [vmem:[#allocation10_spill] sm:$0xff]  ;;  %v17673_v16 = vld [vmem:[#allocation31_spill] sm:$0xff] }
 0x188   : > { %v12478_v14 = vpop.f32.mrb[69].mxu0  ;;  %17663 = vst [vmem:[#allocation52_spill] sm:$0xff] %v12491_v34  ;;  %v12505_v50 = vsel %vm1638_vm7, %v1506_v20, %v1863_v1  ;;  %vm1645_vm9 = vcmp.gt.f32.partialorder %v1509_v25, 0.0  ;;  %v1870_v17 = vmul.f32 %v11477_v56, %v1509_v25  ;;  %v17670_v34 = vld [vmem:[#allocation9_spill] sm:$0xff]  ;;  %vm1788_vm10 = vcmp.gt.f32.partialorder %v17673_v16, 0.0  ;;  %v17674_v20 = vld [vmem:[#allocation35_spill] sm:$0xff] }
 0x189   : > { %v12489_v11 = vpop.f32.mrb[70].mxu0  ;;  %17668 = vst [vmem:[#allocation8_spill] sm:$0xff] %v12505_v50  ;;  %v17671_v33 = vpack.c.bf16 %v17669_v31, %v17670_v34  ;;  %v12516_v10 = vsel %vm1659_vm8, %v1517_v39, %v1884_v2  ;;  %vm1795_vm11 = vcmp.gt.f32.partialorder %v17674_v20, 0.0  ;;  %v10126_v34 = vpop.f32.mrb[68].mxu1  ;;  %v17678_v39 = vld [vmem:[#allocation36_spill] sm:$0xff]  ;;  %vm1810_vm13 = vcmp.gt.f32.partialorder %v12234_v23, 0.0 }
 0x18a   : > { %v12500_v21 = vpop.f32.mrb[71].mxu0  ;;  %17672 = vst [vmem:[#allocation7_spill] sm:$0xff] %v12516_v10  ;;  %v12532_v2 = vsel %vm1795_vm11, %v17674_v20, %v17678_v39  ;;  %v1530_v49 = vadd.f32 %v10126_v34, %v11806_v63  ;;  %v1521_v31 = vpop.f32.mrb[69].mxu1  ;;  %v12547_v20 = vsel %vm1810_vm13, %v12234_v23, %v12247_v22  ;;  %vm1802_vm14 = vcmp.gt.f32.partialorder %v12205_v32, 0.0  ;;  %v17682_v39 = vld [vmem:[#allocation40_spill] sm:$0xff]  ;;  %v17683_v50 = vld [vmem:[#allocation39_spill] sm:$0xff] }
 0x18b   : > { %3304 = vmatmul.mubr.bf16.vlgmr.msra.gmra.mrb[96].mxu1 %v17667_v26  ;;  %v10671_v26 = vld [vmem:[%s17435_s4 + $0x224] ss:$8 sps:$4 sm:$0xff]   ;;  %17679 = vst [vmem:[#allocation31_spill] sm:$0xff] %v12532_v2  ;;  %vm1809_vm15 = vcmp.gt.f32.partialorder %v17682_v39, 0.0  ;;  %v17686_v10 = vld [vmem:[#allocation41_spill] sm:$0xff]  ;;  %vm1817_vm5 = vcmp.gt.f32.partialorder %v12267_v51, 0.0 }
 0x18c   : > { %3465 = vmatpush1.bf16.msra.mxu1 %v10663_v5  ;;  %3313 = vmatprep.mubr.bf16.mxu1 %v17671_v33  ;;  %v12524_v5 = vsel %vm1645_vm9, %v1509_v25, %v1870_v17  ;;  %v17676_v33 = vld [vmem:[#allocation34_spill] sm:$0xff]  ;;  %v12542_v17 = vsel %vm1803_vm12, %v12216_v58, %v12231_v38  ;;  %vm1680_vm1 = vcmp.gt.f32.partialorder %v1530_v49, 0.0  ;;  %v1905_v58 = vmul.f32 %v11477_v56, %v1530_v49 }
 0x18d   : > { %3466 = vmatprep.subr.bf16.mxu1 %v10668_v57  ;;  %17675 = vst [vmem:[#allocation10_spill] sm:$0xff] %v12524_v5  ;;  %v12528_v1 = vsel %vm1788_vm10, %v17673_v16, %v17676_v33  ;;  %17680 = vst [vmem:[#allocation35_spill] sm:$0xff] %v12542_v17  ;;  %v1522_v16 = vadd.f32 %v1521_v31, %v11806_v63  ;;  %v10127_v33 = vpop.f32.mrb[70].mxu1  ;;  %v10669_v57 = vld [vmem:[%s17435_s4 + $0x220] ss:$8 sps:$4 sm:$0xff]   ;;  %v12582_v17 = vsel %vm1809_vm15, %v17682_v39, %v17686_v10 }
 0x18e   : > { %17677 = vst [vmem:[#allocation9_spill] sm:$0xff] %v12528_v1  ;;  %17681 = vst [vmem:[#allocation34_spill] sm:$0xff] %v12547_v20  ;;  %v1533_v38 = vadd.f32 %v10127_v33, %v11806_v63  ;;  %v1524_v31 = vpop.f32.mrb[71].mxu1  ;;  %v12571_v33 = vsel %vm1802_vm14, %v12205_v32, %v17683_v50  ;;  %v12575_v23 = vsel %vm1680_vm1, %v1530_v49, %v1905_v58  ;;  %v17688_v20 = vld [vmem:[#allocation12_spill] sm:$0xff]  ;;  %v17689_v1 = vld [vmem:[#allocation11_spill] sm:$0xff]  ;;  %vm1824_vm6 = vcmp.gt.f32.partialorder %v12285_v47, 0.0 }
 0x18f   : > { %v12551_v34 = vpop.f32.mrb[72].mxu0  ;;  %vm1666_vm2 = vcmp.gt.f32.partialorder %v1522_v16, 0.0  ;;  %v1891_v25 = vmul.f32 %v11477_v56, %v1522_v16  ;;  %v1525_v42 = vadd.f32 %v1524_v31, %v11806_v63  ;;  %17684 = vst [vmem:[#allocation36_spill] sm:$0xff] %v12571_v33  ;;  %17685 = vst [vmem:[#allocation40_spill] sm:$0xff] %v12575_v23  ;;  %v17690_v2 = vpack.c.bf16 %v17688_v20, %v17689_v1  ;;  %v17692_v58 = vld [vmem:[#allocation14_spill] sm:$0xff]  ;;  %v17693_v23 = vld [vmem:[#allocation13_spill] sm:$0xff] }
 0x190   : > { %3467 = vmatpush1.bf16.msra.mxu1 %v10666_v13  ;;  %v12560_v22 = vpop.f32.mrb[73].mxu0  ;;  %v10674_v13 = vld [vmem:[%s17435_s4 + $0x234] ss:$8 sps:$4 sm:$0xff]   ;;  %vm1687_vm3 = vcmp.gt.f32.partialorder %v1533_v38, 0.0  ;;  %17687 = vst [vmem:[#allocation39_spill] sm:$0xff] %v12582_v17  ;;  %v17694_v28 = vpack.c.bf16 %v17692_v58, %v17693_v23  ;;  %vm1816_vm7 = vcmp.gt.f32.partialorder %v12259_v61, 0.0 }
 0x191   : > { %3468 = vmatprep.subr.bf16.mxu1 %v10671_v26  ;;  %v12573_v5 = vpop.f32.mrb[74].mxu0  ;;  %v1912_v26 = vmul.f32 %v11477_v56, %v1533_v38  ;;  %v12589_v32 = vsel %vm1666_vm2, %v1522_v16, %v1891_v25  ;;  %vm1673_vm4 = vcmp.gt.f32.partialorder %v1525_v42, 0.0  ;;  %v1898_v50 = vmul.f32 %v11477_v56, %v1525_v42  ;;  %v10672_v10 = vld [vmem:[%s17435_s4 + $0x230] ss:$8 sps:$4 sm:$0xff]   ;;  %v17700_v23 = vld [vmem:[#allocation44_spill] sm:$0xff] }
 0x192   : > { %v12584_v31 = vpop.f32.mrb[75].mxu0  ;;  %17691 = vst [vmem:[#allocation41_spill] sm:$0xff] %v12589_v32  ;;  %v12616_v25 = vsel %vm1824_vm6, %v12285_v47, %v12298_v37  ;;  %v17699_v16 = vld [vmem:[#allocation45_spill] sm:$0xff]  ;;  %vm1831_vm9 = vcmp.gt.f32.partialorder %v12321_v8, 0.0  ;;  %vm1838_vm10 = vcmp.gt.f32.partialorder %v12338_v60, 0.0  ;;  %vm1830_vm15 = vcmp.gt.f32.partialorder %v12315_v18, 0.0 }
 0x193   : > { %3314 = vmatmul.mubr.bf16.gmra.mrb[100].mxu1 %v17690_v2  ;;  %v12600_v39 = vsel %vm1687_vm3, %v1533_v38, %v1912_v26  ;;  %v12605_v1 = vsel %vm1673_vm4, %v1525_v42, %v1898_v50  ;;  %v10130_v2 = vpop.f32.mrb[72].mxu1  ;;  %17698 = vst [vmem:[#allocation13_spill] sm:$0xff] %v12616_v25  ;;  %vm1823_vm8 = vcmp.gt.f32.partialorder %v17699_v16, 0.0  ;;  %v17702_v26 = vld [vmem:[#allocation46_spill] sm:$0xff]  ;;  %v10675_v58 = vld [vmem:[%s17435_s4 + $0x240] ss:$8 sps:$4 sm:$0xff]  }
 0x194   : > { %3323 = vmatprep.mubr.bf16.mxu1 %v17694_v28  ;;  %3469 = vmatpush1.bf16.msra.mxu1 %v10669_v57  ;;  %17695 = vst [vmem:[#allocation12_spill] sm:$0xff] %v12600_v39  ;;  %17696 = vst [vmem:[#allocation11_spill] sm:$0xff] %v12605_v1  ;;  %v10677_v28 = vld [vmem:[%s17435_s4 + $0x244] ss:$8 sps:$4 sm:$0xff]   ;;  %v12612_v57 = vsel %vm1817_vm5, %v12267_v51, %v12282_v35  ;;  %v1546_v20 = vadd.f32 %v10130_v2, %v11806_v63  ;;  %v1537_v38 = vpop.f32.mrb[73].mxu1  ;;  %vm1837_vm1 = vcmp.gt.f32.partialorder %v12330_v46, 0.0 }
 0x195   : > { %3470 = vmatprep.subr.bf16.mxu1 %v10674_v13  ;;  %17697 = vst [vmem:[#allocation14_spill] sm:$0xff] %v12612_v57  ;;  %v12624_v13 = vsel %vm1816_vm7, %v12259_v61, %v17700_v23  ;;  %v12628_v51 = vsel %vm1823_vm8, %v17699_v16, %v17702_v26  ;;  %v1538_v35 = vadd.f32 %v1537_v38, %v11806_v63  ;;  %v10131_v47 = vpop.f32.mrb[74].mxu1  ;;  %v10680_v37 = vld [vmem:[%s17435_s4 + $0x254] ss:$8 sps:$4 sm:$0xff]   ;;  %v17708_v39 = vld [vmem:[#allocation15_spill] sm:$0xff]  ;;  %vm1845_vm2 = vcmp.gt.f32.partialorder %v12374_v62, 0.0 }
 0x196   : > { %17701 = vst [vmem:[#allocation45_spill] sm:$0xff] %v12624_v13  ;;  %17703 = vst [vmem:[#allocation44_spill] sm:$0xff] %v12628_v51  ;;  %vm1708_vm11 = vcmp.gt.f32.partialorder %v1546_v20, 0.0  ;;  %v1933_v61 = vmul.f32 %v11477_v56, %v1546_v20  ;;  %v1549_v2 = vadd.f32 %v10131_v47, %v11806_v63  ;;  %v1540_v16 = vpop.f32.mrb[75].mxu1  ;;  %v12644_v38 = vsel %vm1831_vm9, %v12321_v8, %v12335_v0  ;;  %v10690_v57 = vld [vmem:[%s17435_s4 + $0x290] ss:$8 sps:$4 sm:$0xff]  }
 0x197   : > { %v12635_v50 = vpop.f32.mrb[76].mxu0  ;;  %17704 = vst [vmem:[#allocation46_spill] sm:$0xff] %v12644_v38  ;;  %vm1694_vm12 = vcmp.gt.f32.partialorder %v1538_v35, 0.0  ;;  %v1919_v26 = vmul.f32 %v11477_v56, %v1538_v35  ;;  %v12655_v47 = vsel %vm1838_vm10, %v12338_v60, %v12356_v3  ;;  %v17711_v3 = vld [vmem:[#allocation3_spill] sm:$0xff]  ;;  %vm1852_vm3 = vcmp.gt.f32.partialorder %v12400_v29, 0.0 }
 0x198   : > { %3471 = vmatpush1.bf16.msra.mxu1 %v10672_v10  ;;  %v12646_v23 = vpop.f32.mrb[77].mxu0  ;;  %v1541_v10 = vadd.f32 %v1540_v16, %v11806_v63  ;;  %17705 = vst [vmem:[#allocation54_spill] sm:$0xff] %v12655_v47  ;;  %v12659_v8 = vsel %vm1708_vm11, %v1546_v20, %v1933_v61  ;;  %vm1715_vm13 = vcmp.gt.f32.partialorder %v1549_v2, 0.0  ;;  %v1940_v0 = vmul.f32 %v11477_v56, %v1549_v2  ;;  %v17707_v16 = vld [vmem:[#allocation16_spill] sm:$0xff]  ;;  %v17712_v61 = vld [vmem:[#allocation18_spill] sm:$0xff] }
 0x199   : > { %3472 = vmatprep.subr.bf16.mxu1 %v10677_v28  ;;  %v12657_v42 = vpop.f32.mrb[78].mxu0  ;;  %17706 = vst [vmem:[#allocation55_spill] sm:$0xff] %v12659_v8  ;;  %v17709_v1 = vpack.c.bf16 %v17707_v16, %v17708_v39  ;;  %v12669_v32 = vsel %vm1694_vm12, %v1538_v35, %v1919_v26  ;;  %v17520_v20 = vsub.s32 4, %v17711_v3  ;;  %v17713_v8 = vld [vmem:[#allocation17_spill] sm:$0xff]  ;;  %v17519_v39 = vsub.s32 5, %v17711_v3  ;;  %v10134_v35 = vpop.f32.mrb[76].mxu1 }
 0x19a   : > { %v12664_v49 = vpop.f32.mrb[79].mxu0  ;;  %17710 = vst [vmem:[#allocation16_spill] sm:$0xff] %v12669_v32  ;;  %vm1701_vm14 = vcmp.gt.f32.partialorder %v1541_v10, 0.0  ;;  %v1926_v60 = vmul.f32 %v11477_v56, %v1541_v10  ;;  %v17714_v13 = vpack.c.bf16 %v17712_v61, %v17713_v8  ;;  %v12676_v51 = vsel %vm1715_vm13, %v1549_v2, %v1940_v0  ;;  %v10678_v28 = vld [vmem:[%s17435_s4 + $0x250] ss:$8 sps:$4 sm:$0xff]   ;;  %v1553_v0 = vpop.f32.mrb[77].mxu1 }
 0x19b   : > { %3324 = vmatmul.mubr.bf16.gmra.mrb[104].mxu1 %v17709_v1  ;;  %17715 = vst [vmem:[#allocation15_spill] sm:$0xff] %v12676_v51  ;;  %v12698_v26 = vsel %vm1830_vm15, %v12315_v18, %v12327_v6  ;;  %v1554_v61 = vadd.f32 %v1553_v0, %v11806_v63  ;;  %v10135_v18 = vpop.f32.mrb[78].mxu1  ;;  %v10681_v0 = vld [vmem:[%s17435_s4 + $0x260] ss:$8 sps:$4 sm:$0xff]   ;;  %vm1844_vm13 = vcmp.gt.f32.partialorder %v12369_v15, 0.0  ;;  %vm1851_vm15 = vcmp.gt.f32.partialorder %v12387_v44, 0.0 }
 0x19c   : > { %3333 = vmatprep.mubr.bf16.mxu1 %v17714_v13  ;;  %3473 = vmatpush1.bf16.msra.mxu1 %v10675_v58  ;;  %v12684_v1 = vsel %vm1701_vm14, %v1541_v10, %v1926_v60  ;;  %v10683_v13 = vld [vmem:[%s17435_s4 + $0x264] ss:$8 sps:$4 sm:$0xff]   ;;  %17717 = vst [vmem:[#allocation17_spill] sm:$0xff] %v12698_v26  ;;  %v17718_v10 = vld [vmem:[#allocation49_spill] sm:$0xff] }
 0x19d   : > { %17716 = vst [vmem:[#allocation18_spill] sm:$0xff] %v12684_v1  ;;  %3474 = vmatprep.subr.bf16.mxu1 %v10680_v37  ;;  %v10918_v58 = vld [vmem:[%s17434_s3] sm:$0x7f]  ;;  %v12702_v8 = vsel %vm1837_vm1, %v12330_v46, %v17718_v10  ;;  %v1562_v37 = vadd.f32 %v10134_v35, %v11806_v63  ;;  %v1565_v10 = vadd.f32 %v10135_v18, %v11806_v63  ;;  %vm1722_vm5 = vcmp.gt.f32.partialorder %v1554_v61, 0.0  ;;  %v17721_v51 = vld [vmem:[#allocation20_spill] sm:$0xff] }
 0x19e   : > { %v12694_v2 = vrot.slane %v10918_v58, %v17520_v20  ;;  %17719 = vst [vmem:[#allocation49_spill] sm:$0xff] %v12702_v8  ;;  %v12707_v16 = vrot.slane %v10918_v58, %v17519_v39  ;;  %v1556_v39 = vpop.f32.mrb[79].mxu1  ;;  %v1947_v20 = vmul.f32 %v11477_v56, %v1554_v61  ;;  %v17722_v1 = vld [vmem:[#allocation19_spill] sm:$0xff] }
 0x19f   : > { %v12718_v35 = vpop.f32.mrb[80].mxu0  ;;  %vm1736_vm4 = vcmp.gt.f32.partialorder %v1562_v37, 0.0  ;;  %v1961_v58 = vmul.f32 %v11477_v56, %v1562_v37  ;;  %v1557_v60 = vadd.f32 %v1556_v39, %v11806_v63  ;;  %vm1743_vm7 = vcmp.gt.f32.partialorder %v1565_v10, 0.0 }
 0x1a0   : > { %v1313_v6 = vadd.f32 %v12380_v12, %v12694_v2  ;;  %v1317_v46 = vadd.f32 %v12405_v4, %v12694_v2  ;;  %3475 = vmatpush1.bf16.msra.mxu1 %v10678_v28  ;;  %v12727_v12 = vadd.f32 %v12393_v30, %v12707_v16  ;;  %v12729_v4 = vpop.f32.mrb[81].mxu0  ;;  %v10686_v28 = vld [vmem:[%s17435_s4 + $0x274] ss:$8 sps:$4 sm:$0xff]   ;;  %v1968_v30 = vmul.f32 %v11477_v56, %v1565_v10 }
 0x1a1   : > { %3476 = vmatprep.subr.bf16.mxu1 %v10683_v13  ;;  %v12736_v18 = vpop.f32.mrb[82].mxu0  ;;  %v12738_v3 = vsel %vm1736_vm4, %v1562_v37, %v1961_v58  ;;  %v17723_v39 = vpack.c.bf16 %v17721_v51, %v17722_v1  ;;  %v12747_v13 = vsel %vm1722_vm5, %v1554_v61, %v1947_v20  ;;  %vm1729_vm8 = vcmp.gt.f32.partialorder %v1557_v60, 0.0  ;;  %v17725_v58 = vld [vmem:[#allocation22_spill] sm:$0xff] }
 0x1a2   : > { %vm1636_vm6 = vcmp.gt.f32.partialorder %v1313_v6, 0.0  ;;  %17720 = vst [vmem:[#allocation56_spill] sm:$0xff] %v12738_v3  ;;  %v1861_v26 = vmul.f32 %v11477_v56, %v1313_v6  ;;  %v12742_v8 = vpop.f32.mrb[83].mxu0  ;;  %17724 = vst [vmem:[#allocation20_spill] sm:$0xff] %v12747_v13  ;;  %v1954_v32 = vmul.f32 %v11477_v56, %v1557_v60  ;;  %v12752_v37 = vmul.f32 %v11477_v56, %v12727_v12  ;;  %v17726_v3 = vld [vmem:[#allocation21_spill] sm:$0xff] }
 0x1a3   : > { %3334 = vmatmul.mubr.bf16.gmra.mrb[108].mxu1 %v17723_v39  ;;  %v17727_v38 = vpack.c.bf16 %v17725_v58, %v17726_v3  ;;  %v12757_v47 = vsel %vm1743_vm7, %v1565_v10, %v1968_v30  ;;  %v10684_v51 = vld [vmem:[%s17435_s4 + $0x270] ss:$8 sps:$4 sm:$0xff]   ;;  %vm1643_vm9 = vcmp.gt.f32.partialorder %v1317_v46, 0.0  ;;  %v1868_v1 = vmul.f32 %v11477_v56, %v1317_v46  ;;  %v10138_v39 = vpop.f32.mrb[80].mxu1 }
 0x1a4   : > { %17728 = vst [vmem:[#allocation19_spill] sm:$0xff] %v12757_v47  ;;  %3477 = vmatpush1.bf16.msra.mxu1 %v10681_v0  ;;  %v12763_v20 = vsel %vm1636_vm6, %v1313_v6, %v1861_v26  ;;  %v12766_v61 = vsel %vm1729_vm8, %v1557_v60, %v1954_v32  ;;  %v12775_v3 = vsel %vm1845_vm2, %v12374_v62, %v12397_v43  ;;  %v1569_v6 = vpop.f32.mrb[81].mxu1  ;;  %vm1637_vm1 = vcmp.gt.f32.partialorder %v12727_v12, 0.0 }
 0x1a5   : > { %3343 = vmatprep.mubr.bf16.mxu1 %v17727_v38  ;;  %17729 = vst [vmem:[#allocation22_spill] sm:$0xff] %v12763_v20  ;;  %17730 = vst [vmem:[#allocation21_spill] sm:$0xff] %v12766_v61  ;;  %3478 = vmatprep.subr.bf16.mxu1 %v10686_v28  ;;  %v10689_v38 = vld [vmem:[%s17435_s4 + $0x284] ss:$8 sps:$4 sm:$0xff]   ;;  %v12781_v26 = vsel %vm1852_vm3, %v12400_v29, %v12421_v55  ;;  %v1319_v32 = vadd.f32 %v12417_v7, %v12707_v16  ;;  %v10139_v28 = vpop.f32.mrb[82].mxu1 }
 0x1a6   : > { %17731 = vst [vmem:[#allocation57_spill] sm:$0xff] %v12775_v3  ;;  %17732 = vst [vmem:[#allocation58_spill] sm:$0xff] %v12781_v26  ;;  %v1578_v60 = vadd.f32 %v10138_v39, %v11806_v63  ;;  %v12786_v10 = vsel %vm1643_vm9, %v1317_v46, %v1868_v1  ;;  %v12792_v62 = vadd.f32 %v12469_v19, %v12694_v2  ;;  %v1572_v58 = vpop.f32.mrb[83].mxu1  ;;  %v10687_v1 = vld [vmem:[%s17435_s4 + $0x280] ss:$8 sps:$4 sm:$0xff]  }
 0x1a7   : > { %17733 = vst [vmem:[#allocation59_spill] sm:$0xff] %v12786_v10  ;;  %v1570_v43 = vadd.f32 %v1569_v6, %v11806_v63  ;;  %v1869_v7 = vmul.f32 %v11477_v56, %v1319_v32  ;;  %v12800_v55 = vadd.f32 %v12478_v14, %v12707_v16  ;;  %v12802_v46 = vpop.f32.mrb[84].mxu0  ;;  %v1581_v19 = vadd.f32 %v10139_v28, %v11806_v63 }
 0x1a8   : > { %vm1764_vm10 = vcmp.gt.f32.partialorder %v1578_v60, 0.0  ;;  %v1989_v30 = vmul.f32 %v11477_v56, %v1578_v60  ;;  %3479 = vmatpush1.bf16.msra.mxu1 %v10684_v51  ;;  %v12811_v39 = vmul.f32 %v11477_v56, %v12792_v62  ;;  %v12813_v6 = vpop.f32.mrb[85].mxu0  ;;  %v1573_v29 = vadd.f32 %v1572_v58, %v11806_v63  ;;  %v10692_v51 = vld [vmem:[%s17435_s4 + $0x294] ss:$8 sps:$4 sm:$0xff]   ;;  %v17736_v58 = vld [vmem:[#allocation23_spill] sm:$0xff] }
 0x1a9   : > { %vm1750_vm11 = vcmp.gt.f32.partialorder %v1570_v43, 0.0  ;;  %v1975_v14 = vmul.f32 %v11477_v56, %v1570_v43  ;;  %3480 = vmatprep.subr.bf16.mxu1 %v10689_v38  ;;  %v12822_v28 = vmul.f32 %v11477_v56, %v12800_v55  ;;  %v12824_v0 = vpop.f32.mrb[86].mxu0  ;;  %vm1771_vm12 = vcmp.gt.f32.partialorder %v1581_v19, 0.0  ;;  %v17735_v38 = vld [vmem:[#allocation24_spill] sm:$0xff] }
 0x1aa   : > { %v12826_v20 = vsel %vm1764_vm10, %v1578_v60, %v1989_v30  ;;  %v1996_v10 = vmul.f32 %v11477_v56, %v1581_v19  ;;  %v12830_v3 = vpop.f32.mrb[87].mxu0  ;;  %v17737_v26 = vpack.c.bf16 %v17735_v38, %v17736_v58  ;;  %vm1757_vm14 = vcmp.gt.f32.partialorder %v1573_v29, 0.0  ;;  %v17739_v60 = vld [vmem:[#allocation26_spill] sm:$0xff]  ;;  %v17740_v30 = vld [vmem:[#allocation25_spill] sm:$0xff] }
 0x1ab   : > { %17734 = vst [vmem:[#allocation60_spill] sm:$0xff] %v12826_v20  ;;  %v12835_v47 = vsel %vm1750_vm11, %v1570_v43, %v1975_v14  ;;  %v1982_v61 = vmul.f32 %v11477_v56, %v1573_v29  ;;  %v17741_v20 = vpack.c.bf16 %v17739_v60, %v17740_v30  ;;  %v12853_v43 = vsel %vm1851_vm15, %v12387_v44, %v12409_v45  ;;  %v10693_v60 = vld [vmem:[%s17435_s4 + $0x2a0] ss:$8 sps:$4 sm:$0xff]  }
 0x1ac   : > { %3344 = vmatmul.mubr.bf16.gmra.mrb[112].mxu1 %v17737_v26  ;;  %17738 = vst [vmem:[#allocation24_spill] sm:$0xff] %v12835_v47  ;;  %v12842_v13 = vsel %vm1771_vm12, %v1581_v19, %v1996_v10  ;;  %v12849_v26 = vsel %vm1844_vm13, %v12369_v15, %v12384_v27  ;;  %17744 = vst [vmem:[#allocation25_spill] sm:$0xff] %v12853_v43  ;;  %v10695_v10 = vld [vmem:[%s17435_s4 + $0x2a4] ss:$8 sps:$4 sm:$0xff]   ;;  %v12865_v15 = vadd.f32 %v12489_v11, %v12694_v2 }
 0x1ad   : > { %3353 = vmatprep.mubr.bf16.mxu1 %v17741_v20  ;;  %17742 = vst [vmem:[#allocation23_spill] sm:$0xff] %v12842_v13  ;;  %3481 = vmatpush1.bf16.msra.mxu1 %v10687_v1  ;;  %17743 = vst [vmem:[#allocation26_spill] sm:$0xff] %v12849_v26  ;;  %v12856_v14 = vsel %vm1757_vm14, %v1573_v29, %v1982_v61  ;;  %v10142_v20 = vpop.f32.mrb[84].mxu1  ;;  %v1329_v27 = vadd.f32 %v12500_v21, %v12707_v16  ;;  %vm1644_vm2 = vcmp.gt.f32.partialorder %v1319_v32, 0.0 }
 0x1ae   : > { %17745 = vst [vmem:[#allocation61_spill] sm:$0xff] %v12856_v14  ;;  %3482 = vmatprep.subr.bf16.mxu1 %v10692_v51  ;;  %v1594_v44 = vadd.f32 %v10142_v20, %v11806_v63  ;;  %v1585_v45 = vpop.f32.mrb[85].mxu1  ;;  %v12872_v61 = vsel %vm1637_vm1, %v12727_v12, %v12752_v37  ;;  %v12876_v29 = vadd.f32 %v12551_v34, %v12694_v2  ;;  %vm1651_vm7 = vcmp.gt.f32.partialorder %v12800_v55, 0.0 }
 0x1af   : > { %17746 = vst [vmem:[#allocation62_spill] sm:$0xff] %v12872_v61  ;;  %v1586_v1 = vadd.f32 %v1585_v45, %v11806_v63  ;;  %v10143_v51 = vpop.f32.mrb[86].mxu1  ;;  %v12881_v11 = vmul.f32 %v11477_v56, %v12865_v15  ;;  %v1883_v21 = vmul.f32 %v11477_v56, %v1329_v27  ;;  %v12884_v38 = vsel %vm1644_vm2, %v1319_v32, %v1869_v7  ;;  %v12886_v58 = vpop.f32.mrb[88].mxu0  ;;  %v10698_v45 = vld [vmem:[%s17435_s4 + $0x2b4] ss:$8 sps:$4 sm:$0xff]  }
 0x1b0   : > { %17747 = vst [vmem:[#allocation63_spill] sm:$0xff] %v12884_v38  ;;  %vm1792_vm3 = vcmp.gt.f32.partialorder %v1594_v44, 0.0  ;;  %v2017_v12 = vmul.f32 %v11477_v56, %v1594_v44  ;;  %v1597_v37 = vadd.f32 %v10143_v51, %v11806_v63  ;;  %v1588_v34 = vpop.f32.mrb[87].mxu1  ;;  %v12895_v20 = vpop.f32.mrb[89].mxu0  ;;  %v12913_v61 = vadd.f32 %v12560_v22, %v12707_v16  ;;  %v17750_v38 = vld [vmem:[#allocation27_spill] sm:$0xff] }
 0x1b1   : > { %3483 = vmatpush1.bf16.msra.mxu1 %v10690_v57  ;;  %vm1778_vm4 = vcmp.gt.f32.partialorder %v1586_v1, 0.0  ;;  %v2003_v32 = vmul.f32 %v11477_v56, %v1586_v1  ;;  %v1589_v7 = vadd.f32 %v1588_v34, %v11806_v63  ;;  %v12904_v57 = vmul.f32 %v11477_v56, %v12876_v29  ;;  %v12906_v51 = vpop.f32.mrb[90].mxu0  ;;  %v17749_v34 = vld [vmem:[#allocation29_spill] sm:$0xff] }
 0x1b2   : > { %3484 = vmatprep.subr.bf16.mxu1 %v10695_v10  ;;  %v12908_v19 = vsel %vm1792_vm3, %v1594_v44, %v2017_v12  ;;  %vm1799_vm5 = vcmp.gt.f32.partialorder %v1597_v37, 0.0  ;;  %v2024_v30 = vmul.f32 %v11477_v56, %v1597_v37  ;;  %v12915_v10 = vpop.f32.mrb[91].mxu0  ;;  %v17751_v26 = vpack.c.bf16 %v17749_v34, %v17750_v38  ;;  %v17753_v12 = vld [vmem:[#allocation33_spill] sm:$0xff] }
 0x1b3   : > { %17748 = vst [vmem:[#allocation64_spill] sm:$0xff] %v12908_v19  ;;  %v12920_v43 = vsel %vm1778_vm4, %v1586_v1, %v2003_v32  ;;  %vm1785_vm6 = vcmp.gt.f32.partialorder %v1589_v7, 0.0  ;;  %v2010_v13 = vmul.f32 %v11477_v56, %v1589_v7  ;;  %v12925_v44 = vadd.f32 %v12573_v5, %v12694_v2  ;;  %v17754_v19 = vld [vmem:[#allocation32_spill] sm:$0xff] }
 0x1b4   : > { %3354 = vmatmul.mubr.bf16.gmra.mrb[116].mxu1 %v17751_v26  ;;  %17752 = vst [vmem:[#allocation29_spill] sm:$0xff] %v12920_v43  ;;  %v17755_v14 = vpack.c.bf16 %v17753_v12, %v17754_v19  ;;  %v12930_v22 = vsel %vm1799_vm5, %v1597_v37, %v2024_v30  ;;  %v10696_v26 = vld [vmem:[%s17435_s4 + $0x2b0] ss:$8 sps:$4 sm:$0xff]   ;;  %v12937_v1 = vmul.f32 %v11477_v56, %v12913_v61  ;;  %v10701_v19 = vld [vmem:[%s17435_s4 + $0x2c4] ss:$8 sps:$4 sm:$0xff]   ;;  %vm1658_vm8 = vcmp.gt.f32.partialorder %v1329_v27, 0.0 }
 0x1b5   : > { %17756 = vst [vmem:[#allocation27_spill] sm:$0xff] %v12930_v22  ;;  %3485 = vmatpush1.bf16.msra.mxu1 %v10693_v60  ;;  %v12941_v38 = vadd.f32 %v12584_v31, %v12707_v16  ;;  %v12944_v5 = vsel %vm1785_vm6, %v1589_v7, %v2010_v13  ;;  %v12951_v37 = vmul.f32 %v11477_v56, %v12925_v44  ;;  %vm1650_vm9 = vcmp.gt.f32.partialorder %v12792_v62, 0.0 }
 0x1b6   : > { %3363 = vmatprep.mubr.bf16.mxu1 %v17755_v14  ;;  %17757 = vst [vmem:[#allocation33_spill] sm:$0xff] %v12944_v5  ;;  %v10146_v14 = vpop.f32.mrb[88].mxu1  ;;  %3486 = vmatprep.subr.bf16.mxu1 %v10698_v45  ;;  %v12955_v60 = vsel %vm1651_vm7, %v12800_v55, %v12822_v28  ;;  %v12960_v32 = vsel %vm1658_vm8, %v1329_v27, %v1883_v21  ;;  %vm1657_vm13 = vcmp.gt.f32.partialorder %v12865_v15, 0.0  ;;  %vm1665_vm15 = vcmp.gt.f32.partialorder %v12913_v61, 0.0 }
 0x1b7   : > { %17758 = vst [vmem:[#allocation32_spill] sm:$0xff] %v12955_v60  ;;  %v1610_v31 = vadd.f32 %v10146_v14, %v11806_v63  ;;  %v1601_v30 = vpop.f32.mrb[89].mxu1  ;;  %v1897_v13 = vmul.f32 %v11477_v56, %v12941_v38  ;;  %17759 = vst [vmem:[#allocation65_spill] sm:$0xff] %v12960_v32  ;;  %v12964_v7 = vadd.f32 %v12635_v50, %v12694_v2  ;;  %v12974_v28 = vpop.f32.mrb[92].mxu0  ;;  %v10699_v14 = vld [vmem:[%s17435_s4 + $0x2c0] ss:$8 sps:$4 sm:$0xff]  }
 0x1b8   : > { %v1602_v45 = vadd.f32 %v1601_v30, %v11806_v63  ;;  %v10147_v34 = vpop.f32.mrb[90].mxu1  ;;  %v12971_v55 = vadd.f32 %v12646_v23, %v12707_v16  ;;  %v12985_v23 = vpop.f32.mrb[93].mxu0  ;;  %vm1672_vm1 = vcmp.gt.f32.partialorder %v12941_v38, 0.0  ;;  %vm1664_vm6 = vcmp.gt.f32.partialorder %v12876_v29, 0.0 }
 0x1b9   : > { %vm1820_vm10 = vcmp.gt.f32.partialorder %v1610_v31, 0.0  ;;  %v2045_v27 = vmul.f32 %v11477_v56, %v1610_v31  ;;  %v1613_v50 = vadd.f32 %v10147_v34, %v11806_v63  ;;  %v1604_v21 = vpop.f32.mrb[91].mxu1  ;;  %3487 = vmatpush1.bf16.msra.mxu1 %v10696_v26  ;;  %v12983_v30 = vmul.f32 %v11477_v56, %v12964_v7  ;;  %v10704_v26 = vld [vmem:[%s17435_s4 + $0x2d4] ss:$8 sps:$4 sm:$0xff]   ;;  %v12996_v32 = vpop.f32.mrb[94].mxu0 }
 0x1ba   : > { %vm1806_vm11 = vcmp.gt.f32.partialorder %v1602_v45, 0.0  ;;  %v2031_v12 = vmul.f32 %v11477_v56, %v1602_v45  ;;  %v1605_v60 = vadd.f32 %v1604_v21, %v11806_v63  ;;  %3488 = vmatprep.subr.bf16.mxu1 %v10701_v19  ;;  %v12994_v34 = vmul.f32 %v11477_v56, %v12971_v55  ;;  %v13002_v43 = vpop.f32.mrb[95].mxu0  ;;  %v17761_v19 = vld [vmem:[#allocation38_spill] sm:$0xff]  ;;  %v17762_v21 = vld [vmem:[#allocation37_spill] sm:$0xff] }
 0x1bb   : > { %v12998_v22 = vsel %vm1820_vm10, %v1610_v31, %v2045_v27  ;;  %vm1827_vm12 = vcmp.gt.f32.partialorder %v1613_v50, 0.0  ;;  %v2052_v5 = vmul.f32 %v11477_v56, %v1613_v50  ;;  %v17763_v47 = vpack.c.bf16 %v17761_v19, %v17762_v21  ;;  %v17765_v27 = vld [vmem:[#allocation43_spill] sm:$0xff] }
 0x1bc   : > { %17760 = vst [vmem:[#allocation66_spill] sm:$0xff] %v12998_v22  ;;  %v13007_v25 = vsel %vm1806_vm11, %v1602_v45, %v2031_v12  ;;  %vm1813_vm14 = vcmp.gt.f32.partialorder %v1605_v60, 0.0  ;;  %v2038_v33 = vmul.f32 %v11477_v56, %v1605_v60  ;;  %v13014_v31 = vsel %vm1650_vm9, %v12792_v62, %v12811_v39  ;;  %v17766_v22 = vld [vmem:[#allocation42_spill] sm:$0xff]  ;;  %v10707_v39 = vld [vmem:[%s17435_s4 + $0x2e4] ss:$8 sps:$4 sm:$0xff]  }
 0x1bd   : > { %3364 = vmatmul.mubr.bf16.gmra.mrb[120].mxu1 %v17763_v47  ;;  %17764 = vst [vmem:[#allocation38_spill] sm:$0xff] %v13014_v31  ;;  %v17767_v17 = vpack.c.bf16 %v17765_v27, %v17766_v22  ;;  %v13019_v52 = vsel %vm1827_vm12, %v1613_v50, %v2052_v5  ;;  %v10702_v47 = vld [vmem:[%s17435_s4 + $0x2d0] ss:$8 sps:$4 sm:$0xff]   ;;  %v13026_v45 = vsel %vm1657_vm13, %v12865_v15, %v12881_v11  ;;  %vm1671_vm7 = vcmp.gt.f32.partialorder %v12925_v44, 0.0 }
 0x1be   : > { %3489 = vmatpush1.bf16.msra.mxu1 %v10699_v14  ;;  %17768 = vst [vmem:[#allocation37_spill] sm:$0xff] %v13026_v45  ;;  %v13030_v12 = vadd.f32 %v12657_v42, %v12694_v2  ;;  %v13033_v62 = vsel %vm1813_vm14, %v1605_v60, %v2038_v33  ;;  %v1349_v15 = vadd.f32 %v12664_v49, %v12707_v16  ;;  %vm1679_vm8 = vcmp.gt.f32.partialorder %v12971_v55, 0.0 }
 0x1bf   : > { %3373 = vmatprep.mubr.bf16.mxu1 %v17767_v17  ;;  %v10150_v17 = vpop.f32.mrb[92].mxu1  ;;  %3490 = vmatprep.subr.bf16.mxu1 %v10704_v26  ;;  %v13050_v5 = vsel %vm1665_vm15, %v12913_v61, %v12937_v1  ;;  %v13053_v60 = vsel %vm1672_vm1, %v12941_v38, %v1897_v13  ;;  %v13061_v19 = vadd.f32 %v12718_v35, %v12694_v2  ;;  %v13063_v21 = vpop.f32.mrb[96].mxu0  ;;  %v10705_v13 = vld [vmem:[%s17435_s4 + $0x2e0] ss:$8 sps:$4 sm:$0xff]   ;;  %vm1678_vm10 = vcmp.gt.f32.partialorder %v12964_v7, 0.0 }
 0x1c0   : > { %v1626_v42 = vadd.f32 %v10150_v17, %v11806_v63  ;;  %v1617_v11 = vpop.f32.mrb[93].mxu1  ;;  %v13046_v33 = vmul.f32 %v11477_v56, %v13030_v12  ;;  %17769 = vst [vmem:[#allocation43_spill] sm:$0xff] %v13050_v5  ;;  %17770 = vst [vmem:[#allocation42_spill] sm:$0xff] %v13053_v60  ;;  %v1911_v49 = vmul.f32 %v11477_v56, %v1349_v15  ;;  %v13072_v17 = vpop.f32.mrb[97].mxu0  ;;  %vm1686_vm9 = vcmp.gt.f32.partialorder %v1349_v15, 0.0 }
 0x1c1   : > { %v1618_v50 = vadd.f32 %v1617_v11, %v11806_v63  ;;  %v10151_v14 = vpop.f32.mrb[94].mxu1  ;;  %v1355_v27 = vadd.f32 %v12729_v4, %v12707_v16  ;;  %v13083_v26 = vpop.f32.mrb[98].mxu0  ;;  %vm1685_vm11 = vcmp.gt.f32.partialorder %v13030_v12, 0.0  ;;  %vm1692_vm14 = vcmp.gt.f32.partialorder %v13061_v19, 0.0 }
 0x1c2   : > { %vm1848_vm2 = vcmp.gt.f32.partialorder %v1626_v42, 0.0  ;;  %v2073_v61 = vmul.f32 %v11477_v56, %v1626_v42  ;;  %v1629_v1 = vadd.f32 %v10151_v14, %v11806_v63  ;;  %v1620_v38 = vpop.f32.mrb[95].mxu1  ;;  %3491 = vmatpush1.bf16.msra.mxu1 %v10702_v47  ;;  %v10710_v14 = vld [vmem:[%s17435_s4 + $0x2f4] ss:$8 sps:$4 sm:$0xff]   ;;  %v13081_v47 = vmul.f32 %v11477_v56, %v13061_v19  ;;  %v13089_v60 = vpop.f32.mrb[99].mxu0 }
 0x1c3   : > { %vm1834_vm3 = vcmp.gt.f32.partialorder %v1618_v50, 0.0  ;;  %v2059_v35 = vmul.f32 %v11477_v56, %v1618_v50  ;;  %v1621_v11 = vadd.f32 %v1620_v38, %v11806_v63  ;;  %3492 = vmatprep.subr.bf16.mxu1 %v10707_v39  ;;  %v1918_v5 = vmul.f32 %v11477_v56, %v1355_v27  ;;  %v17772_v63 = vld [vmem:[#allocation48_spill] sm:$0xff]  ;;  %v17773_v39 = vld [vmem:[#allocation47_spill] sm:$0xff] }
 0x1c4   : > { %v13085_v22 = vsel %vm1848_vm2, %v1626_v42, %v2073_v61  ;;  %vm1855_vm4 = vcmp.gt.f32.partialorder %v1629_v1, 0.0  ;;  %v2080_v4 = vmul.f32 %v11477_v56, %v1629_v1  ;;  %v17774_v38 = vpack.c.bf16 %v17772_v63, %v17773_v39 }
 0x1c5   : > { %17771 = vst [vmem:[#allocation67_spill] sm:$0xff] %v13085_v22  ;;  %v13094_v31 = vsel %vm1834_vm3, %v1618_v50, %v2059_v35  ;;  %vm1841_vm5 = vcmp.gt.f32.partialorder %v1621_v11, 0.0  ;;  %v2066_v45 = vmul.f32 %v11477_v56, %v1621_v11  ;;  %v17775_v42 = vpack.c.bf16 %v12363_v48, %v12344_v54  ;;  %v10708_v22 = vld [vmem:[%s17435_s4 + $0x2f0] ss:$8 sps:$4 sm:$0xff]   ;;  %v10713_v54 = vld [vmem:[%s17435_s4 + $0x304] ss:$8 sps:$4 sm:$0xff]  }
 0x1c6   : > { %3374 = vmatmul.mubr.bf16.gmra.mrb[124].mxu1 %v17774_v38  ;;  %v13101_v61 = vsel %vm1855_vm4, %v1629_v1, %v2080_v4  ;;  %v13109_v50 = vsel %vm1664_vm6, %v12876_v29, %v12904_v57  ;;  %v1357_v35 = vadd.f32 %v12736_v18, %v12694_v2  ;;  %v13120_v48 = vsel %vm1671_vm7, %v12925_v44, %v12951_v37 }
 0x1c7   : > { %3383 = vmatprep.mubr.bf16.mxu1 %v17775_v42  ;;  %3493 = vmatpush1.bf16.msra.mxu1 %v10705_v13  ;;  %v13113_v63 = vsel %vm1841_vm5, %v1621_v11, %v2066_v45  ;;  %v1359_v1 = vadd.f32 %v12742_v8, %v12707_v16  ;;  %v13130_v57 = vsel %vm1679_vm8, %v12971_v55, %v12994_v34  ;;  %v13139_v37 = vpop.f32.mrb[100].mxu0  ;;  %vm1693_vm12 = vcmp.gt.f32.partialorder %v1355_v27, 0.0  ;;  %v17785_v11 = vld [vmem:[#allocation53_spill] sm:$0xff] }
 0x1c8   : > { %3494 = vmatprep.subr.bf16.mxu1 %v10710_v14  ;;  %v1924_v18 = vmul.f32 %v11477_v56, %v1357_v35  ;;  %v13133_v13 = vsel %vm1686_vm9, %v1349_v15, %v1911_v49  ;;  %v1363_v44 = vadd.f32 %v12802_v46, %v12694_v2  ;;  %v1365_v8 = vadd.f32 %v12813_v6, %v12707_v16  ;;  %v13147_v34 = vpop.f32.mrb[101].mxu0 }
 0x1c9   : > { %v1925_v45 = vmul.f32 %v11477_v56, %v1359_v1  ;;  %v1367_v55 = vadd.f32 %v12824_v0, %v12694_v2  ;;  %v13157_v15 = vsel %vm1685_vm11, %v13030_v12, %v13046_v33  ;;  %v13159_v49 = vpop.f32.mrb[102].mxu0  ;;  %v1369_v4 = vadd.f32 %v12830_v3, %v12707_v16 }
 0x1ca   : > { %v1931_v46 = vmul.f32 %v11477_v56, %v1363_v44  ;;  %v1932_v6 = vmul.f32 %v11477_v56, %v1365_v8  ;;  %v13166_v39 = vpop.f32.mrb[103].mxu0  ;;  %vm1700_vm13 = vcmp.gt.f32.partialorder %v1359_v1, 0.0  ;;  %v1373_v12 = vadd.f32 %v12886_v58, %v12694_v2 }
 0x1cb   : > { %3495 = vmatpush1.bf16.msra.mxu1 %v10708_v22  ;;  %v13153_v22 = vsel %vm1678_vm10, %v12964_v7, %v12983_v30  ;;  %v1938_v14 = vmul.f32 %v11477_v56, %v1367_v55  ;;  %v17776_v7 = vpack.c.bf16 %v12391_v24, %v12378_v40  ;;  %v13171_v30 = vsel %vm1693_vm12, %v1355_v27, %v1918_v5  ;;  %v17783_v40 = vld [vmem:[#allocation28_spill] sm:$0xff] }
 0x1cc   : > { %3657 = vmatprep.subr.bf16.mxu1 %v10713_v54  ;;  %v1375_v33 = vadd.f32 %v12895_v20, %v12707_v16  ;;  %v17777_v38 = vpack.c.bf16 %v12425_v53, %v12414_v9  ;;  %v1939_v3 = vmul.f32 %v11477_v56, %v1369_v4  ;;  %v13181_v42 = vsel %vm1700_vm13, %v1359_v1, %v1925_v45  ;;  %v17782_v45 = vld [vmem:[#allocation30_spill] sm:$0xff] }
 0x1cd   : > { %vm1699_vm15 = vcmp.gt.f32.partialorder %v1357_v35, 0.0  ;;  %v1945_v24 = vmul.f32 %v11477_v56, %v1373_v12  ;;  %v13190_v20 = vsel %vm1692_vm14, %v13061_v19, %v13081_v47  ;;  %v1377_v53 = vadd.f32 %v12906_v51, %v12694_v2 }
 0x1ce   : > { %3384 = vmatmul.mubr.bf16.gmra.mrb[128].mxu1 %v17776_v7  ;;  %v1946_v58 = vmul.f32 %v11477_v56, %v1375_v33  ;;  %v13192_v9 = vsel %vm1699_vm15, %v1357_v35, %v1924_v18  ;;  %v1379_v5 = vadd.f32 %v12915_v10, %v12707_v16  ;;  %vm1707_vm1 = vcmp.gt.f32.partialorder %v1365_v8, 0.0 }
 0x1cf   : > { %3393 = vmatprep.mubr.bf16.mxu1 %v17777_v38  ;;  %vm1714_vm2 = vcmp.gt.f32.partialorder %v1369_v4, 0.0  ;;  %v13200_v54 = vsel %vm1707_vm1, %v1365_v8, %v1932_v6  ;;  %v1383_v1 = vadd.f32 %v12974_v28, %v12694_v2  ;;  %v13204_v19 = vpop.f32.mrb[104].mxu0  ;;  %v1952_v47 = vmul.f32 %v11477_v56, %v1377_v53 }
 0x1d0   : > { %v1953_v35 = vmul.f32 %v11477_v56, %v1379_v5  ;;  %v13208_v51 = vsel %vm1714_vm2, %v1369_v4, %v1939_v3  ;;  %v1385_v10 = vadd.f32 %v12985_v23, %v12707_v16  ;;  %v1414_v18 = vpop.f32.mrb[105].mxu0  ;;  %vm1706_vm3 = vcmp.gt.f32.partialorder %v1363_v44, 0.0 }
 0x1d1   : > { %v1959_v8 = vmul.f32 %v11477_v56, %v1383_v1  ;;  %vm1713_vm4 = vcmp.gt.f32.partialorder %v1367_v55, 0.0  ;;  %v13215_v28 = vpop.f32.mrb[106].mxu0  ;;  %v13218_v7 = vsel %vm1706_vm3, %v1363_v44, %v1931_v46  ;;  %v1387_v4 = vadd.f32 %v12996_v32, %v12694_v2  ;;  %v17779_v44 = vld [vmem:[#allocation50_spill] sm:$0xff] }
 0x1d2   : > { %v1960_v6 = vmul.f32 %v11477_v56, %v1385_v10  ;;  %v13220_v38 = vsel %vm1713_vm4, %v1367_v55, %v1938_v14  ;;  %v13224_v23 = vpop.f32.mrb[107].mxu0  ;;  %v17778_v3 = vpack.c.bf16 %v12439_v41, %v12430_v59  ;;  %v1389_v27 = vadd.f32 %v13002_v43, %v12707_v16 }
 0x1d3   : > { %vm1721_vm5 = vcmp.gt.f32.partialorder %v1375_v33, 0.0  ;;  %vm1728_vm6 = vcmp.gt.f32.partialorder %v1379_v5, 0.0  ;;  %v17780_v55 = vpack.c.bf16 %v12451_v36, %v17779_v44  ;;  %v1966_v32 = vmul.f32 %v11477_v56, %v1387_v4 }
 0x1d4   : > { %v13237_v46 = vsel %vm1721_vm5, %v1375_v33, %v1946_v58  ;;  %v13239_v14 = vsel %vm1728_vm6, %v1379_v5, %v1953_v35  ;;  %v1393_v59 = vadd.f32 %v13063_v21, %v12694_v2  ;;  %v1967_v41 = vmul.f32 %v11477_v56, %v1389_v27 }
 0x1d5   : > { %vm1720_vm7 = vcmp.gt.f32.partialorder %v1373_v12, 0.0  ;;  %vm1727_vm8 = vcmp.gt.f32.partialorder %v1377_v53, 0.0  ;;  %v1397_v33 = vadd.f32 %v13083_v26, %v12694_v2  ;;  %v1399_v5 = vadd.f32 %v13089_v60, %v12707_v16 }
 0x1d6   : > { %3394 = vmatmul.mubr.bf16.gmra.mrb[132].mxu1 %v17778_v3  ;;  %v1395_v3 = vadd.f32 %v13072_v17, %v12707_v16  ;;  %v1973_v36 = vmul.f32 %v11477_v56, %v1393_v59  ;;  %v13249_v44 = vsel %vm1720_vm7, %v1373_v12, %v1945_v24  ;;  %v13254_v21 = vsel %vm1727_vm8, %v1377_v53, %v1952_v47  ;;  %v17786_v17 = vld [vmem:[#allocation51_spill] sm:$0xff] }
 0x1d7   : > { %3403 = vmatprep.mubr.bf16.mxu1 %v17780_v55  ;;  %vm1735_vm9 = vcmp.gt.f32.partialorder %v1385_v10, 0.0  ;;  %v1422_v35 = vpop.f32.mrb[108].mxu0  ;;  %v1980_v55 = vmul.f32 %v11477_v56, %v1397_v33  ;;  %vm1742_vm10 = vcmp.gt.f32.partialorder %v1389_v27, 0.0  ;;  %v1981_v26 = vmul.f32 %v11477_v56, %v1399_v5 }
 0x1d8   : > { %v1974_v58 = vmul.f32 %v11477_v56, %v1395_v3  ;;  %v13261_v12 = vsel %vm1735_vm9, %v1385_v10, %v1960_v6  ;;  %v1424_v24 = vpop.f32.mrb[109].mxu0  ;;  %v13264_v43 = vsel %vm1742_vm10, %v1389_v27, %v1967_v41  ;;  %v1403_v53 = vadd.f32 %v13139_v37, %v12694_v2 }
 0x1d9   : > { %17781 = vst [vmem:[#allocation48_spill] sm:$0xff] %v13261_v12  ;;  %v1405_v60 = vadd.f32 %v13147_v34, %v12707_v16  ;;  %v1426_v47 = vpop.f32.mrb[110].mxu0  ;;  %vm1734_vm11 = vcmp.gt.f32.partialorder %v1383_v1, 0.0  ;;  %vm1741_vm12 = vcmp.gt.f32.partialorder %v1387_v4, 0.0  ;;  %v1407_v10 = vadd.f32 %v13159_v49, %v12694_v2  ;;  %v17792_v49 = vld [vmem:[#allocation31_spill] sm:$0xff] }
 0x1da   : > { %v1428_v6 = vpop.f32.mrb[111].mxu0  ;;  %v17784_v27 = vpack.c.bf16 %v17782_v45, %v17783_v40  ;;  %v1987_v41 = vmul.f32 %v11477_v56, %v1403_v53  ;;  %v13279_v0 = vsel %vm1734_vm11, %v1383_v1, %v1959_v8  ;;  %v13281_v34 = vsel %vm1741_vm12, %v1387_v4, %v1966_v32 }
 0x1db   : > { %v1988_v37 = vmul.f32 %v11477_v56, %v1405_v60  ;;  %v17787_v29 = vpack.c.bf16 %v17785_v11, %v17786_v17  ;;  %v1994_v12 = vmul.f32 %v11477_v56, %v1407_v10  ;;  %v1409_v40 = vadd.f32 %v13166_v39, %v12707_v16 }
 0x1dc   : > { %vm1749_vm13 = vcmp.gt.f32.partialorder %v1395_v3, 0.0  ;;  %vm1756_vm14 = vcmp.gt.f32.partialorder %v1399_v5, 0.0  ;;  %v1413_v1 = vadd.f32 %v13204_v19, %v12694_v2  ;;  %v1415_v8 = vadd.f32 %v1414_v18, %v12707_v16 }
 0x1dd   : > { %v13291_v45 = vsel %vm1749_vm13, %v1395_v3, %v1974_v58  ;;  %v1995_v11 = vmul.f32 %v11477_v56, %v1409_v40  ;;  %vm1748_vm15 = vcmp.gt.f32.partialorder %v1393_v59, 0.0  ;;  %vm1755_vm1 = vcmp.gt.f32.partialorder %v1397_v33, 0.0 }
 0x1de   : > { %3404 = vmatmul.mubr.bf16.gmra.mrb[136].mxu1 %v17784_v27  ;;  %17788 = vst [vmem:[#allocation47_spill] sm:$0xff] %v13291_v45  ;;  %v2001_v39 = vmul.f32 %v11477_v56, %v1413_v1  ;;  %v2002_v32 = vmul.f32 %v11477_v56, %v1415_v8  ;;  %v13303_v3 = vsel %vm1748_vm15, %v1393_v59, %v1973_v36  ;;  %vm1763_vm2 = vcmp.gt.f32.partialorder %v1405_v60, 0.0  ;;  %v17793_v45 = vld [vmem:[#allocation9_spill] sm:$0xff] }
 0x1df   : > { %3413 = vmatprep.mubr.bf16.mxu1 %v17787_v29  ;;  %v13297_v29 = vsel %vm1756_vm14, %v1399_v5, %v1981_v26  ;;  %17790 = vst [vmem:[#allocation30_spill] sm:$0xff] %v13303_v3  ;;  %v1432_v58 = vpop.f32.mrb[112].mxu0  ;;  %v13305_v17 = vsel %vm1755_vm1, %v1397_v33, %v1980_v55  ;;  %v1417_v19 = vadd.f32 %v13215_v28, %v12694_v2  ;;  %vm1770_vm3 = vcmp.gt.f32.partialorder %v1409_v40, 0.0  ;;  %v17796_v26 = vld [vmem:[#allocation35_spill] sm:$0xff] }
 0x1e0   : > { %17789 = vst [vmem:[#allocation50_spill] sm:$0xff] %v13297_v29  ;;  %v1419_v18 = vadd.f32 %v13224_v23, %v12707_v16  ;;  %v1434_v5 = vpop.f32.mrb[113].mxu0  ;;  %v13313_v27 = vsel %vm1763_vm2, %v1405_v60, %v1988_v37  ;;  %v1423_v59 = vadd.f32 %v1422_v35, %v12694_v2  ;;  %v13318_v4 = vsel %vm1770_vm3, %v1409_v40, %v1995_v11  ;;  %v17795_v35 = vld [vmem:[#allocation34_spill] sm:$0xff] }
 0x1e1   : > { %17791 = vst [vmem:[#allocation28_spill] sm:$0xff] %v13313_v27  ;;  %v1436_v36 = vpop.f32.mrb[114].mxu0  ;;  %v2008_v33 = vmul.f32 %v11477_v56, %v1417_v19  ;;  %v1425_v28 = vadd.f32 %v1424_v24, %v12707_v16  ;;  %v17794_v29 = vpack.c.bf16 %v17792_v49, %v17793_v45  ;;  %vm1762_vm4 = vcmp.gt.f32.partialorder %v1403_v53, 0.0 }
 0x1e2   : > { %v2009_v55 = vmul.f32 %v11477_v56, %v1419_v18  ;;  %v1438_v23 = vpop.f32.mrb[115].mxu0  ;;  %v2015_v37 = vmul.f32 %v11477_v56, %v1423_v59  ;;  %vm1769_vm5 = vcmp.gt.f32.partialorder %v1407_v10, 0.0  ;;  %v17797_v3 = vpack.c.bf16 %v17795_v35, %v17796_v26 }
 0x1e3   : > { %v2016_v40 = vmul.f32 %v11477_v56, %v1425_v28  ;;  %v13331_v11 = vsel %vm1762_vm4, %v1403_v53, %v1987_v41  ;;  %v13333_v24 = vsel %vm1769_vm5, %v1407_v10, %v1994_v12  ;;  %v1427_v49 = vadd.f32 %v1426_v47, %v12694_v2 }
 0x1e4   : > { %17798 = vst [vmem:[#allocation53_spill] sm:$0xff] %v13331_v11  ;;  %vm1777_vm6 = vcmp.gt.f32.partialorder %v1415_v8, 0.0  ;;  %vm1784_vm7 = vcmp.gt.f32.partialorder %v1419_v18, 0.0  ;;  %v1433_v53 = vadd.f32 %v1432_v58, %v12694_v2  ;;  %v1435_v10 = vadd.f32 %v1434_v5, %v12707_v16  ;;  %v17805_v11 = vld [vmem:[#allocation13_spill] sm:$0xff]  ;;  %v17806_v5 = vld [vmem:[#allocation14_spill] sm:$0xff] }
 0x1e5   : > { %v2022_v60 = vmul.f32 %v11477_v56, %v1427_v49  ;;  %v13340_v27 = vsel %vm1777_vm6, %v1415_v8, %v2002_v32  ;;  %vm1776_vm8 = vcmp.gt.f32.partialorder %v1413_v1, 0.0  ;;  %vm1783_vm9 = vcmp.gt.f32.partialorder %v1417_v19, 0.0 }
 0x1e6   : > { %3414 = vmatmul.mubr.bf16.gmra.mrb[140].mxu1 %v17794_v29  ;;  %v1429_v29 = vadd.f32 %v1428_v6, %v12707_v16  ;;  %17799 = vst [vmem:[#allocation51_spill] sm:$0xff] %v13340_v27  ;;  %v2029_v6 = vmul.f32 %v11477_v56, %v1433_v53  ;;  %v13350_v26 = vsel %vm1776_vm8, %v1413_v1, %v2001_v39  ;;  %vm1791_vm10 = vcmp.gt.f32.partialorder %v1425_v28, 0.0  ;;  %v17802_v39 = vld [vmem:[#allocation39_spill] sm:$0xff] }
 0x1e7   : > { %3423 = vmatprep.mubr.bf16.mxu1 %v17797_v3  ;;  %v13342_v3 = vsel %vm1784_vm7, %v1419_v18, %v2009_v55  ;;  %v1442_v41 = vpop.f32.mrb[116].mxu0  ;;  %17801 = vst [vmem:[#allocation9_spill] sm:$0xff] %v13350_v26  ;;  %v1437_v8 = vadd.f32 %v1436_v36, %v12694_v2  ;;  %v2030_v18 = vmul.f32 %v11477_v56, %v1435_v10  ;;  %v17803_v36 = vld [vmem:[#allocation36_spill] sm:$0xff]  ;;  %vm1790_vm12 = vcmp.gt.f32.partialorder %v1423_v59, 0.0 }
 0x1e8   : > { %17800 = vst [vmem:[#allocation31_spill] sm:$0xff] %v13342_v3  ;;  %v2023_v12 = vmul.f32 %v11477_v56, %v1429_v29  ;;  %v1444_v32 = vpop.f32.mrb[117].mxu0  ;;  %v13354_v58 = vsel %vm1783_vm9, %v1417_v19, %v2008_v33  ;;  %v1439_v55 = vadd.f32 %v1438_v23, %v12707_v16  ;;  %vm1798_vm11 = vcmp.gt.f32.partialorder %v1429_v29, 0.0 }
 0x1e9   : > { %v1446_v35 = vpop.f32.mrb[118].mxu0  ;;  %v2036_v47 = vmul.f32 %v11477_v56, %v1437_v8  ;;  %v13360_v45 = vsel %vm1791_vm10, %v1425_v28, %v2016_v40  ;;  %v17804_v27 = vpack.c.bf16 %v17802_v39, %v17803_v36  ;;  %v1443_v23 = vadd.f32 %v1442_v41, %v12694_v2 }
 0x1ea   : > { %v1448_v1 = vpop.f32.mrb[119].mxu0  ;;  %v2037_v19 = vmul.f32 %v11477_v56, %v1439_v55  ;;  %v13366_v33 = vsel %vm1798_vm11, %v1429_v29, %v2023_v12  ;;  %v1445_v3 = vadd.f32 %v1444_v32, %v12707_v16  ;;  %v17807_v26 = vpack.c.bf16 %v17805_v11, %v17806_v5 }
 0x1eb   : > { %vm1797_vm13 = vcmp.gt.f32.partialorder %v1427_v49, 0.0  ;;  %v1447_v40 = vadd.f32 %v1446_v35, %v12694_v2  ;;  %v13378_v12 = vsel %vm1790_vm12, %v1423_v59, %v2015_v37  ;;  %vm1805_vm14 = vcmp.gt.f32.partialorder %v1435_v10, 0.0 }
 0x1ec   : > { %v2044_v29 = vmul.f32 %v11477_v56, %v1445_v3  ;;  %17808 = vst [vmem:[#allocation34_spill] sm:$0xff] %v13378_v12  ;;  %v13380_v41 = vsel %vm1797_vm13, %v1427_v49, %v2022_v60  ;;  %vm1812_vm15 = vcmp.gt.f32.partialorder %v1439_v55, 0.0  ;;  %v13386_v5 = vsel %vm1805_vm14, %v1435_v10, %v2030_v18 }
 0x1ed   : > { %v2050_v11 = vmul.f32 %v11477_v56, %v1447_v40  ;;  %17809 = vst [vmem:[#allocation35_spill] sm:$0xff] %v13386_v5  ;;  %vm1804_vm1 = vcmp.gt.f32.partialorder %v1433_v53, 0.0  ;;  %vm1811_vm2 = vcmp.gt.f32.partialorder %v1437_v8, 0.0  ;;  %v13389_v59 = vsel %vm1812_vm15, %v1439_v55, %v2037_v19  ;;  %v17814_v5 = vld [vmem:[#allocation54_spill] sm:$0xff] }
 0x1ee   : > { %3424 = vmatmul.mubr.bf16.gmra.mrb[144].mxu1 %v17804_v27  ;;  %v2043_v27 = vmul.f32 %v11477_v56, %v1443_v23  ;;  %17810 = vst [vmem:[#allocation39_spill] sm:$0xff] %v13389_v59  ;;  %v13392_v49 = vsel %vm1804_vm1, %v1433_v53, %v2029_v6  ;;  %v13397_v32 = vsel %vm1811_vm2, %v1437_v8, %v2036_v47  ;;  %vm1819_vm3 = vcmp.gt.f32.partialorder %v1445_v3, 0.0  ;;  %v17811_v53 = vld [vmem:[#allocation44_spill] sm:$0xff]  ;;  %v17812_v6 = vld [vmem:[#allocation45_spill] sm:$0xff]  ;;  %v17815_v59 = vld [vmem:[#allocation46_spill] sm:$0xff] }
 0x1ef   : > { %3433 = vmatprep.mubr.bf16.mxu1 %v17807_v26  ;;  %v1449_v26 = vadd.f32 %v1448_v1, %v12707_v16  ;;  %v1452_v35 = vpop.f32.mrb[120].mxu0  ;;  %v17813_v28 = vpack.c.bf16 %v17811_v53, %v17812_v6  ;;  %v13408_v8 = vsel %vm1819_vm3, %v1445_v3, %v2044_v29  ;;  %v17816_v12 = vpack.c.bf16 %v17814_v5, %v17815_v59  ;;  %v17847_v59 = vld [vmem:[#allocation29_spill] sm:$0xff] }
 0x1f0   : > { %v1453_v60 = vadd.f32 %v1452_v35, %v12694_v2  ;;  %v1454_v37 = vpop.f32.mrb[121].mxu0  ;;  %vm1818_vm5 = vcmp.gt.f32.partialorder %v1443_v23, 0.0  ;;  %vm1825_vm6 = vcmp.gt.f32.partialorder %v1447_v40, 0.0  ;;  %vm3029_vm15 = vcmask 261120  }
 0x1f1   : > { %v2051_v39 = vmul.f32 %v11477_v56, %v1449_v26  ;;  %v1455_v1 = vadd.f32 %v1454_v37, %v12707_v16  ;;  %v1456_v10 = vpop.f32.mrb[122].mxu0  ;;  %vm1826_vm4 = vcmp.gt.f32.partialorder %v1449_v26, 0.0  ;;  %v13419_v53 = vsel %vm1818_vm5, %v1443_v23, %v2043_v27 }
 0x1f2   : > { %v2057_v18 = vmul.f32 %v11477_v56, %v1453_v60  ;;  %v1457_v19 = vadd.f32 %v1456_v10, %v12694_v2  ;;  %v1458_v35 = vpop.f32.mrb[123].mxu0  ;;  %17817 = vst [vmem:[#allocation36_spill] sm:$0xff] %v13419_v53  ;;  %vm1832_vm9 = vcmp.gt.f32.partialorder %v1453_v60, 0.0  ;;  %vm4230_vm1 = vcmask 1043456  }
 0x1f3   : > { %v2058_v36 = vmul.f32 %v11477_v56, %v1455_v1  ;;  %v1459_v47 = vadd.f32 %v1458_v35, %v12707_v16  ;;  %v13410_v37 = vsel %vm1826_vm4, %v1449_v26, %v2051_v39  ;;  %v13421_v35 = vsel %vm1825_vm6, %v1447_v40, %v2050_v11  ;;  %v17846_v11 = vld [vmem:[#allocation23_spill] sm:$0xff]  ;;  %v17848_v39 = vld [vmem:[#allocation33_spill] sm:$0xff] }
 0x1f4   : > { %v2064_v10 = vmul.f32 %v11477_v56, %v1457_v19  ;;  %17818 = vst [vmem:[#allocation13_spill] sm:$0xff] %v13421_v35  ;;  %vm1833_vm7 = vcmp.gt.f32.partialorder %v1455_v1, 0.0  ;;  %vm1839_vm10 = vcmp.gt.f32.partialorder %v1457_v19, 0.0  ;;  %v13429_v5 = vsel %vm1832_vm9, %v1453_v60, %v2057_v18  ;;  %v17836_v35 = vld [vmem:[#allocation17_spill] sm:$0xff] }
 0x1f5   : > { %vm1840_vm8 = vcmp.gt.f32.partialorder %v1459_v47, 0.0  ;;  %v13425_v29 = vsel %vm1833_vm7, %v1455_v1, %v2058_v36  ;;  %17821 = vst [vmem:[#allocation45_spill] sm:$0xff] %v13429_v5  ;;  %v17844_v36 = vld [vmem:[#allocation61_spill] sm:$0xff]  ;;  %v17851_v1 = vld [vmem:[#allocation66_spill] sm:$0xff]  ;;  %vm4181_vm6 = vcmask 588800  }
 0x1f6   : > { %3434 = vmatmul.mubr.bf16.gmra.mrb[148].mxu1 %v17813_v28  ;;  %v2065_v28 = vmul.f32 %v11477_v56, %v1459_v47  ;;  %17819 = vst [vmem:[#allocation14_spill] sm:$0xff] %v13425_v29  ;;  %v13436_v6 = vsel %vm1839_vm10, %v1457_v19, %v2064_v10  ;;  %v17856_v29 = vld [vmem:[#allocation63_spill] sm:$0xff] }
 0x1f7   : > { %3443 = vmatprep.mubr.bf16.mxu1 %v17816_v12  ;;  %v1462_v12 = vpop.f32.mrb[124].mxu0  ;;  %17824 = vst [vmem:[#allocation54_spill] sm:$0xff] %v13436_v6 }
 0x1f8   : > { %v13427_v26 = vsel %vm1840_vm8, %v1459_v47, %v2065_v28  ;;  %v1463_v40 = vadd.f32 %v1462_v12, %v12694_v2  ;;  %v1464_v27 = vpop.f32.mrb[125].mxu0 }
 0x1f9   : > { %17820 = vst [vmem:[#allocation44_spill] sm:$0xff] %v13427_v26  ;;  %v1465_v47 = vadd.f32 %v1464_v27, %v12707_v16  ;;  %v1466_v28 = vpop.f32.mrb[126].mxu0  ;;  %v17835_v26 = vld [vmem:[#allocation49_spill] sm:$0xff]  ;;  %v17845_v27 = vld [vmem:[#allocation60_spill] sm:$0xff] }
 0x1fa   : > { %v2071_v53 = vmul.f32 %v11477_v56, %v1463_v40  ;;  %v1467_v19 = vadd.f32 %v1466_v28, %v12694_v2  ;;  %v1468_v10 = vpop.f32.mrb[127].mxu0  ;;  %v17837_v60 = vpack.c.bf16 %v17835_v26, %v17836_v35  ;;  %v17840_v2 = vld [vmem:[#allocation58_spill] sm:$0xff]  ;;  %v17841_v28 = vld [vmem:[#allocation57_spill] sm:$0xff]  ;;  %vm1846_vm12 = vcmp.gt.f32.partialorder %v1463_v40, 0.0  ;;  %v17869_v35 = vld [vmem:[#allocation43_spill] sm:$0xff] }
 0x1fb   : > { %v2072_v23 = vmul.f32 %v11477_v56, %v1465_v47  ;;  %v1469_v18 = vadd.f32 %v1468_v10, %v12707_v16  ;;  %vm1847_vm11 = vcmp.gt.f32.partialorder %v1465_v47, 0.0  ;;  %v17842_v55 = vpack.c.bf16 %v17840_v2, %v17841_v28  ;;  %v17850_v28 = vld [vmem:[#allocation27_spill] sm:$0xff] }
 0x1fc   : > { %v2078_v3 = vmul.f32 %v11477_v56, %v1467_v19  ;;  %vm1853_vm13 = vcmp.gt.f32.partialorder %v1467_v19, 0.0  ;;  %v2295_v16 = vsel %vm1846_vm12, %v1463_v40, %v2071_v53  ;;  %v17862_v40 = vld [vmem:[#allocation65_spill] sm:$0xff] }
 0x1fd   : > { %v2079_v26 = vmul.f32 %v11477_v56, %v1469_v18  ;;  %vm1854_vm14 = vcmp.gt.f32.partialorder %v1469_v18, 0.0  ;;  %v17868_v56 = vld [vmem:[#allocation42_spill] sm:$0xff] }
 0x1fe   : > { %3444 = vmatmul.mubr.bf16.gmra.mrb[152].mxu1 %v17837_v60  ;;  %v2296_v60 = vsel %vm1847_vm11, %v1465_v47, %v2072_v23  ;;  %v2302_v10 = vsel %vm1853_vm13, %v1467_v19, %v2078_v3  ;;  %v17852_v3 = vld [vmem:[#allocation67_spill] sm:$0xff]  ;;  %v17853_v47 = vld [vmem:[#allocation25_spill] sm:$0xff]  ;;  %v17854_v19 = vld [vmem:[#allocation26_spill] sm:$0xff]  ;;  %v17870_v12 = vpack.c.bf16 %v17868_v56, %v17869_v35  ;;  %v17875_v56 = vpack.c.bf16 %v13192_v9, %v13190_v20 }
 0x1ff   : > { %3453 = vmatprep.mubr.bf16.mxu1 %v17842_v55  ;;  %v17849_v55 = vld [vmem:[#allocation64_spill] sm:$0xff]  ;;  %v2303_v5 = vsel %vm1854_vm14, %v1469_v18, %v2079_v26  ;;  %v2515_v6 = vpack.c.bf16 %v2302_v10, %v2295_v16  ;;  %v17855_v2 = vpack.c.bf16 %v17853_v47, %v17854_v19  ;;  %v17857_v18 = vld [vmem:[#allocation62_spill] sm:$0xff]  ;;  %v17865_v19 = vld [vmem:[#allocation37_spill] sm:$0xff] }
 0x200   : > { %v2516_v23 = vpack.c.bf16 %v2303_v5, %v2296_v60  ;;  %v17858_v26 = vpack.c.bf16 %v17856_v29, %v17857_v18  ;;  %v10711_v16 = vld [vmem:[%s17435_s4 + $0x300] ss:$8 sps:$4 sm:$0xff]   ;;  %v10716_v5 = vld [vmem:[%s17435_s4 + $0x314] ss:$8 sps:$4 sm:$0xff]   ;;  %v10714_v29 = vld [vmem:[%s17435_s4 + $0x310] ss:$8 sps:$4 sm:$0xff]  }
 0x201   : > { %v17859_v60 = vld [vmem:[#allocation59_spill] sm:$0xff]  ;;  %v17860_v10 = vld [vmem:[#allocation22_spill] sm:$0xff]  ;;  %v17863_v47 = vld [vmem:[#allocation32_spill] sm:$0xff] }
 0x202   : > { %v17861_v53 = vpack.c.bf16 %v17859_v60, %v17860_v10  ;;  %v17866_v18 = vld [vmem:[#allocation38_spill] sm:$0xff]  ;;  %v17884_v20 = vld [vmem:[#allocation47_spill] sm:$0xff] }
 0x203   : > { %v17900_v35 = vld [vmem:[#allocation39_spill] sm:$0xff] }
 0x204   : > { %v17901_v60 = vld [vmem:[#allocation35_spill] sm:$0xff] }
 0x205   : > { %v10717_v10 = vld [vmem:[%s17437_s6] sm:$0xff]  }
 0x206   : > { %3454 = vmatmul.mubr.bf16.gmra.mrb[156].mxu1 %v17855_v2  ;;  %v17864_v2 = vpack.c.bf16 %v17862_v40, %v17863_v47  ;;  %v17872_v40 = vpack.c.bf16 %v13133_v13, %v13130_v57  ;;  %v17878_v57 = vpack.c.bf16 %v13239_v14, %v13237_v46  ;;  %v17879_v13 = vpack.c.bf16 %v13254_v21, %v13249_v44  ;;  %v17890_v46 = vld [vmem:[#allocation53_spill] sm:$0xff]  ;;  %v17893_v44 = vld [vmem:[#allocation51_spill] sm:$0xff] }
 0x207   : > { %3496 = vmatprep.mubr.bf16.mxu1 %v17858_v26  ;;  %v17867_v26 = vpack.c.bf16 %v17865_v19, %v17866_v18  ;;  %v17891_v14 = vpack.c.bf16 %v13333_v24, %v17890_v46  ;;  %v17895_v21 = vld [vmem:[#allocation9_spill] sm:$0xff]  ;;  %v17902_v24 = vpack.c.bf16 %v17900_v35, %v17901_v60  ;;  %4235 = vmatpush1.bf16.msra.mxu0 %v10717_v10  ;;  %v17903_v47 = vmov 0   ;;  %v17909_v19 = vld [vmem:[#allocation44_spill] sm:$0xff]  ;;  %v17910_v18 = vld [vmem:[#allocation14_spill] sm:$0xff] }
 0x208   : > { %4236 = vmatprep.subr.bf16.mxu0 %v17903_v47  ;;  %v17927_v46 = vld [vmem:[#allocation18_spill] sm:$0xff]  ;;  %v17937_v35 = vld [vmem:[#allocation56_spill] sm:$0xff] }
 0x20e   : > { %3497 = vmatmul.mubr.bf16.vlgmr.msra.gmra.mrb[96].mxu1 %v17861_v53  ;;  %v17871_v53 = vpack.c.bf16 %v13120_v48, %v13109_v50  ;;  %v17876_v50 = vpack.c.bf16 %v13208_v51, %v13200_v54  ;;  %v17877_v48 = vpack.c.bf16 %v13220_v38, %v13218_v7  ;;  %v17886_v54 = vld [vmem:[#allocation30_spill] sm:$0xff]  ;;  %v17888_v7 = vld [vmem:[#allocation28_spill] sm:$0xff] }
 0x20f   : > { %3658 = vmatpush1.bf16.msra.mxu1 %v10711_v16  ;;  %3506 = vmatprep.mubr.bf16.mxu1 %v17864_v2  ;;  %v17873_v16 = vpack.c.bf16 %v13157_v15, %v13153_v22  ;;  %v17880_v22 = vld [vmem:[#allocation48_spill] sm:$0xff]  ;;  %v17887_v51 = vpack.c.bf16 %v13305_v17, %v17886_v54  ;;  %v17889_v38 = vpack.c.bf16 %v13318_v4, %v17888_v7  ;;  %v10728_v54 = vld [vmem:[%s17437_s6 + $0x58] sm:$0xff]  }
 0x210   : > { %3659 = vmatprep.subr.bf16.mxu1 %v10716_v5  ;;  %v17874_v5 = vpack.c.bf16 %v13181_v42, %v13171_v30  ;;  %v17881_v15 = vpack.c.bf16 %v13264_v43, %v17880_v22  ;;  %v17882_v30 = vpack.c.bf16 %v13281_v34, %v13279_v0  ;;  %v17883_v42 = vld [vmem:[#allocation50_spill] sm:$0xff]  ;;  %v17892_v43 = vld [vmem:[#allocation31_spill] sm:$0xff]  ;;  %v17896_v34 = vpack.c.bf16 %v13354_v58, %v17895_v21  ;;  %v17925_v7 = vld [vmem:[#allocation40_spill] sm:$0xff] }
 0x211   : > { %v17885_v9 = vpack.c.bf16 %v17883_v42, %v17884_v20  ;;  %v17894_v0 = vpack.c.bf16 %v17892_v43, %v17893_v44  ;;  %v17897_v17 = vpack.c.bf16 %v13366_v33, %v13360_v45  ;;  %v17904_v58 = vpack.c.bf16 %v13397_v32, %v13392_v49  ;;  %v17906_v33 = vld [vmem:[#allocation13_spill] sm:$0xff]  ;;  %v17912_v32 = vld [vmem:[#allocation54_spill] sm:$0xff]  ;;  %v10725_v22 = vld [vmem:[%s17437_s6 + $0x40] sm:$0xff]  }
 0x212   : > { %v17905_v45 = vpack.c.bf16 %v13410_v37, %v13408_v8  ;;  %v17913_v49 = vld [vmem:[#allocation45_spill] sm:$0xff]  ;;  %v10720_v37 = vld [vmem:[%s17437_s6 + $0x18] sm:$0xff]   ;;  %v17930_v44 = vld [vmem:[#allocation15_spill] sm:$0xff] }
 0x213   : > { %3660 = vmatpush1.bf16.msra.mxu1 %v10714_v29  ;;  %v10718_v29 = vld [vmem:[%s17437_s6 + $0x8] sm:$0xff]   ;;  %v10719_v8 = vld [vmem:[%s17437_s6 + $0x10] sm:$0xff]  }
 0x214   : > { %4237 = vmatpush1.bf16.msra.mxu0 %v10718_v29  ;;  %v17922_v42 = vld [vmem:[#allocation41_spill] sm:$0xff]  ;;  %v17950_v29 = vld [vmem:[#allocation6_spill] sm:$0xff] }
 0x215   : > { %4238 = vmatprep.subr.bf16.mxu0 %v17903_v47 }
 0x216   : > { %3507 = vmatmul.mubr.bf16.gmra.mrb[100].mxu1 %v17867_v26  ;;  %v17911_v26 = vpack.c.bf16 %v17909_v19, %v17910_v18 }
 0x217   : > { %3516 = vmatprep.mubr.bf16.mxu1 %v17870_v12  ;;  %v17898_v12 = vld [vmem:[#allocation34_spill] sm:$0xff] }
 0x218   : > { %v17899_v4 = vpack.c.bf16 %v13380_v41, %v17898_v12  ;;  %v17907_v41 = vld [vmem:[#allocation36_spill] sm:$0xff]  ;;  %4239 = vmatpush1.bf16.msra.mxu0 %v10719_v8 }
 0x219   : > { %v17908_v2 = vpack.c.bf16 %v17906_v33, %v17907_v41  ;;  %4240 = vmatprep.subr.bf16.mxu0 %v17903_v47 }
 0x21c   : > { %4241 = vmatpush1.bf16.msra.mxu0 %v10720_v37 }
 0x21d   : > { %4242 = vmatprep.subr.bf16.mxu0 %v17903_v47 }
 0x21e   : > { %3517 = vmatmul.mubr.bf16.gmra.mrb[104].mxu1 %v17871_v53  ;;  %v17914_v53 = vpack.c.bf16 %v17912_v32, %v17913_v49 }
 0x21f   : > { %3526 = vmatprep.mubr.bf16.mxu1 %v17872_v40  ;;  %v10721_v40 = vld [vmem:[%s17437_s6 + $0x20] sm:$0xff]  }
 0x220   : > { %4243 = vmatpush1.bf16.msra.mxu0 %v10721_v40 }
 0x221   : > { %4244 = vmatprep.subr.bf16.mxu0 %v17903_v47 }
 0x226   : > { %3527 = vmatmul.mubr.bf16.gmra.mrb[108].mxu1 %v17873_v16  ;;  %v17916_v16 = vld [vmem:[#allocation8_spill] sm:$0xff] }
 0x227   : > { %3536 = vmatprep.mubr.bf16.mxu1 %v17874_v5 }
 0x22e   : > { %3537 = vmatmul.mubr.bf16.gmra.mrb[112].mxu1 %v17875_v56  ;;  %v10723_v56 = vld [vmem:[%s17437_s6 + $0x30] sm:$0xff]  }
 0x22f   : > { %3546 = vmatprep.mubr.bf16.mxu1 %v17876_v50  ;;  %v10724_v50 = vld [vmem:[%s17437_s6 + $0x38] sm:$0xff]  }
 0x236   : > { %3547 = vmatmul.mubr.bf16.gmra.mrb[116].mxu1 %v17877_v48  ;;  %v17918_v48 = vld [vmem:[#allocation7_spill] sm:$0xff] }
 0x237   : > { %3556 = vmatprep.mubr.bf16.mxu1 %v17878_v57  ;;  %v17919_v57 = vld [vmem:[#allocation52_spill] sm:$0xff] }
 0x23e   : > { %3557 = vmatmul.mubr.bf16.gmra.mrb[120].mxu1 %v17879_v13  ;;  %v17920_v13 = vpack.c.bf16 %v17918_v48, %v17919_v57 }
 0x23f   : > { %3566 = vmatprep.mubr.bf16.mxu1 %v17881_v15  ;;  %v10726_v15 = vld [vmem:[%s17437_s6 + $0x48] sm:$0xff]  }
 0x246   : > { %3567 = vmatmul.mubr.bf16.gmra.mrb[124].mxu1 %v17882_v30  ;;  %v17921_v30 = vld [vmem:[#allocation11_spill] sm:$0xff] }
 0x247   : > { %3576 = vmatprep.mubr.bf16.mxu1 %v17885_v9  ;;  %v17923_v20 = vpack.c.bf16 %v17921_v30, %v17922_v42  ;;  %v10727_v9 = vld [vmem:[%s17437_s6 + $0x50] sm:$0xff]  }
 0x24e   : > { %3577 = vmatmul.mubr.bf16.gmra.mrb[128].mxu1 %v17887_v51  ;;  %v17924_v51 = vld [vmem:[#allocation12_spill] sm:$0xff] }
 0x24f   : > { %3586 = vmatprep.mubr.bf16.mxu1 %v17889_v38  ;;  %v17926_v38 = vpack.c.bf16 %v17924_v51, %v17925_v7  ;;  %v10732_v7 = vld [vmem:[%s17439_s8 + $0x10] ss:$0 sps:$4 sm:$0xff]  }
 0x256   : > { %3587 = vmatmul.mubr.bf16.gmra.mrb[132].mxu1 %v17891_v14  ;;  %v17928_v14 = vld [vmem:[#allocation16_spill] sm:$0xff] }
 0x257   : > { %3596 = vmatprep.mubr.bf16.mxu1 %v17894_v0  ;;  %v17929_v43 = vpack.c.bf16 %v17927_v46, %v17928_v14  ;;  %v17931_v0 = vld [vmem:[#allocation55_spill] sm:$0xff] }
 0x258   : > { %v17932_v21 = vpack.c.bf16 %v17930_v44, %v17931_v0 }
 0x25e   : > { %3597 = vmatmul.mubr.bf16.gmra.mrb[136].mxu1 %v17896_v34  ;;  %v17933_v34 = vld [vmem:[#allocation21_spill] sm:$0xff] }
 0x25f   : > { %3606 = vmatprep.mubr.bf16.mxu1 %v17897_v17  ;;  %v17934_v17 = vld [vmem:[#allocation20_spill] sm:$0xff] }
 0x260   : > { %v17935_v12 = vpack.c.bf16 %v17933_v34, %v17934_v17 }
 0x266   : > { %3607 = vmatmul.mubr.bf16.gmra.mrb[140].mxu1 %v17899_v4  ;;  %v17936_v4 = vld [vmem:[#allocation19_spill] sm:$0xff] }
 0x267   : > { %3616 = vmatprep.mubr.bf16.mxu1 %v17902_v24  ;;  %v17938_v60 = vpack.c.bf16 %v17936_v4, %v17937_v35  ;;  %v17939_v24 = vld [vmem:[#allocation24_spill] sm:$0xff]  ;;  %v4584_v35 = vsel %vm4230_vm1, %v10732_v7, 0 }
 0x268   : > { %v17940_v10 = vpack.c.bf16 %v17844_v36, %v17939_v24  ;;  %v17943_v36 = vpack.c.bf16 %v17850_v28, %v17849_v55  ;;  %v17946_v55 = vpack.c.bf16 %v13113_v63, %v13094_v31  ;;  %v17949_v63 = vld [vmem:[#allocation5_spill] sm:$0xff] }
 0x26e   : > { %3617 = vmatmul.mubr.bf16.gmra.mrb[144].mxu1 %v17904_v58  ;;  %v17941_v58 = vpack.c.bf16 %v17846_v11, %v17845_v27  ;;  %v10729_v11 = vld [vmem:[%s17437_s6 + $0x60] ss:$0 sps:$4 sm:$0xff]  }
 0x26f   : > { %3626 = vmatprep.mubr.bf16.mxu1 %v17905_v45  ;;  %v17942_v45 = vpack.c.bf16 %v17848_v39, %v17847_v59  ;;  %v4232_v27 = vsel %vm4230_vm1, %v10729_v11, 0  ;;  %v17944_v39 = vpack.c.bf16 %v13033_v62, %v13007_v25  ;;  %v17945_v59 = vpack.c.bf16 %v13019_v52, %v17851_v1  ;;  %v10730_v52 = vld [vmem:[%s17439_s8] sm:$0xff]   ;;  %v17948_v1 = vld [vmem:[#allocation4_spill] sm:$0xff] }
 0x270   : > { %v17947_v25 = vpack.c.bf16 %v13101_v61, %v17852_v3  ;;  %v2405_v62 = vld [vmem:[%s17436_s5] sm:$0x3] }
 0x271   : > { %v13722_v31 = vrot.slane %v2405_v62, %v17948_v1  ;;  %v13725_v28 = vrot.slane %v2405_v62, %v17949_v63 }
 0x276   : > { %3627 = vmatmul.mubr.bf16.gmra.mrb[148].mxu1 %v17908_v2 }
 0x277   : > { %3636 = vmatprep.mubr.bf16.mxu1 %v17911_v26 }
 0x27e   : > { %3637 = vmatmul.mubr.bf16.gmra.mrb[152].mxu1 %v17914_v53 }
 0x27f   : > { %3646 = vmatprep.mubr.bf16.mxu1 %v2516_v23  ;;  %v10722_v23 = vld [vmem:[%s17437_s6 + $0x28] sm:$0xff]  }
 0x280   : > { %4245 = vmatpush1.bf16.msra.mxu0 %v10722_v23 }
 0x281   : > { %4246 = vmatprep.subr.bf16.mxu0 %v17903_v47 }
 0x284   : > { %4247 = vmatpush1.bf16.msra.mxu0 %v10723_v56 }
 0x285   : > { %4248 = vmatprep.subr.bf16.mxu0 %v17903_v47 }
 0x286   : > { %3647 = vmatmul.mubr.bf16.gmra.mrb[156].mxu1 %v2515_v6  ;;  %v17915_v6 = vld [vmem:[#allocation10_spill] sm:$0xff] }
 0x287   : > { %3689 = vmatprep.mubr.bf16.mxu1 %v17903_v47  ;;  %v17917_v5 = vpack.c.bf16 %v17915_v6, %v17916_v16 }
 0x288   : > { %4249 = vmatpush1.bf16.msra.mxu0 %v10724_v50 }
 0x289   : > { %4250 = vmatprep.subr.bf16.mxu0 %v17903_v47 }
 0x28c   : > { %4251 = vmatpush1.bf16.msra.mxu0 %v10725_v22  ;;  %v10731_v22 = vld [vmem:[%s17439_s8 + $0x8] sm:$0xff]  }
 0x28d   : > { %4252 = vmatprep.subr.bf16.mxu0 %v17903_v47 }
 0x28e   : > { %9369 = vmatmul.mubr.msk.bf16.vlgmr.msra.gmra.mrb[96].mxu1 %vm3029_vm15, %v17917_v5 }
 0x28f   : > { %3699 = vmatprep.mubr.bf16.mxu1 %v17903_v47 }
 0x290   : > { %4253 = vmatpush1.bf16.msra.mxu0 %v10726_v15 }
 0x291   : > { %4254 = vmatprep.subr.bf16.mxu0 %v17903_v47 }
 0x294   : > { %4255 = vmatpush1.bf16.msra.mxu0 %v10727_v9 }
 0x295   : > { %4256 = vmatprep.subr.bf16.mxu0 %v17903_v47 }
 0x296   : > { %9370 = vmatmul.mubr.msk.bf16.gmra.mrb[100].mxu1 %vm3029_vm15, %v17920_v13 }
 0x297   : > { %3709 = vmatprep.mubr.bf16.mxu1 %v17903_v47 }
 0x298   : > { %4257 = vmatpush1.bf16.msra.mxu0 %v10728_v54 }
 0x299   : > { %4258 = vmatprep.subr.bf16.mxu0 %v17903_v47 }
 0x29c   : > { %4259 = vmatpush1.bf16.msra.mxu0 %v4232_v27 }
 0x29d   : > { %10152 = vmatprep.subr.bf16.mxu0 %v10730_v52 }
 0x29e   : > { %9371 = vmatmul.mubr.msk.bf16.gmra.mrb[104].mxu1 %vm3029_vm15, %v17923_v20 }
 0x29f   : > { %3719 = vmatprep.mubr.bf16.mxu1 %v17903_v47 }
 0x2a6   : > { %9372 = vmatmul.mubr.msk.bf16.gmra.mrb[108].mxu1 %vm3029_vm15, %v17926_v38 }
 0x2a7   : > { %3729 = vmatprep.mubr.bf16.mxu1 %v17903_v47 }
 0x2ae   : > { %9373 = vmatmul.mubr.msk.bf16.gmra.mrb[112].mxu1 %vm3029_vm15, %v17929_v43 }
 0x2af   : > { %3739 = vmatprep.mubr.bf16.mxu1 %v17903_v47 }
 0x2b6   : > { %9374 = vmatmul.mubr.msk.bf16.gmra.mrb[116].mxu1 %vm3029_vm15, %v17932_v21 }
 0x2b7   : > { %3749 = vmatprep.mubr.bf16.mxu1 %v17903_v47 }
 0x2be   : > { %9375 = vmatmul.mubr.msk.bf16.gmra.mrb[120].mxu1 %vm3029_vm15, %v17935_v12 }
 0x2bf   : > { %3759 = vmatprep.mubr.bf16.mxu1 %v17903_v47 }
 0x2c6   : > { %9376 = vmatmul.mubr.msk.bf16.gmra.mrb[124].mxu1 %vm3029_vm15, %v17938_v60 }
 0x2c7   : > { %3769 = vmatprep.mubr.bf16.mxu1 %v17903_v47 }
 0x2ce   : > { %9377 = vmatmul.mubr.msk.bf16.gmra.mrb[128].mxu1 %vm3029_vm15, %v17940_v10 }
 0x2cf   : > { %3779 = vmatprep.mubr.bf16.mxu1 %v17903_v47 }
 0x2d6   : > { %9378 = vmatmul.mubr.msk.bf16.gmra.mrb[132].mxu1 %vm3029_vm15, %v17941_v58 }
 0x2d7   : > { %3789 = vmatprep.mubr.bf16.mxu1 %v17903_v47 }
 0x2de   : > { %9379 = vmatmul.mubr.msk.bf16.gmra.mrb[136].mxu1 %vm3029_vm15, %v17942_v45 }
 0x2df   : > { %3799 = vmatprep.mubr.bf16.mxu1 %v17903_v47 }
 0x2e6   : > { %9380 = vmatmul.mubr.msk.bf16.gmra.mrb[140].mxu1 %vm3029_vm15, %v17943_v36 }
 0x2e7   : > { %3809 = vmatprep.mubr.bf16.mxu1 %v17903_v47 }
 0x2ee   : > { %9381 = vmatmul.mubr.msk.bf16.gmra.mrb[144].mxu1 %vm3029_vm15, %v17944_v39 }
 0x2ef   : > { %3819 = vmatprep.mubr.bf16.mxu1 %v17903_v47 }
 0x2f6   : > { %9382 = vmatmul.mubr.msk.bf16.gmra.mrb[148].mxu1 %vm3029_vm15, %v17945_v59 }
 0x2f7   : > { %3829 = vmatprep.mubr.bf16.mxu1 %v17903_v47 }
 0x2fe   : > { %9383 = vmatmul.mubr.msk.bf16.gmra.mrb[152].mxu1 %vm3029_vm15, %v17946_v55 }
 0x2ff   : > { %3839 = vmatprep.mubr.bf16.mxu1 %v17903_v47 }
 0x306   : > { %9384 = vmatmul.mubr.msk.bf16.gmra.mrb[156].mxu1 %vm3029_vm15, %v17947_v25 }
 0x361   : > { %v3691_v33 = vpop.f32.mrb[96].mxu1 }
 0x362   : > { %v10260_v61 = vadd.f32 %v3691_v33, %v13722_v31  ;;  %v3693_v3 = vpop.f32.mrb[97].mxu1 }
 0x363   : > { %v10261_v41 = vadd.f32 %v3693_v3, %v13725_v28  ;;  %v3695_v2 = vpop.f32.mrb[98].mxu1 }
 0x364   : > { %v3914_v19 = vmul.f32 %v10260_v61, %v17950_v29  ;;  %v10262_v18 = vadd.f32 %v3695_v2, %v13722_v31  ;;  %v3697_v26 = vpop.f32.mrb[99].mxu1  ;;  %vm3850_vm2 = vcmp.gt.f32.partialorder %v10260_v61, 0.0 }
 0x365   : > { %v3915_v32 = vmul.f32 %v10261_v41, %v17950_v29  ;;  %v10263_v49 = vadd.f32 %v3697_v26, %v13725_v28  ;;  %vm3851_vm3 = vcmp.gt.f32.partialorder %v10261_v41, 0.0 }
 0x366   : > { %vm3852_vm4 = vcmp.gt.f32.partialorder %v10262_v18, 0.0  ;;  %v3916_v53 = vmul.f32 %v10262_v18, %v17950_v29  ;;  %v3978_v37 = vsel %vm3850_vm2, %v10260_v61, %v3914_v19 }
 0x367   : > { %vm3853_vm5 = vcmp.gt.f32.partialorder %v10263_v49, 0.0  ;;  %v3917_v8 = vmul.f32 %v10263_v49, %v17950_v29  ;;  %v3979_v23 = vsel %vm3851_vm3, %v10261_v41, %v3915_v32 }
 0x368   : > { %v3980_v40 = vsel %vm3852_vm4, %v10262_v18, %v3916_v53 }
 0x369   : > { %v4068_v6 = vpack.c.bf16 %v3980_v40, %v3978_v37  ;;  %v3981_v16 = vsel %vm3853_vm5, %v10263_v49, %v3917_v8  ;;  %v3701_v5 = vpop.f32.mrb[100].mxu1 }
 0x36a   : > { %v10264_v56 = vadd.f32 %v3701_v5, %v13722_v31  ;;  %v3703_v50 = vpop.f32.mrb[101].mxu1  ;;  %v4069_v48 = vpack.c.bf16 %v3981_v16, %v3979_v23 }
 0x36b   : > { %v10265_v57 = vadd.f32 %v3703_v50, %v13725_v28  ;;  %v3705_v13 = vpop.f32.mrb[102].mxu1 }
 0x36c   : > { %v3918_v15 = vmul.f32 %v10264_v56, %v17950_v29  ;;  %v10266_v30 = vadd.f32 %v3705_v13, %v13722_v31  ;;  %v3707_v42 = vpop.f32.mrb[103].mxu1  ;;  %9399 = vmatprep.mubr.msk.bf16.mxu0 %vm4181_vm6, %v4069_v48  ;;  %vm3854_vm7 = vcmp.gt.f32.partialorder %v10264_v56, 0.0 }
 0x36d   : > { %v3919_v20 = vmul.f32 %v10265_v57, %v17950_v29  ;;  %v10267_v9 = vadd.f32 %v3707_v42, %v13725_v28  ;;  %4267 = vmatmul.mubr.bf16.vlgmr.msra.gmra.mrb[128].mxu0 %v4068_v6  ;;  %vm3855_vm8 = vcmp.gt.f32.partialorder %v10265_v57, 0.0 }
 0x36e   : > { %v3920_v54 = vmul.f32 %v10266_v30, %v17950_v29  ;;  %vm3856_vm9 = vcmp.gt.f32.partialorder %v10266_v30, 0.0  ;;  %10153 = vmatpush3.bf16.msra.mxu0 %v10730_v52  ;;  %v3982_v38 = vsel %vm3854_vm7, %v10264_v56, %v3918_v15 }
 0x36f   : > { %vm3857_vm10 = vcmp.gt.f32.partialorder %v10267_v9, 0.0  ;;  %v3921_v51 = vmul.f32 %v10267_v9, %v17950_v29  ;;  %10154 = vmatprep.subr.bf16.mxu0 %v10731_v22  ;;  %v3983_v14 = vsel %vm3855_vm8, %v10265_v57, %v3919_v20 }
 0x370   : > { %v3984_v46 = vsel %vm3856_vm9, %v10266_v30, %v3920_v54 }
 0x371   : > { %v3985_v43 = vsel %vm3857_vm10, %v10267_v9, %v3921_v51  ;;  %v3711_v44 = vpop.f32.mrb[104].mxu1  ;;  %v4070_v0 = vpack.c.bf16 %v3984_v46, %v3982_v38 }
 0x372   : > { %v10268_v21 = vadd.f32 %v3711_v44, %v13722_v31  ;;  %v3713_v34 = vpop.f32.mrb[105].mxu1  ;;  %v4071_v17 = vpack.c.bf16 %v3985_v43, %v3983_v14  ;;  %10155 = vmatpush3.bf16.msra.mxu0 %v10731_v22 }
 0x373   : > { %v10269_v12 = vadd.f32 %v3713_v34, %v13725_v28  ;;  %v3715_v4 = vpop.f32.mrb[106].mxu1  ;;  %10516 = vmatprep.subr.msk.bf16.mxu0 %vm4230_vm1, %v10732_v7 }
 0x374   : > { %v3922_v60 = vmul.f32 %v10268_v21, %v17950_v29  ;;  %v10270_v24 = vadd.f32 %v3715_v4, %v13722_v31  ;;  %v3717_v10 = vpop.f32.mrb[107].mxu1  ;;  %9400 = vmatprep.mubr.msk.bf16.mxu0 %vm4181_vm6, %v4071_v17  ;;  %vm3858_vm11 = vcmp.gt.f32.partialorder %v10268_v21, 0.0 }
 0x375   : > { %v3923_v58 = vmul.f32 %v10269_v12, %v17950_v29  ;;  %v10271_v45 = vadd.f32 %v3717_v10, %v13725_v28  ;;  %4275 = vmatmul.mubr.bf16.gmra.mrb[132].mxu0 %v4070_v0  ;;  %vm3859_vm12 = vcmp.gt.f32.partialorder %v10269_v12, 0.0 }
 0x376   : > { %v3924_v36 = vmul.f32 %v10270_v24, %v17950_v29  ;;  %vm3860_vm13 = vcmp.gt.f32.partialorder %v10270_v24, 0.0  ;;  %10157 = vmatpush3.bf16.msra.mxu0 %v4584_v35  ;;  %v3986_v27 = vsel %vm3858_vm11, %v10268_v21, %v3922_v60 }
 0x377   : > { %vm3861_vm14 = vcmp.gt.f32.partialorder %v10271_v45, 0.0  ;;  %v3925_v11 = vmul.f32 %v10271_v45, %v17950_v29  ;;  %v3987_v59 = vsel %vm3859_vm12, %v10269_v12, %v3923_v58 }
 0x378   : > { %v3988_v39 = vsel %vm3860_vm13, %v10270_v24, %v3924_v36 }
 0x379   : > { %v3989_v55 = vsel %vm3861_vm14, %v10271_v45, %v3925_v11  ;;  %v3721_v25 = vpop.f32.mrb[108].mxu1  ;;  %v4072_v52 = vpack.c.bf16 %v3988_v39, %v3986_v27 }
 0x37a   : > { %v10272_v62 = vadd.f32 %v3721_v25, %v13722_v31  ;;  %v3723_v33 = vpop.f32.mrb[109].mxu1  ;;  %v4073_v61 = vpack.c.bf16 %v3989_v55, %v3987_v59 }
 0x37b   : > { %v10273_v3 = vadd.f32 %v3723_v33, %v13725_v28  ;;  %v3725_v41 = vpop.f32.mrb[110].mxu1 }
 0x37c   : > { %v3926_v2 = vmul.f32 %v10272_v62, %v17950_v29  ;;  %v10274_v19 = vadd.f32 %v3725_v41, %v13722_v31  ;;  %v3727_v18 = vpop.f32.mrb[111].mxu1  ;;  %9401 = vmatprep.mubr.msk.bf16.mxu0 %vm4181_vm6, %v4073_v61  ;;  %vm3862_vm2 = vcmp.gt.f32.partialorder %v10272_v62, 0.0 }
 0x37d   : > { %v3927_v26 = vmul.f32 %v10273_v3, %v17950_v29  ;;  %v10275_v32 = vadd.f32 %v3727_v18, %v13725_v28  ;;  %4283 = vmatmul.mubr.bf16.gmra.mrb[136].mxu0 %v4072_v52  ;;  %vm3863_vm3 = vcmp.gt.f32.partialorder %v10273_v3, 0.0 }
 0x37e   : > { %v3928_v49 = vmul.f32 %v10274_v19, %v17950_v29  ;;  %vm3864_vm4 = vcmp.gt.f32.partialorder %v10274_v19, 0.0  ;;  %v3990_v8 = vsel %vm3862_vm2, %v10272_v62, %v3926_v2 }
 0x37f   : > { %vm3865_vm5 = vcmp.gt.f32.partialorder %v10275_v32, 0.0  ;;  %v3929_v53 = vmul.f32 %v10275_v32, %v17950_v29  ;;  %v3991_v40 = vsel %vm3863_vm3, %v10273_v3, %v3927_v26 }
 0x380   : > { %v3992_v37 = vsel %vm3864_vm4, %v10274_v19, %v3928_v49 }
 0x381   : > { %v3993_v23 = vsel %vm3865_vm5, %v10275_v32, %v3929_v53  ;;  %v3731_v6 = vpop.f32.mrb[112].mxu1  ;;  %v4074_v16 = vpack.c.bf16 %v3992_v37, %v3990_v8 }
 0x382   : > { %v10276_v5 = vadd.f32 %v3731_v6, %v13722_v31  ;;  %v3733_v56 = vpop.f32.mrb[113].mxu1  ;;  %v4075_v50 = vpack.c.bf16 %v3993_v23, %v3991_v40 }
 0x383   : > { %v10277_v48 = vadd.f32 %v3733_v56, %v13725_v28  ;;  %v3735_v57 = vpop.f32.mrb[114].mxu1 }
 0x384   : > { %v3930_v13 = vmul.f32 %v10276_v5, %v17950_v29  ;;  %v10278_v22 = vadd.f32 %v3735_v57, %v13722_v31  ;;  %v3737_v15 = vpop.f32.mrb[115].mxu1  ;;  %9402 = vmatprep.mubr.msk.bf16.mxu0 %vm4181_vm6, %v4075_v50  ;;  %vm3866_vm7 = vcmp.gt.f32.partialorder %v10276_v5, 0.0 }
 0x385   : > { %v3931_v30 = vmul.f32 %v10277_v48, %v17950_v29  ;;  %v10279_v42 = vadd.f32 %v3737_v15, %v13725_v28  ;;  %4291 = vmatmul.mubr.bf16.gmra.mrb[140].mxu0 %v4074_v16  ;;  %vm3867_vm8 = vcmp.gt.f32.partialorder %v10277_v48, 0.0 }
 0x386   : > { %v3932_v20 = vmul.f32 %v10278_v22, %v17950_v29  ;;  %vm3868_vm9 = vcmp.gt.f32.partialorder %v10278_v22, 0.0  ;;  %v3994_v54 = vsel %vm3866_vm7, %v10276_v5, %v3930_v13 }
 0x387   : > { %vm3869_vm10 = vcmp.gt.f32.partialorder %v10279_v42, 0.0  ;;  %v3933_v9 = vmul.f32 %v10279_v42, %v17950_v29  ;;  %v3995_v7 = vsel %vm3867_vm8, %v10277_v48, %v3931_v30 }
 0x388   : > { %v3996_v51 = vsel %vm3868_vm9, %v10278_v22, %v3932_v20 }
 0x389   : > { %v3997_v38 = vsel %vm3869_vm10, %v10279_v42, %v3933_v9  ;;  %v3741_v46 = vpop.f32.mrb[116].mxu1  ;;  %v4076_v14 = vpack.c.bf16 %v3996_v51, %v3994_v54 }
 0x38a   : > { %v10280_v43 = vadd.f32 %v3741_v46, %v13722_v31  ;;  %v3743_v44 = vpop.f32.mrb[117].mxu1  ;;  %v4077_v0 = vpack.c.bf16 %v3997_v38, %v3995_v7 }
 0x38b   : > { %v10281_v21 = vadd.f32 %v3743_v44, %v13725_v28  ;;  %v3745_v34 = vpop.f32.mrb[118].mxu1 }
 0x38c   : > { %v3934_v17 = vmul.f32 %v10280_v43, %v17950_v29  ;;  %v10282_v12 = vadd.f32 %v3745_v34, %v13722_v31  ;;  %v3747_v4 = vpop.f32.mrb[119].mxu1  ;;  %9403 = vmatprep.mubr.msk.bf16.mxu0 %vm4181_vm6, %v4077_v0  ;;  %vm3870_vm11 = vcmp.gt.f32.partialorder %v10280_v43, 0.0 }
 0x38d   : > { %v3935_v35 = vmul.f32 %v10281_v21, %v17950_v29  ;;  %v10283_v60 = vadd.f32 %v3747_v4, %v13725_v28  ;;  %4299 = vmatmul.mubr.bf16.gmra.mrb[144].mxu0 %v4076_v14  ;;  %vm3871_vm12 = vcmp.gt.f32.partialorder %v10281_v21, 0.0 }
 0x38e   : > { %v3936_v24 = vmul.f32 %v10282_v12, %v17950_v29  ;;  %vm3872_vm13 = vcmp.gt.f32.partialorder %v10282_v12, 0.0  ;;  %v3998_v58 = vsel %vm3870_vm11, %v10280_v43, %v3934_v17 }
 0x38f   : > { %vm3873_vm14 = vcmp.gt.f32.partialorder %v10283_v60, 0.0  ;;  %v3937_v10 = vmul.f32 %v10283_v60, %v17950_v29  ;;  %v3999_v36 = vsel %vm3871_vm12, %v10281_v21, %v3935_v35 }
 0x390   : > { %v4000_v45 = vsel %vm3872_vm13, %v10282_v12, %v3936_v24 }
 0x391   : > { %v4001_v11 = vsel %vm3873_vm14, %v10283_v60, %v3937_v10  ;;  %v3751_v27 = vpop.f32.mrb[120].mxu1  ;;  %v4078_v39 = vpack.c.bf16 %v4000_v45, %v3998_v58 }
 0x392   : > { %v10284_v59 = vadd.f32 %v3751_v27, %v13722_v31  ;;  %v3753_v55 = vpop.f32.mrb[121].mxu1  ;;  %v4079_v25 = vpack.c.bf16 %v4001_v11, %v3999_v36 }
 0x393   : > { %v10285_v52 = vadd.f32 %v3753_v55, %v13725_v28  ;;  %v3755_v62 = vpop.f32.mrb[122].mxu1 }
 0x394   : > { %v3938_v33 = vmul.f32 %v10284_v59, %v17950_v29  ;;  %v10286_v61 = vadd.f32 %v3755_v62, %v13722_v31  ;;  %v3757_v3 = vpop.f32.mrb[123].mxu1  ;;  %9404 = vmatprep.mubr.msk.bf16.mxu0 %vm4181_vm6, %v4079_v25  ;;  %vm3874_vm2 = vcmp.gt.f32.partialorder %v10284_v59, 0.0 }
 0x395   : > { %v3939_v41 = vmul.f32 %v10285_v52, %v17950_v29  ;;  %v10287_v2 = vadd.f32 %v3757_v3, %v13725_v28  ;;  %4307 = vmatmul.mubr.bf16.gmra.mrb[148].mxu0 %v4078_v39  ;;  %vm3875_vm3 = vcmp.gt.f32.partialorder %v10285_v52, 0.0 }
 0x396   : > { %v3940_v19 = vmul.f32 %v10286_v61, %v17950_v29  ;;  %vm3876_vm4 = vcmp.gt.f32.partialorder %v10286_v61, 0.0  ;;  %v4002_v26 = vsel %vm3874_vm2, %v10284_v59, %v3938_v33 }
 0x397   : > { %vm3877_vm5 = vcmp.gt.f32.partialorder %v10287_v2, 0.0  ;;  %v3941_v18 = vmul.f32 %v10287_v2, %v17950_v29  ;;  %v4003_v49 = vsel %vm3875_vm3, %v10285_v52, %v3939_v41 }
 0x398   : > { %v4004_v32 = vsel %vm3876_vm4, %v10286_v61, %v3940_v19 }
 0x399   : > { %v4005_v53 = vsel %vm3877_vm5, %v10287_v2, %v3941_v18  ;;  %v3761_v8 = vpop.f32.mrb[124].mxu1  ;;  %v4080_v37 = vpack.c.bf16 %v4004_v32, %v4002_v26 }
 0x39a   : > { %v10288_v40 = vadd.f32 %v3761_v8, %v13722_v31  ;;  %v3763_v23 = vpop.f32.mrb[125].mxu1  ;;  %v4081_v6 = vpack.c.bf16 %v4005_v53, %v4003_v49 }
 0x39b   : > { %v10289_v16 = vadd.f32 %v3763_v23, %v13725_v28  ;;  %v3765_v5 = vpop.f32.mrb[126].mxu1 }
 0x39c   : > { %v3942_v56 = vmul.f32 %v10288_v40, %v17950_v29  ;;  %v10290_v50 = vadd.f32 %v3765_v5, %v13722_v31  ;;  %v3767_v48 = vpop.f32.mrb[127].mxu1  ;;  %9405 = vmatprep.mubr.msk.bf16.mxu0 %vm4181_vm6, %v4081_v6  ;;  %vm3878_vm7 = vcmp.gt.f32.partialorder %v10288_v40, 0.0 }
 0x39d   : > { %v3943_v57 = vmul.f32 %v10289_v16, %v17950_v29  ;;  %v10291_v13 = vadd.f32 %v3767_v48, %v13725_v28  ;;  %4315 = vmatmul.mubr.bf16.gmra.mrb[152].mxu0 %v4080_v37  ;;  %vm3879_vm8 = vcmp.gt.f32.partialorder %v10289_v16, 0.0 }
 0x39e   : > { %v3944_v22 = vmul.f32 %v10290_v50, %v17950_v29  ;;  %vm3880_vm9 = vcmp.gt.f32.partialorder %v10290_v50, 0.0  ;;  %v4006_v30 = vsel %vm3878_vm7, %v10288_v40, %v3942_v56 }
 0x39f   : > { %vm3881_vm10 = vcmp.gt.f32.partialorder %v10291_v13, 0.0  ;;  %v3945_v15 = vmul.f32 %v10291_v13, %v17950_v29  ;;  %v4007_v20 = vsel %vm3879_vm8, %v10289_v16, %v3943_v57 }
 0x3a0   : > { %v4008_v42 = vsel %vm3880_vm9, %v10290_v50, %v3944_v22 }
 0x3a1   : > { %v4009_v9 = vsel %vm3881_vm10, %v10291_v13, %v3945_v15  ;;  %v3771_v54 = vpop.f32.mrb[128].mxu1  ;;  %v4082_v51 = vpack.c.bf16 %v4008_v42, %v4006_v30 }
 0x3a2   : > { %v10292_v7 = vadd.f32 %v3771_v54, %v13722_v31  ;;  %v3773_v38 = vpop.f32.mrb[129].mxu1  ;;  %v4083_v46 = vpack.c.bf16 %v4009_v9, %v4007_v20 }
 0x3a3   : > { %v10293_v14 = vadd.f32 %v3773_v38, %v13725_v28  ;;  %v3775_v43 = vpop.f32.mrb[130].mxu1 }
 0x3a4   : > { %v3946_v44 = vmul.f32 %v10292_v7, %v17950_v29  ;;  %v10294_v0 = vadd.f32 %v3775_v43, %v13722_v31  ;;  %v3777_v21 = vpop.f32.mrb[131].mxu1  ;;  %9406 = vmatprep.mubr.msk.bf16.mxu0 %vm4181_vm6, %v4083_v46  ;;  %vm3882_vm11 = vcmp.gt.f32.partialorder %v10292_v7, 0.0 }
 0x3a5   : > { %v3947_v34 = vmul.f32 %v10293_v14, %v17950_v29  ;;  %v10295_v17 = vadd.f32 %v3777_v21, %v13725_v28  ;;  %4323 = vmatmul.mubr.bf16.gmra.mrb[156].mxu0 %v4082_v51  ;;  %vm3883_vm12 = vcmp.gt.f32.partialorder %v10293_v14, 0.0 }
 0x3a6   : > { %vm3884_vm13 = vcmp.gt.f32.partialorder %v10294_v0, 0.0  ;;  %v3948_v12 = vmul.f32 %v10294_v0, %v17950_v29  ;;  %v4010_v35 = vsel %vm3882_vm11, %v10292_v7, %v3946_v44 }
 0x3a7   : > { %vm3885_vm14 = vcmp.gt.f32.partialorder %v10295_v17, 0.0  ;;  %v3949_v4 = vmul.f32 %v10295_v17, %v17950_v29  ;;  %v4011_v24 = vsel %vm3883_vm12, %v10293_v14, %v3947_v34 }
 0x3a8   : > { %v4012_v60 = vsel %vm3884_vm13, %v10294_v0, %v3948_v12 }
 0x3a9   : > { %v4013_v10 = vsel %vm3885_vm14, %v10295_v17, %v3949_v4  ;;  %v3781_v58 = vpop.f32.mrb[132].mxu1  ;;  %v4084_v45 = vpack.c.bf16 %v4012_v60, %v4010_v35 }
 0x3aa   : > { %v4085_v36 = vpack.c.bf16 %v4013_v10, %v4011_v24  ;;  %v10296_v11 = vadd.f32 %v3781_v58, %v13722_v31  ;;  %v3783_v27 = vpop.f32.mrb[133].mxu1 }
 0x3ab   : > { %v10297_v39 = vadd.f32 %v3783_v27, %v13725_v28  ;;  %v3785_v59 = vpop.f32.mrb[134].mxu1 }
 0x3ac   : > { %v3950_v55 = vmul.f32 %v10296_v11, %v17950_v29  ;;  %v10298_v25 = vadd.f32 %v3785_v59, %v13722_v31  ;;  %v3787_v52 = vpop.f32.mrb[135].mxu1  ;;  %9407 = vmatprep.mubr.msk.bf16.mxu0 %vm4181_vm6, %v4085_v36  ;;  %vm3886_vm2 = vcmp.gt.f32.partialorder %v10296_v11, 0.0 }
 0x3ad   : > { %v3951_v62 = vmul.f32 %v10297_v39, %v17950_v29  ;;  %v10299_v33 = vadd.f32 %v3787_v52, %v13725_v28  ;;  %4331 = vmatmul.mubr.bf16.gmra.mrb[160].mxu0 %v4084_v45  ;;  %vm3887_vm3 = vcmp.gt.f32.partialorder %v10297_v39, 0.0 }
 0x3ae   : > { %vm3888_vm4 = vcmp.gt.f32.partialorder %v10298_v25, 0.0  ;;  %v3952_v61 = vmul.f32 %v10298_v25, %v17950_v29  ;;  %v4014_v41 = vsel %vm3886_vm2, %v10296_v11, %v3950_v55 }
 0x3af   : > { %vm3889_vm5 = vcmp.gt.f32.partialorder %v10299_v33, 0.0  ;;  %v3953_v3 = vmul.f32 %v10299_v33, %v17950_v29  ;;  %v4015_v19 = vsel %vm3887_vm3, %v10297_v39, %v3951_v62 }
 0x3b0   : > { %v4016_v2 = vsel %vm3888_vm4, %v10298_v25, %v3952_v61 }
 0x3b1   : > { %v4017_v18 = vsel %vm3889_vm5, %v10299_v33, %v3953_v3  ;;  %v3791_v26 = vpop.f32.mrb[136].mxu1  ;;  %v4086_v32 = vpack.c.bf16 %v4016_v2, %v4014_v41 }
 0x3b2   : > { %v4087_v49 = vpack.c.bf16 %v4017_v18, %v4015_v19  ;;  %v10300_v53 = vadd.f32 %v3791_v26, %v13722_v31  ;;  %v3793_v8 = vpop.f32.mrb[137].mxu1 }
 0x3b3   : > { %v10301_v37 = vadd.f32 %v3793_v8, %v13725_v28  ;;  %v3795_v40 = vpop.f32.mrb[138].mxu1 }
 0x3b4   : > { %v3954_v23 = vmul.f32 %v10300_v53, %v17950_v29  ;;  %v10302_v6 = vadd.f32 %v3795_v40, %v13722_v31  ;;  %v3797_v16 = vpop.f32.mrb[139].mxu1  ;;  %9408 = vmatprep.mubr.msk.bf16.mxu0 %vm4181_vm6, %v4087_v49  ;;  %vm3890_vm7 = vcmp.gt.f32.partialorder %v10300_v53, 0.0 }
 0x3b5   : > { %v3955_v5 = vmul.f32 %v10301_v37, %v17950_v29  ;;  %v10303_v56 = vadd.f32 %v3797_v16, %v13725_v28  ;;  %4339 = vmatmul.mubr.bf16.gmra.mrb[164].mxu0 %v4086_v32  ;;  %vm3891_vm8 = vcmp.gt.f32.partialorder %v10301_v37, 0.0 }
 0x3b6   : > { %vm3892_vm9 = vcmp.gt.f32.partialorder %v10302_v6, 0.0  ;;  %v3956_v50 = vmul.f32 %v10302_v6, %v17950_v29  ;;  %v4018_v57 = vsel %vm3890_vm7, %v10300_v53, %v3954_v23 }
 0x3b7   : > { %vm3893_vm10 = vcmp.gt.f32.partialorder %v10303_v56, 0.0  ;;  %v3957_v48 = vmul.f32 %v10303_v56, %v17950_v29  ;;  %v4019_v22 = vsel %vm3891_vm8, %v10301_v37, %v3955_v5 }
 0x3b8   : > { %v4020_v13 = vsel %vm3892_vm9, %v10302_v6, %v3956_v50 }
 0x3b9   : > { %v4021_v15 = vsel %vm3893_vm10, %v10303_v56, %v3957_v48  ;;  %v3801_v30 = vpop.f32.mrb[140].mxu1  ;;  %v4088_v42 = vpack.c.bf16 %v4020_v13, %v4018_v57 }
 0x3ba   : > { %v4089_v20 = vpack.c.bf16 %v4021_v15, %v4019_v22  ;;  %v10304_v9 = vadd.f32 %v3801_v30, %v13722_v31  ;;  %v3803_v54 = vpop.f32.mrb[141].mxu1 }
 0x3bb   : > { %v10305_v51 = vadd.f32 %v3803_v54, %v13725_v28  ;;  %v3805_v7 = vpop.f32.mrb[142].mxu1 }
 0x3bc   : > { %v3958_v38 = vmul.f32 %v10304_v9, %v17950_v29  ;;  %v10306_v46 = vadd.f32 %v3805_v7, %v13722_v31  ;;  %v3807_v14 = vpop.f32.mrb[143].mxu1  ;;  %9409 = vmatprep.mubr.msk.bf16.mxu0 %vm4181_vm6, %v4089_v20  ;;  %vm3894_vm11 = vcmp.gt.f32.partialorder %v10304_v9, 0.0 }
 0x3bd   : > { %v3959_v43 = vmul.f32 %v10305_v51, %v17950_v29  ;;  %v10307_v44 = vadd.f32 %v3807_v14, %v13725_v28  ;;  %4347 = vmatmul.mubr.bf16.gmra.mrb[168].mxu0 %v4088_v42  ;;  %vm3895_vm12 = vcmp.gt.f32.partialorder %v10305_v51, 0.0 }
 0x3be   : > { %vm3896_vm13 = vcmp.gt.f32.partialorder %v10306_v46, 0.0  ;;  %v3960_v0 = vmul.f32 %v10306_v46, %v17950_v29  ;;  %v4022_v34 = vsel %vm3894_vm11, %v10304_v9, %v3958_v38 }
 0x3bf   : > { %vm3897_vm14 = vcmp.gt.f32.partialorder %v10307_v44, 0.0  ;;  %v3961_v21 = vmul.f32 %v10307_v44, %v17950_v29  ;;  %v4023_v12 = vsel %vm3895_vm12, %v10305_v51, %v3959_v43 }
 0x3c0   : > { %v4024_v17 = vsel %vm3896_vm13, %v10306_v46, %v3960_v0 }
 0x3c1   : > { %v4025_v4 = vsel %vm3897_vm14, %v10307_v44, %v3961_v21  ;;  %v3811_v35 = vpop.f32.mrb[144].mxu1  ;;  %v4090_v60 = vpack.c.bf16 %v4024_v17, %v4022_v34 }
 0x3c2   : > { %v4091_v24 = vpack.c.bf16 %v4025_v4, %v4023_v12  ;;  %v10308_v10 = vadd.f32 %v3811_v35, %v13722_v31  ;;  %v3813_v58 = vpop.f32.mrb[145].mxu1 }
 0x3c3   : > { %v10309_v45 = vadd.f32 %v3813_v58, %v13725_v28  ;;  %v3815_v36 = vpop.f32.mrb[146].mxu1 }
 0x3c4   : > { %v3962_v11 = vmul.f32 %v10308_v10, %v17950_v29  ;;  %v10310_v27 = vadd.f32 %v3815_v36, %v13722_v31  ;;  %v3817_v39 = vpop.f32.mrb[147].mxu1  ;;  %9410 = vmatprep.mubr.msk.bf16.mxu0 %vm4181_vm6, %v4091_v24  ;;  %vm3898_vm2 = vcmp.gt.f32.partialorder %v10308_v10, 0.0 }
 0x3c5   : > { %v3963_v59 = vmul.f32 %v10309_v45, %v17950_v29  ;;  %v10311_v55 = vadd.f32 %v3817_v39, %v13725_v28  ;;  %4355 = vmatmul.mubr.bf16.gmra.mrb[172].mxu0 %v4090_v60  ;;  %vm3899_vm3 = vcmp.gt.f32.partialorder %v10309_v45, 0.0 }
 0x3c6   : > { %vm3900_vm4 = vcmp.gt.f32.partialorder %v10310_v27, 0.0  ;;  %v3964_v25 = vmul.f32 %v10310_v27, %v17950_v29  ;;  %v4026_v62 = vsel %vm3898_vm2, %v10308_v10, %v3962_v11 }
 0x3c7   : > { %vm3901_vm5 = vcmp.gt.f32.partialorder %v10311_v55, 0.0  ;;  %v3965_v52 = vmul.f32 %v10311_v55, %v17950_v29  ;;  %v4027_v61 = vsel %vm3899_vm3, %v10309_v45, %v3963_v59 }
 0x3c8   : > { %v4028_v33 = vsel %vm3900_vm4, %v10310_v27, %v3964_v25 }
 0x3c9   : > { %v4029_v3 = vsel %vm3901_vm5, %v10311_v55, %v3965_v52  ;;  %v3821_v41 = vpop.f32.mrb[148].mxu1  ;;  %v4092_v2 = vpack.c.bf16 %v4028_v33, %v4026_v62 }
 0x3ca   : > { %v4093_v19 = vpack.c.bf16 %v4029_v3, %v4027_v61  ;;  %v10312_v18 = vadd.f32 %v3821_v41, %v13722_v31  ;;  %v3823_v26 = vpop.f32.mrb[149].mxu1 }
 0x3cb   : > { %v10313_v32 = vadd.f32 %v3823_v26, %v13725_v28  ;;  %v3825_v49 = vpop.f32.mrb[150].mxu1 }
 0x3cc   : > { %v3966_v53 = vmul.f32 %v10312_v18, %v17950_v29  ;;  %v10314_v8 = vadd.f32 %v3825_v49, %v13722_v31  ;;  %v3827_v37 = vpop.f32.mrb[151].mxu1  ;;  %9411 = vmatprep.mubr.msk.bf16.mxu0 %vm4181_vm6, %v4093_v19  ;;  %vm3902_vm7 = vcmp.gt.f32.partialorder %v10312_v18, 0.0 }
 0x3cd   : > { %v3967_v40 = vmul.f32 %v10313_v32, %v17950_v29  ;;  %v10315_v23 = vadd.f32 %v3827_v37, %v13725_v28  ;;  %4363 = vmatmul.mubr.bf16.gmra.mrb[176].mxu0 %v4092_v2  ;;  %vm3903_vm8 = vcmp.gt.f32.partialorder %v10313_v32, 0.0  ;;  %v4843_v2 = vld [vmem:[%s17441_s10] sm:$0xf] }
 0x3ce   : > { %vm3904_vm9 = vcmp.gt.f32.partialorder %v10314_v8, 0.0  ;;  %v3968_v6 = vmul.f32 %v10314_v8, %v17950_v29  ;;  %v4030_v5 = vsel %vm3902_vm7, %v10312_v18, %v3966_v53  ;;  %10517 = vmatprep.subr.msk.bf16.mxu0 %vm4230_vm1, %v4843_v2 }
 0x3cf   : > { %vm3905_vm10 = vcmp.gt.f32.partialorder %v10315_v23, 0.0  ;;  %v3969_v16 = vmul.f32 %v10315_v23, %v17950_v29  ;;  %v4031_v50 = vsel %vm3903_vm8, %v10313_v32, %v3967_v40 }
 0x3d0   : > { %v4032_v56 = vsel %vm3904_vm9, %v10314_v8, %v3968_v6  ;;  %vm4534_vm9 = vcmask 326656  }
 0x3d1   : > { %v4033_v48 = vsel %vm3905_vm10, %v10315_v23, %v3969_v16  ;;  %v3831_v57 = vpop.f32.mrb[152].mxu1  ;;  %v4094_v13 = vpack.c.bf16 %v4032_v56, %v4030_v5 }
 0x3d2   : > { %v4095_v22 = vpack.c.bf16 %v4033_v48, %v4031_v50  ;;  %v10316_v15 = vadd.f32 %v3831_v57, %v13722_v31  ;;  %v3833_v30 = vpop.f32.mrb[153].mxu1 }
 0x3d3   : > { %v10317_v42 = vadd.f32 %v3833_v30, %v13725_v28  ;;  %v3835_v20 = vpop.f32.mrb[154].mxu1 }
 0x3d4   : > { %v3970_v9 = vmul.f32 %v10316_v15, %v17950_v29  ;;  %v10318_v54 = vadd.f32 %v3835_v20, %v13722_v31  ;;  %v3837_v51 = vpop.f32.mrb[155].mxu1  ;;  %9412 = vmatprep.mubr.msk.bf16.mxu0 %vm4181_vm6, %v4095_v22  ;;  %vm3906_vm11 = vcmp.gt.f32.partialorder %v10316_v15, 0.0 }
 0x3d5   : > { %v3971_v7 = vmul.f32 %v10317_v42, %v17950_v29  ;;  %v10319_v38 = vadd.f32 %v3837_v51, %v13725_v28  ;;  %4371 = vmatmul.mubr.bf16.gmra.mrb[180].mxu0 %v4094_v13  ;;  %vm3907_vm12 = vcmp.gt.f32.partialorder %v10317_v42, 0.0 }
 0x3d6   : > { %vm3908_vm13 = vcmp.gt.f32.partialorder %v10318_v54, 0.0  ;;  %v3972_v46 = vmul.f32 %v10318_v54, %v17950_v29  ;;  %v4034_v43 = vsel %vm3906_vm11, %v10316_v15, %v3970_v9  ;;  %v4917_v15 = vsel %vm4230_vm1, %v4843_v2, 0 }
 0x3d7   : > { %vm3909_vm14 = vcmp.gt.f32.partialorder %v10319_v38, 0.0  ;;  %v3973_v14 = vmul.f32 %v10319_v38, %v17950_v29  ;;  %v4035_v0 = vsel %vm3907_vm12, %v10317_v42, %v3971_v7 }
 0x3d8   : > { %v4036_v44 = vsel %vm3908_vm13, %v10318_v54, %v3972_v46 }
 0x3d9   : > { %v4037_v21 = vsel %vm3909_vm14, %v10319_v38, %v3973_v14  ;;  %v3841_v34 = vpop.f32.mrb[156].mxu1  ;;  %v4096_v17 = vpack.c.bf16 %v4036_v44, %v4034_v43 }
 0x3da   : > { %v4097_v12 = vpack.c.bf16 %v4037_v21, %v4035_v0  ;;  %v10320_v4 = vadd.f32 %v3841_v34, %v13722_v31  ;;  %v3843_v35 = vpop.f32.mrb[157].mxu1 }
 0x3db   : > { %v10321_v60 = vadd.f32 %v3843_v35, %v13725_v28  ;;  %v3845_v24 = vpop.f32.mrb[158].mxu1 }
 0x3dc   : > { %v3974_v10 = vmul.f32 %v10320_v4, %v17950_v29  ;;  %v10322_v58 = vadd.f32 %v3845_v24, %v13722_v31  ;;  %v3847_v45 = vpop.f32.mrb[159].mxu1  ;;  %9413 = vmatprep.mubr.msk.bf16.mxu0 %vm4181_vm6, %v4097_v12  ;;  %vm3910_vm2 = vcmp.gt.f32.partialorder %v10320_v4, 0.0 }
 0x3dd   : > { %v3975_v36 = vmul.f32 %v10321_v60, %v17950_v29  ;;  %v10323_v11 = vadd.f32 %v3847_v45, %v13725_v28  ;;  %4379 = vmatmul.mubr.bf16.gmra.mrb[184].mxu0 %v4096_v17  ;;  %vm3911_vm3 = vcmp.gt.f32.partialorder %v10321_v60, 0.0  ;;  %v13882_v28 = vld [vmem:[%s17438_s7] ss:$0 sm:$0xff] }
 0x3de   : > { %vm3912_vm4 = vcmp.gt.f32.partialorder %v10322_v58, 0.0  ;;  %v3976_v27 = vmul.f32 %v10322_v58, %v17950_v29  ;;  %v4038_v59 = vsel %vm3910_vm2, %v10320_v4, %v3974_v10 }
 0x3df   : > { %vm3913_vm5 = vcmp.gt.f32.partialorder %v10323_v11, 0.0  ;;  %v3977_v39 = vmul.f32 %v10323_v11, %v17950_v29  ;;  %v4039_v25 = vsel %vm3911_vm3, %v10321_v60, %v3975_v36 }
 0x3e0   : > { %v4040_v55 = vsel %vm3912_vm4, %v10322_v58, %v3976_v27 }
 0x3e1   : > { %v4041_v31 = vsel %vm3913_vm5, %v10323_v11, %v3977_v39  ;;  %v4098_v52 = vpack.c.bf16 %v4040_v55, %v4038_v59 }
 0x3e2   : > { %v4099_v62 = vpack.c.bf16 %v4041_v31, %v4039_v25 }
 0x3e4   : > { %9414 = vmatprep.mubr.msk.bf16.mxu0 %vm4181_vm6, %v4099_v62 }
 0x3e5   : > { %4387 = vmatmul.mubr.bf16.gmra.mrb[188].mxu0 %v4098_v52 }
 0x440   : > { %v4268_v33 = vpop.f32.mrb[128].mxu0 }
 0x441   : > { %v4269_v61 = vadd.f32 %v13882_v28, %v4268_v33  ;;  %v4270_v3 = vpop.f32.mrb[129].mxu0 }
 0x442   : > { %v4271_v41 = vpop.f32.mrb[130].mxu0 }
 0x443   : > { %v4427_v19 = vmul.f32 %v4269_v61, %v17950_v29  ;;  %v4272_v18 = vadd.f32 %v13882_v28, %v4271_v41  ;;  %v4273_v26 = vpop.f32.mrb[131].mxu0  ;;  %vm4395_vm7 = vcmp.gt.f32.partialorder %v4269_v61, 0.0 }
 0x445   : > { %vm4396_vm8 = vcmp.gt.f32.partialorder %v4272_v18, 0.0  ;;  %v4428_v32 = vmul.f32 %v4272_v18, %v17950_v29  ;;  %v4459_v49 = vsel %vm4395_vm7, %v4269_v61, %v4427_v19 }
 0x447   : > { %v4460_v53 = vsel %vm4396_vm8, %v4272_v18, %v4428_v32 }
 0x448   : > { %v4276_v8 = vpop.f32.mrb[132].mxu0  ;;  %v4497_v37 = vpack.c.bf16 %v4460_v53, %v4459_v49 }
 0x449   : > { %v4277_v40 = vadd.f32 %v13882_v28, %v4276_v8  ;;  %v4278_v23 = vpop.f32.mrb[133].mxu0 }
 0x44a   : > { %v4279_v6 = vpop.f32.mrb[134].mxu0  ;;  %10158 = vmatprep.mubr.msk.bf16.mxu0 %vm4534_vm9, %v4497_v37 }
 0x44b   : > { %v4429_v16 = vmul.f32 %v4277_v40, %v17950_v29  ;;  %v4280_v5 = vadd.f32 %v13882_v28, %v4279_v6  ;;  %v4281_v56 = vpop.f32.mrb[135].mxu0  ;;  %vm4397_vm10 = vcmp.gt.f32.partialorder %v4277_v40, 0.0 }
 0x44d   : > { %vm4398_vm11 = vcmp.gt.f32.partialorder %v4280_v5, 0.0  ;;  %v4430_v50 = vmul.f32 %v4280_v5, %v17950_v29  ;;  %v4461_v48 = vsel %vm4397_vm10, %v4277_v40, %v4429_v16 }
 0x44f   : > { %v4462_v57 = vsel %vm4398_vm11, %v4280_v5, %v4430_v50 }
 0x450   : > { %v4498_v13 = vpack.c.bf16 %v4462_v57, %v4461_v48  ;;  %v4284_v22 = vpop.f32.mrb[136].mxu0 }
 0x451   : > { %v4285_v30 = vadd.f32 %v13882_v28, %v4284_v22  ;;  %v4286_v42 = vpop.f32.mrb[137].mxu0 }
 0x452   : > { %v4287_v20 = vpop.f32.mrb[138].mxu0  ;;  %10159 = vmatmul.mubr.msk.bf16.vlgmr.msra.gmra.mrb[192].mxu0 %vm4534_vm9, %v4498_v13 }
 0x453   : > { %v4431_v9 = vmul.f32 %v4285_v30, %v17950_v29  ;;  %v4288_v54 = vadd.f32 %v13882_v28, %v4287_v20  ;;  %v4289_v51 = vpop.f32.mrb[139].mxu0  ;;  %10191 = vmatpush3.bf16.msra.mxu0 %v4917_v15  ;;  %vm4399_vm12 = vcmp.gt.f32.partialorder %v4285_v30, 0.0 }
 0x455   : > { %vm4400_vm13 = vcmp.gt.f32.partialorder %v4288_v54, 0.0  ;;  %v4432_v7 = vmul.f32 %v4288_v54, %v17950_v29  ;;  %v4463_v38 = vsel %vm4399_vm12, %v4285_v30, %v4431_v9 }
 0x457   : > { %v4464_v46 = vsel %vm4400_vm13, %v4288_v54, %v4432_v7 }
 0x458   : > { %v4292_v14 = vpop.f32.mrb[140].mxu0  ;;  %v4499_v43 = vpack.c.bf16 %v4464_v46, %v4463_v38 }
 0x459   : > { %v4293_v44 = vadd.f32 %v13882_v28, %v4292_v14  ;;  %v4294_v0 = vpop.f32.mrb[141].mxu0 }
 0x45a   : > { %v4295_v21 = vpop.f32.mrb[142].mxu0  ;;  %10162 = vmatprep.mubr.msk.bf16.mxu0 %vm4534_vm9, %v4499_v43 }
 0x45b   : > { %v4433_v34 = vmul.f32 %v4293_v44, %v17950_v29  ;;  %v4296_v17 = vadd.f32 %v13882_v28, %v4295_v21  ;;  %v4297_v12 = vpop.f32.mrb[143].mxu0  ;;  %vm4401_vm14 = vcmp.gt.f32.partialorder %v4293_v44, 0.0 }
 0x45d   : > { %vm4402_vm2 = vcmp.gt.f32.partialorder %v4296_v17, 0.0  ;;  %v4434_v4 = vmul.f32 %v4296_v17, %v17950_v29  ;;  %v4465_v35 = vsel %vm4401_vm14, %v4293_v44, %v4433_v34 }
 0x45f   : > { %v4466_v60 = vsel %vm4402_vm2, %v4296_v17, %v4434_v4 }
 0x460   : > { %v4300_v24 = vpop.f32.mrb[144].mxu0  ;;  %v4500_v10 = vpack.c.bf16 %v4466_v60, %v4465_v35 }
 0x461   : > { %v4301_v58 = vadd.f32 %v13882_v28, %v4300_v24  ;;  %v4302_v45 = vpop.f32.mrb[145].mxu0 }
 0x462   : > { %v4303_v36 = vpop.f32.mrb[146].mxu0  ;;  %10163 = vmatmul.mubr.msk.bf16.gmra.mrb[196].mxu0 %vm4534_vm9, %v4500_v10 }
 0x463   : > { %v4435_v11 = vmul.f32 %v4301_v58, %v17950_v29  ;;  %v4304_v27 = vadd.f32 %v13882_v28, %v4303_v36  ;;  %v4305_v39 = vpop.f32.mrb[147].mxu0  ;;  %vm4403_vm3 = vcmp.gt.f32.partialorder %v4301_v58, 0.0 }
 0x465   : > { %vm4404_vm4 = vcmp.gt.f32.partialorder %v4304_v27, 0.0  ;;  %v4436_v59 = vmul.f32 %v4304_v27, %v17950_v29  ;;  %v4467_v55 = vsel %vm4403_vm3, %v4301_v58, %v4435_v11 }
 0x467   : > { %v4468_v25 = vsel %vm4404_vm4, %v4304_v27, %v4436_v59 }
 0x468   : > { %v4308_v31 = vpop.f32.mrb[148].mxu0  ;;  %v4501_v52 = vpack.c.bf16 %v4468_v25, %v4467_v55 }
 0x469   : > { %v4309_v62 = vadd.f32 %v13882_v28, %v4308_v31  ;;  %v4310_v33 = vpop.f32.mrb[149].mxu0 }
 0x46a   : > { %v4311_v61 = vpop.f32.mrb[150].mxu0  ;;  %10166 = vmatprep.mubr.msk.bf16.mxu0 %vm4534_vm9, %v4501_v52 }
 0x46b   : > { %v4437_v3 = vmul.f32 %v4309_v62, %v17950_v29  ;;  %v4312_v41 = vadd.f32 %v13882_v28, %v4311_v61  ;;  %v4313_v2 = vpop.f32.mrb[151].mxu0  ;;  %vm4405_vm5 = vcmp.gt.f32.partialorder %v4309_v62, 0.0 }
 0x46d   : > { %vm4406_vm7 = vcmp.gt.f32.partialorder %v4312_v41, 0.0  ;;  %v4438_v19 = vmul.f32 %v4312_v41, %v17950_v29  ;;  %v4469_v18 = vsel %vm4405_vm5, %v4309_v62, %v4437_v3 }
 0x46f   : > { %v4470_v26 = vsel %vm4406_vm7, %v4312_v41, %v4438_v19 }
 0x470   : > { %v4316_v32 = vpop.f32.mrb[152].mxu0  ;;  %v4502_v49 = vpack.c.bf16 %v4470_v26, %v4469_v18 }
 0x471   : > { %v4317_v53 = vadd.f32 %v13882_v28, %v4316_v32  ;;  %v4318_v8 = vpop.f32.mrb[153].mxu0 }
 0x472   : > { %v4319_v37 = vpop.f32.mrb[154].mxu0  ;;  %10167 = vmatmul.mubr.msk.bf16.gmra.mrb[200].mxu0 %vm4534_vm9, %v4502_v49 }
 0x473   : > { %v4439_v40 = vmul.f32 %v4317_v53, %v17950_v29  ;;  %v4320_v23 = vadd.f32 %v13882_v28, %v4319_v37  ;;  %v4321_v6 = vpop.f32.mrb[155].mxu0  ;;  %vm4407_vm8 = vcmp.gt.f32.partialorder %v4317_v53, 0.0 }
 0x475   : > { %vm4408_vm10 = vcmp.gt.f32.partialorder %v4320_v23, 0.0  ;;  %v4440_v16 = vmul.f32 %v4320_v23, %v17950_v29  ;;  %v4471_v5 = vsel %vm4407_vm8, %v4317_v53, %v4439_v40 }
 0x477   : > { %v4472_v56 = vsel %vm4408_vm10, %v4320_v23, %v4440_v16 }
 0x478   : > { %v4324_v50 = vpop.f32.mrb[156].mxu0  ;;  %v4503_v48 = vpack.c.bf16 %v4472_v56, %v4471_v5 }
 0x479   : > { %v4325_v57 = vadd.f32 %v13882_v28, %v4324_v50  ;;  %v4326_v13 = vpop.f32.mrb[157].mxu0 }
 0x47a   : > { %v4327_v22 = vpop.f32.mrb[158].mxu0  ;;  %10170 = vmatprep.mubr.msk.bf16.mxu0 %vm4534_vm9, %v4503_v48 }
 0x47b   : > { %v4441_v15 = vmul.f32 %v4325_v57, %v17950_v29  ;;  %v4328_v30 = vadd.f32 %v13882_v28, %v4327_v22  ;;  %v4329_v42 = vpop.f32.mrb[159].mxu0  ;;  %vm4409_vm11 = vcmp.gt.f32.partialorder %v4325_v57, 0.0 }
 0x47d   : > { %vm4410_vm12 = vcmp.gt.f32.partialorder %v4328_v30, 0.0  ;;  %v4442_v20 = vmul.f32 %v4328_v30, %v17950_v29  ;;  %v4473_v9 = vsel %vm4409_vm11, %v4325_v57, %v4441_v15 }
 0x47f   : > { %v4474_v54 = vsel %vm4410_vm12, %v4328_v30, %v4442_v20 }
 0x480   : > { %v4332_v51 = vpop.f32.mrb[160].mxu0  ;;  %v4504_v7 = vpack.c.bf16 %v4474_v54, %v4473_v9 }
 0x481   : > { %v4333_v38 = vadd.f32 %v13882_v28, %v4332_v51  ;;  %v4334_v46 = vpop.f32.mrb[161].mxu0 }
 0x482   : > { %v4335_v14 = vpop.f32.mrb[162].mxu0  ;;  %10171 = vmatmul.mubr.msk.bf16.gmra.mrb[204].mxu0 %vm4534_vm9, %v4504_v7 }
 0x483   : > { %v4443_v43 = vmul.f32 %v4333_v38, %v17950_v29  ;;  %v4336_v44 = vadd.f32 %v13882_v28, %v4335_v14  ;;  %v4337_v0 = vpop.f32.mrb[163].mxu0  ;;  %vm4411_vm13 = vcmp.gt.f32.partialorder %v4333_v38, 0.0 }
 0x485   : > { %vm4412_vm14 = vcmp.gt.f32.partialorder %v4336_v44, 0.0  ;;  %v4444_v21 = vmul.f32 %v4336_v44, %v17950_v29  ;;  %v4475_v34 = vsel %vm4411_vm13, %v4333_v38, %v4443_v43 }
 0x487   : > { %v4476_v17 = vsel %vm4412_vm14, %v4336_v44, %v4444_v21 }
 0x488   : > { %v4340_v12 = vpop.f32.mrb[164].mxu0  ;;  %v4505_v4 = vpack.c.bf16 %v4476_v17, %v4475_v34 }
 0x489   : > { %v4341_v35 = vadd.f32 %v13882_v28, %v4340_v12  ;;  %v4342_v60 = vpop.f32.mrb[165].mxu0 }
 0x48a   : > { %v4343_v24 = vpop.f32.mrb[166].mxu0  ;;  %10174 = vmatprep.mubr.msk.bf16.mxu0 %vm4534_vm9, %v4505_v4 }
 0x48b   : > { %v4445_v10 = vmul.f32 %v4341_v35, %v17950_v29  ;;  %v4344_v58 = vadd.f32 %v13882_v28, %v4343_v24  ;;  %v4345_v45 = vpop.f32.mrb[167].mxu0  ;;  %vm4413_vm2 = vcmp.gt.f32.partialorder %v4341_v35, 0.0 }
 0x48d   : > { %vm4414_vm3 = vcmp.gt.f32.partialorder %v4344_v58, 0.0  ;;  %v4446_v36 = vmul.f32 %v4344_v58, %v17950_v29  ;;  %v4477_v11 = vsel %vm4413_vm2, %v4341_v35, %v4445_v10 }
 0x48f   : > { %v4478_v27 = vsel %vm4414_vm3, %v4344_v58, %v4446_v36 }
 0x490   : > { %v4348_v39 = vpop.f32.mrb[168].mxu0  ;;  %v4506_v59 = vpack.c.bf16 %v4478_v27, %v4477_v11 }
 0x491   : > { %v4349_v55 = vadd.f32 %v13882_v28, %v4348_v39  ;;  %v4350_v25 = vpop.f32.mrb[169].mxu0 }
 0x492   : > { %v4351_v31 = vpop.f32.mrb[170].mxu0  ;;  %10175 = vmatmul.mubr.msk.bf16.gmra.mrb[208].mxu0 %vm4534_vm9, %v4506_v59 }
 0x493   : > { %v4447_v52 = vmul.f32 %v4349_v55, %v17950_v29  ;;  %v4352_v62 = vadd.f32 %v13882_v28, %v4351_v31  ;;  %v4353_v33 = vpop.f32.mrb[171].mxu0  ;;  %vm4415_vm4 = vcmp.gt.f32.partialorder %v4349_v55, 0.0 }
 0x495   : > { %vm4416_vm5 = vcmp.gt.f32.partialorder %v4352_v62, 0.0  ;;  %v4448_v61 = vmul.f32 %v4352_v62, %v17950_v29  ;;  %v4479_v3 = vsel %vm4415_vm4, %v4349_v55, %v4447_v52 }
 0x497   : > { %v4480_v41 = vsel %vm4416_vm5, %v4352_v62, %v4448_v61  ;;  %v10735_v61 = vld [vmem:[%s17443_s12 + $0x4] ss:$8 sps:$4 sm:$0xff]  }
 0x498   : > { %v4356_v2 = vpop.f32.mrb[172].mxu0  ;;  %v4507_v19 = vpack.c.bf16 %v4480_v41, %v4479_v3  ;;  %v13975_v3 = vld [vmem:[%s17440_s9] ss:$0 sm:$0xff]  ;;  %5288 = vmatprep.subr.bf16.mxu0 %v10735_v61 }
 0x499   : > { %v4357_v18 = vadd.f32 %v13882_v28, %v4356_v2  ;;  %v4358_v26 = vpop.f32.mrb[173].mxu0 }
 0x49a   : > { %v4359_v32 = vpop.f32.mrb[174].mxu0  ;;  %10178 = vmatprep.mubr.msk.bf16.mxu0 %vm4534_vm9, %v4507_v19 }
 0x49b   : > { %v4449_v49 = vmul.f32 %v4357_v18, %v17950_v29  ;;  %v4360_v53 = vadd.f32 %v13882_v28, %v4359_v32  ;;  %v4361_v8 = vpop.f32.mrb[175].mxu0  ;;  %vm4417_vm7 = vcmp.gt.f32.partialorder %v4357_v18, 0.0 }
 0x49d   : > { %vm4418_vm8 = vcmp.gt.f32.partialorder %v4360_v53, 0.0  ;;  %v4450_v37 = vmul.f32 %v4360_v53, %v17950_v29  ;;  %v4481_v40 = vsel %vm4417_vm7, %v4357_v18, %v4449_v49 }
 0x49f   : > { %v4482_v23 = vsel %vm4418_vm8, %v4360_v53, %v4450_v37 }
 0x4a0   : > { %v4364_v6 = vpop.f32.mrb[176].mxu0  ;;  %v4508_v16 = vpack.c.bf16 %v4482_v23, %v4481_v40 }
 0x4a1   : > { %v4365_v5 = vadd.f32 %v13882_v28, %v4364_v6  ;;  %v4366_v56 = vpop.f32.mrb[177].mxu0 }
 0x4a2   : > { %v4367_v50 = vpop.f32.mrb[178].mxu0  ;;  %10179 = vmatmul.mubr.msk.bf16.gmra.mrb[212].mxu0 %vm4534_vm9, %v4508_v16 }
 0x4a3   : > { %v4451_v48 = vmul.f32 %v4365_v5, %v17950_v29  ;;  %v4368_v57 = vadd.f32 %v13882_v28, %v4367_v50  ;;  %v4369_v13 = vpop.f32.mrb[179].mxu0  ;;  %vm4419_vm10 = vcmp.gt.f32.partialorder %v4365_v5, 0.0 }
 0x4a4   : > { %v5180_v13 = vld [vmem:[%s17443_s12 + $0x20] sm:$0xff] }
 0x4a5   : > { %vm4420_vm11 = vcmp.gt.f32.partialorder %v4368_v57, 0.0  ;;  %v4452_v22 = vmul.f32 %v4368_v57, %v17950_v29  ;;  %v4483_v15 = vsel %vm4419_vm10, %v4365_v5, %v4451_v48  ;;  %v10733_v48 = vld [vmem:[%s17443_s12] ss:$8 sps:$4 sm:$0xff]  }
 0x4a7   : > { %v4484_v30 = vsel %vm4420_vm11, %v4368_v57, %v4452_v22  ;;  %vm4867_vm11 = vcmask 64512   ;;  %v10738_v57 = vld [vmem:[%s17443_s12 + $0x14] ss:$8 sps:$4 sm:$0xff]   ;;  %v10736_v22 = vld [vmem:[%s17443_s12 + $0x10] ss:$8 sps:$4 sm:$0xff]  }
 0x4a8   : > { %v4372_v42 = vpop.f32.mrb[180].mxu0  ;;  %v4509_v20 = vpack.c.bf16 %v4484_v30, %v4483_v15  ;;  %v9457_v15 = vcombine.high %v5180_v13, %v5180_v13  ;;  %v9456_v30 = vcombine.low %v5180_v13, %v5180_v13 }
 0x4a9   : > { %v4373_v9 = vadd.f32 %v13882_v28, %v4372_v42  ;;  %v4374_v54 = vpop.f32.mrb[181].mxu0 }
 0x4aa   : > { %v4375_v51 = vpop.f32.mrb[182].mxu0  ;;  %10182 = vmatprep.mubr.msk.bf16.mxu0 %vm4534_vm9, %v4509_v20 }
 0x4ab   : > { %v4453_v7 = vmul.f32 %v4373_v9, %v17950_v29  ;;  %v4376_v38 = vadd.f32 %v13882_v28, %v4375_v51  ;;  %v4377_v46 = vpop.f32.mrb[183].mxu0  ;;  %vm4421_vm12 = vcmp.gt.f32.partialorder %v4373_v9, 0.0 }
 0x4ad   : > { %vm4422_vm13 = vcmp.gt.f32.partialorder %v4376_v38, 0.0  ;;  %v4454_v14 = vmul.f32 %v4376_v38, %v17950_v29  ;;  %v4485_v43 = vsel %vm4421_vm12, %v4373_v9, %v4453_v7  ;;  %v5283_v7 = vsel %vm4230_vm1, %v9456_v30, 0 }
 0x4af   : > { %v4486_v44 = vsel %vm4422_vm13, %v4376_v38, %v4454_v14 }
 0x4b0   : > { %v4380_v0 = vpop.f32.mrb[184].mxu0  ;;  %v4510_v21 = vpack.c.bf16 %v4486_v44, %v4485_v43 }
 0x4b1   : > { %v4381_v34 = vadd.f32 %v13882_v28, %v4380_v0  ;;  %v4382_v17 = vpop.f32.mrb[185].mxu0 }
 0x4b2   : > { %v4383_v12 = vpop.f32.mrb[186].mxu0  ;;  %10183 = vmatmul.mubr.msk.bf16.gmra.mrb[216].mxu0 %vm4534_vm9, %v4510_v21 }
 0x4b3   : > { %v4455_v4 = vmul.f32 %v4381_v34, %v17950_v29  ;;  %v4384_v35 = vadd.f32 %v13882_v28, %v4383_v12  ;;  %v4385_v60 = vpop.f32.mrb[187].mxu0  ;;  %vm4423_vm14 = vcmp.gt.f32.partialorder %v4381_v34, 0.0 }
 0x4b5   : > { %vm4424_vm2 = vcmp.gt.f32.partialorder %v4384_v35, 0.0  ;;  %v4456_v24 = vmul.f32 %v4384_v35, %v17950_v29  ;;  %v4487_v10 = vsel %vm4423_vm14, %v4381_v34, %v4455_v4 }
 0x4b7   : > { %v4488_v58 = vsel %vm4424_vm2, %v4384_v35, %v4456_v24 }
 0x4b8   : > { %v4388_v45 = vpop.f32.mrb[188].mxu0  ;;  %v4511_v36 = vpack.c.bf16 %v4488_v58, %v4487_v10 }
 0x4b9   : > { %v4389_v11 = vadd.f32 %v13882_v28, %v4388_v45  ;;  %v4390_v27 = vpop.f32.mrb[189].mxu0 }
 0x4ba   : > { %v4391_v39 = vpop.f32.mrb[190].mxu0  ;;  %10186 = vmatprep.mubr.msk.bf16.mxu0 %vm4534_vm9, %v4511_v36 }
 0x4bb   : > { %v4457_v59 = vmul.f32 %v4389_v11, %v17950_v29  ;;  %v4392_v55 = vadd.f32 %v13882_v28, %v4391_v39  ;;  %v4393_v25 = vpop.f32.mrb[191].mxu0  ;;  %vm4425_vm3 = vcmp.gt.f32.partialorder %v4389_v11, 0.0 }
 0x4bd   : > { %vm4426_vm4 = vcmp.gt.f32.partialorder %v4392_v55, 0.0  ;;  %v4458_v31 = vmul.f32 %v4392_v55, %v17950_v29  ;;  %v4489_v52 = vsel %vm4425_vm3, %v4389_v11, %v4457_v59 }
 0x4bf   : > { %v4490_v62 = vsel %vm4426_vm4, %v4392_v55, %v4458_v31 }
 0x4c0   : > { %v4512_v33 = vpack.c.bf16 %v4490_v62, %v4489_v52 }
 0x4c2   : > { %10187 = vmatmul.mubr.msk.bf16.gmra.mrb[220].mxu0 %vm4534_vm9, %v4512_v33 }
 0x525   : > { %v10160_v28 = vpop.f32.mrb[192].mxu0 }
 0x526   : > { %v4629_v41 = vadd.f32 %v10160_v28, %v13975_v3  ;;  %v4620_v2 = vpop.f32.mrb[193].mxu0 }
 0x527   : > { %v4621_v19 = vadd.f32 %v13975_v3, %v4620_v2  ;;  %v10161_v18 = vpop.f32.mrb[194].mxu0 }
 0x528   : > { %v4781_v26 = vmul.f32 %v4629_v41, %v17950_v29  ;;  %v4632_v32 = vadd.f32 %v10161_v18, %v13975_v3  ;;  %v4623_v49 = vpop.f32.mrb[195].mxu0  ;;  %vm4749_vm5 = vcmp.gt.f32.partialorder %v4629_v41, 0.0 }
 0x529   : > { %v4779_v53 = vmul.f32 %v4621_v19, %v17950_v29  ;;  %v4624_v8 = vadd.f32 %v13975_v3, %v4623_v49  ;;  %vm4747_vm7 = vcmp.gt.f32.partialorder %v4621_v19, 0.0 }
 0x52a   : > { %vm4750_vm8 = vcmp.gt.f32.partialorder %v4632_v32, 0.0  ;;  %v4782_v37 = vmul.f32 %v4632_v32, %v17950_v29  ;;  %v4813_v23 = vsel %vm4749_vm5, %v4629_v41, %v4781_v26 }
 0x52b   : > { %vm4748_vm10 = vcmp.gt.f32.partialorder %v4624_v8, 0.0  ;;  %v4780_v40 = vmul.f32 %v4624_v8, %v17950_v29  ;;  %v4811_v16 = vsel %vm4747_vm7, %v4621_v19, %v4779_v53 }
 0x52c   : > { %v4814_v6 = vsel %vm4750_vm8, %v4632_v32, %v4782_v37 }
 0x52d   : > { %v4846_v5 = vpack.c.bf16 %v4814_v6, %v4813_v23  ;;  %v4812_v56 = vsel %vm4748_vm10, %v4624_v8, %v4780_v40 }
 0x52e   : > { %v4845_v50 = vpack.c.bf16 %v4812_v56, %v4811_v16 }
 0x530   : > { %10192 = vmatprep.mubr.msk.bf16.mxu0 %vm4867_vm11, %v4845_v50 }
 0x531   : > { %10193 = vmatmul.mubr.msk.bf16.vlgmr.msra.gmra.mrb[224].mxu0 %vm4867_vm11, %v4846_v5 }
 0x532   : > { %5289 = vmatpush1.bf16.msra.mxu0 %v10733_v48 }
 0x533   : > { %5290 = vmatprep.subr.bf16.mxu0 %v10738_v57 }
 0x535   : > { %v10164_v42 = vpop.f32.mrb[196].mxu0 }
 0x536   : > { %v4645_v20 = vadd.f32 %v10164_v42, %v13975_v3  ;;  %v4636_v9 = vpop.f32.mrb[197].mxu0  ;;  %5291 = vmatpush1.bf16.msra.mxu0 %v10736_v22 }
 0x537   : > { %v4637_v54 = vadd.f32 %v13975_v3, %v4636_v9  ;;  %v10165_v51 = vpop.f32.mrb[198].mxu0  ;;  %9458 = vmatprep.subr.msk.bf16.mxu0 %vm4230_vm1, %v9457_v15 }
 0x538   : > { %v4785_v38 = vmul.f32 %v4645_v20, %v17950_v29  ;;  %v4648_v46 = vadd.f32 %v10165_v51, %v13975_v3  ;;  %v4639_v14 = vpop.f32.mrb[199].mxu0  ;;  %vm4753_vm12 = vcmp.gt.f32.partialorder %v4645_v20, 0.0 }
 0x539   : > { %v4783_v43 = vmul.f32 %v4637_v54, %v17950_v29  ;;  %v4640_v44 = vadd.f32 %v13975_v3, %v4639_v14  ;;  %vm4751_vm13 = vcmp.gt.f32.partialorder %v4637_v54, 0.0 }
 0x53a   : > { %vm4754_vm14 = vcmp.gt.f32.partialorder %v4648_v46, 0.0  ;;  %v4786_v0 = vmul.f32 %v4648_v46, %v17950_v29  ;;  %5293 = vmatpush1.bf16.msra.mxu0 %v5283_v7  ;;  %v4817_v34 = vsel %vm4753_vm12, %v4645_v20, %v4785_v38 }
 0x53b   : > { %vm4752_vm2 = vcmp.gt.f32.partialorder %v4640_v44, 0.0  ;;  %v4784_v21 = vmul.f32 %v4640_v44, %v17950_v29  ;;  %v4815_v12 = vsel %vm4751_vm13, %v4637_v54, %v4783_v43 }
 0x53c   : > { %v4818_v17 = vsel %vm4754_vm14, %v4648_v46, %v4786_v0 }
 0x53d   : > { %v4816_v4 = vsel %vm4752_vm2, %v4640_v44, %v4784_v21  ;;  %v4848_v35 = vpack.c.bf16 %v4818_v17, %v4817_v34 }
 0x53e   : > { %v4847_v60 = vpack.c.bf16 %v4816_v4, %v4815_v12 }
 0x540   : > { %10196 = vmatprep.mubr.msk.bf16.mxu0 %vm4867_vm11, %v4847_v60 }
 0x541   : > { %10197 = vmatmul.mubr.msk.bf16.gmra.mrb[228].mxu0 %vm4867_vm11, %v4848_v35 }
 0x545   : > { %v10168_v24 = vpop.f32.mrb[200].mxu0 }
 0x546   : > { %v4661_v10 = vadd.f32 %v10168_v24, %v13975_v3  ;;  %v4652_v58 = vpop.f32.mrb[201].mxu0 }
 0x547   : > { %v4653_v45 = vadd.f32 %v13975_v3, %v4652_v58  ;;  %v10169_v36 = vpop.f32.mrb[202].mxu0 }
 0x548   : > { %v4789_v11 = vmul.f32 %v4661_v10, %v17950_v29  ;;  %v4664_v27 = vadd.f32 %v10169_v36, %v13975_v3  ;;  %v4655_v39 = vpop.f32.mrb[203].mxu0  ;;  %vm4757_vm3 = vcmp.gt.f32.partialorder %v4661_v10, 0.0 }
 0x549   : > { %v4787_v59 = vmul.f32 %v4653_v45, %v17950_v29  ;;  %v4656_v55 = vadd.f32 %v13975_v3, %v4655_v39  ;;  %vm4755_vm4 = vcmp.gt.f32.partialorder %v4653_v45, 0.0 }
 0x54a   : > { %vm4758_vm5 = vcmp.gt.f32.partialorder %v4664_v27, 0.0  ;;  %v4790_v25 = vmul.f32 %v4664_v27, %v17950_v29  ;;  %v4821_v52 = vsel %vm4757_vm3, %v4661_v10, %v4789_v11 }
 0x54b   : > { %vm4756_vm7 = vcmp.gt.f32.partialorder %v4656_v55, 0.0  ;;  %v4788_v31 = vmul.f32 %v4656_v55, %v17950_v29  ;;  %v4819_v33 = vsel %vm4755_vm4, %v4653_v45, %v4787_v59 }
 0x54c   : > { %v4822_v62 = vsel %vm4758_vm5, %v4664_v27, %v4790_v25 }
 0x54d   : > { %v4820_v61 = vsel %vm4756_vm7, %v4656_v55, %v4788_v31  ;;  %v4850_v28 = vpack.c.bf16 %v4822_v62, %v4821_v52 }
 0x54e   : > { %v4849_v41 = vpack.c.bf16 %v4820_v61, %v4819_v33 }
 0x550   : > { %10200 = vmatprep.mubr.msk.bf16.mxu0 %vm4867_vm11, %v4849_v41 }
 0x551   : > { %10201 = vmatmul.mubr.msk.bf16.gmra.mrb[232].mxu0 %vm4867_vm11, %v4850_v28 }
 0x555   : > { %v10172_v2 = vpop.f32.mrb[204].mxu0 }
 0x556   : > { %v4677_v19 = vadd.f32 %v10172_v2, %v13975_v3  ;;  %v4668_v18 = vpop.f32.mrb[205].mxu0 }
 0x557   : > { %v4669_v26 = vadd.f32 %v13975_v3, %v4668_v18  ;;  %v10173_v32 = vpop.f32.mrb[206].mxu0 }
 0x558   : > { %v4793_v49 = vmul.f32 %v4677_v19, %v17950_v29  ;;  %v4680_v53 = vadd.f32 %v10173_v32, %v13975_v3  ;;  %v4671_v8 = vpop.f32.mrb[207].mxu0  ;;  %vm4761_vm8 = vcmp.gt.f32.partialorder %v4677_v19, 0.0 }
 0x559   : > { %v4791_v37 = vmul.f32 %v4669_v26, %v17950_v29  ;;  %v4672_v40 = vadd.f32 %v13975_v3, %v4671_v8  ;;  %vm4759_vm10 = vcmp.gt.f32.partialorder %v4669_v26, 0.0 }
 0x55a   : > { %vm4762_vm12 = vcmp.gt.f32.partialorder %v4680_v53, 0.0  ;;  %v4794_v23 = vmul.f32 %v4680_v53, %v17950_v29  ;;  %v4825_v16 = vsel %vm4761_vm8, %v4677_v19, %v4793_v49 }
 0x55b   : > { %vm4760_vm13 = vcmp.gt.f32.partialorder %v4672_v40, 0.0  ;;  %v4792_v6 = vmul.f32 %v4672_v40, %v17950_v29  ;;  %v4823_v56 = vsel %vm4759_vm10, %v4669_v26, %v4791_v37 }
 0x55c   : > { %v4826_v5 = vsel %vm4762_vm12, %v4680_v53, %v4794_v23 }
 0x55d   : > { %v4824_v50 = vsel %vm4760_vm13, %v4672_v40, %v4792_v6  ;;  %v4852_v48 = vpack.c.bf16 %v4826_v5, %v4825_v16 }
 0x55e   : > { %v4851_v57 = vpack.c.bf16 %v4824_v50, %v4823_v56 }
 0x560   : > { %10204 = vmatprep.mubr.msk.bf16.mxu0 %vm4867_vm11, %v4851_v57 }
 0x561   : > { %10205 = vmatmul.mubr.msk.bf16.gmra.mrb[236].mxu0 %vm4867_vm11, %v4852_v48 }
 0x565   : > { %v10176_v13 = vpop.f32.mrb[208].mxu0 }
 0x566   : > { %v4693_v22 = vadd.f32 %v10176_v13, %v13975_v3  ;;  %v4684_v15 = vpop.f32.mrb[209].mxu0 }
 0x567   : > { %v4685_v30 = vadd.f32 %v13975_v3, %v4684_v15  ;;  %v10177_v42 = vpop.f32.mrb[210].mxu0 }
 0x568   : > { %v4797_v20 = vmul.f32 %v4693_v22, %v17950_v29  ;;  %v4696_v9 = vadd.f32 %v10177_v42, %v13975_v3  ;;  %v4687_v54 = vpop.f32.mrb[211].mxu0  ;;  %vm4765_vm14 = vcmp.gt.f32.partialorder %v4693_v22, 0.0 }
 0x569   : > { %v4795_v51 = vmul.f32 %v4685_v30, %v17950_v29  ;;  %v4688_v7 = vadd.f32 %v13975_v3, %v4687_v54  ;;  %vm4763_vm2 = vcmp.gt.f32.partialorder %v4685_v30, 0.0 }
 0x56a   : > { %vm4766_vm3 = vcmp.gt.f32.partialorder %v4696_v9, 0.0  ;;  %v4798_v38 = vmul.f32 %v4696_v9, %v17950_v29  ;;  %v4829_v14 = vsel %vm4765_vm14, %v4693_v22, %v4797_v20 }
 0x56b   : > { %vm4764_vm4 = vcmp.gt.f32.partialorder %v4688_v7, 0.0  ;;  %v4796_v46 = vmul.f32 %v4688_v7, %v17950_v29  ;;  %v4827_v44 = vsel %vm4763_vm2, %v4685_v30, %v4795_v51 }
 0x56c   : > { %v4830_v43 = vsel %vm4766_vm3, %v4696_v9, %v4798_v38 }
 0x56d   : > { %v4828_v0 = vsel %vm4764_vm4, %v4688_v7, %v4796_v46  ;;  %v4854_v21 = vpack.c.bf16 %v4830_v43, %v4829_v14  ;;  %v14078_v43 = vld [vmem:[%s17442_s11] ss:$0 sm:$0xff] }
 0x56e   : > { %v4853_v34 = vpack.c.bf16 %v4828_v0, %v4827_v44 }
 0x570   : > { %10208 = vmatprep.mubr.msk.bf16.mxu0 %vm4867_vm11, %v4853_v34 }
 0x571   : > { %10209 = vmatmul.mubr.msk.bf16.gmra.mrb[240].mxu0 %vm4867_vm11, %v4854_v21 }
 0x575   : > { %v10180_v17 = vpop.f32.mrb[212].mxu0 }
 0x576   : > { %v4709_v12 = vadd.f32 %v10180_v17, %v13975_v3  ;;  %v4700_v4 = vpop.f32.mrb[213].mxu0 }
 0x577   : > { %v4701_v35 = vadd.f32 %v13975_v3, %v4700_v4  ;;  %v10181_v60 = vpop.f32.mrb[214].mxu0 }
 0x578   : > { %v4801_v24 = vmul.f32 %v4709_v12, %v17950_v29  ;;  %v4712_v10 = vadd.f32 %v10181_v60, %v13975_v3  ;;  %v4703_v58 = vpop.f32.mrb[215].mxu0  ;;  %vm4769_vm5 = vcmp.gt.f32.partialorder %v4709_v12, 0.0 }
 0x579   : > { %v4799_v45 = vmul.f32 %v4701_v35, %v17950_v29  ;;  %v4704_v36 = vadd.f32 %v13975_v3, %v4703_v58  ;;  %vm4767_vm7 = vcmp.gt.f32.partialorder %v4701_v35, 0.0  ;;  %v10755_v58 = vld [vmem:[%s17445_s14 + $0xc] ss:$28 sps:$4 sm:$0xff]  }
 0x57a   : > { %vm4770_vm8 = vcmp.gt.f32.partialorder %v4712_v10, 0.0  ;;  %v4802_v11 = vmul.f32 %v4712_v10, %v17950_v29  ;;  %v4833_v39 = vsel %vm4769_vm5, %v4709_v12, %v4801_v24  ;;  %6554 = vmatprep.subr.bf16.mxu1 %v10755_v58 }
 0x57b   : > { %vm4768_vm10 = vcmp.gt.f32.partialorder %v4704_v36, 0.0  ;;  %v4800_v27 = vmul.f32 %v4704_v36, %v17950_v29  ;;  %v4831_v55 = vsel %vm4767_vm7, %v4701_v35, %v4799_v45 }
 0x57c   : > { %v4834_v59 = vsel %vm4770_vm8, %v4712_v10, %v4802_v11  ;;  %v10753_v10 = vld [vmem:[%s17445_s14 + $0x8] ss:$28 sps:$4 sm:$0xff]  }
 0x57d   : > { %v4832_v25 = vsel %vm4768_vm10, %v4704_v36, %v4800_v27  ;;  %v4856_v31 = vpack.c.bf16 %v4834_v59, %v4833_v39  ;;  %v10761_v11 = vld [vmem:[%s17445_s14 + $0x44] ss:$28 sps:$4 sm:$0xff]   ;;  %6555 = vmatpush1.bf16.msra.mxu1 %v10753_v10  ;;  %v10803_v10 = vld [vmem:[%s17445_s14 + $0x1cc] ss:$28 sps:$4 sm:$0xff]  }
 0x57e   : > { %v4855_v52 = vpack.c.bf16 %v4832_v25, %v4831_v55  ;;  %v10759_v59 = vld [vmem:[%s17445_s14 + $0x40] ss:$28 sps:$4 sm:$0xff]   ;;  %6556 = vmatprep.subr.bf16.mxu1 %v10761_v11 }
 0x580   : > { %10212 = vmatprep.mubr.msk.bf16.mxu0 %vm4867_vm11, %v4855_v52  ;;  %v10741_v52 = vld [vmem:[%s17445_s14] ss:$28 sps:$4 sm:$0xff]  }
 0x581   : > { %10213 = vmatmul.mubr.msk.bf16.gmra.mrb[244].mxu0 %vm4867_vm11, %v4856_v31  ;;  %6557 = vmatpush1.bf16.msra.mxu1 %v10759_v59 }
 0x585   : > { %v10184_v62 = vpop.f32.mrb[216].mxu0 }
 0x586   : > { %v4725_v33 = vadd.f32 %v10184_v62, %v13975_v3  ;;  %v4716_v61 = vpop.f32.mrb[217].mxu0 }
 0x587   : > { %v4717_v28 = vadd.f32 %v13975_v3, %v4716_v61  ;;  %v10185_v41 = vpop.f32.mrb[218].mxu0  ;;  %v10767_v61 = vld [vmem:[%s17445_s14 + $0x7c] ss:$28 sps:$4 sm:$0xff]  }
 0x588   : > { %v4805_v2 = vmul.f32 %v4725_v33, %v17950_v29  ;;  %v4728_v19 = vadd.f32 %v10185_v41, %v13975_v3  ;;  %v4719_v18 = vpop.f32.mrb[219].mxu0  ;;  %vm4773_vm12 = vcmp.gt.f32.partialorder %v4725_v33, 0.0  ;;  %v10744_v41 = vld [vmem:[%s17445_s14 + $0x38] ss:$28 sps:$4 sm:$0xff]   ;;  %6558 = vmatprep.subr.bf16.mxu1 %v10767_v61 }
 0x589   : > { %v4803_v26 = vmul.f32 %v4717_v28, %v17950_v29  ;;  %v4720_v32 = vadd.f32 %v13975_v3, %v4719_v18  ;;  %vm4771_vm13 = vcmp.gt.f32.partialorder %v4717_v28, 0.0  ;;  %v10774_v18 = vld [vmem:[%s17445_s14 + $0xb0] ss:$28 sps:$4 sm:$0xff]  }
 0x58a   : > { %vm4774_vm14 = vcmp.gt.f32.partialorder %v4728_v19, 0.0  ;;  %v4806_v49 = vmul.f32 %v4728_v19, %v17950_v29  ;;  %v4837_v8 = vsel %vm4773_vm12, %v4725_v33, %v4805_v2  ;;  %v10746_v33 = vld [vmem:[%s17445_s14 + $0x3c] ss:$28 sps:$4 sm:$0xff]   ;;  %v10776_v2 = vld [vmem:[%s17445_s14 + $0xb4] ss:$28 sps:$4 sm:$0xff]  }
 0x58b   : > { %vm4772_vm2 = vcmp.gt.f32.partialorder %v4720_v32, 0.0  ;;  %v4804_v53 = vmul.f32 %v4720_v32, %v17950_v29  ;;  %v4835_v40 = vsel %vm4771_vm13, %v4717_v28, %v4803_v26  ;;  %v10765_v28 = vld [vmem:[%s17445_s14 + $0x78] ss:$28 sps:$4 sm:$0xff]  }
 0x58c   : > { %v4838_v37 = vsel %vm4774_vm14, %v4728_v19, %v4806_v49  ;;  %v10749_v19 = vld [vmem:[%s17445_s14 + $0x74] ss:$28 sps:$4 sm:$0xff]   ;;  %6559 = vmatpush1.bf16.msra.mxu1 %v10765_v28 }
 0x58d   : > { %v4836_v23 = vsel %vm4772_vm2, %v4720_v32, %v4804_v53  ;;  %v4858_v6 = vpack.c.bf16 %v4838_v37, %v4837_v8  ;;  %v10747_v32 = vld [vmem:[%s17445_s14 + $0x70] ss:$28 sps:$4 sm:$0xff]   ;;  %6560 = vmatprep.subr.bf16.mxu1 %v10776_v2 }
 0x58e   : > { %v4857_v16 = vpack.c.bf16 %v4836_v23, %v4835_v40  ;;  %v10752_v8 = vld [vmem:[%s17445_s14 + $0xac] ss:$28 sps:$4 sm:$0xff]  }
 0x58f   : > { %v10782_v37 = vld [vmem:[%s17445_s14 + $0xec] ss:$28 sps:$4 sm:$0xff]  }
 0x590   : > { %10216 = vmatprep.mubr.msk.bf16.mxu0 %vm4867_vm11, %v4857_v16  ;;  %6561 = vmatpush1.bf16.msra.mxu1 %v10774_v18 }
 0x591   : > { %10217 = vmatmul.mubr.msk.bf16.gmra.mrb[248].mxu0 %vm4867_vm11, %v4858_v6  ;;  %6562 = vmatprep.subr.bf16.mxu1 %v10782_v37 }
 0x595   : > { %v10188_v5 = vpop.f32.mrb[220].mxu0 }
 0x596   : > { %v4741_v56 = vadd.f32 %v10188_v5, %v13975_v3  ;;  %v4732_v50 = vpop.f32.mrb[221].mxu0 }
 0x597   : > { %v4733_v48 = vadd.f32 %v13975_v3, %v4732_v50  ;;  %v10189_v57 = vpop.f32.mrb[222].mxu0 }
 0x598   : > { %v4809_v13 = vmul.f32 %v4741_v56, %v17950_v29  ;;  %v4744_v22 = vadd.f32 %v10189_v57, %v13975_v3  ;;  %v4735_v15 = vpop.f32.mrb[223].mxu0  ;;  %vm4777_vm3 = vcmp.gt.f32.partialorder %v4741_v56, 0.0  ;;  %v10750_v57 = vld [vmem:[%s17445_s14 + $0xa8] ss:$28 sps:$4 sm:$0xff]  }
 0x599   : > { %v4807_v30 = vmul.f32 %v4733_v48, %v17950_v29  ;;  %v4736_v42 = vadd.f32 %v13975_v3, %v4735_v15  ;;  %vm4775_vm4 = vcmp.gt.f32.partialorder %v4733_v48, 0.0  ;;  %v10743_v3 = vld [vmem:[%s17445_s14 + $0x4] ss:$28 sps:$4 sm:$0xff]  }
 0x59a   : > { %vm4778_vm5 = vcmp.gt.f32.partialorder %v4744_v22, 0.0  ;;  %v4810_v20 = vmul.f32 %v4744_v22, %v17950_v29  ;;  %v4841_v54 = vsel %vm4777_vm3, %v4741_v56, %v4809_v13  ;;  %6361 = vmatprep.subr.bf16.mxu0 %v10743_v3  ;;  %v10780_v56 = vld [vmem:[%s17445_s14 + $0xe8] ss:$28 sps:$4 sm:$0xff]   ;;  %v10794_v3 = vld [vmem:[%s17445_s14 + $0x15c] ss:$28 sps:$4 sm:$0xff]  }
 0x59b   : > { %vm4776_vm7 = vcmp.gt.f32.partialorder %v4736_v42, 0.0  ;;  %v4808_v9 = vmul.f32 %v4736_v42, %v17950_v29  ;;  %v4839_v7 = vsel %vm4775_vm4, %v4733_v48, %v4807_v30  ;;  %v10788_v13 = vld [vmem:[%s17445_s14 + $0x124] ss:$28 sps:$4 sm:$0xff]   ;;  %6563 = vmatpush1.bf16.msra.mxu1 %v10780_v56 }
 0x59c   : > { %v4842_v51 = vsel %vm4778_vm5, %v4744_v22, %v4810_v20  ;;  %v10758_v15 = vld [vmem:[%s17445_s14 + $0xe4] ss:$28 sps:$4 sm:$0xff]   ;;  %6564 = vmatprep.subr.bf16.mxu1 %v10788_v13 }
 0x59d   : > { %v4840_v38 = vsel %vm4776_vm7, %v4736_v42, %v4808_v9  ;;  %v4860_v46 = vpack.c.bf16 %v4842_v51, %v4841_v54  ;;  %v10786_v9 = vld [vmem:[%s17445_s14 + $0x120] ss:$28 sps:$4 sm:$0xff]  }
 0x59e   : > { %v4859_v14 = vpack.c.bf16 %v4840_v38, %v4839_v7  ;;  %v10756_v38 = vld [vmem:[%s17445_s14 + $0xe0] ss:$28 sps:$4 sm:$0xff]  }
 0x59f   : > { %6565 = vmatpush1.bf16.msra.mxu1 %v10786_v9 }
 0x5a0   : > { %10220 = vmatprep.mubr.msk.bf16.mxu0 %vm4867_vm11, %v4859_v14  ;;  %v10764_v14 = vld [vmem:[%s17445_s14 + $0x11c] ss:$28 sps:$4 sm:$0xff]   ;;  %6566 = vmatprep.subr.bf16.mxu1 %v10794_v3 }
 0x5a1   : > { %10221 = vmatmul.mubr.msk.bf16.gmra.mrb[252].mxu0 %vm4867_vm11, %v4860_v46 }
 0x5a2   : > { %5320 = vmatprep.mubr.bf16.mxu0 %v17903_v47 }
 0x604   : > { %v10194_v44 = vpop.f32.mrb[224].mxu0 }
 0x605   : > { %v4962_v0 = vadd.f32 %v10194_v44, %v14078_v43  ;;  %v4953_v21 = vpop.f32.mrb[225].mxu0  ;;  %v10792_v44 = vld [vmem:[%s17445_s14 + $0x158] ss:$28 sps:$4 sm:$0xff]  }
 0x606   : > { %v4954_v34 = vadd.f32 %v14078_v43, %v4953_v21  ;;  %v10195_v17 = vpop.f32.mrb[226].mxu0  ;;  %v10797_v21 = vld [vmem:[%s17445_s14 + $0x194] ss:$28 sps:$4 sm:$0xff]   ;;  %6567 = vmatpush1.bf16.msra.mxu1 %v10792_v44 }
 0x607   : > { %v5114_v12 = vmul.f32 %v4962_v0, %v17950_v29  ;;  %v4965_v4 = vadd.f32 %v10195_v17, %v14078_v43  ;;  %v4956_v35 = vpop.f32.mrb[227].mxu0  ;;  %vm5082_vm11 = vcmp.gt.f32.partialorder %v4962_v0, 0.0  ;;  %v10795_v17 = vld [vmem:[%s17445_s14 + $0x190] ss:$28 sps:$4 sm:$0xff]   ;;  %6568 = vmatprep.subr.bf16.mxu1 %v10797_v21 }
 0x608   : > { %v5112_v60 = vmul.f32 %v4954_v34, %v17950_v29  ;;  %v4957_v24 = vadd.f32 %v14078_v43, %v4956_v35  ;;  %vm5080_vm8 = vcmp.gt.f32.partialorder %v4954_v34, 0.0 }
 0x609   : > { %vm5083_vm10 = vcmp.gt.f32.partialorder %v4965_v4, 0.0  ;;  %v5115_v45 = vmul.f32 %v4965_v4, %v17950_v29  ;;  %v5146_v27 = vsel %vm5082_vm11, %v4962_v0, %v5114_v12  ;;  %v10762_v0 = vld [vmem:[%s17445_s14 + $0x118] ss:$28 sps:$4 sm:$0xff]  }
 0x60a   : > { %vm5081_vm12 = vcmp.gt.f32.partialorder %v4957_v24, 0.0  ;;  %v5113_v36 = vmul.f32 %v4957_v24, %v17950_v29  ;;  %v5144_v55 = vsel %vm5080_vm8, %v4954_v34, %v5112_v60  ;;  %v10770_v34 = vld [vmem:[%s17445_s14 + $0x154] ss:$28 sps:$4 sm:$0xff]   ;;  %6569 = vmatpush1.bf16.msra.mxu1 %v10795_v17 }
 0x60b   : > { %v5147_v39 = vsel %vm5083_vm10, %v4965_v4, %v5115_v45  ;;  %v10768_v4 = vld [vmem:[%s17445_s14 + $0x150] ss:$28 sps:$4 sm:$0xff]   ;;  %6570 = vmatprep.subr.bf16.mxu1 %v10803_v10 }
 0x60c   : > { %v5183_v25 = vpack.c.bf16 %v5147_v39, %v5146_v27  ;;  %v5145_v31 = vsel %vm5081_vm12, %v4957_v24, %v5113_v36  ;;  %v10773_v24 = vld [vmem:[%s17445_s14 + $0x18c] ss:$28 sps:$4 sm:$0xff]  }
 0x60d   : > { %v5182_v62 = vpack.c.bf16 %v5145_v31, %v5144_v55  ;;  %v10801_v39 = vld [vmem:[%s17445_s14 + $0x1c8] ss:$28 sps:$4 sm:$0xff]  }
 0x60e   : > { %v10806_v31 = vld [vmem:[%s17445_s14 + $0x204] ss:$28 sps:$4 sm:$0xff]   ;;  %6571 = vmatpush1.bf16.msra.mxu1 %v10801_v39 }
 0x60f   : > { %9459 = vmatmul.mubr.msk.bf16.vlgmr.msra.gmra.mrb[0].mxu0 %vm4534_vm9, %v5182_v62  ;;  %v10779_v62 = vld [vmem:[%s17445_s14 + $0x1c4] ss:$28 sps:$4 sm:$0xff]   ;;  %6572 = vmatprep.subr.bf16.mxu1 %v10806_v31 }
 0x610   : > { %5330 = vmatprep.mubr.bf16.mxu0 %v17903_v47  ;;  %6362 = vmatpush1.bf16.msra.mxu0 %v10741_v52 }
 0x611   : > { %6363 = vmatprep.subr.bf16.mxu0 %v10746_v33 }
 0x614   : > { %v10198_v26 = vpop.f32.mrb[228].mxu0  ;;  %6364 = vmatpush1.bf16.msra.mxu0 %v10744_v41  ;;  %v10804_v41 = vld [vmem:[%s17445_s14 + $0x200] ss:$28 sps:$4 sm:$0xff]  }
 0x615   : > { %v4978_v49 = vadd.f32 %v10198_v26, %v14078_v43  ;;  %v4969_v53 = vpop.f32.mrb[229].mxu0  ;;  %6365 = vmatprep.subr.bf16.mxu0 %v10749_v19  ;;  %v10777_v26 = vld [vmem:[%s17445_s14 + $0x1c0] ss:$28 sps:$4 sm:$0xff]   ;;  %6573 = vmatpush1.bf16.msra.mxu1 %v10804_v41 }
 0x616   : > { %v4970_v40 = vadd.f32 %v14078_v43, %v4969_v53  ;;  %v10199_v23 = vpop.f32.mrb[230].mxu0  ;;  %v10783_v53 = vld [vmem:[%s17445_s14 + $0x1f8] ss:$28 sps:$4 sm:$0xff]  }
 0x617   : > { %v5118_v6 = vmul.f32 %v4978_v49, %v17950_v29  ;;  %v4981_v16 = vadd.f32 %v10199_v23, %v14078_v43  ;;  %v4972_v5 = vpop.f32.mrb[231].mxu0  ;;  %9460 = vmatmul.mubr.msk.bf16.gmra.mrb[4].mxu0 %vm4534_vm9, %v5183_v25  ;;  %vm5086_vm13 = vcmp.gt.f32.partialorder %v4978_v49, 0.0  ;;  %v10771_v25 = vld [vmem:[%s17445_s14 + $0x188] ss:$28 sps:$4 sm:$0xff]  }
 0x618   : > { %v5116_v50 = vmul.f32 %v4970_v40, %v17950_v29  ;;  %v4973_v48 = vadd.f32 %v14078_v43, %v4972_v5  ;;  %5340 = vmatprep.mubr.bf16.mxu0 %v17903_v47  ;;  %6366 = vmatpush1.bf16.msra.mxu0 %v10747_v32  ;;  %vm5084_vm14 = vcmp.gt.f32.partialorder %v4970_v40, 0.0 }
 0x619   : > { %vm5087_vm2 = vcmp.gt.f32.partialorder %v4981_v16, 0.0  ;;  %v5119_v22 = vmul.f32 %v4981_v16, %v17950_v29  ;;  %6367 = vmatprep.subr.bf16.mxu0 %v10752_v8  ;;  %v5150_v42 = vsel %vm5086_vm13, %v4978_v49, %v5118_v6  ;;  %v10785_v49 = vld [vmem:[%s17445_s14 + $0x1fc] ss:$28 sps:$4 sm:$0xff]   ;;  %v10791_v8 = vld [vmem:[%s17445_s14 + $0x234] ss:$28 sps:$4 sm:$0xff]  }
 0x61a   : > { %vm5085_vm3 = vcmp.gt.f32.partialorder %v4973_v48, 0.0  ;;  %v5117_v30 = vmul.f32 %v4973_v48, %v17950_v29  ;;  %v5148_v54 = vsel %vm5084_vm14, %v4970_v40, %v5116_v50  ;;  %v10789_v40 = vld [vmem:[%s17445_s14 + $0x230] ss:$28 sps:$4 sm:$0xff]  }
 0x61b   : > { %v5151_v20 = vsel %vm5087_vm2, %v4981_v16, %v5119_v22  ;;  %v10800_v16 = vld [vmem:[%s17445_s14 + $0x26c] ss:$28 sps:$4 sm:$0xff]  }
 0x61c   : > { %v5185_v51 = vpack.c.bf16 %v5151_v20, %v5150_v42  ;;  %v5149_v7 = vsel %vm5085_vm3, %v4973_v48, %v5117_v30  ;;  %6368 = vmatpush1.bf16.msra.mxu0 %v10750_v57 }
 0x61d   : > { %v5184_v46 = vpack.c.bf16 %v5149_v7, %v5148_v54  ;;  %6369 = vmatprep.subr.bf16.mxu0 %v10758_v15  ;;  %v10798_v15 = vld [vmem:[%s17445_s14 + $0x268] ss:$28 sps:$4 sm:$0xff]  }
 0x61f   : > { %9461 = vmatmul.mubr.msk.bf16.gmra.mrb[8].mxu0 %vm4534_vm9, %v5184_v46 }
 0x620   : > { %5350 = vmatprep.mubr.bf16.mxu0 %v17903_v47  ;;  %6370 = vmatpush1.bf16.msra.mxu0 %v10756_v38 }
 0x621   : > { %6371 = vmatprep.subr.bf16.mxu0 %v10764_v14 }
 0x624   : > { %v10202_v12 = vpop.f32.mrb[232].mxu0  ;;  %6372 = vmatpush1.bf16.msra.mxu0 %v10762_v0 }
 0x625   : > { %v4994_v35 = vadd.f32 %v10202_v12, %v14078_v43  ;;  %v4985_v60 = vpop.f32.mrb[233].mxu0  ;;  %6373 = vmatprep.subr.bf16.mxu0 %v10770_v34 }
 0x626   : > { %v4986_v58 = vadd.f32 %v14078_v43, %v4985_v60  ;;  %v10203_v45 = vpop.f32.mrb[234].mxu0 }
 0x627   : > { %v5122_v36 = vmul.f32 %v4994_v35, %v17950_v29  ;;  %v4997_v11 = vadd.f32 %v10203_v45, %v14078_v43  ;;  %v4988_v27 = vpop.f32.mrb[235].mxu0  ;;  %9462 = vmatmul.mubr.msk.bf16.gmra.mrb[12].mxu0 %vm4534_vm9, %v5185_v51  ;;  %vm5090_vm4 = vcmp.gt.f32.partialorder %v4994_v35, 0.0 }
 0x628   : > { %v5120_v59 = vmul.f32 %v4986_v58, %v17950_v29  ;;  %v4989_v55 = vadd.f32 %v14078_v43, %v4988_v27  ;;  %5360 = vmatprep.mubr.bf16.mxu0 %v17903_v47  ;;  %6374 = vmatpush1.bf16.msra.mxu0 %v10768_v4  ;;  %vm5088_vm5 = vcmp.gt.f32.partialorder %v4986_v58, 0.0 }
 0x629   : > { %vm5091_vm7 = vcmp.gt.f32.partialorder %v4997_v11, 0.0  ;;  %v5123_v52 = vmul.f32 %v4997_v11, %v17950_v29  ;;  %6375 = vmatprep.subr.bf16.mxu0 %v10773_v24  ;;  %v5154_v61 = vsel %vm5090_vm4, %v4994_v35, %v5122_v36 }
 0x62a   : > { %vm5089_vm11 = vcmp.gt.f32.partialorder %v4989_v55, 0.0  ;;  %v5121_v33 = vmul.f32 %v4989_v55, %v17950_v29  ;;  %v5152_v2 = vsel %vm5088_vm5, %v4986_v58, %v5120_v59 }
 0x62b   : > { %v5155_v28 = vsel %vm5091_vm7, %v4997_v11, %v5123_v52 }
 0x62c   : > { %v5187_v19 = vpack.c.bf16 %v5155_v28, %v5154_v61  ;;  %v5153_v18 = vsel %vm5089_vm11, %v4989_v55, %v5121_v33  ;;  %6376 = vmatpush1.bf16.msra.mxu0 %v10771_v25 }
 0x62d   : > { %v5186_v32 = vpack.c.bf16 %v5153_v18, %v5152_v2  ;;  %6377 = vmatprep.subr.bf16.mxu0 %v10779_v62 }
 0x62f   : > { %9463 = vmatmul.mubr.msk.bf16.gmra.mrb[16].mxu0 %vm4534_vm9, %v5186_v32 }
 0x630   : > { %5370 = vmatprep.mubr.bf16.mxu0 %v17903_v47  ;;  %6378 = vmatpush1.bf16.msra.mxu0 %v10777_v26 }
 0x631   : > { %6379 = vmatprep.subr.bf16.mxu0 %v10785_v49 }
 0x634   : > { %v10206_v37 = vpop.f32.mrb[236].mxu0  ;;  %6380 = vmatpush1.bf16.msra.mxu0 %v10783_v53 }
 0x635   : > { %v5010_v23 = vadd.f32 %v10206_v37, %v14078_v43  ;;  %v5001_v6 = vpop.f32.mrb[237].mxu0  ;;  %6381 = vmatprep.subr.bf16.mxu0 %v10791_v8 }
 0x636   : > { %v5002_v5 = vadd.f32 %v14078_v43, %v5001_v6  ;;  %v10207_v56 = vpop.f32.mrb[238].mxu0 }
 0x637   : > { %v5126_v50 = vmul.f32 %v5010_v23, %v17950_v29  ;;  %v5013_v48 = vadd.f32 %v10207_v56, %v14078_v43  ;;  %v5004_v57 = vpop.f32.mrb[239].mxu0  ;;  %9464 = vmatmul.mubr.msk.bf16.gmra.mrb[20].mxu0 %vm4534_vm9, %v5187_v19  ;;  %vm5094_vm8 = vcmp.gt.f32.partialorder %v5010_v23, 0.0  ;;  %v10807_v56 = vld [vmem:[%s17445_s14 + $0x238] ss:$28 sps:$4 sm:$0xff]  }
 0x638   : > { %v5124_v13 = vmul.f32 %v5002_v5, %v17950_v29  ;;  %v5005_v22 = vadd.f32 %v14078_v43, %v5004_v57  ;;  %5380 = vmatprep.mubr.bf16.mxu0 %v17903_v47  ;;  %6382 = vmatpush1.bf16.msra.mxu0 %v10789_v40  ;;  %vm5092_vm10 = vcmp.gt.f32.partialorder %v5002_v5, 0.0 }
 0x639   : > { %vm5095_vm12 = vcmp.gt.f32.partialorder %v5013_v48, 0.0  ;;  %v5127_v30 = vmul.f32 %v5013_v48, %v17950_v29  ;;  %6383 = vmatprep.subr.bf16.mxu0 %v10800_v16  ;;  %v5158_v20 = vsel %vm5094_vm8, %v5010_v23, %v5126_v50  ;;  %v10809_v50 = vld [vmem:[%s17445_s14 + $0x23c] ss:$28 sps:$4 sm:$0xff]  }
 0x63a   : > { %vm5093_vm13 = vcmp.gt.f32.partialorder %v5005_v22, 0.0  ;;  %v5125_v42 = vmul.f32 %v5005_v22, %v17950_v29  ;;  %v5156_v54 = vsel %vm5092_vm10, %v5002_v5, %v5124_v13  ;;  %6574 = vmatprep.subr.bf16.mxu1 %v10809_v50 }
 0x63b   : > { %v5159_v9 = vsel %vm5095_vm12, %v5013_v48, %v5127_v30  ;;  %6575 = vmatpush1.bf16.msra.mxu1 %v10807_v56  ;;  %v10812_v30 = vld [vmem:[%s17445_s14 + $0x270] ss:$28 sps:$4 sm:$0xff]  }
 0x63c   : > { %v5189_v51 = vpack.c.bf16 %v5159_v9, %v5158_v20  ;;  %v5157_v7 = vsel %vm5093_vm13, %v5005_v22, %v5125_v42  ;;  %6384 = vmatpush1.bf16.msra.mxu0 %v10798_v15  ;;  %v5769_v15 = vld [vmem:[%s17445_s14 + $0x2a0] sm:$0xff]  ;;  %v10814_v42 = vld [vmem:[%s17445_s14 + $0x274] ss:$28 sps:$4 sm:$0xff]  }
 0x63d   : > { %v5188_v38 = vpack.c.bf16 %v5157_v7, %v5156_v54  ;;  %v9560_v54 = vcombine.high %v5769_v15, %v5769_v15  ;;  %6576 = vmatprep.subr.bf16.mxu1 %v10814_v42 }
 0x63f   : > { %9465 = vmatmul.mubr.msk.bf16.gmra.mrb[24].mxu0 %vm4534_vm9, %v5188_v38  ;;  %9566 = vmatprep.subr.msk.bf16.mxu0 %vm4230_vm1, %v9560_v54 }
 0x640   : > { %5390 = vmatprep.mubr.bf16.mxu0 %v17903_v47  ;;  %6577 = vmatpush1.bf16.msra.mxu1 %v10812_v30 }
 0x644   : > { %v10210_v46 = vpop.f32.mrb[240].mxu0 }
 0x645   : > { %v5026_v14 = vadd.f32 %v10210_v46, %v14078_v43  ;;  %v5017_v3 = vpop.f32.mrb[241].mxu0 }
 0x646   : > { %v5018_v44 = vadd.f32 %v14078_v43, %v5017_v3  ;;  %v10211_v0 = vpop.f32.mrb[242].mxu0 }
 0x647   : > { %v5130_v21 = vmul.f32 %v5026_v14, %v17950_v29  ;;  %v5029_v34 = vadd.f32 %v10211_v0, %v14078_v43  ;;  %v5020_v17 = vpop.f32.mrb[243].mxu0  ;;  %9466 = vmatmul.mubr.msk.bf16.gmra.mrb[28].mxu0 %vm4534_vm9, %v5189_v51  ;;  %vm5098_vm14 = vcmp.gt.f32.partialorder %v5026_v14, 0.0  ;;  %v9559_v51 = vcombine.low %v5769_v15, %v5769_v15  ;;  %v10832_v15 = vld [vmem:[%s17445_s14 + $0x18] ss:$28 sps:$4 sm:$0xff]  }
 0x648   : > { %v5128_v12 = vmul.f32 %v5018_v44, %v17950_v29  ;;  %v5021_v4 = vadd.f32 %v14078_v43, %v5020_v17  ;;  %5400 = vmatprep.mubr.bf16.mxu0 %v17903_v47  ;;  %vm5096_vm2 = vcmp.gt.f32.partialorder %v5018_v44, 0.0  ;;  %v10819_v17 = vld [vmem:[%s17445_s14 + $0x14] ss:$28 sps:$4 sm:$0xff]  }
 0x649   : > { %vm5099_vm3 = vcmp.gt.f32.partialorder %v5029_v34, 0.0  ;;  %v5131_v35 = vmul.f32 %v5029_v34, %v17950_v29  ;;  %v5162_v24 = vsel %vm5098_vm14, %v5026_v14, %v5130_v21  ;;  %v6341_v3 = vsel %vm4230_vm1, %v9559_v51, 0 }
 0x64a   : > { %vm5097_vm4 = vcmp.gt.f32.partialorder %v5021_v4, 0.0  ;;  %v5129_v60 = vmul.f32 %v5021_v4, %v17950_v29  ;;  %v5160_v58 = vsel %vm5096_vm2, %v5018_v44, %v5128_v12  ;;  %6386 = vmatpush1.bf16.msra.mxu0 %v6341_v3  ;;  %v5770_v44 = vld [vmem:[%s17445_s14 + $0x2a8] sm:$0xff] }
 0x64b   : > { %v5163_v10 = vsel %vm5099_vm3, %v5029_v34, %v5131_v35  ;;  %v9562_v0 = vcombine.high %v5770_v44, %v5770_v44  ;;  %v9561_v21 = vcombine.low %v5770_v44, %v5770_v44  ;;  %6747 = vmatprep.subr.bf16.mxu0 %v10819_v17  ;;  %v10836_v3 = vld [vmem:[%s17445_s14 + $0x50] ss:$28 sps:$4 sm:$0xff]  }
 0x64c   : > { %v5191_v45 = vpack.c.bf16 %v5163_v10, %v5162_v24  ;;  %v5161_v36 = vsel %vm5097_vm4, %v5021_v4, %v5129_v60 }
 0x64d   : > { %v5190_v11 = vpack.c.bf16 %v5161_v36, %v5160_v58  ;;  %9583 = vmatprep.subr.msk.bf16.mxu1 %vm4230_vm1, %v9562_v0  ;;  %v6347_v34 = vsel %vm4230_vm1, %v9561_v21, 0  ;;  %v10825_v0 = vld [vmem:[%s17445_s14 + $0x84] ss:$28 sps:$4 sm:$0xff]  }
 0x64e   : > { %6579 = vmatpush1.bf16.msra.mxu1 %v6347_v34 }
 0x64f   : > { %9467 = vmatmul.mubr.msk.bf16.gmra.mrb[32].mxu0 %vm4534_vm9, %v5190_v11  ;;  %6940 = vmatprep.subr.bf16.mxu1 %v17903_v47 }
 0x650   : > { %5410 = vmatprep.mubr.bf16.mxu0 %v17903_v47 }
 0x654   : > { %v10214_v27 = vpop.f32.mrb[244].mxu0 }
 0x655   : > { %v5042_v39 = vadd.f32 %v10214_v27, %v14078_v43  ;;  %v5033_v59 = vpop.f32.mrb[245].mxu0 }
 0x656   : > { %v5034_v55 = vadd.f32 %v14078_v43, %v5033_v59  ;;  %v10215_v25 = vpop.f32.mrb[246].mxu0 }
 0x657   : > { %v5134_v31 = vmul.f32 %v5042_v39, %v17950_v29  ;;  %v5045_v52 = vadd.f32 %v10215_v25, %v14078_v43  ;;  %v5036_v62 = vpop.f32.mrb[247].mxu0  ;;  %9468 = vmatmul.mubr.msk.bf16.gmra.mrb[36].mxu0 %vm4534_vm9, %v5191_v45  ;;  %vm5102_vm5 = vcmp.gt.f32.partialorder %v5042_v39, 0.0 }
 0x658   : > { %v5132_v33 = vmul.f32 %v5034_v55, %v17950_v29  ;;  %v5037_v61 = vadd.f32 %v14078_v43, %v5036_v62  ;;  %5420 = vmatprep.mubr.bf16.mxu0 %v17903_v47  ;;  %vm5100_vm7 = vcmp.gt.f32.partialorder %v5034_v55, 0.0 }
 0x659   : > { %vm5103_vm11 = vcmp.gt.f32.partialorder %v5045_v52, 0.0  ;;  %v5135_v28 = vmul.f32 %v5045_v52, %v17950_v29  ;;  %v5166_v2 = vsel %vm5102_vm5, %v5042_v39, %v5134_v31 }
 0x65a   : > { %vm5101_vm8 = vcmp.gt.f32.partialorder %v5037_v61, 0.0  ;;  %v5133_v41 = vmul.f32 %v5037_v61, %v17950_v29  ;;  %v5164_v18 = vsel %vm5100_vm7, %v5034_v55, %v5132_v33 }
 0x65b   : > { %v5167_v19 = vsel %vm5103_vm11, %v5045_v52, %v5135_v28 }
 0x65c   : > { %v5193_v26 = vpack.c.bf16 %v5167_v19, %v5166_v2  ;;  %v5165_v32 = vsel %vm5101_vm8, %v5037_v61, %v5133_v41 }
 0x65d   : > { %v5192_v49 = vpack.c.bf16 %v5165_v32, %v5164_v18 }
 0x65f   : > { %9469 = vmatmul.mubr.msk.bf16.gmra.mrb[40].mxu0 %vm4534_vm9, %v5192_v49 }
 0x660   : > { %5430 = vmatprep.mubr.bf16.mxu0 %v17903_v47 }
 0x664   : > { %v10218_v53 = vpop.f32.mrb[248].mxu0 }
 0x665   : > { %v5058_v8 = vadd.f32 %v10218_v53, %v14078_v43  ;;  %v5049_v37 = vpop.f32.mrb[249].mxu0 }
 0x666   : > { %v5050_v40 = vadd.f32 %v14078_v43, %v5049_v37  ;;  %v10219_v23 = vpop.f32.mrb[250].mxu0 }
 0x667   : > { %v5138_v6 = vmul.f32 %v5058_v8, %v17950_v29  ;;  %v5061_v16 = vadd.f32 %v10219_v23, %v14078_v43  ;;  %v5052_v5 = vpop.f32.mrb[251].mxu0  ;;  %9470 = vmatmul.mubr.msk.bf16.gmra.mrb[44].mxu0 %vm4534_vm9, %v5193_v26  ;;  %vm5106_vm10 = vcmp.gt.f32.partialorder %v5058_v8, 0.0 }
 0x668   : > { %v5136_v48 = vmul.f32 %v5050_v40, %v17950_v29  ;;  %v5053_v57 = vadd.f32 %v14078_v43, %v5052_v5  ;;  %5440 = vmatprep.mubr.bf16.mxu0 %v17903_v47  ;;  %vm5104_vm12 = vcmp.gt.f32.partialorder %v5050_v40, 0.0 }
 0x669   : > { %vm5107_vm13 = vcmp.gt.f32.partialorder %v5061_v16, 0.0  ;;  %v5139_v13 = vmul.f32 %v5061_v16, %v17950_v29  ;;  %v5170_v20 = vsel %vm5106_vm10, %v5058_v8, %v5138_v6 }
 0x66a   : > { %vm5105_vm14 = vcmp.gt.f32.partialorder %v5053_v57, 0.0  ;;  %v5137_v22 = vmul.f32 %v5053_v57, %v17950_v29  ;;  %v5168_v7 = vsel %vm5104_vm12, %v5050_v40, %v5136_v48 }
 0x66b   : > { %v5171_v9 = vsel %vm5107_vm13, %v5061_v16, %v5139_v13 }
 0x66c   : > { %v5195_v38 = vpack.c.bf16 %v5171_v9, %v5170_v20  ;;  %v5169_v46 = vsel %vm5105_vm14, %v5053_v57, %v5137_v22  ;;  %v10817_v22 = vld [vmem:[%s17445_s14 + $0x10] ss:$28 sps:$4 sm:$0xff]  }
 0x66d   : > { %v5194_v14 = vpack.c.bf16 %v5169_v46, %v5168_v7  ;;  %v10822_v20 = vld [vmem:[%s17445_s14 + $0x4c] ss:$28 sps:$4 sm:$0xff]  }
 0x66f   : > { %9471 = vmatmul.mubr.msk.bf16.gmra.mrb[48].mxu0 %vm4534_vm9, %v5194_v14  ;;  %v10820_v14 = vld [vmem:[%s17445_s14 + $0x48] ss:$28 sps:$4 sm:$0xff]  }
 0x670   : > { %5450 = vmatprep.mubr.bf16.mxu0 %v17903_v47 }
 0x674   : > { %v10222_v12 = vpop.f32.mrb[252].mxu0 }
 0x675   : > { %v5074_v4 = vadd.f32 %v10222_v12, %v14078_v43  ;;  %v5065_v35 = vpop.f32.mrb[253].mxu0 }
 0x676   : > { %v5066_v60 = vadd.f32 %v14078_v43, %v5065_v35  ;;  %v10223_v24 = vpop.f32.mrb[254].mxu0 }
 0x677   : > { %v5142_v10 = vmul.f32 %v5074_v4, %v17950_v29  ;;  %v5077_v58 = vadd.f32 %v10223_v24, %v14078_v43  ;;  %v5068_v45 = vpop.f32.mrb[255].mxu0  ;;  %9472 = vmatmul.mubr.msk.bf16.gmra.mrb[52].mxu0 %vm4534_vm9, %v5195_v38  ;;  %vm5110_vm2 = vcmp.gt.f32.partialorder %v5074_v4, 0.0 }
 0x678   : > { %v5140_v36 = vmul.f32 %v5066_v60, %v17950_v29  ;;  %v5069_v11 = vadd.f32 %v14078_v43, %v5068_v45  ;;  %5460 = vmatprep.mubr.bf16.mxu0 %v17903_v47  ;;  %vm5108_vm3 = vcmp.gt.f32.partialorder %v5066_v60, 0.0  ;;  %v5181_v43 = vld [vmem:[%s17444_s13] sm:$0x3]  ;;  %v10840_v45 = vld [vmem:[%s17445_s14 + $0x88] ss:$28 sps:$4 sm:$0xff]  }
 0x679   : > { %vm5111_vm4 = vcmp.gt.f32.partialorder %v5077_v58, 0.0  ;;  %v5143_v27 = vmul.f32 %v5077_v58, %v17950_v29  ;;  %v5174_v59 = vsel %vm5110_vm2, %v5074_v4, %v5142_v10  ;;  %v14334_v33 = vrot.slane %v5181_v43, %v17948_v1 }
 0x67a   : > { %vm5109_vm5 = vcmp.gt.f32.partialorder %v5069_v11, 0.0  ;;  %v5141_v39 = vmul.f32 %v5069_v11, %v17950_v29  ;;  %v5172_v25 = vsel %vm5108_vm3, %v5066_v60, %v5140_v36  ;;  %v14337_v61 = vrot.slane %v5181_v43, %v17949_v63  ;;  %v10844_v43 = vld [vmem:[%s17445_s14 + $0xc0] ss:$28 sps:$4 sm:$0xff]  }
 0x67b   : > { %v5175_v55 = vsel %vm5111_vm4, %v5077_v58, %v5143_v27  ;;  %v10823_v58 = vld [vmem:[%s17445_s14 + $0x80] ss:$28 sps:$4 sm:$0xff]  }
 0x67c   : > { %v5197_v31 = vpack.c.bf16 %v5175_v55, %v5174_v59  ;;  %v5173_v52 = vsel %vm5109_vm5, %v5069_v11, %v5141_v39  ;;  %v10828_v27 = vld [vmem:[%s17445_s14 + $0xbc] ss:$28 sps:$4 sm:$0xff]  }
 0x67d   : > { %v5196_v62 = vpack.c.bf16 %v5173_v52, %v5172_v25 }
 0x67f   : > { %9473 = vmatmul.mubr.msk.bf16.gmra.mrb[56].mxu0 %vm4534_vm9, %v5196_v62  ;;  %v10826_v62 = vld [vmem:[%s17445_s14 + $0xb8] ss:$28 sps:$4 sm:$0xff]  }
 0x680   : > { %5470 = vmatprep.mubr.bf16.mxu0 %v17903_v47 }
 0x687   : > { %9474 = vmatmul.mubr.msk.bf16.gmra.mrb[60].mxu0 %vm4534_vm9, %v5197_v31 }
 0x6e2   : > { %v5322_v28 = vpop.f32.mrb[0].mxu0 }
 0x6e3   : > { %v5323_v41 = vadd.f32 %v5322_v28, %v14334_v33  ;;  %v5324_v2 = vpop.f32.mrb[1].mxu0 }
 0x6e4   : > { %v5325_v19 = vadd.f32 %v5324_v2, %v14337_v61  ;;  %v5326_v18 = vpop.f32.mrb[2].mxu0 }
 0x6e5   : > { %v5545_v26 = vmul.f32 %v5323_v41, %v17950_v29  ;;  %v5327_v32 = vadd.f32 %v5326_v18, %v14334_v33  ;;  %v5328_v49 = vpop.f32.mrb[3].mxu0  ;;  %vm5481_vm9 = vcmp.gt.f32.partialorder %v5323_v41, 0.0 }
 0x6e6   : > { %v5546_v53 = vmul.f32 %v5325_v19, %v17950_v29  ;;  %v5329_v8 = vadd.f32 %v5328_v49, %v14337_v61  ;;  %vm5482_vm7 = vcmp.gt.f32.partialorder %v5325_v19, 0.0 }
 0x6e7   : > { %vm5483_vm11 = vcmp.gt.f32.partialorder %v5327_v32, 0.0  ;;  %v5547_v37 = vmul.f32 %v5327_v32, %v17950_v29  ;;  %v5609_v23 = vsel %vm5481_vm9, %v5323_v41, %v5545_v26  ;;  %v10831_v41 = vld [vmem:[%s17445_s14 + $0xf4] ss:$28 sps:$4 sm:$0xff]  }
 0x6e8   : > { %vm5484_vm8 = vcmp.gt.f32.partialorder %v5329_v8, 0.0  ;;  %v5548_v40 = vmul.f32 %v5329_v8, %v17950_v29  ;;  %v5610_v16 = vsel %vm5482_vm7, %v5325_v19, %v5546_v53 }
 0x6e9   : > { %v5611_v6 = vsel %vm5483_vm11, %v5327_v32, %v5547_v37 }
 0x6ea   : > { %v14347_v5 = vpack.c.bf16 %v5611_v6, %v5609_v23  ;;  %v5612_v56 = vsel %vm5484_vm8, %v5329_v8, %v5548_v40  ;;  %v5332_v50 = vpop.f32.mrb[4].mxu0  ;;  %v10829_v40 = vld [vmem:[%s17445_s14 + $0xf0] ss:$28 sps:$4 sm:$0xff]   ;;  %v10848_v23 = vld [vmem:[%s17445_s14 + $0xf8] ss:$28 sps:$4 sm:$0xff]  }
 0x6eb   : > { %v5333_v48 = vadd.f32 %v5332_v50, %v14334_v33  ;;  %v5334_v57 = vpop.f32.mrb[5].mxu0  ;;  %v14350_v13 = vpack.c.bf16 %v5612_v56, %v5610_v16  ;;  %v10835_v56 = vld [vmem:[%s17445_s14 + $0x12c] ss:$28 sps:$4 sm:$0xff]  }
 0x6ec   : > { %v5335_v30 = vadd.f32 %v5334_v57, %v14337_v61  ;;  %v5336_v42 = vpop.f32.mrb[6].mxu0 }
 0x6ed   : > { %v5549_v9 = vmul.f32 %v5333_v48, %v17950_v29  ;;  %v5337_v54 = vadd.f32 %v5336_v42, %v14334_v33  ;;  %v5338_v51 = vpop.f32.mrb[7].mxu0  ;;  %9567 = vmatprep.mubr.msk.bf16.mxu0 %vm4181_vm6, %v14350_v13  ;;  %9584 = vmatprep.mubr.msk.bf16.mxu1 %vm4181_vm6, %v14350_v13  ;;  %vm5485_vm10 = vcmp.gt.f32.partialorder %v5333_v48, 0.0  ;;  %v10833_v42 = vld [vmem:[%s17445_s14 + $0x128] ss:$28 sps:$4 sm:$0xff]  }
 0x6ee   : > { %v5550_v7 = vmul.f32 %v5335_v30, %v17950_v29  ;;  %v5339_v38 = vadd.f32 %v5338_v51, %v14337_v61  ;;  %6394 = vmatmul.mubr.bf16.vlgmr.msra.gmra.mrb[64].mxu0 %v14347_v5  ;;  %6587 = vmatmul.mubr.bf16.vlgmr.msra.gmra.mrb[160].mxu1 %v14347_v5  ;;  %vm5486_vm12 = vcmp.gt.f32.partialorder %v5335_v30, 0.0 }
 0x6ef   : > { %vm5487_vm13 = vcmp.gt.f32.partialorder %v5337_v54, 0.0  ;;  %v5551_v46 = vmul.f32 %v5337_v54, %v17950_v29  ;;  %6748 = vmatpush1.bf16.msra.mxu0 %v10817_v22  ;;  %6941 = vmatpush1.bf16.msra.mxu1 %v10832_v15  ;;  %v5613_v21 = vsel %vm5485_vm10, %v5333_v48, %v5549_v9 }
 0x6f0   : > { %vm5488_vm14 = vcmp.gt.f32.partialorder %v5339_v38, 0.0  ;;  %v5552_v44 = vmul.f32 %v5339_v38, %v17950_v29  ;;  %6749 = vmatprep.subr.bf16.mxu0 %v10822_v20  ;;  %6942 = vmatprep.subr.bf16.mxu1 %v17903_v47  ;;  %v5614_v17 = vsel %vm5486_vm12, %v5335_v30, %v5550_v7  ;;  %v10852_v20 = vld [vmem:[%s17445_s14 + $0x130] ss:$28 sps:$4 sm:$0xff]  }
 0x6f1   : > { %v5615_v34 = vsel %vm5487_vm13, %v5337_v54, %v5551_v46  ;;  %v10839_v54 = vld [vmem:[%s17445_s14 + $0x164] ss:$28 sps:$4 sm:$0xff]  }
 0x6f2   : > { %v14385_v12 = vpack.c.bf16 %v5615_v34, %v5613_v21  ;;  %v5616_v4 = vsel %vm5488_vm14, %v5339_v38, %v5552_v44  ;;  %v5342_v35 = vpop.f32.mrb[8].mxu0  ;;  %v10837_v34 = vld [vmem:[%s17445_s14 + $0x160] ss:$28 sps:$4 sm:$0xff]  }
 0x6f3   : > { %v5343_v60 = vadd.f32 %v5342_v35, %v14334_v33  ;;  %v5344_v24 = vpop.f32.mrb[9].mxu0  ;;  %v14388_v10 = vpack.c.bf16 %v5616_v4, %v5614_v17  ;;  %6750 = vmatpush1.bf16.msra.mxu0 %v10820_v14  ;;  %6943 = vmatpush1.bf16.msra.mxu1 %v10836_v3  ;;  %v10856_v17 = vld [vmem:[%s17445_s14 + $0x168] ss:$28 sps:$4 sm:$0xff]  }
 0x6f4   : > { %v5345_v36 = vadd.f32 %v5344_v24, %v14337_v61  ;;  %v5346_v11 = vpop.f32.mrb[10].mxu0  ;;  %6751 = vmatprep.subr.bf16.mxu0 %v10825_v0  ;;  %6944 = vmatprep.subr.bf16.mxu1 %v17903_v47 }
 0x6f5   : > { %v5553_v39 = vmul.f32 %v5343_v60, %v17950_v29  ;;  %v5347_v59 = vadd.f32 %v5346_v11, %v14334_v33  ;;  %v5348_v55 = vpop.f32.mrb[11].mxu0  ;;  %9568 = vmatprep.mubr.msk.bf16.mxu0 %vm4181_vm6, %v14388_v10  ;;  %9585 = vmatprep.mubr.msk.bf16.mxu1 %vm4181_vm6, %v14388_v10  ;;  %vm5489_vm2 = vcmp.gt.f32.partialorder %v5343_v60, 0.0 }
 0x6f6   : > { %v5554_v25 = vmul.f32 %v5345_v36, %v17950_v29  ;;  %v5349_v31 = vadd.f32 %v5348_v55, %v14337_v61  ;;  %6404 = vmatmul.mubr.bf16.gmra.mrb[68].mxu0 %v14385_v12  ;;  %6597 = vmatmul.mubr.bf16.gmra.mrb[164].mxu1 %v14385_v12  ;;  %vm5490_vm3 = vcmp.gt.f32.partialorder %v5345_v36, 0.0 }
 0x6f7   : > { %vm5491_vm4 = vcmp.gt.f32.partialorder %v5347_v59, 0.0  ;;  %v5555_v52 = vmul.f32 %v5347_v59, %v17950_v29  ;;  %6752 = vmatpush1.bf16.msra.mxu0 %v10823_v58  ;;  %6945 = vmatpush1.bf16.msra.mxu1 %v10840_v45  ;;  %v5617_v2 = vsel %vm5489_vm2, %v5343_v60, %v5553_v39  ;;  %v10843_v60 = vld [vmem:[%s17445_s14 + $0x19c] ss:$28 sps:$4 sm:$0xff]  }
 0x6f8   : > { %vm5492_vm5 = vcmp.gt.f32.partialorder %v5349_v31, 0.0  ;;  %v5556_v28 = vmul.f32 %v5349_v31, %v17950_v29  ;;  %6753 = vmatprep.subr.bf16.mxu0 %v10828_v27  ;;  %6946 = vmatprep.subr.bf16.mxu1 %v17903_v47  ;;  %v5618_v18 = vsel %vm5490_vm3, %v5345_v36, %v5554_v25  ;;  %v10841_v39 = vld [vmem:[%s17445_s14 + $0x198] ss:$28 sps:$4 sm:$0xff]  }
 0x6f9   : > { %v5619_v19 = vsel %vm5491_vm4, %v5347_v59, %v5555_v52  ;;  %v10857_v59 = vld [vmem:[%s17445_s14 + $0x1a0] ss:$28 sps:$4 sm:$0xff]   ;;  %v10847_v25 = vld [vmem:[%s17445_s14 + $0x1d4] ss:$28 sps:$4 sm:$0xff]  }
 0x6fa   : > { %v14424_v26 = vpack.c.bf16 %v5619_v19, %v5617_v2  ;;  %v5620_v32 = vsel %vm5492_vm5, %v5349_v31, %v5556_v28  ;;  %v5352_v49 = vpop.f32.mrb[12].mxu0 }
 0x6fb   : > { %v5353_v53 = vadd.f32 %v5352_v49, %v14334_v33  ;;  %v5354_v8 = vpop.f32.mrb[13].mxu0  ;;  %v14427_v37 = vpack.c.bf16 %v5620_v32, %v5618_v18  ;;  %6754 = vmatpush1.bf16.msra.mxu0 %v10826_v62  ;;  %6947 = vmatpush1.bf16.msra.mxu1 %v10844_v43  ;;  %v10845_v32 = vld [vmem:[%s17445_s14 + $0x1d0] ss:$28 sps:$4 sm:$0xff]   ;;  %v10861_v49 = vld [vmem:[%s17445_s14 + $0x1d8] ss:$28 sps:$4 sm:$0xff]  }
 0x6fc   : > { %v5355_v6 = vadd.f32 %v5354_v8, %v14337_v61  ;;  %v5356_v16 = vpop.f32.mrb[14].mxu0  ;;  %6755 = vmatprep.subr.bf16.mxu0 %v10831_v41  ;;  %6948 = vmatprep.subr.bf16.mxu1 %v17903_v47 }
 0x6fd   : > { %v5557_v50 = vmul.f32 %v5353_v53, %v17950_v29  ;;  %v5357_v48 = vadd.f32 %v5356_v16, %v14334_v33  ;;  %v5358_v57 = vpop.f32.mrb[15].mxu0  ;;  %9569 = vmatprep.mubr.msk.bf16.mxu0 %vm4181_vm6, %v14427_v37  ;;  %9586 = vmatprep.mubr.msk.bf16.mxu1 %vm4181_vm6, %v14427_v37  ;;  %vm5493_vm9 = vcmp.gt.f32.partialorder %v5353_v53, 0.0 }
 0x6fe   : > { %v5558_v22 = vmul.f32 %v5355_v6, %v17950_v29  ;;  %v5359_v15 = vadd.f32 %v5358_v57, %v14337_v61  ;;  %6414 = vmatmul.mubr.bf16.gmra.mrb[72].mxu0 %v14424_v26  ;;  %6607 = vmatmul.mubr.bf16.gmra.mrb[168].mxu1 %v14424_v26  ;;  %vm5494_vm7 = vcmp.gt.f32.partialorder %v5355_v6, 0.0  ;;  %v10849_v57 = vld [vmem:[%s17445_s14 + $0x208] ss:$28 sps:$4 sm:$0xff]  }
 0x6ff   : > { %vm5495_vm11 = vcmp.gt.f32.partialorder %v5357_v48, 0.0  ;;  %v5559_v30 = vmul.f32 %v5357_v48, %v17950_v29  ;;  %6756 = vmatpush1.bf16.msra.mxu0 %v10829_v40  ;;  %6949 = vmatpush1.bf16.msra.mxu1 %v10848_v23  ;;  %v5621_v51 = vsel %vm5493_vm9, %v5353_v53, %v5557_v50  ;;  %v10851_v40 = vld [vmem:[%s17445_s14 + $0x20c] ss:$28 sps:$4 sm:$0xff]  }
 0x700   : > { %vm5496_vm8 = vcmp.gt.f32.partialorder %v5359_v15, 0.0  ;;  %v5560_v9 = vmul.f32 %v5359_v15, %v17950_v29  ;;  %6757 = vmatprep.subr.bf16.mxu0 %v10835_v56  ;;  %6950 = vmatprep.subr.bf16.mxu1 %v17903_v47  ;;  %v5622_v38 = vsel %vm5494_vm7, %v5355_v6, %v5558_v22  ;;  %v10862_v22 = vld [vmem:[%s17445_s14 + $0x210] ss:$28 sps:$4 sm:$0xff]  }
 0x701   : > { %v5623_v7 = vsel %vm5495_vm11, %v5357_v48, %v5559_v30  ;;  %v10855_v30 = vld [vmem:[%s17445_s14 + $0x244] ss:$28 sps:$4 sm:$0xff]  }
 0x702   : > { %v14463_v46 = vpack.c.bf16 %v5623_v7, %v5621_v51  ;;  %v5624_v14 = vsel %vm5496_vm8, %v5359_v15, %v5560_v9  ;;  %v5362_v3 = vpop.f32.mrb[16].mxu0 }
 0x703   : > { %v5363_v44 = vadd.f32 %v5362_v3, %v14334_v33  ;;  %v5364_v0 = vpop.f32.mrb[17].mxu0  ;;  %v14466_v21 = vpack.c.bf16 %v5624_v14, %v5622_v38  ;;  %6758 = vmatpush1.bf16.msra.mxu0 %v10833_v42  ;;  %6951 = vmatpush1.bf16.msra.mxu1 %v10852_v20 }
 0x704   : > { %v5365_v4 = vadd.f32 %v5364_v0, %v14337_v61  ;;  %v5366_v35 = vpop.f32.mrb[18].mxu0  ;;  %6759 = vmatprep.subr.bf16.mxu0 %v10839_v54  ;;  %6952 = vmatprep.subr.bf16.mxu1 %v17903_v47  ;;  %v10863_v0 = vld [vmem:[%s17445_s14 + $0x248] ss:$28 sps:$4 sm:$0xff]  }
 0x705   : > { %v5561_v24 = vmul.f32 %v5363_v44, %v17950_v29  ;;  %v5367_v58 = vadd.f32 %v5366_v35, %v14334_v33  ;;  %v5368_v45 = vpop.f32.mrb[19].mxu0  ;;  %9570 = vmatprep.mubr.msk.bf16.mxu0 %vm4181_vm6, %v14466_v21  ;;  %9587 = vmatprep.mubr.msk.bf16.mxu1 %vm4181_vm6, %v14466_v21  ;;  %vm5497_vm10 = vcmp.gt.f32.partialorder %v5363_v44, 0.0 }
 0x706   : > { %v5562_v36 = vmul.f32 %v5365_v4, %v17950_v29  ;;  %v5369_v11 = vadd.f32 %v5368_v45, %v14337_v61  ;;  %6424 = vmatmul.mubr.bf16.gmra.mrb[76].mxu0 %v14463_v46  ;;  %6617 = vmatmul.mubr.bf16.gmra.mrb[172].mxu1 %v14463_v46  ;;  %vm5498_vm12 = vcmp.gt.f32.partialorder %v5365_v4, 0.0 }
 0x707   : > { %vm5499_vm13 = vcmp.gt.f32.partialorder %v5367_v58, 0.0  ;;  %v5563_v27 = vmul.f32 %v5367_v58, %v17950_v29  ;;  %6760 = vmatpush1.bf16.msra.mxu0 %v10837_v34  ;;  %6953 = vmatpush1.bf16.msra.mxu1 %v10856_v17  ;;  %v5625_v31 = vsel %vm5497_vm10, %v5363_v44, %v5561_v24  ;;  %v10853_v44 = vld [vmem:[%s17445_s14 + $0x240] ss:$28 sps:$4 sm:$0xff]  }
 0x708   : > { %vm5500_vm14 = vcmp.gt.f32.partialorder %v5369_v11, 0.0  ;;  %v5564_v55 = vmul.f32 %v5369_v11, %v17950_v29  ;;  %6761 = vmatprep.subr.bf16.mxu0 %v10843_v60  ;;  %6954 = vmatprep.subr.bf16.mxu1 %v17903_v47  ;;  %v5626_v62 = vsel %vm5498_vm12, %v5365_v4, %v5562_v36  ;;  %v10860_v4 = vld [vmem:[%s17445_s14 + $0x27c] ss:$28 sps:$4 sm:$0xff]  }
 0x709   : > { %v5627_v52 = vsel %vm5499_vm13, %v5367_v58, %v5563_v27  ;;  %v5771_v58 = vld [vmem:[%s17445_s14 + $0x2b0] sm:$0xff] }
 0x70a   : > { %v14502_v43 = vpack.c.bf16 %v5627_v52, %v5625_v31  ;;  %v5628_v28 = vsel %vm5500_vm14, %v5369_v11, %v5564_v55  ;;  %v5372_v41 = vpop.f32.mrb[20].mxu0  ;;  %v10858_v27 = vld [vmem:[%s17445_s14 + $0x278] ss:$28 sps:$4 sm:$0xff]   ;;  %v9564_v55 = vcombine.high %v5771_v58, %v5771_v58 }
 0x70b   : > { %v5373_v2 = vadd.f32 %v5372_v41, %v14334_v33  ;;  %v5374_v19 = vpop.f32.mrb[21].mxu0  ;;  %v14505_v18 = vpack.c.bf16 %v5628_v28, %v5626_v62  ;;  %6762 = vmatpush1.bf16.msra.mxu0 %v10841_v39  ;;  %6955 = vmatpush1.bf16.msra.mxu1 %v10857_v59  ;;  %v10866_v39 = vld [vmem:[%s17445_s14 + $0x280] ss:$28 sps:$4 sm:$0xff]   ;;  %v10867_v31 = vld [vmem:[%s17445_s14 + $0x2b8] ss:$0 sps:$4 sm:$0xff]  }
 0x70c   : > { %v5375_v53 = vadd.f32 %v5374_v19, %v14337_v61  ;;  %v5376_v8 = vpop.f32.mrb[22].mxu0  ;;  %6763 = vmatprep.subr.bf16.mxu0 %v10847_v25  ;;  %6956 = vmatprep.subr.bf16.mxu1 %v17903_v47  ;;  %v9563_v25 = vcombine.low %v5771_v58, %v5771_v58 }
 0x70d   : > { %v5565_v23 = vmul.f32 %v5373_v2, %v17950_v29  ;;  %v5377_v6 = vadd.f32 %v5376_v8, %v14334_v33  ;;  %v5378_v16 = vpop.f32.mrb[23].mxu0  ;;  %9571 = vmatprep.mubr.msk.bf16.mxu0 %vm4181_vm6, %v14505_v18  ;;  %9588 = vmatprep.mubr.msk.bf16.mxu1 %vm4181_vm6, %v14505_v18  ;;  %vm5501_vm2 = vcmp.gt.f32.partialorder %v5373_v2, 0.0 }
 0x70e   : > { %v5566_v56 = vmul.f32 %v5375_v53, %v17950_v29  ;;  %v5379_v50 = vadd.f32 %v5378_v16, %v14337_v61  ;;  %6434 = vmatmul.mubr.bf16.gmra.mrb[80].mxu0 %v14502_v43  ;;  %6627 = vmatmul.mubr.bf16.gmra.mrb[176].mxu1 %v14502_v43  ;;  %vm5502_vm3 = vcmp.gt.f32.partialorder %v5375_v53, 0.0  ;;  %v10868_v16 = vld [vmem:[%s17447_s16 + $0x40] sm:$0xff]  }
 0x70f   : > { %vm5503_vm4 = vcmp.gt.f32.partialorder %v5377_v6, 0.0  ;;  %v5567_v48 = vmul.f32 %v5377_v6, %v17950_v29  ;;  %6764 = vmatpush1.bf16.msra.mxu0 %v10845_v32  ;;  %6957 = vmatpush1.bf16.msra.mxu1 %v10861_v49  ;;  %v5629_v42 = vsel %vm5501_vm2, %v5373_v2, %v5565_v23  ;;  %v6353_v23 = vsel %vm4230_vm1, %v9563_v25, 0 }
 0x710   : > { %vm5504_vm5 = vcmp.gt.f32.partialorder %v5379_v50, 0.0  ;;  %v5568_v15 = vmul.f32 %v5379_v50, %v17950_v29  ;;  %6765 = vmatprep.subr.bf16.mxu0 %v10851_v40  ;;  %6958 = vmatprep.subr.bf16.mxu1 %v17903_v47  ;;  %v5630_v9 = vsel %vm5502_vm3, %v5375_v53, %v5566_v56 }
 0x711   : > { %v5631_v20 = vsel %vm5503_vm4, %v5377_v6, %v5567_v48  ;;  %v6359_v6 = vsel %vm4230_vm1, %v10867_v31, 0 }
 0x712   : > { %v14541_v54 = vpack.c.bf16 %v5631_v20, %v5629_v42  ;;  %v5632_v51 = vsel %vm5504_vm5, %v5379_v50, %v5568_v15  ;;  %v5382_v7 = vpop.f32.mrb[24].mxu0 }
 0x713   : > { %v5383_v38 = vadd.f32 %v5382_v7, %v14334_v33  ;;  %v5384_v14 = vpop.f32.mrb[25].mxu0  ;;  %v14544_v3 = vpack.c.bf16 %v5632_v51, %v5630_v9  ;;  %6766 = vmatpush1.bf16.msra.mxu0 %v10849_v57  ;;  %6959 = vmatpush1.bf16.msra.mxu1 %v10862_v22 }
 0x714   : > { %v5385_v34 = vadd.f32 %v5384_v14, %v14337_v61  ;;  %v5386_v17 = vpop.f32.mrb[26].mxu0  ;;  %6767 = vmatprep.subr.bf16.mxu0 %v10855_v30  ;;  %6960 = vmatprep.subr.bf16.mxu1 %v17903_v47 }
 0x715   : > { %v5569_v35 = vmul.f32 %v5383_v38, %v17950_v29  ;;  %v5387_v60 = vadd.f32 %v5386_v17, %v14334_v33  ;;  %v5388_v24 = vpop.f32.mrb[27].mxu0  ;;  %9572 = vmatprep.mubr.msk.bf16.mxu0 %vm4181_vm6, %v14544_v3  ;;  %9589 = vmatprep.mubr.msk.bf16.mxu1 %vm4181_vm6, %v14544_v3  ;;  %vm5505_vm9 = vcmp.gt.f32.partialorder %v5383_v38, 0.0 }
 0x716   : > { %v5570_v45 = vmul.f32 %v5385_v34, %v17950_v29  ;;  %v5389_v36 = vadd.f32 %v5388_v24, %v14337_v61  ;;  %6444 = vmatmul.mubr.bf16.gmra.mrb[84].mxu0 %v14541_v54  ;;  %6637 = vmatmul.mubr.bf16.gmra.mrb[180].mxu1 %v14541_v54  ;;  %vm5506_vm7 = vcmp.gt.f32.partialorder %v5385_v34, 0.0 }
 0x717   : > { %vm5507_vm11 = vcmp.gt.f32.partialorder %v5387_v60, 0.0  ;;  %v5571_v11 = vmul.f32 %v5387_v60, %v17950_v29  ;;  %6768 = vmatpush1.bf16.msra.mxu0 %v10853_v44  ;;  %6961 = vmatpush1.bf16.msra.mxu1 %v10863_v0  ;;  %v5633_v52 = vsel %vm5505_vm9, %v5383_v38, %v5569_v35 }
 0x718   : > { %vm5508_vm8 = vcmp.gt.f32.partialorder %v5389_v36, 0.0  ;;  %v5572_v59 = vmul.f32 %v5389_v36, %v17950_v29  ;;  %6769 = vmatprep.subr.bf16.mxu0 %v10860_v4  ;;  %6962 = vmatprep.subr.bf16.mxu1 %v17903_v47  ;;  %v5634_v28 = vsel %vm5506_vm7, %v5385_v34, %v5570_v45 }
 0x719   : > { %v5635_v62 = vsel %vm5507_vm11, %v5387_v60, %v5571_v11 }
 0x71a   : > { %v14584_v41 = vpack.c.bf16 %v5635_v62, %v5633_v52  ;;  %v5636_v2 = vsel %vm5508_vm8, %v5389_v36, %v5572_v59  ;;  %v5392_v19 = vpop.f32.mrb[28].mxu0 }
 0x71b   : > { %v5393_v32 = vadd.f32 %v5392_v19, %v14334_v33  ;;  %v5394_v49 = vpop.f32.mrb[29].mxu0  ;;  %v14587_v53 = vpack.c.bf16 %v5636_v2, %v5634_v28  ;;  %6770 = vmatpush1.bf16.msra.mxu0 %v10858_v27  ;;  %6963 = vmatpush1.bf16.msra.mxu1 %v10866_v39 }
 0x71c   : > { %v5395_v8 = vadd.f32 %v5394_v49, %v14337_v61  ;;  %v5396_v40 = vpop.f32.mrb[30].mxu0  ;;  %9600 = vmatprep.subr.msk.bf16.mxu0 %vm4230_vm1, %v9564_v55  ;;  %6964 = vmatprep.subr.bf16.mxu1 %v17903_v47 }
 0x71d   : > { %v5573_v56 = vmul.f32 %v5393_v32, %v17950_v29  ;;  %v5397_v50 = vadd.f32 %v5396_v40, %v14334_v33  ;;  %v5398_v48 = vpop.f32.mrb[31].mxu0  ;;  %9573 = vmatprep.mubr.msk.bf16.mxu0 %vm4181_vm6, %v14587_v53  ;;  %9590 = vmatprep.mubr.msk.bf16.mxu1 %vm4181_vm6, %v14587_v53  ;;  %vm5509_vm10 = vcmp.gt.f32.partialorder %v5393_v32, 0.0 }
 0x71e   : > { %v5574_v47 = vmul.f32 %v5395_v8, %v17950_v29  ;;  %v5399_v57 = vadd.f32 %v5398_v48, %v14337_v61  ;;  %6454 = vmatmul.mubr.bf16.gmra.mrb[88].mxu0 %v14584_v41  ;;  %6647 = vmatmul.mubr.bf16.gmra.mrb[184].mxu1 %v14584_v41  ;;  %vm5510_vm1 = vcmp.gt.f32.partialorder %v5395_v8, 0.0 }
 0x71f   : > { %vm5511_vm12 = vcmp.gt.f32.partialorder %v5397_v50, 0.0  ;;  %v5575_v22 = vmul.f32 %v5397_v50, %v17950_v29  ;;  %6772 = vmatpush1.bf16.msra.mxu0 %v6353_v23  ;;  %6965 = vmatpush1.bf16.msra.mxu1 %v6359_v6  ;;  %v5637_v30 = vsel %vm5509_vm10, %v5393_v32, %v5573_v56  ;;  %v10878_v23 = vld [vmem:[%s17447_s16 + $0xc0] sm:$0xff]  }
 0x720   : > { %vm5512_vm13 = vcmp.gt.f32.partialorder %v5399_v57, 0.0  ;;  %v5576_v15 = vmul.f32 %v5399_v57, %v17950_v29  ;;  %9758 = vmatprep.subr.bf16.mxu0 %v10868_v16  ;;  %v5638_v20 = vsel %vm5510_vm1, %v5395_v8, %v5574_v47  ;;  %9870 = vmatprep.subr.bf16.mxu1 %v10878_v23 }
 0x721   : > { %v5639_v42 = vsel %vm5511_vm12, %v5397_v50, %v5575_v22 }
 0x722   : > { %v14609_v9 = vpack.c.bf16 %v5639_v42, %v5637_v30  ;;  %v5640_v51 = vsel %vm5512_vm13, %v5399_v57, %v5576_v15  ;;  %v5402_v7 = vpop.f32.mrb[32].mxu0 }
 0x723   : > { %v5403_v38 = vadd.f32 %v5402_v7, %v14334_v33  ;;  %v5404_v14 = vpop.f32.mrb[33].mxu0  ;;  %v14612_v44 = vpack.c.bf16 %v5640_v51, %v5638_v20 }
 0x724   : > { %v5405_v0 = vadd.f32 %v5404_v14, %v14337_v61  ;;  %v5406_v34 = vpop.f32.mrb[34].mxu0 }
 0x725   : > { %v5577_v17 = vmul.f32 %v5403_v38, %v17950_v29  ;;  %v5407_v4 = vadd.f32 %v5406_v34, %v14334_v33  ;;  %v5408_v35 = vpop.f32.mrb[35].mxu0  ;;  %9574 = vmatprep.mubr.msk.bf16.mxu0 %vm4181_vm6, %v14612_v44  ;;  %9591 = vmatprep.mubr.msk.bf16.mxu1 %vm4181_vm6, %v14612_v44  ;;  %vm5513_vm14 = vcmp.gt.f32.partialorder %v5403_v38, 0.0 }
 0x726   : > { %v5578_v60 = vmul.f32 %v5405_v0, %v17950_v29  ;;  %v5409_v24 = vadd.f32 %v5408_v35, %v14337_v61  ;;  %6464 = vmatmul.mubr.bf16.gmra.mrb[92].mxu0 %v14609_v9  ;;  %6657 = vmatmul.mubr.bf16.gmra.mrb[188].mxu1 %v14609_v9  ;;  %vm5514_vm2 = vcmp.gt.f32.partialorder %v5405_v0, 0.0 }
 0x727   : > { %vm5515_vm3 = vcmp.gt.f32.partialorder %v5407_v4, 0.0  ;;  %v5579_v58 = vmul.f32 %v5407_v4, %v17950_v29  ;;  %v5641_v36 = vsel %vm5513_vm14, %v5403_v38, %v5577_v17 }
 0x728   : > { %vm5516_vm4 = vcmp.gt.f32.partialorder %v5409_v24, 0.0  ;;  %v5580_v45 = vmul.f32 %v5409_v24, %v17950_v29  ;;  %v5642_v27 = vsel %vm5514_vm2, %v5405_v0, %v5578_v60 }
 0x729   : > { %v5643_v11 = vsel %vm5515_vm3, %v5407_v4, %v5579_v58 }
 0x72a   : > { %v14627_v39 = vpack.c.bf16 %v5643_v11, %v5641_v36  ;;  %v5644_v59 = vsel %vm5516_vm4, %v5409_v24, %v5580_v45  ;;  %v5412_v55 = vpop.f32.mrb[36].mxu0 }
 0x72b   : > { %v5413_v25 = vadd.f32 %v5412_v55, %v14334_v33  ;;  %v5414_v31 = vpop.f32.mrb[37].mxu0  ;;  %v14630_v52 = vpack.c.bf16 %v5644_v59, %v5642_v27 }
 0x72c   : > { %v5415_v62 = vadd.f32 %v5414_v31, %v14337_v61  ;;  %v5416_v28 = vpop.f32.mrb[38].mxu0 }
 0x72d   : > { %v5581_v2 = vmul.f32 %v5413_v25, %v17950_v29  ;;  %v5417_v19 = vadd.f32 %v5416_v28, %v14334_v33  ;;  %v5418_v32 = vpop.f32.mrb[39].mxu0  ;;  %9575 = vmatprep.mubr.msk.bf16.mxu0 %vm4181_vm6, %v14630_v52  ;;  %9592 = vmatprep.mubr.msk.bf16.mxu1 %vm4181_vm6, %v14630_v52  ;;  %vm5517_vm5 = vcmp.gt.f32.partialorder %v5413_v25, 0.0 }
 0x72e   : > { %v5582_v49 = vmul.f32 %v5415_v62, %v17950_v29  ;;  %v5419_v8 = vadd.f32 %v5418_v32, %v14337_v61  ;;  %6474 = vmatmul.mubr.bf16.gmra.mrb[96].mxu0 %v14627_v39  ;;  %6667 = vmatmul.mubr.bf16.gmra.mrb[192].mxu1 %v14627_v39  ;;  %vm5518_vm9 = vcmp.gt.f32.partialorder %v5415_v62, 0.0 }
 0x72f   : > { %vm5519_vm7 = vcmp.gt.f32.partialorder %v5417_v19, 0.0  ;;  %v5583_v40 = vmul.f32 %v5417_v19, %v17950_v29  ;;  %v5645_v16 = vsel %vm5517_vm5, %v5413_v25, %v5581_v2 }
 0x730   : > { %vm5520_vm11 = vcmp.gt.f32.partialorder %v5419_v8, 0.0  ;;  %v5584_v6 = vmul.f32 %v5419_v8, %v17950_v29  ;;  %v5646_v50 = vsel %vm5518_vm9, %v5415_v62, %v5582_v49 }
 0x731   : > { %v5647_v56 = vsel %vm5519_vm7, %v5417_v19, %v5583_v40 }
 0x732   : > { %v14648_v48 = vpack.c.bf16 %v5647_v56, %v5645_v16  ;;  %v5648_v47 = vsel %vm5520_vm11, %v5419_v8, %v5584_v6  ;;  %v5422_v57 = vpop.f32.mrb[40].mxu0 }
 0x733   : > { %v5423_v22 = vadd.f32 %v5422_v57, %v14334_v33  ;;  %v5424_v15 = vpop.f32.mrb[41].mxu0  ;;  %v14651_v30 = vpack.c.bf16 %v5648_v47, %v5646_v50 }
 0x734   : > { %v5425_v42 = vadd.f32 %v5424_v15, %v14337_v61  ;;  %v5426_v20 = vpop.f32.mrb[42].mxu0 }
 0x735   : > { %v5585_v51 = vmul.f32 %v5423_v22, %v17950_v29  ;;  %v5427_v7 = vadd.f32 %v5426_v20, %v14334_v33  ;;  %v5428_v38 = vpop.f32.mrb[43].mxu0  ;;  %9576 = vmatprep.mubr.msk.bf16.mxu0 %vm4181_vm6, %v14651_v30  ;;  %9593 = vmatprep.mubr.msk.bf16.mxu1 %vm4181_vm6, %v14651_v30  ;;  %vm5521_vm8 = vcmp.gt.f32.partialorder %v5423_v22, 0.0 }
 0x736   : > { %v5586_v14 = vmul.f32 %v5425_v42, %v17950_v29  ;;  %v5429_v0 = vadd.f32 %v5428_v38, %v14337_v61  ;;  %6484 = vmatmul.mubr.bf16.gmra.mrb[100].mxu0 %v14648_v48  ;;  %6677 = vmatmul.mubr.bf16.gmra.mrb[196].mxu1 %v14648_v48  ;;  %vm5522_vm10 = vcmp.gt.f32.partialorder %v5425_v42, 0.0 }
 0x737   : > { %vm5523_vm1 = vcmp.gt.f32.partialorder %v5427_v7, 0.0  ;;  %v5587_v34 = vmul.f32 %v5427_v7, %v17950_v29  ;;  %v5649_v4 = vsel %vm5521_vm8, %v5423_v22, %v5585_v51 }
 0x738   : > { %vm5524_vm12 = vcmp.gt.f32.partialorder %v5429_v0, 0.0  ;;  %v5588_v17 = vmul.f32 %v5429_v0, %v17950_v29  ;;  %v5650_v60 = vsel %vm5522_vm10, %v5425_v42, %v5586_v14 }
 0x739   : > { %v5651_v35 = vsel %vm5523_vm1, %v5427_v7, %v5587_v34 }
 0x73a   : > { %v14666_v24 = vpack.c.bf16 %v5651_v35, %v5649_v4  ;;  %v5652_v58 = vsel %vm5524_vm12, %v5429_v0, %v5588_v17  ;;  %v5432_v45 = vpop.f32.mrb[44].mxu0 }
 0x73b   : > { %v5433_v36 = vadd.f32 %v5432_v45, %v14334_v33  ;;  %v5434_v11 = vpop.f32.mrb[45].mxu0  ;;  %v14669_v27 = vpack.c.bf16 %v5652_v58, %v5650_v60 }
 0x73c   : > { %v5435_v59 = vadd.f32 %v5434_v11, %v14337_v61  ;;  %v5436_v55 = vpop.f32.mrb[46].mxu0 }
 0x73d   : > { %v5589_v25 = vmul.f32 %v5433_v36, %v17950_v29  ;;  %v5437_v31 = vadd.f32 %v5436_v55, %v14334_v33  ;;  %v5438_v62 = vpop.f32.mrb[47].mxu0  ;;  %9577 = vmatprep.mubr.msk.bf16.mxu0 %vm4181_vm6, %v14669_v27  ;;  %9594 = vmatprep.mubr.msk.bf16.mxu1 %vm4181_vm6, %v14669_v27  ;;  %vm5525_vm13 = vcmp.gt.f32.partialorder %v5433_v36, 0.0 }
 0x73e   : > { %v5590_v28 = vmul.f32 %v5435_v59, %v17950_v29  ;;  %v5439_v2 = vadd.f32 %v5438_v62, %v14337_v61  ;;  %6494 = vmatmul.mubr.bf16.gmra.mrb[104].mxu0 %v14666_v24  ;;  %6687 = vmatmul.mubr.bf16.gmra.mrb[200].mxu1 %v14666_v24  ;;  %vm5526_vm14 = vcmp.gt.f32.partialorder %v5435_v59, 0.0 }
 0x73f   : > { %vm5527_vm2 = vcmp.gt.f32.partialorder %v5437_v31, 0.0  ;;  %v5591_v19 = vmul.f32 %v5437_v31, %v17950_v29  ;;  %v5653_v49 = vsel %vm5525_vm13, %v5433_v36, %v5589_v25 }
 0x740   : > { %vm5528_vm3 = vcmp.gt.f32.partialorder %v5439_v2, 0.0  ;;  %v5592_v32 = vmul.f32 %v5439_v2, %v17950_v29  ;;  %v5654_v40 = vsel %vm5526_vm14, %v5435_v59, %v5590_v28 }
 0x741   : > { %v5655_v8 = vsel %vm5527_vm2, %v5437_v31, %v5591_v19 }
 0x742   : > { %v14684_v23 = vpack.c.bf16 %v5655_v8, %v5653_v49  ;;  %v5656_v6 = vsel %vm5528_vm3, %v5439_v2, %v5592_v32  ;;  %v5442_v16 = vpop.f32.mrb[48].mxu0 }
 0x743   : > { %v5443_v56 = vadd.f32 %v5442_v16, %v14334_v33  ;;  %v5444_v50 = vpop.f32.mrb[49].mxu0  ;;  %v14687_v47 = vpack.c.bf16 %v5656_v6, %v5654_v40 }
 0x744   : > { %v5445_v57 = vadd.f32 %v5444_v50, %v14337_v61  ;;  %v5446_v22 = vpop.f32.mrb[50].mxu0 }
 0x745   : > { %v5593_v15 = vmul.f32 %v5443_v56, %v17950_v29  ;;  %v5447_v42 = vadd.f32 %v5446_v22, %v14334_v33  ;;  %v5448_v20 = vpop.f32.mrb[51].mxu0  ;;  %9578 = vmatprep.mubr.msk.bf16.mxu0 %vm4181_vm6, %v14687_v47  ;;  %9595 = vmatprep.mubr.msk.bf16.mxu1 %vm4181_vm6, %v14687_v47  ;;  %vm5529_vm4 = vcmp.gt.f32.partialorder %v5443_v56, 0.0 }
 0x746   : > { %v5594_v51 = vmul.f32 %v5445_v57, %v17950_v29  ;;  %v5449_v7 = vadd.f32 %v5448_v20, %v14337_v61  ;;  %6504 = vmatmul.mubr.bf16.gmra.mrb[108].mxu0 %v14684_v23  ;;  %6697 = vmatmul.mubr.bf16.gmra.mrb[204].mxu1 %v14684_v23  ;;  %vm5530_vm5 = vcmp.gt.f32.partialorder %v5445_v57, 0.0 }
 0x747   : > { %vm5531_vm9 = vcmp.gt.f32.partialorder %v5447_v42, 0.0  ;;  %v5595_v38 = vmul.f32 %v5447_v42, %v17950_v29  ;;  %v5657_v0 = vsel %vm5529_vm4, %v5443_v56, %v5593_v15 }
 0x748   : > { %vm5532_vm7 = vcmp.gt.f32.partialorder %v5449_v7, 0.0  ;;  %v5596_v14 = vmul.f32 %v5449_v7, %v17950_v29  ;;  %v5658_v17 = vsel %vm5530_vm5, %v5445_v57, %v5594_v51 }
 0x749   : > { %v5659_v34 = vsel %vm5531_vm9, %v5447_v42, %v5595_v38 }
 0x74a   : > { %v14702_v4 = vpack.c.bf16 %v5659_v34, %v5657_v0  ;;  %v5660_v35 = vsel %vm5532_vm7, %v5449_v7, %v5596_v14  ;;  %v5452_v60 = vpop.f32.mrb[52].mxu0 }
 0x74b   : > { %v5453_v58 = vadd.f32 %v5452_v60, %v14334_v33  ;;  %v5454_v45 = vpop.f32.mrb[53].mxu0  ;;  %v14705_v36 = vpack.c.bf16 %v5660_v35, %v5658_v17 }
 0x74c   : > { %v5455_v11 = vadd.f32 %v5454_v45, %v14337_v61  ;;  %v5456_v59 = vpop.f32.mrb[54].mxu0 }
 0x74d   : > { %v5597_v55 = vmul.f32 %v5453_v58, %v17950_v29  ;;  %v5457_v25 = vadd.f32 %v5456_v59, %v14334_v33  ;;  %v5458_v31 = vpop.f32.mrb[55].mxu0  ;;  %9579 = vmatprep.mubr.msk.bf16.mxu0 %vm4181_vm6, %v14705_v36  ;;  %9596 = vmatprep.mubr.msk.bf16.mxu1 %vm4181_vm6, %v14705_v36  ;;  %vm5533_vm11 = vcmp.gt.f32.partialorder %v5453_v58, 0.0 }
 0x74e   : > { %v5598_v62 = vmul.f32 %v5455_v11, %v17950_v29  ;;  %v5459_v28 = vadd.f32 %v5458_v31, %v14337_v61  ;;  %6514 = vmatmul.mubr.bf16.gmra.mrb[112].mxu0 %v14702_v4  ;;  %6707 = vmatmul.mubr.bf16.gmra.mrb[208].mxu1 %v14702_v4  ;;  %vm5534_vm8 = vcmp.gt.f32.partialorder %v5455_v11, 0.0 }
 0x74f   : > { %vm5535_vm10 = vcmp.gt.f32.partialorder %v5457_v25, 0.0  ;;  %v5599_v2 = vmul.f32 %v5457_v25, %v17950_v29  ;;  %v5661_v32 = vsel %vm5533_vm11, %v5453_v58, %v5597_v55 }
 0x750   : > { %vm5536_vm1 = vcmp.gt.f32.partialorder %v5459_v28, 0.0  ;;  %v5600_v19 = vmul.f32 %v5459_v28, %v17950_v29  ;;  %v5662_v8 = vsel %vm5534_vm8, %v5455_v11, %v5598_v62 }
 0x751   : > { %v5663_v49 = vsel %vm5535_vm10, %v5457_v25, %v5599_v2 }
 0x752   : > { %v14720_v40 = vpack.c.bf16 %v5663_v49, %v5661_v32  ;;  %v5664_v6 = vsel %vm5536_vm1, %v5459_v28, %v5600_v19  ;;  %v5462_v16 = vpop.f32.mrb[56].mxu0 }
 0x753   : > { %v5463_v56 = vadd.f32 %v5462_v16, %v14334_v33  ;;  %v5464_v50 = vpop.f32.mrb[57].mxu0  ;;  %v14723_v57 = vpack.c.bf16 %v5664_v6, %v5662_v8 }
 0x754   : > { %v5465_v22 = vadd.f32 %v5464_v50, %v14337_v61  ;;  %v5466_v15 = vpop.f32.mrb[58].mxu0 }
 0x755   : > { %v5601_v42 = vmul.f32 %v5463_v56, %v17950_v29  ;;  %v5467_v20 = vadd.f32 %v5466_v15, %v14334_v33  ;;  %v5468_v51 = vpop.f32.mrb[59].mxu0  ;;  %9580 = vmatprep.mubr.msk.bf16.mxu0 %vm4181_vm6, %v14723_v57  ;;  %9597 = vmatprep.mubr.msk.bf16.mxu1 %vm4181_vm6, %v14723_v57  ;;  %vm5537_vm12 = vcmp.gt.f32.partialorder %v5463_v56, 0.0  ;;  %v10870_v15 = vld [vmem:[%s17447_s16 + $0x48] sm:$0xff]  }
 0x756   : > { %v5602_v7 = vmul.f32 %v5465_v22, %v17950_v29  ;;  %v5469_v38 = vadd.f32 %v5468_v51, %v14337_v61  ;;  %6524 = vmatmul.mubr.bf16.gmra.mrb[116].mxu0 %v14720_v40  ;;  %6717 = vmatmul.mubr.bf16.gmra.mrb[212].mxu1 %v14720_v40  ;;  %vm5538_vm13 = vcmp.gt.f32.partialorder %v5465_v22, 0.0  ;;  %v10883_v51 = vld [vmem:[%s17447_s16 + $0x88] sm:$0xff]  }
 0x757   : > { %vm5539_vm14 = vcmp.gt.f32.partialorder %v5467_v20, 0.0  ;;  %v5603_v14 = vmul.f32 %v5467_v20, %v17950_v29  ;;  %v5665_v34 = vsel %vm5537_vm12, %v5463_v56, %v5601_v42  ;;  %v10879_v42 = vld [vmem:[%s17447_s16 + $0x80] sm:$0xff]  }
 0x758   : > { %vm5540_vm2 = vcmp.gt.f32.partialorder %v5469_v38, 0.0  ;;  %v5604_v0 = vmul.f32 %v5469_v38, %v17950_v29  ;;  %v5666_v35 = vsel %vm5538_vm13, %v5465_v22, %v5602_v7  ;;  %v10873_v7 = vld [vmem:[%s17447_s16 + $0x10] sm:$0xff]  }
 0x759   : > { %v5667_v17 = vsel %vm5539_vm14, %v5467_v20, %v5603_v14  ;;  %v10871_v20 = vld [vmem:[%s17447_s16 + $0x8] sm:$0xff]   ;;  %v10887_v14 = vld [vmem:[%s17447_s16 + $0x90] sm:$0xff]  }
 0x75a   : > { %v14738_v60 = vpack.c.bf16 %v5667_v17, %v5665_v34  ;;  %v5668_v58 = vsel %vm5540_vm2, %v5469_v38, %v5604_v0  ;;  %v5472_v45 = vpop.f32.mrb[60].mxu0  ;;  %v10874_v38 = vld [vmem:[%s17447_s16 + $0x58] sm:$0xff]  }
 0x75b   : > { %v5473_v11 = vadd.f32 %v5472_v45, %v14334_v33  ;;  %v5474_v59 = vpop.f32.mrb[61].mxu0  ;;  %v14741_v55 = vpack.c.bf16 %v5668_v58, %v5666_v35  ;;  %v10888_v0 = vld [vmem:[%s17447_s16 + $0xd8] sm:$0xff]   ;;  %v10892_v35 = vld [vmem:[%s17447_s16 + $0xe0] sm:$0xff]   ;;  %v10880_v58 = vld [vmem:[%s17447_s16 + $0x68] sm:$0xff]  }
 0x75c   : > { %v5475_v25 = vadd.f32 %v5474_v59, %v14337_v61  ;;  %v5476_v31 = vpop.f32.mrb[62].mxu0  ;;  %v10875_v34 = vld [vmem:[%s17447_s16 + $0x18] sm:$0xff]   ;;  %v10893_v45 = vld [vmem:[%s17447_s16 + $0xa0] sm:$0xff]   ;;  %v10881_v59 = vld [vmem:[%s17447_s16 + $0x28] sm:$0xff]  }
 0x75d   : > { %v5605_v62 = vmul.f32 %v5473_v11, %v17950_v29  ;;  %v5477_v28 = vadd.f32 %v5476_v31, %v14334_v33  ;;  %v5478_v2 = vpop.f32.mrb[63].mxu0  ;;  %9581 = vmatprep.mubr.msk.bf16.mxu0 %vm4181_vm6, %v14741_v55  ;;  %9598 = vmatprep.mubr.msk.bf16.mxu1 %vm4181_vm6, %v14741_v55  ;;  %vm5541_vm3 = vcmp.gt.f32.partialorder %v5473_v11, 0.0  ;;  %v10889_v17 = vld [vmem:[%s17447_s16 + $0x98] sm:$0xff]   ;;  %v10896_v31 = vld [vmem:[%s17447_s16 + $0xf0] sm:$0xff]  }
 0x75e   : > { %v5606_v19 = vmul.f32 %v5475_v25, %v17950_v29  ;;  %v5479_v32 = vadd.f32 %v5478_v2, %v14337_v61  ;;  %6534 = vmatmul.mubr.bf16.gmra.mrb[120].mxu0 %v14738_v60  ;;  %6727 = vmatmul.mubr.bf16.gmra.mrb[216].mxu1 %v14738_v60  ;;  %vm5542_vm4 = vcmp.gt.f32.partialorder %v5475_v25, 0.0  ;;  %v10869_v61 = vld [vmem:[%s17447_s16] sm:$0xff]   ;;  %v10898_v2 = vld [vmem:[%s17447_s16 + $0xf8] sm:$0xff]  }
 0x75f   : > { %vm5543_vm5 = vcmp.gt.f32.partialorder %v5477_v28, 0.0  ;;  %v5607_v33 = vmul.f32 %v5477_v28, %v17950_v29  ;;  %v5669_v8 = vsel %vm5541_vm3, %v5473_v11, %v5605_v62  ;;  %v10894_v11 = vld [vmem:[%s17447_s16 + $0xe8] sm:$0xff]   ;;  %v10890_v62 = vld [vmem:[%s17447_s16 + $0x78] sm:$0xff]  }
 0x760   : > { %vm5544_vm9 = vcmp.gt.f32.partialorder %v5479_v32, 0.0  ;;  %v5608_v49 = vmul.f32 %v5479_v32, %v17950_v29  ;;  %v5670_v16 = vsel %vm5542_vm4, %v5475_v25, %v5606_v19  ;;  %v10895_v25 = vld [vmem:[%s17447_s16 + $0xa8] sm:$0xff]   ;;  %v10891_v19 = vld [vmem:[%s17447_s16 + $0x38] sm:$0xff]  }
 0x761   : > { %v5671_v6 = vsel %vm5543_vm5, %v5477_v28, %v5607_v33  ;;  %v10897_v28 = vld [vmem:[%s17447_s16 + $0xb0] sm:$0xff]  }
 0x762   : > { %v14756_v56 = vpack.c.bf16 %v5671_v6, %v5669_v8  ;;  %v5672_v50 = vsel %vm5544_vm9, %v5479_v32, %v5608_v49  ;;  %v10900_v32 = vld [vmem:[%s17447_s16 + $0x140] sm:$0xff]  }
 0x763   : > { %v14758_v22 = vpack.c.bf16 %v5672_v50, %v5670_v16 }
 0x765   : > { %9582 = vmatprep.mubr.msk.bf16.mxu0 %vm4181_vm6, %v14758_v22  ;;  %9599 = vmatprep.mubr.msk.bf16.mxu1 %vm4181_vm6, %v14758_v22 }
 0x766   : > { %6544 = vmatmul.mubr.bf16.gmra.mrb[124].mxu0 %v14756_v56  ;;  %6737 = vmatmul.mubr.bf16.gmra.mrb[220].mxu1 %v14756_v56 }
 0x767   : > { %9601 = vmatprep.mubr.msk.bf16.mxu0 %vm4181_vm6, %v14350_v13  ;;  %9617 = vmatprep.mubr.msk.bf16.mxu1 %vm4181_vm6, %v14350_v13  ;;  %v10882_v13 = vld [vmem:[%s17447_s16 + $0xc8] sm:$0xff]  }
 0x76e   : > { %6780 = vmatmul.mubr.bf16.vlgmr.msra.gmra.mrb[128].mxu0 %v14347_v5  ;;  %6973 = vmatmul.mubr.bf16.vlgmr.msra.gmra.mrb[224].mxu1 %v14347_v5  ;;  %v10872_v5 = vld [vmem:[%s17447_s16 + $0x50] sm:$0xff]  }
 0x76f   : > { %9759 = vmatpush3.bf16.msra.mxu0 %v10869_v61  ;;  %9602 = vmatprep.mubr.msk.bf16.mxu0 %vm4181_vm6, %v14388_v10 }
 0x770   : > { %9618 = vmatprep.mubr.msk.bf16.mxu1 %vm4181_vm6, %v14388_v10  ;;  %9760 = vmatprep.subr.bf16.mxu0 %v10870_v15  ;;  %v10886_v10 = vld [vmem:[%s17447_s16 + $0xd0] sm:$0xff]  }
 0x771   : > { %9871 = vmatpush3.bf16.msra.mxu1 %v10879_v42 }
 0x772   : > { %9872 = vmatprep.subr.bf16.mxu1 %v10882_v13 }
 0x773   : > { %9761 = vmatpush3.bf16.msra.mxu0 %v10871_v20 }
 0x774   : > { %9762 = vmatprep.subr.bf16.mxu0 %v10872_v5 }
 0x775   : > { %9873 = vmatpush3.bf16.msra.mxu1 %v10883_v51 }
 0x776   : > { %6790 = vmatmul.mubr.bf16.gmra.mrb[132].mxu0 %v14385_v12  ;;  %6981 = vmatmul.mubr.bf16.gmra.mrb[228].mxu1 %v14385_v12  ;;  %v10876_v12 = vld [vmem:[%s17447_s16 + $0x60] sm:$0xff]  }
 0x777   : > { %9603 = vmatprep.mubr.msk.bf16.mxu0 %vm4181_vm6, %v14427_v37  ;;  %9619 = vmatprep.mubr.msk.bf16.mxu1 %vm4181_vm6, %v14427_v37  ;;  %v10877_v37 = vld [vmem:[%s17447_s16 + $0x20] sm:$0xff]  }
 0x778   : > { %9763 = vmatpush3.bf16.msra.mxu0 %v10873_v7  ;;  %9874 = vmatprep.subr.bf16.mxu1 %v10886_v10 }
 0x779   : > { %9764 = vmatprep.subr.bf16.mxu0 %v10874_v38  ;;  %9875 = vmatpush3.bf16.msra.mxu1 %v10887_v14 }
 0x77a   : > { %9876 = vmatprep.subr.bf16.mxu1 %v10888_v0 }
 0x77c   : > { %9765 = vmatpush3.bf16.msra.mxu0 %v10875_v34 }
 0x77d   : > { %9766 = vmatprep.subr.bf16.mxu0 %v10876_v12  ;;  %9877 = vmatpush3.bf16.msra.mxu1 %v10889_v17 }
 0x77e   : > { %6800 = vmatmul.mubr.bf16.gmra.mrb[136].mxu0 %v14424_v26  ;;  %6989 = vmatmul.mubr.bf16.gmra.mrb[232].mxu1 %v14424_v26  ;;  %v10884_v26 = vld [vmem:[%s17447_s16 + $0x70] sm:$0xff]  }
 0x77f   : > { %9604 = vmatprep.mubr.msk.bf16.mxu0 %vm4181_vm6, %v14466_v21  ;;  %9620 = vmatprep.mubr.msk.bf16.mxu1 %vm4181_vm6, %v14466_v21  ;;  %v10885_v21 = vld [vmem:[%s17447_s16 + $0x30] sm:$0xff]  }
 0x780   : > { %9767 = vmatpush3.bf16.msra.mxu0 %v10877_v37  ;;  %9878 = vmatprep.subr.bf16.mxu1 %v10892_v35 }
 0x781   : > { %9768 = vmatprep.subr.bf16.mxu0 %v10880_v58  ;;  %9879 = vmatpush3.bf16.msra.mxu1 %v10893_v45 }
 0x782   : > { %9880 = vmatprep.subr.bf16.mxu1 %v10894_v11 }
 0x784   : > { %9769 = vmatpush3.bf16.msra.mxu0 %v10881_v59 }
 0x785   : > { %9770 = vmatprep.subr.bf16.mxu0 %v10884_v26  ;;  %9881 = vmatpush3.bf16.msra.mxu1 %v10895_v25 }
 0x786   : > { %6810 = vmatmul.mubr.bf16.gmra.mrb[140].mxu0 %v14463_v46  ;;  %6997 = vmatmul.mubr.bf16.gmra.mrb[236].mxu1 %v14463_v46  ;;  %v10899_v46 = vld [vmem:[%s17447_s16 + $0xb8] sm:$0xff]  }
 0x787   : > { %9605 = vmatprep.mubr.msk.bf16.mxu0 %vm4181_vm6, %v14505_v18  ;;  %9621 = vmatprep.mubr.msk.bf16.mxu1 %vm4181_vm6, %v14505_v18 }
 0x788   : > { %9771 = vmatpush3.bf16.msra.mxu0 %v10885_v21  ;;  %9882 = vmatprep.subr.bf16.mxu1 %v10896_v31 }
 0x789   : > { %9772 = vmatprep.subr.bf16.mxu0 %v10890_v62  ;;  %9883 = vmatpush3.bf16.msra.mxu1 %v10897_v28 }
 0x78a   : > { %9884 = vmatprep.subr.bf16.mxu1 %v10898_v2 }
 0x78c   : > { %9773 = vmatpush3.bf16.msra.mxu0 %v10891_v19 }
 0x78d   : > { %9885 = vmatpush3.bf16.msra.mxu1 %v10899_v46  ;;  %9982 = vmatprep.subr.bf16.mxu0 %v10900_v32 }
 0x78e   : > { %6820 = vmatmul.mubr.bf16.gmra.mrb[144].mxu0 %v14502_v43  ;;  %7005 = vmatmul.mubr.bf16.gmra.mrb[240].mxu1 %v14502_v43  ;;  %v14926_v43 = vld [vmem:[%s17446_s15] sm:$0x7f] }
 0x78f   : > { %9606 = vmatprep.mubr.msk.bf16.mxu0 %vm4181_vm6, %v14544_v3  ;;  %9622 = vmatprep.mubr.msk.bf16.mxu1 %vm4181_vm6, %v14544_v3  ;;  %v14932_v18 = vrot.slane %v14926_v43, %v17948_v1  ;;  %v14962_v16 = vrot.slane %v14926_v43, %v17949_v63 }
 0x796   : > { %6830 = vmatmul.mubr.bf16.gmra.mrb[148].mxu0 %v14541_v54  ;;  %7013 = vmatmul.mubr.bf16.gmra.mrb[244].mxu1 %v14541_v54  ;;  %v17951_v54 = vld [vmem:[#allocation3_spill] sm:$0xff] }
 0x797   : > { %9607 = vmatprep.mubr.msk.bf16.mxu0 %vm4181_vm6, %v14587_v53  ;;  %9623 = vmatprep.mubr.msk.bf16.mxu1 %vm4181_vm6, %v14587_v53  ;;  %v17952_v3 = vsub.s32 2, %v17951_v54  ;;  %v14946_v53 = vld [vmem:[%s17447_s16 + $0x180] sm:$0xff]  }
 0x798   : > { %10224 = vmatprep.subr.bf16.mxu1 %v14946_v53 }
 0x79e   : > { %6840 = vmatmul.mubr.bf16.gmra.mrb[152].mxu0 %v14584_v41  ;;  %7021 = vmatmul.mubr.bf16.gmra.mrb[248].mxu1 %v14584_v41  ;;  %v14937_v41 = vrot.slane %v14926_v43, %v17952_v3 }
 0x79f   : > { %9608 = vmatprep.mubr.msk.bf16.mxu0 %vm4181_vm6, %v14612_v44  ;;  %9624 = vmatprep.mubr.msk.bf16.mxu1 %vm4181_vm6, %v14612_v44 }
 0x7a6   : > { %6850 = vmatmul.mubr.bf16.gmra.mrb[156].mxu0 %v14609_v9  ;;  %7029 = vmatmul.mubr.bf16.gmra.mrb[252].mxu1 %v14609_v9 }
 0x7a7   : > { %9609 = vmatprep.mubr.msk.bf16.mxu0 %vm4181_vm6, %v14630_v52  ;;  %9625 = vmatprep.mubr.msk.bf16.mxu1 %vm4181_vm6, %v14630_v52 }
 0x7ae   : > { %6860 = vmatmul.mubr.bf16.gmra.mrb[160].mxu0 %v14627_v39  ;;  %7037 = vmatmul.mubr.bf16.gmra.mrb[0].mxu1 %v14627_v39 }
 0x7af   : > { %9610 = vmatprep.mubr.msk.bf16.mxu0 %vm4181_vm6, %v14651_v30  ;;  %9626 = vmatprep.mubr.msk.bf16.mxu1 %vm4181_vm6, %v14651_v30 }
 0x7b6   : > { %6870 = vmatmul.mubr.bf16.gmra.mrb[164].mxu0 %v14648_v48  ;;  %7045 = vmatmul.mubr.bf16.gmra.mrb[4].mxu1 %v14648_v48 }
 0x7b7   : > { %9611 = vmatprep.mubr.msk.bf16.mxu0 %vm4181_vm6, %v14669_v27  ;;  %9627 = vmatprep.mubr.msk.bf16.mxu1 %vm4181_vm6, %v14669_v27 }
 0x7be   : > { %6880 = vmatmul.mubr.bf16.gmra.mrb[168].mxu0 %v14666_v24  ;;  %7053 = vmatmul.mubr.bf16.gmra.mrb[8].mxu1 %v14666_v24 }
 0x7bf   : > { %9612 = vmatprep.mubr.msk.bf16.mxu0 %vm4181_vm6, %v14687_v47  ;;  %9628 = vmatprep.mubr.msk.bf16.mxu1 %vm4181_vm6, %v14687_v47 }
 0x7c1   : > { %v6395_v9 = vpop.f32.mrb[64].mxu0  ;;  %v6588_v44 = vpop.f32.mrb[160].mxu1 }
 0x7c2   : > { %v6396_v1 = vadd.f32 %v6395_v9, %v14932_v18  ;;  %v6589_v39 = vadd.f32 %v6588_v44, %v14937_v41  ;;  %v6397_v52 = vpop.f32.mrb[65].mxu0  ;;  %v14950_v48 = vpop.f32.mrb[161].mxu1 }
 0x7c3   : > { %v6399_v30 = vpop.f32.mrb[66].mxu0  ;;  %v6592_v24 = vpop.f32.mrb[162].mxu1 }
 0x7c4   : > { %v6401_v27 = vpop.f32.mrb[67].mxu0  ;;  %v14953_v47 = vpop.f32.mrb[163].mxu1  ;;  %v7325_v33 = vmul.f32 %v6396_v1, %v17950_v29  ;;  %v7327_v49 = vmul.f32 %v6589_v39, %v17950_v29  ;;  %vm7101_vm7 = vcmp.gt.f32.partialorder %v6396_v1, 0.0  ;;  %vm7103_vm11 = vcmp.gt.f32.partialorder %v6589_v39, 0.0 }
 0x7c5   : > { %v6400_v8 = vadd.f32 %v6399_v30, %v14932_v18  ;;  %v6593_v6 = vadd.f32 %v6592_v24, %v14937_v41  ;;  %v6402_v0 = vadd.f32 %v6401_v27, %v14962_v16 }
 0x7c6   : > { %6890 = vmatmul.mubr.bf16.gmra.mrb[172].mxu0 %v14684_v23  ;;  %7061 = vmatmul.mubr.bf16.gmra.mrb[12].mxu1 %v14684_v23  ;;  %v14971_v15 = vsel %vm7101_vm7, %v6396_v1, %v7325_v33  ;;  %v14973_v42 = vsel %vm7103_vm11, %v6589_v39, %v7327_v49 }
 0x7c7   : > { %9613 = vmatprep.mubr.msk.bf16.mxu0 %vm4181_vm6, %v14705_v36  ;;  %vm7108_vm8 = vcmp.gt.f32.partialorder %v6400_v8, 0.0  ;;  %v7332_v50 = vmul.f32 %v6400_v8, %v17950_v29  ;;  %vm7110_vm10 = vcmp.gt.f32.partialorder %v6593_v6, 0.0  ;;  %v7334_v61 = vmul.f32 %v6593_v6, %v17950_v29  ;;  %9629 = vmatprep.mubr.msk.bf16.mxu1 %vm4181_vm6, %v14705_v36 }
 0x7c8   : > { %v6398_v36 = vadd.f32 %v6397_v52, %v14962_v16  ;;  %v7333_v59 = vmul.f32 %v6402_v0, %v17950_v29  ;;  %vm7109_vm3 = vcmp.gt.f32.partialorder %v6402_v0, 0.0 }
 0x7c9   : > { %v6405_v63 = vpop.f32.mrb[68].mxu0  ;;  %v6598_v13 = vpop.f32.mrb[164].mxu1  ;;  %v14975_v20 = vsel %vm7108_vm8, %v6400_v8, %v7332_v50  ;;  %v14977_v23 = vsel %vm7110_vm10, %v6593_v6, %v7334_v61 }
 0x7ca   : > { %v6406_v5 = vadd.f32 %v6405_v63, %v14932_v18  ;;  %v6599_v51 = vadd.f32 %v6598_v13, %v14937_v41  ;;  %v14981_v7 = vpop.f32.mrb[69].mxu0  ;;  %v14983_v10 = vpop.f32.mrb[165].mxu1  ;;  %v7874_v38 = vpack.c.bf16 %v14975_v20, %v14971_v15  ;;  %v7876_v14 = vpack.c.bf16 %v14977_v23, %v14973_v42 }
 0x7cb   : > { %v6409_v34 = vpop.f32.mrb[70].mxu0  ;;  %v6602_v12 = vpop.f32.mrb[166].mxu1  ;;  %vm7102_vm13 = vcmp.gt.f32.partialorder %v6398_v36, 0.0  ;;  %v7326_v21 = vmul.f32 %v6398_v36, %v17950_v29  ;;  %v15034_v24 = vsel %vm7109_vm3, %v6402_v0, %v7333_v59 }
 0x7cc   : > { %v14991_v17 = vpop.f32.mrb[71].mxu0  ;;  %v14993_v37 = vpop.f32.mrb[167].mxu1  ;;  %v7339_v35 = vmul.f32 %v6406_v5, %v17950_v29  ;;  %v7341_v58 = vmul.f32 %v6599_v51, %v17950_v29  ;;  %vm7115_vm1 = vcmp.gt.f32.partialorder %v6406_v5, 0.0  ;;  %vm7117_vm12 = vcmp.gt.f32.partialorder %v6599_v51, 0.0 }
 0x7cd   : > { %v6410_v45 = vadd.f32 %v6409_v34, %v14932_v18  ;;  %v6603_v11 = vadd.f32 %v6602_v12, %v14937_v41  ;;  %v15039_v49 = vsel %vm7102_vm13, %v6398_v36, %v7326_v21  ;;  %v17953_v21 = vsub.s32 3, %v17951_v54 }
 0x7ce   : > { %6900 = vmatmul.mubr.bf16.gmra.mrb[176].mxu0 %v14702_v4  ;;  %7069 = vmatmul.mubr.bf16.gmra.mrb[16].mxu1 %v14702_v4  ;;  %v15010_v31 = vsel %vm7115_vm1, %v6406_v5, %v7339_v35  ;;  %v15013_v4 = vsel %vm7117_vm12, %v6599_v51, %v7341_v58  ;;  %v7875_v50 = vpack.c.bf16 %v15034_v24, %v15039_v49 }
 0x7cf   : > { %9614 = vmatprep.mubr.msk.bf16.mxu0 %vm4181_vm6, %v14723_v57  ;;  %vm7122_vm14 = vcmp.gt.f32.partialorder %v6410_v45, 0.0  ;;  %v7346_v26 = vmul.f32 %v6410_v45, %v17950_v29  ;;  %vm7124_vm2 = vcmp.gt.f32.partialorder %v6603_v11, 0.0  ;;  %v7348_v25 = vmul.f32 %v6603_v11, %v17950_v29  ;;  %9630 = vmatprep.mubr.msk.bf16.mxu1 %vm4181_vm6, %v14723_v57 }
 0x7d1   : > { %v6415_v62 = vpop.f32.mrb[72].mxu0  ;;  %v6608_v28 = vpop.f32.mrb[168].mxu1  ;;  %v15015_v2 = vsel %vm7122_vm14, %v6410_v45, %v7346_v26  ;;  %v15017_v19 = vsel %vm7124_vm2, %v6603_v11, %v7348_v25 }
 0x7d2   : > { %v6416_v46 = vadd.f32 %v6415_v62, %v14932_v18  ;;  %v6609_v32 = vadd.f32 %v6608_v28, %v14937_v41  ;;  %v15021_v57 = vpop.f32.mrb[73].mxu0  ;;  %v15023_v3 = vpop.f32.mrb[169].mxu1  ;;  %v15078_v62 = vrot.slane %v14926_v43, %v17953_v21 }
 0x7d3   : > { %v6419_v1 = vpop.f32.mrb[74].mxu0  ;;  %v6612_v39 = vpop.f32.mrb[170].mxu1 }
 0x7d4   : > { %v15029_v52 = vpop.f32.mrb[75].mxu0  ;;  %v15031_v30 = vpop.f32.mrb[171].mxu1  ;;  %v7353_v27 = vmul.f32 %v6416_v46, %v17950_v29  ;;  %v7355_v33 = vmul.f32 %v6609_v32, %v17950_v29  ;;  %vm7129_vm4 = vcmp.gt.f32.partialorder %v6416_v46, 0.0  ;;  %vm7131_vm5 = vcmp.gt.f32.partialorder %v6609_v32, 0.0 }
 0x7d5   : > { %v6420_v8 = vadd.f32 %v6419_v1, %v14932_v18  ;;  %v6613_v6 = vadd.f32 %v6612_v39, %v14937_v41  ;;  %v6595_v39 = vadd.f32 %v14953_v47, %v15078_v62  ;;  %v15209_v54 = vadd.f32 %v15029_v52, %v14962_v16 }
 0x7d6   : > { %6910 = vmatmul.mubr.bf16.gmra.mrb[180].mxu0 %v14720_v40  ;;  %7077 = vmatmul.mubr.bf16.gmra.mrb[20].mxu1 %v14720_v40  ;;  %v15053_v13 = vsel %vm7129_vm4, %v6416_v46, %v7353_v27  ;;  %v15055_v5 = vsel %vm7131_vm5, %v6609_v32, %v7355_v33  ;;  %v6591_v33 = vadd.f32 %v14950_v48, %v15078_v62 }
 0x7d7   : > { %9615 = vmatprep.mubr.msk.bf16.mxu0 %vm4181_vm6, %v14741_v55  ;;  %vm7136_vm9 = vcmp.gt.f32.partialorder %v6420_v8, 0.0  ;;  %v7360_v61 = vmul.f32 %v6420_v8, %v17950_v29  ;;  %vm7138_vm7 = vcmp.gt.f32.partialorder %v6613_v6, 0.0  ;;  %v7362_v63 = vmul.f32 %v6613_v6, %v17950_v29  ;;  %9631 = vmatprep.mubr.msk.bf16.mxu1 %vm4181_vm6, %v14741_v55 }
 0x7d8   : > { %v7335_v48 = vmul.f32 %v6595_v39, %v17950_v29  ;;  %vm7104_vm12 = vcmp.gt.f32.partialorder %v6591_v33, 0.0  ;;  %v15213_v15 = vadd.f32 %v15031_v30, %v15078_v62  ;;  %v10904_v30 = vld [vmem:[%s17447_s16 + $0x150] sm:$0xff]  }
 0x7d9   : > { %v6425_v40 = vpop.f32.mrb[76].mxu0  ;;  %v6618_v51 = vpop.f32.mrb[172].mxu1  ;;  %v15057_v36 = vsel %vm7136_vm9, %v6420_v8, %v7360_v61  ;;  %v15059_v0 = vsel %vm7138_vm7, %v6613_v6, %v7362_v63 }
 0x7da   : > { %v6426_v34 = vadd.f32 %v6425_v40, %v14932_v18  ;;  %v6619_v12 = vadd.f32 %v6618_v51, %v14937_v41  ;;  %v15063_v35 = vpop.f32.mrb[77].mxu0  ;;  %v15065_v58 = vpop.f32.mrb[173].mxu1 }
 0x7db   : > { %v6429_v11 = vpop.f32.mrb[78].mxu0  ;;  %v6622_v59 = vpop.f32.mrb[174].mxu1 }
 0x7dc   : > { %v15071_v26 = vpop.f32.mrb[79].mxu0  ;;  %v15073_v25 = vpop.f32.mrb[175].mxu1  ;;  %v7367_v28 = vmul.f32 %v6426_v34, %v17950_v29  ;;  %v7369_v46 = vmul.f32 %v6619_v12, %v17950_v29  ;;  %vm7143_vm11 = vcmp.gt.f32.partialorder %v6426_v34, 0.0  ;;  %vm7145_vm8 = vcmp.gt.f32.partialorder %v6619_v12, 0.0 }
 0x7dd   : > { %v6430_v32 = vadd.f32 %v6429_v11, %v14932_v18  ;;  %v6623_v1 = vadd.f32 %v6622_v59, %v14937_v41  ;;  %v6412_v59 = vadd.f32 %v14991_v17, %v14962_v16 }
 0x7de   : > { %6920 = vmatmul.mubr.bf16.gmra.mrb[184].mxu0 %v14738_v60  ;;  %7085 = vmatmul.mubr.bf16.gmra.mrb[24].mxu1 %v14738_v60  ;;  %v15096_v8 = vsel %vm7143_vm11, %v6426_v34, %v7367_v28  ;;  %v15098_v47 = vsel %vm7145_vm8, %v6619_v12, %v7369_v46  ;;  %v15113_v34 = vadd.f32 %v14981_v7, %v14962_v16 }
 0x7df   : > { %9616 = vmatprep.mubr.msk.bf16.mxu0 %vm4181_vm6, %v14758_v22  ;;  %vm7150_vm10 = vcmp.gt.f32.partialorder %v6430_v32, 0.0  ;;  %v7374_v43 = vmul.f32 %v6430_v32, %v17950_v29  ;;  %vm7152_vm1 = vcmp.gt.f32.partialorder %v6623_v1, 0.0  ;;  %v7376_v27 = vmul.f32 %v6623_v1, %v17950_v29  ;;  %9632 = vmatprep.mubr.msk.bf16.mxu1 %vm4181_vm6, %v14758_v22 }
 0x7e0   : > { %vm7111_vm6 = vcmp.gt.f32.partialorder %v6595_v39, 0.0  ;;  %vm7116_vm2 = vcmp.gt.f32.partialorder %v15113_v34, 0.0  ;;  %vm7123_vm9 = vcmp.gt.f32.partialorder %v6412_v59, 0.0 }
 0x7e1   : > { %v6435_v60 = vpop.f32.mrb[80].mxu0  ;;  %v6628_v6 = vpop.f32.mrb[176].mxu1  ;;  %v15100_v61 = vsel %vm7150_vm10, %v6430_v32, %v7374_v43  ;;  %v15102_v63 = vsel %vm7152_vm1, %v6623_v1, %v7376_v27  ;;  %v7328_v1 = vmul.f32 %v6591_v33, %v17950_v29 }
 0x7e2   : > { %v6436_v40 = vadd.f32 %v6435_v60, %v14932_v18  ;;  %v6629_v51 = vadd.f32 %v6628_v6, %v14937_v41  ;;  %v15106_v11 = vpop.f32.mrb[81].mxu0  ;;  %v15108_v22 = vpop.f32.mrb[177].mxu1  ;;  %v15132_v6 = vadd.f32 %v14983_v10, %v15078_v62  ;;  %v15145_v10 = vadd.f32 %v14993_v37, %v15078_v62 }
 0x7e3   : > { %v6439_v21 = vpop.f32.mrb[82].mxu0  ;;  %v6632_v28 = vpop.f32.mrb[178].mxu1  ;;  %v7552_v24 = vsel %vm7104_vm12, %v6591_v33, %v7328_v1  ;;  %v15199_v33 = vadd.f32 %v15023_v3, %v15078_v62 }
 0x7e4   : > { %v15119_v46 = vpop.f32.mrb[83].mxu0  ;;  %v15121_v32 = vpop.f32.mrb[179].mxu1  ;;  %v7381_v43 = vmul.f32 %v6436_v40, %v17950_v29  ;;  %v7383_v7 = vmul.f32 %v6629_v51, %v17950_v29  ;;  %vm7157_vm13 = vcmp.gt.f32.partialorder %v6436_v40, 0.0  ;;  %vm7159_vm14 = vcmp.gt.f32.partialorder %v6629_v51, 0.0 }
 0x7e5   : > { %v6440_v27 = vadd.f32 %v6439_v21, %v14932_v18  ;;  %v6633_v60 = vadd.f32 %v6632_v28, %v14937_v41  ;;  %v7559_v21 = vsel %vm7111_vm6, %v6595_v39, %v7335_v48  ;;  %vm7118_vm5 = vcmp.gt.f32.partialorder %v15132_v6, 0.0 }
 0x7e6   : > { %6930 = vmatmul.mubr.bf16.gmra.mrb[188].mxu0 %v14756_v56  ;;  %7093 = vmatmul.mubr.bf16.gmra.mrb[28].mxu1 %v14756_v56  ;;  %v15148_v17 = vsel %vm7157_vm13, %v6436_v40, %v7381_v43  ;;  %v15151_v56 = vsel %vm7159_vm14, %v6629_v51, %v7383_v7  ;;  %v7877_v45 = vpack.c.bf16 %v7559_v21, %v7552_v24  ;;  %v10901_v24 = vld [vmem:[%s17447_s16 + $0x100] sm:$0xff]   ;;  %vm7125_vm7 = vcmp.gt.f32.partialorder %v15145_v10, 0.0 }
 0x7e7   : > { %8372 = vmatprep.mubr.bf16.mxu0 %v7875_v50  ;;  %vm7164_vm3 = vcmp.gt.f32.partialorder %v6440_v27, 0.0  ;;  %v7388_v28 = vmul.f32 %v6440_v27, %v17950_v29  ;;  %vm7166_vm4 = vcmp.gt.f32.partialorder %v6633_v60, 0.0  ;;  %v7390_v12 = vmul.f32 %v6633_v60, %v17950_v29 }
 0x7e8   : > { %v7340_v40 = vmul.f32 %v15113_v34, %v17950_v29  ;;  %v7347_v7 = vmul.f32 %v6412_v59, %v17950_v29  ;;  %8533 = vmatprep.mubr.bf16.mxu1 %v7877_v45  ;;  %v10902_v45 = vld [vmem:[%s17447_s16 + $0x148] sm:$0xff]   ;;  %vm7132_vm12 = vcmp.gt.f32.partialorder %v15199_v33, 0.0  ;;  %vm7137_vm13 = vcmp.gt.f32.partialorder %v15209_v54, 0.0 }
 0x7e9   : > { %v6445_v49 = vpop.f32.mrb[84].mxu0  ;;  %v6638_v50 = vpop.f32.mrb[180].mxu1  ;;  %v15154_v39 = vsel %vm7164_vm3, %v6440_v27, %v7388_v28  ;;  %v15156_v48 = vsel %vm7166_vm4, %v6633_v60, %v7390_v12  ;;  %v15174_v27 = vadd.f32 %v15021_v57, %v14962_v16  ;;  %vm7139_vm14 = vcmp.gt.f32.partialorder %v15213_v15, 0.0 }
 0x7ea   : > { %v6446_v55 = vadd.f32 %v6445_v49, %v14932_v18  ;;  %v15159_v44 = vpop.f32.mrb[85].mxu0  ;;  %v15161_v37 = vpop.f32.mrb[181].mxu1  ;;  %v6639_v1 = vadd.f32 %v6638_v50, %v14937_v41  ;;  %v7342_v49 = vmul.f32 %v15132_v6, %v17950_v29  ;;  %v7349_v50 = vmul.f32 %v15145_v10, %v17950_v29 }
 0x7eb   : > { %v6449_v12 = vpop.f32.mrb[86].mxu0  ;;  %v6642_v43 = vpop.f32.mrb[182].mxu1  ;;  %vm7130_vm1 = vcmp.gt.f32.partialorder %v15174_v27, 0.0  ;;  %v7571_v20 = vsel %vm7123_vm9, %v6412_v59, %v7347_v7 }
 0x7ec   : > { %v6450_v60 = vadd.f32 %v6449_v12, %v14932_v18  ;;  %v15177_v21 = vpop.f32.mrb[87].mxu0  ;;  %v15179_v28 = vpop.f32.mrb[183].mxu1  ;;  %v7395_v57 = vmul.f32 %v6446_v55, %v17950_v29  ;;  %vm7171_vm11 = vcmp.gt.f32.partialorder %v6446_v55, 0.0  ;;  %v7397_v12 = vmul.f32 %v6639_v1, %v17950_v29 }
 0x7ed   : > { %vm7173_vm10 = vcmp.gt.f32.partialorder %v6639_v1, 0.0  ;;  %v6643_v9 = vadd.f32 %v6642_v43, %v14937_v41  ;;  %v7566_v43 = vsel %vm7118_vm5, %v15132_v6, %v7342_v49 }
 0x7ee   : > { %vm7178_vm8 = vcmp.gt.f32.partialorder %v6450_v60, 0.0  ;;  %8373 = vmatmul.mubr.bf16.vlgmr.msra.gmra.mrb[192].mxu0 %v7874_v38  ;;  %v7402_v51 = vmul.f32 %v6450_v60, %v17950_v29  ;;  %8534 = vmatmul.mubr.bf16.vlgmr.msra.gmra.mrb[32].mxu1 %v7876_v14  ;;  %v10903_v38 = vld [vmem:[%s17447_s16 + $0x108] sm:$0xff]   ;;  %v15219_v3 = vsel %vm7171_vm11, %v6446_v55, %v7395_v57  ;;  %v15229_v59 = vsel %vm7173_vm10, %v6639_v1, %v7397_v12 }
 0x7ef   : > { %9983 = vmatpush3.bf16.msra.mxu0 %v10901_v24  ;;  %vm7180_vm6 = vcmp.gt.f32.partialorder %v6643_v9, 0.0  ;;  %v7404_v23 = vmul.f32 %v6643_v9, %v17950_v29  ;;  %10225 = vmatpush3.bf16.msra.mxu1 %v14946_v53  ;;  %17954 = vst [vmem:[#allocation46_spill] sm:$0xff] %v15229_v59  ;;  %v7573_v1 = vsel %vm7125_vm7, %v15145_v10, %v7349_v50  ;;  %v10905_v10 = vld [vmem:[%s17447_s16 + $0x110] sm:$0xff]  }
 0x7f0   : > { %v15221_v42 = vsel %vm7178_vm8, %v6450_v60, %v7402_v51  ;;  %9984 = vmatprep.subr.bf16.mxu0 %v10902_v45  ;;  %v7564_v51 = vsel %vm7116_vm2, %v15113_v34, %v7340_v40  ;;  %v7354_v34 = vmul.f32 %v15174_v27, %v17950_v29  ;;  %v7884_v40 = vpack.c.bf16 %v7573_v1, %v7566_v43  ;;  %v10917_v1 = vld [vmem:[%s17447_s16 + $0x188] sm:$0xff]  }
 0x7f1   : > { %v6455_v14 = vpop.f32.mrb[88].mxu0  ;;  %v6648_v52 = vpop.f32.mrb[184].mxu1  ;;  %v15243_v24 = vsel %vm7180_vm6, %v6643_v9, %v7404_v23  ;;  %v7882_v53 = vpack.c.bf16 %v7571_v20, %v7564_v51  ;;  %v7361_v50 = vmul.f32 %v15209_v54, %v17950_v29  ;;  %v15266_v23 = vadd.f32 %v15063_v35, %v14962_v16  ;;  %10226 = vmatprep.subr.bf16.mxu1 %v10917_v1 }
 0x7f2   : > { %v15239_v7 = vpop.f32.mrb[89].mxu0  ;;  %v15241_v60 = vpop.f32.mrb[185].mxu1  ;;  %v6456_v57 = vadd.f32 %v6455_v14, %v14932_v18  ;;  %v6649_v49 = vadd.f32 %v6648_v52, %v14937_v41  ;;  %v7356_v52 = vmul.f32 %v15199_v33, %v17950_v29  ;;  %8541 = vmatprep.mubr.bf16.mxu1 %v7884_v40  ;;  %v17955_v35 = vpack.c.bf16 %v15015_v2, %v15010_v31  ;;  %v10907_v40 = vld [vmem:[%s17447_s16 + $0x118] sm:$0xff]  }
 0x7f3   : > { %v6459_v45 = vpop.f32.mrb[90].mxu0  ;;  %v6652_v12 = vpop.f32.mrb[186].mxu1  ;;  %9985 = vmatpush3.bf16.msra.mxu0 %v10903_v38  ;;  %8380 = vmatprep.mubr.bf16.mxu0 %v7882_v53  ;;  %v10906_v38 = vld [vmem:[%s17447_s16 + $0x158] sm:$0xff]   ;;  %v17956_v53 = vpack.c.bf16 %v15017_v19, %v15013_v4  ;;  %vm7144_vm5 = vcmp.gt.f32.partialorder %v15266_v23, 0.0  ;;  %v15301_v4 = vadd.f32 %v15071_v26, %v14962_v16  ;;  %v15305_v19 = vadd.f32 %v15073_v25, %v15078_v62 }
 0x7f4   : > { %v15254_v9 = vpop.f32.mrb[91].mxu0  ;;  %v15256_v20 = vpop.f32.mrb[187].mxu1  ;;  %v6460_v14 = vadd.f32 %v6459_v45, %v14932_v18  ;;  %9986 = vmatprep.subr.bf16.mxu0 %v10904_v30  ;;  %v7409_v51 = vmul.f32 %v6456_v57, %v17950_v29  ;;  %v7363_v30 = vmul.f32 %v15213_v15, %v17950_v29  ;;  %vm7185_vm2 = vcmp.gt.f32.partialorder %v6456_v57, 0.0  ;;  %10227 = vmatpush3.bf16.msra.mxu1 %v10917_v1 }
 0x7f5   : > { %v7411_v43 = vmul.f32 %v6649_v49, %v17950_v29  ;;  %v15291_v45 = vadd.f32 %v15065_v58, %v15078_v62  ;;  %vm7187_vm4 = vcmp.gt.f32.partialorder %v6649_v49, 0.0  ;;  %v6653_v2 = vadd.f32 %v6652_v12, %v14937_v41 }
 0x7f6   : > { %8381 = vmatmul.mubr.bf16.gmra.mrb[196].mxu0 %v17955_v35  ;;  %vm7192_vm3 = vcmp.gt.f32.partialorder %v6460_v14, 0.0  ;;  %8542 = vmatmul.mubr.bf16.gmra.mrb[36].mxu1 %v17956_v53  ;;  %v7416_v31 = vmul.f32 %v6460_v14, %v17950_v29  ;;  %v7585_v58 = vsel %vm7137_vm13, %v15209_v54, %v7361_v50  ;;  %v10908_v35 = vld [vmem:[%s17447_s16 + $0x160] sm:$0xff]   ;;  %v15314_v53 = vsel %vm7185_vm2, %v6456_v57, %v7409_v51 }
 0x7f7   : > { %9987 = vmatpush3.bf16.msra.mxu0 %v10905_v10  ;;  %17957 = vst [vmem:[#allocation49_spill] sm:$0xff] %v15314_v53  ;;  %vm7194_vm9 = vcmp.gt.f32.partialorder %v6653_v2, 0.0  ;;  %v7418_v25 = vmul.f32 %v6653_v2, %v17950_v29  ;;  %v15325_v54 = vsel %vm7187_vm4, %v6649_v49, %v7411_v43  ;;  %v7578_v57 = vsel %vm7130_vm1, %v15174_v27, %v7354_v34 }
 0x7f8   : > { %9988 = vmatprep.subr.bf16.mxu0 %v10906_v38  ;;  %v15317_v26 = vsel %vm7192_vm3, %v6460_v14, %v7416_v31  ;;  %v7580_v14 = vsel %vm7132_vm12, %v15199_v33, %v7356_v52  ;;  %v7889_v59 = vpack.c.bf16 %v7585_v58, %v7578_v57  ;;  %v7587_v49 = vsel %vm7139_vm14, %v15213_v15, %v7363_v30  ;;  %v10909_v33 = vld [vmem:[%s17447_s16 + $0x120] sm:$0xff]   ;;  %v10911_v30 = vld [vmem:[%s17447_s16 + $0x168] sm:$0xff]  }
 0x7f9   : > { %v6465_v12 = vpop.f32.mrb[92].mxu0  ;;  %v6658_v10 = vpop.f32.mrb[188].mxu1  ;;  %v15335_v31 = vsel %vm7194_vm9, %v6653_v2, %v7418_v25  ;;  %v7368_v27 = vmul.f32 %v15266_v23, %v17950_v29  ;;  %v7891_v52 = vpack.c.bf16 %v7587_v49, %v7580_v14  ;;  %vm7146_vm7 = vcmp.gt.f32.partialorder %v15291_v45, 0.0  ;;  %v10912_v25 = vld [vmem:[%s17447_s16 + $0x128] sm:$0xff]  }
 0x7fa   : > { %v15320_v6 = vpop.f32.mrb[93].mxu0  ;;  %v15322_v55 = vpop.f32.mrb[189].mxu1  ;;  %v6466_v43 = vadd.f32 %v6465_v12, %v14932_v18  ;;  %v6659_v15 = vadd.f32 %v6658_v10, %v14937_v41  ;;  %v7375_v1 = vmul.f32 %v15301_v4, %v17950_v29  ;;  %v15361_v2 = vadd.f32 %v15106_v11, %v14962_v16  ;;  %8388 = vmatprep.mubr.bf16.mxu0 %v7889_v59 }
 0x7fb   : > { %v6469_v38 = vpop.f32.mrb[94].mxu0  ;;  %v6662_v51 = vpop.f32.mrb[190].mxu1  ;;  %9989 = vmatpush3.bf16.msra.mxu0 %v10907_v40  ;;  %v7370_v58 = vmul.f32 %v15291_v45, %v17950_v29  ;;  %vm7151_vm11 = vcmp.gt.f32.partialorder %v15301_v4, 0.0  ;;  %vm7153_vm8 = vcmp.gt.f32.partialorder %v15305_v19, 0.0  ;;  %8549 = vmatprep.mubr.bf16.mxu1 %v7891_v52  ;;  %v17958_v10 = vpack.c.bf16 %v15057_v36, %v15053_v13 }
 0x7fc   : > { %v15341_v50 = vpop.f32.mrb[95].mxu0  ;;  %v15343_v53 = vpop.f32.mrb[191].mxu1  ;;  %9990 = vmatprep.subr.bf16.mxu0 %v10908_v35  ;;  %v6470_v40 = vadd.f32 %v6469_v38, %v14932_v18  ;;  %v7423_v12 = vmul.f32 %v6466_v43, %v17950_v29  ;;  %v7377_v11 = vmul.f32 %v15305_v19, %v17950_v29  ;;  %vm7199_vm10 = vcmp.gt.f32.partialorder %v6466_v43, 0.0 }
 0x7fd   : > { %v7425_v59 = vmul.f32 %v6659_v15, %v17950_v29  ;;  %v17959_v35 = vpack.c.bf16 %v15059_v0, %v15055_v5  ;;  %v15383_v13 = vadd.f32 %v15108_v22, %v15078_v62  ;;  %vm7201_vm6 = vcmp.gt.f32.partialorder %v6659_v15, 0.0  ;;  %v10913_v5 = vld [vmem:[%s17447_s16 + $0x170] sm:$0xff]  }
 0x7fe   : > { %8389 = vmatmul.mubr.bf16.gmra.mrb[200].mxu0 %v17958_v10  ;;  %vm7206_vm1 = vcmp.gt.f32.partialorder %v6470_v40, 0.0  ;;  %v7430_v36 = vmul.f32 %v6470_v40, %v17950_v29  ;;  %v6663_v57 = vadd.f32 %v6662_v51, %v14937_v41  ;;  %vm7158_vm12 = vcmp.gt.f32.partialorder %v15361_v2, 0.0 }
 0x7ff   : > { %8550 = vmatmul.mubr.bf16.gmra.mrb[40].mxu1 %v17959_v35  ;;  %9991 = vmatpush3.bf16.msra.mxu0 %v10909_v33  ;;  %v6442_v0 = vadd.f32 %v15119_v46, %v14962_v16  ;;  %v15395_v22 = vadd.f32 %v15121_v32, %v15078_v62  ;;  %v7599_v51 = vsel %vm7151_vm11, %v15301_v4, %v7375_v1  ;;  %vm7160_vm14 = vcmp.gt.f32.partialorder %v15383_v13, 0.0 }
 0x800   : > { %9992 = vmatprep.subr.bf16.mxu0 %v10911_v30  ;;  %v15405_v52 = vsel %vm7199_vm10, %v6466_v43, %v7423_v12  ;;  %v15408_v30 = vsel %vm7206_vm1, %v6470_v40, %v7430_v36  ;;  %vm7208_vm13 = vcmp.gt.f32.partialorder %v6663_v57, 0.0  ;;  %v7432_v46 = vmul.f32 %v6663_v57, %v17950_v29 }
 0x801   : > { %v6475_v14 = vpop.f32.mrb[96].mxu0  ;;  %v6668_v38 = vpop.f32.mrb[192].mxu1  ;;  %v15412_v35 = vsel %vm7201_vm6, %v6659_v15, %v7425_v59  ;;  %v7592_v1 = vsel %vm7144_vm5, %v15266_v23, %v7368_v27  ;;  %v7594_v43 = vsel %vm7146_vm7, %v15291_v45, %v7370_v58  ;;  %v7601_v59 = vsel %vm7153_vm8, %v15305_v19, %v7377_v11  ;;  %v10914_v23 = vld [vmem:[%s17447_s16 + $0x130] sm:$0xff]   ;;  %v10915_v19 = vld [vmem:[%s17447_s16 + $0x178] sm:$0xff]  }
 0x802   : > { %v15400_v49 = vpop.f32.mrb[97].mxu0  ;;  %v15402_v33 = vpop.f32.mrb[193].mxu1  ;;  %v15426_v36 = vsel %vm7208_vm13, %v6663_v57, %v7432_v46  ;;  %v7896_v15 = vpack.c.bf16 %v7599_v51, %v7592_v1  ;;  %v6476_v4 = vadd.f32 %v6475_v14, %v14932_v18  ;;  %v7382_v45 = vmul.f32 %v15361_v2, %v17950_v29 }
 0x803   : > { %v6479_v10 = vpop.f32.mrb[98].mxu0  ;;  %v6672_v32 = vpop.f32.mrb[194].mxu1  ;;  %9993 = vmatpush3.bf16.msra.mxu0 %v10912_v25  ;;  %v7898_v58 = vpack.c.bf16 %v7601_v59, %v7594_v43  ;;  %v6669_v25 = vadd.f32 %v6668_v38, %v14937_v41  ;;  %v7389_v11 = vmul.f32 %v6442_v0, %v17950_v29  ;;  %v15447_v57 = vadd.f32 %v15159_v44, %v14962_v16 }
 0x804   : > { %v15422_v40 = vpop.f32.mrb[99].mxu0  ;;  %v15424_v12 = vpop.f32.mrb[195].mxu1  ;;  %9994 = vmatprep.subr.bf16.mxu0 %v10913_v5  ;;  %8396 = vmatprep.mubr.bf16.mxu0 %v7896_v15  ;;  %v6480_v14 = vadd.f32 %v6479_v10, %v14932_v18  ;;  %v7384_v5 = vmul.f32 %v15383_v13, %v17950_v29  ;;  %vm7165_vm2 = vcmp.gt.f32.partialorder %v6442_v0, 0.0  ;;  %vm7167_vm3 = vcmp.gt.f32.partialorder %v15395_v22, 0.0  ;;  %v10916_v15 = vld [vmem:[%s17447_s16 + $0x138] sm:$0xff]  }
 0x805   : > { %8557 = vmatprep.mubr.bf16.mxu1 %v7898_v58  ;;  %v7437_v38 = vmul.f32 %v6476_v4, %v17950_v29  ;;  %v17960_v51 = vpack.c.bf16 %v15100_v61, %v15096_v8  ;;  %v7391_v44 = vmul.f32 %v15395_v22, %v17950_v29  ;;  %vm7213_vm4 = vcmp.gt.f32.partialorder %v6476_v4, 0.0 }
 0x806   : > { %v7439_v46 = vmul.f32 %v6669_v25, %v17950_v29  ;;  %vm7220_vm5 = vcmp.gt.f32.partialorder %v6480_v14, 0.0  ;;  %v17961_v10 = vpack.c.bf16 %v15102_v63, %v15098_v47  ;;  %v15468_v8 = vadd.f32 %v15161_v37, %v15078_v62 }
 0x807   : > { %8397 = vmatmul.mubr.bf16.gmra.mrb[204].mxu0 %v17960_v51  ;;  %vm7215_vm9 = vcmp.gt.f32.partialorder %v6669_v25, 0.0  ;;  %v7444_v61 = vmul.f32 %v6480_v14, %v17950_v29  ;;  %v6673_v59 = vadd.f32 %v6672_v32, %v14937_v41  ;;  %vm7172_vm7 = vcmp.gt.f32.partialorder %v15447_v57, 0.0 }
 0x808   : > { %8558 = vmatmul.mubr.bf16.gmra.mrb[44].mxu1 %v17961_v10  ;;  %9995 = vmatpush3.bf16.msra.mxu0 %v10914_v23  ;;  %v6452_v63 = vadd.f32 %v15177_v21, %v14962_v16  ;;  %v15481_v23 = vadd.f32 %v15179_v28, %v15078_v62  ;;  %v7613_v37 = vsel %vm7165_vm2, %v6442_v0, %v7389_v11  ;;  %vm7174_vm8 = vcmp.gt.f32.partialorder %v15468_v8, 0.0 }
 0x809   : > { %v6485_v1 = vpop.f32.mrb[100].mxu0  ;;  %v6678_v43 = vpop.f32.mrb[196].mxu1  ;;  %9996 = vmatprep.subr.bf16.mxu0 %v10915_v19  ;;  %v15485_v32 = vsel %vm7213_vm4, %v6476_v4, %v7437_v38  ;;  %v15488_v27 = vsel %vm7220_vm5, %v6480_v14, %v7444_v61  ;;  %vm7222_vm11 = vcmp.gt.f32.partialorder %v6673_v59, 0.0  ;;  %v7446_v19 = vmul.f32 %v6673_v59, %v17950_v29 }
 0x80a   : > { %v15472_v58 = vpop.f32.mrb[101].mxu0  ;;  %v15474_v47 = vpop.f32.mrb[197].mxu1  ;;  %v15496_v28 = vsel %vm7215_vm9, %v6669_v25, %v7439_v46  ;;  %v7606_v4 = vsel %vm7158_vm12, %v15361_v2, %v7382_v45  ;;  %v7608_v11 = vsel %vm7160_vm14, %v15383_v13, %v7384_v5  ;;  %v7615_v25 = vsel %vm7167_vm3, %v15395_v22, %v7391_v44 }
 0x80b   : > { %v6489_v51 = vpop.f32.mrb[102].mxu0  ;;  %v6682_v10 = vpop.f32.mrb[198].mxu1  ;;  %17962 = vst [vmem:[#allocation17_spill] sm:$0xff] %v15496_v28  ;;  %v15506_v14 = vsel %vm7222_vm11, %v6673_v59, %v7446_v19  ;;  %v7903_v38 = vpack.c.bf16 %v7613_v37, %v7606_v4  ;;  %v6486_v46 = vadd.f32 %v6485_v1, %v14932_v18  ;;  %v7396_v61 = vmul.f32 %v15447_v57, %v17950_v29 }
 0x80c   : > { %v15491_v34 = vpop.f32.mrb[103].mxu0  ;;  %v15493_v21 = vpop.f32.mrb[199].mxu1  ;;  %9997 = vmatpush3.bf16.msra.mxu0 %v10916_v15  ;;  %v7905_v45 = vpack.c.bf16 %v7615_v25, %v7608_v11  ;;  %v6679_v0 = vadd.f32 %v6678_v43, %v14937_v41  ;;  %v7403_v13 = vmul.f32 %v6452_v63, %v17950_v29  ;;  %v15521_v5 = vadd.f32 %v15239_v7, %v14962_v16 }
 0x80d   : > { %8404 = vmatprep.mubr.bf16.mxu0 %v7903_v38  ;;  %v6490_v22 = vadd.f32 %v6489_v51, %v14932_v18  ;;  %v7398_v44 = vmul.f32 %v15468_v8, %v17950_v29  ;;  %vm7179_vm10 = vcmp.gt.f32.partialorder %v6452_v63, 0.0  ;;  %vm7181_vm1 = vcmp.gt.f32.partialorder %v15481_v23, 0.0 }
 0x80e   : > { %8565 = vmatprep.mubr.bf16.mxu1 %v7905_v45  ;;  %v7451_v1 = vmul.f32 %v6486_v46, %v17950_v29  ;;  %v17963_v43 = vpack.c.bf16 %v15154_v39, %v15148_v17  ;;  %v7405_v7 = vmul.f32 %v15481_v23, %v17950_v29  ;;  %vm7227_vm6 = vcmp.gt.f32.partialorder %v6486_v46, 0.0 }
 0x80f   : > { %v7453_v37 = vmul.f32 %v6679_v0, %v17950_v29  ;;  %vm7234_vm12 = vcmp.gt.f32.partialorder %v6490_v22, 0.0  ;;  %v17964_v51 = vpack.c.bf16 %v15156_v48, %v15151_v56  ;;  %v15543_v17 = vadd.f32 %v15241_v60, %v15078_v62 }
 0x810   : > { %8405 = vmatmul.mubr.bf16.gmra.mrb[208].mxu0 %v17963_v43  ;;  %vm7229_vm13 = vcmp.gt.f32.partialorder %v6679_v0, 0.0  ;;  %v7458_v39 = vmul.f32 %v6490_v22, %v17950_v29  ;;  %v6683_v11 = vadd.f32 %v6682_v10, %v14937_v41  ;;  %vm7186_vm14 = vcmp.gt.f32.partialorder %v15521_v5, 0.0 }
 0x811   : > { %v6495_v15 = vpop.f32.mrb[104].mxu0  ;;  %v6688_v59 = vpop.f32.mrb[200].mxu1  ;;  %8566 = vmatmul.mubr.bf16.gmra.mrb[48].mxu1 %v17964_v51  ;;  %v7410_v56 = vmul.f32 %v15521_v5, %v17950_v29  ;;  %v6462_v48 = vadd.f32 %v15254_v9, %v14962_v16  ;;  %v15554_v45 = vadd.f32 %v15256_v20, %v15078_v62  ;;  %v7627_v60 = vsel %vm7179_vm10, %v6452_v63, %v7403_v13 }
 0x812   : > { %v15537_v19 = vpop.f32.mrb[105].mxu0  ;;  %v15539_v4 = vpop.f32.mrb[201].mxu1  ;;  %v15562_v10 = vsel %vm7227_vm6, %v6486_v46, %v7451_v1  ;;  %v15565_v2 = vsel %vm7234_vm12, %v6490_v22, %v7458_v39  ;;  %vm7236_vm2 = vcmp.gt.f32.partialorder %v6683_v11, 0.0  ;;  %v7460_v28 = vmul.f32 %v6683_v11, %v17950_v29 }
 0x813   : > { %v6499_v38 = vpop.f32.mrb[106].mxu0  ;;  %v6692_v25 = vpop.f32.mrb[202].mxu1  ;;  %v15569_v9 = vsel %vm7229_vm13, %v6679_v0, %v7453_v37  ;;  %v7620_v63 = vsel %vm7172_vm7, %v15447_v57, %v7396_v61  ;;  %v7622_v46 = vsel %vm7174_vm8, %v15468_v8, %v7398_v44  ;;  %v7629_v1 = vsel %vm7181_vm1, %v15481_v23, %v7405_v7 }
 0x814   : > { %v15557_v43 = vpop.f32.mrb[107].mxu0  ;;  %v15559_v51 = vpop.f32.mrb[203].mxu1  ;;  %17965 = vst [vmem:[#allocation58_spill] sm:$0xff] %v15569_v9  ;;  %v15579_v13 = vsel %vm7236_vm2, %v6683_v11, %v7460_v28  ;;  %v7910_v22 = vpack.c.bf16 %v7627_v60, %v7620_v63  ;;  %v6496_v0 = vadd.f32 %v6495_v15, %v14932_v18  ;;  %v15587_v37 = vadd.f32 %v15320_v6, %v14962_v16 }
 0x815   : > { %17966 = vst [vmem:[#allocation57_spill] sm:$0xff] %v15579_v13  ;;  %v7912_v61 = vpack.c.bf16 %v7629_v1, %v7622_v46  ;;  %v6689_v39 = vadd.f32 %v6688_v59, %v14937_v41  ;;  %vm7188_vm3 = vcmp.gt.f32.partialorder %v15543_v17, 0.0  ;;  %v7412_v8 = vmul.f32 %v15543_v17, %v17950_v29  ;;  %v17968_v46 = vld [vmem:[#allocation46_spill] sm:$0xff] }
 0x816   : > { %v7417_v28 = vmul.f32 %v6462_v48, %v17950_v29  ;;  %8412 = vmatprep.mubr.bf16.mxu0 %v7910_v22  ;;  %v6500_v23 = vadd.f32 %v6499_v38, %v14932_v18  ;;  %vm7193_vm4 = vcmp.gt.f32.partialorder %v6462_v48, 0.0  ;;  %vm7195_vm5 = vcmp.gt.f32.partialorder %v15554_v45, 0.0 }
 0x817   : > { %v7419_v6 = vmul.f32 %v15554_v45, %v17950_v29  ;;  %8573 = vmatprep.mubr.bf16.mxu1 %v7912_v61  ;;  %v7465_v59 = vmul.f32 %v6496_v0, %v17950_v29  ;;  %v17967_v7 = vpack.c.bf16 %v15221_v42, %v15219_v3  ;;  %v15610_v38 = vadd.f32 %v15322_v55, %v15078_v62 }
 0x818   : > { %vm7241_vm9 = vcmp.gt.f32.partialorder %v6496_v0, 0.0  ;;  %v7467_v63 = vmul.f32 %v6689_v39, %v17950_v29  ;;  %vm7248_vm7 = vcmp.gt.f32.partialorder %v6500_v23, 0.0  ;;  %v17969_v22 = vpack.c.bf16 %v15243_v24, %v17968_v46 }
 0x819   : > { %v6505_v44 = vpop.f32.mrb[108].mxu0  ;;  %v6698_v15 = vpop.f32.mrb[204].mxu1  ;;  %8413 = vmatmul.mubr.bf16.gmra.mrb[212].mxu0 %v17967_v7  ;;  %v15618_v3 = vmul.f32 %v15587_v37, %v17950_v29  ;;  %vm7243_vm11 = vcmp.gt.f32.partialorder %v6689_v39, 0.0  ;;  %v7472_v42 = vmul.f32 %v6500_v23, %v17950_v29  ;;  %v6693_v55 = vadd.f32 %v6692_v25, %v14937_v41 }
 0x81a   : > { %v15604_v11 = vpop.f32.mrb[109].mxu0  ;;  %v15606_v60 = vpop.f32.mrb[205].mxu1  ;;  %8574 = vmatmul.mubr.bf16.gmra.mrb[52].mxu1 %v17969_v22  ;;  %vm7200_vm8 = vcmp.gt.f32.partialorder %v15587_v37, 0.0  ;;  %v6472_v24 = vadd.f32 %v15341_v50, %v14962_v16  ;;  %v15631_v46 = vadd.f32 %v15343_v53, %v15078_v62  ;;  %v15635_v22 = vadd.f32 %v15400_v49, %v14962_v16 }
 0x81b   : > { %v6509_v1 = vpop.f32.mrb[110].mxu0  ;;  %v6702_v61 = vpop.f32.mrb[206].mxu1  ;;  %v7641_v20 = vsel %vm7193_vm4, %v6462_v48, %v7417_v28  ;;  %v15639_v25 = vsel %vm7241_vm9, %v6496_v0, %v7465_v59  ;;  %v15642_v9 = vsel %vm7248_vm7, %v6500_v23, %v7472_v42  ;;  %vm7250_vm10 = vcmp.gt.f32.partialorder %v6693_v55, 0.0 }
 0x81c   : > { %v15622_v7 = vpop.f32.mrb[111].mxu0  ;;  %v15624_v57 = vpop.f32.mrb[207].mxu1  ;;  %v7474_v13 = vmul.f32 %v6693_v55, %v17950_v29  ;;  %v15645_v50 = vsel %vm7243_vm11, %v6689_v39, %v7467_v63  ;;  %v7634_v49 = vsel %vm7186_vm14, %v15521_v5, %v7410_v56  ;;  %v7636_v48 = vsel %vm7188_vm3, %v15543_v17, %v7412_v8 }
 0x81d   : > { %17970 = vst [vmem:[#allocation61_spill] sm:$0xff] %v15645_v50  ;;  %v7917_v28 = vpack.c.bf16 %v7641_v20, %v7634_v49  ;;  %v7643_v23 = vsel %vm7195_vm5, %v15554_v45, %v7419_v6  ;;  %v6506_v39 = vadd.f32 %v6505_v44, %v14932_v18  ;;  %vm7202_vm1 = vcmp.gt.f32.partialorder %v15610_v38, 0.0 }
 0x81e   : > { %v15655_v0 = vsel %vm7250_vm10, %v6693_v55, %v7474_v13  ;;  %v7919_v63 = vpack.c.bf16 %v7643_v23, %v7636_v48  ;;  %v6699_v5 = vadd.f32 %v6698_v15, %v14937_v41  ;;  %v7426_v17 = vmul.f32 %v15610_v38, %v17950_v29  ;;  %v17971_v55 = vld [vmem:[#allocation49_spill] sm:$0xff] }
 0x81f   : > { %v7431_v20 = vmul.f32 %v6472_v24, %v17950_v29  ;;  %v15670_v45 = vadd.f32 %v15402_v33, %v15078_v62  ;;  %8420 = vmatprep.mubr.bf16.mxu0 %v7917_v28  ;;  %v6510_v13 = vadd.f32 %v6509_v1, %v14932_v18  ;;  %vm7207_vm6 = vcmp.gt.f32.partialorder %v6472_v24, 0.0 }
 0x820   : > { %vm7209_vm12 = vcmp.gt.f32.partialorder %v15631_v46, 0.0  ;;  %v7433_v15 = vmul.f32 %v15631_v46, %v17950_v29  ;;  %8581 = vmatprep.mubr.bf16.mxu1 %v7919_v63  ;;  %v7479_v6 = vmul.f32 %v6506_v39, %v17950_v29  ;;  %v17972_v33 = vpack.c.bf16 %v15317_v26, %v17971_v55 }
 0x821   : > { %v6515_v56 = vpop.f32.mrb[112].mxu0  ;;  %v6708_v42 = vpop.f32.mrb[208].mxu1  ;;  %v15686_v1 = vmul.f32 %v15635_v22, %v17950_v29  ;;  %vm7255_vm13 = vcmp.gt.f32.partialorder %v6506_v39, 0.0  ;;  %v7481_v28 = vmul.f32 %v6699_v5, %v17950_v29  ;;  %vm7262_vm14 = vcmp.gt.f32.partialorder %v6510_v13, 0.0 }
 0x822   : > { %v15673_v8 = vpop.f32.mrb[113].mxu0  ;;  %v15675_v44 = vpop.f32.mrb[209].mxu1  ;;  %8421 = vmatmul.mubr.bf16.gmra.mrb[216].mxu0 %v17972_v33  ;;  %v17973_v23 = vpack.c.bf16 %v15335_v31, %v15325_v54  ;;  %v6482_v26 = vadd.f32 %v15422_v40, %v14962_v16  ;;  %vm7257_vm2 = vcmp.gt.f32.partialorder %v6699_v5, 0.0  ;;  %v7486_v55 = vmul.f32 %v6510_v13, %v17950_v29 }
 0x823   : > { %v6519_v49 = vpop.f32.mrb[114].mxu0  ;;  %v6712_v48 = vpop.f32.mrb[210].mxu1  ;;  %v6703_v33 = vadd.f32 %v6702_v61, %v14937_v41  ;;  %vm7214_vm3 = vcmp.gt.f32.partialorder %v15635_v22, 0.0  ;;  %vm7216_vm4 = vcmp.gt.f32.partialorder %v15670_v45, 0.0  ;;  %v15704_v54 = vadd.f32 %v15424_v12, %v15078_v62 }
 0x824   : > { %8582 = vmatmul.mubr.bf16.gmra.mrb[56].mxu1 %v17973_v23  ;;  %v15692_v63 = vpop.f32.mrb[115].mxu0  ;;  %v15694_v59 = vpop.f32.mrb[211].mxu1  ;;  %v15708_v31 = vadd.f32 %v15472_v58, %v14962_v16  ;;  %v15712_v40 = vadd.f32 %v15474_v47, %v15078_v62  ;;  %v7655_v23 = vsel %vm7207_vm6, %v6472_v24, %v7431_v20  ;;  %v15716_v61 = vsel %vm7255_vm13, %v6506_v39, %v7479_v6 }
 0x825   : > { %v15718_v53 = vsel %vm7262_vm14, %v6510_v13, %v7486_v55  ;;  %vm7264_vm5 = vcmp.gt.f32.partialorder %v6703_v33, 0.0  ;;  %v7488_v50 = vmul.f32 %v6703_v33, %v17950_v29  ;;  %v15721_v12 = vsel %vm7257_vm2, %v6699_v5, %v7481_v28 }
 0x826   : > { %17974 = vst [vmem:[#allocation60_spill] sm:$0xff] %v15721_v12  ;;  %v7648_v47 = vsel %vm7200_vm8, %v15587_v37, %v15618_v3  ;;  %v7650_v24 = vsel %vm7202_vm1, %v15610_v38, %v7426_v17  ;;  %v7657_v5 = vsel %vm7209_vm12, %v15631_v46, %v7433_v15  ;;  %v6516_v13 = vadd.f32 %v6515_v56, %v14932_v18 }
 0x827   : > { %v15732_v39 = vsel %vm7264_vm5, %v6703_v33, %v7488_v50  ;;  %v7924_v20 = vpack.c.bf16 %v7655_v23, %v7648_v47  ;;  %v7440_v55 = vmul.f32 %v15670_v45, %v17950_v29  ;;  %v7926_v3 = vpack.c.bf16 %v7657_v5, %v7650_v24 }
 0x828   : > { %17975 = vst [vmem:[#allocation23_spill] sm:$0xff] %v15732_v39  ;;  %v6709_v38 = vadd.f32 %v6708_v42, %v14937_v41  ;;  %vm7221_vm9 = vcmp.gt.f32.partialorder %v6482_v26, 0.0  ;;  %v7445_v46 = vmul.f32 %v6482_v26, %v17950_v29  ;;  %v7447_v56 = vmul.f32 %v15704_v54, %v17950_v29 }
 0x829   : > { %v6525_v6 = vpop.f32.mrb[116].mxu0  ;;  %v6718_v28 = vpop.f32.mrb[212].mxu1  ;;  %8428 = vmatprep.mubr.bf16.mxu0 %v7924_v20  ;;  %v6520_v15 = vadd.f32 %v6519_v49, %v14932_v18  ;;  %vm7223_vm7 = vcmp.gt.f32.partialorder %v15704_v54, 0.0  ;;  %v15756_v42 = vmul.f32 %v15708_v31, %v17950_v29  ;;  %v15760_v47 = vmul.f32 %v15712_v40, %v17950_v29  ;;  %8589 = vmatprep.mubr.bf16.mxu1 %v7926_v3 }
 0x82a   : > { %v15743_v50 = vpop.f32.mrb[117].mxu0  ;;  %v15745_v17 = vpop.f32.mrb[213].mxu1  ;;  %v7493_v24 = vmul.f32 %v6516_v13, %v17950_v29  ;;  %v17976_v20 = vpack.c.bf16 %v15408_v30, %v15405_v52  ;;  %v15772_v37 = vadd.f32 %v15491_v34, %v14962_v16  ;;  %vm7269_vm11 = vcmp.gt.f32.partialorder %v6516_v13, 0.0 }
 0x82b   : > { %v6529_v33 = vpop.f32.mrb[118].mxu0  ;;  %v15751_v23 = vpop.f32.mrb[214].mxu1  ;;  %v7495_v58 = vmul.f32 %v6709_v38, %v17950_v29  ;;  %vm7276_vm8 = vcmp.gt.f32.partialorder %v6520_v15, 0.0  ;;  %v17977_v3 = vpack.c.bf16 %v15426_v36, %v15412_v35  ;;  %v15780_v52 = vadd.f32 %v15493_v21, %v15078_v62 }
 0x82c   : > { %8429 = vmatmul.mubr.bf16.gmra.mrb[220].mxu0 %v17976_v20  ;;  %v15766_v49 = vpop.f32.mrb[119].mxu0  ;;  %v15768_v5 = vpop.f32.mrb[215].mxu1  ;;  %vm7271_vm10 = vcmp.gt.f32.partialorder %v6709_v38, 0.0  ;;  %v7500_v30 = vmul.f32 %v6520_v15, %v17950_v29  ;;  %v6713_v20 = vadd.f32 %v6712_v48, %v14937_v41  ;;  %vm7228_vm1 = vcmp.gt.f32.partialorder %v15708_v31, 0.0 }
 0x82d   : > { %8590 = vmatmul.mubr.bf16.gmra.mrb[60].mxu1 %v17977_v3  ;;  %vm7230_vm6 = vcmp.gt.f32.partialorder %v15712_v40, 0.0  ;;  %v15788_v34 = vadd.f32 %v15537_v19, %v14962_v16  ;;  %v15792_v35 = vadd.f32 %v15539_v4, %v15078_v62  ;;  %v15796_v36 = vadd.f32 %v15557_v43, %v14962_v16 }
 0x82e   : > { %v7669_v21 = vsel %vm7221_vm9, %v6482_v26, %v7445_v46  ;;  %v15799_v3 = vsel %vm7269_vm11, %v6516_v13, %v7493_v24  ;;  %v15801_v48 = vsel %vm7276_vm8, %v6520_v15, %v7500_v30  ;;  %vm7278_vm12 = vcmp.gt.f32.partialorder %v6713_v20, 0.0 }
 0x82f   : > { %v7502_v12 = vmul.f32 %v6713_v20, %v17950_v29  ;;  %v15804_v39 = vsel %vm7271_vm10, %v6709_v38, %v7495_v58  ;;  %v7662_v4 = vsel %vm7214_vm3, %v15635_v22, %v15686_v1  ;;  %v7664_v43 = vsel %vm7216_vm4, %v15670_v45, %v7440_v55  ;;  %v17981_v22 = vld [vmem:[#allocation17_spill] sm:$0xff] }
 0x830   : > { %17978 = vst [vmem:[#allocation29_spill] sm:$0xff] %v15804_v39  ;;  %v7931_v15 = vpack.c.bf16 %v7669_v21, %v7662_v4  ;;  %v7671_v58 = vsel %vm7223_vm7, %v15704_v54, %v7447_v56  ;;  %v6526_v38 = vadd.f32 %v6525_v6, %v14932_v18  ;;  %vm7235_vm13 = vcmp.gt.f32.partialorder %v15772_v37, 0.0 }
 0x831   : > { %v6535_v26 = vpop.f32.mrb[120].mxu0  ;;  %v6728_v13 = vpop.f32.mrb[216].mxu1  ;;  %v15815_v46 = vsel %vm7278_vm12, %v6713_v20, %v7502_v12  ;;  %v7933_v45 = vpack.c.bf16 %v7671_v58, %v7664_v43  ;;  %v6719_v1 = vadd.f32 %v6718_v28, %v14937_v41  ;;  %v7459_v54 = vmul.f32 %v15772_v37, %v17950_v29 }
 0x832   : > { %17979 = vst [vmem:[#allocation33_spill] sm:$0xff] %v15815_v46  ;;  %v15821_v24 = vpop.f32.mrb[121].mxu0  ;;  %v15823_v30 = vpop.f32.mrb[217].mxu1  ;;  %v7461_v6 = vmul.f32 %v15780_v52, %v17950_v29  ;;  %v15837_v56 = vmul.f32 %v15788_v34, %v17950_v29  ;;  %8436 = vmatprep.mubr.bf16.mxu0 %v7931_v15  ;;  %v6530_v20 = vadd.f32 %v6529_v33, %v14932_v18  ;;  %vm7237_vm14 = vcmp.gt.f32.partialorder %v15780_v52, 0.0 }
 0x833   : > { %v6539_v12 = vpop.f32.mrb[122].mxu0  ;;  %v15829_v55 = vpop.f32.mrb[218].mxu1  ;;  %v15847_v28 = vmul.f32 %v15792_v35, %v17950_v29  ;;  %v15851_v43 = vadd.f32 %v15559_v51, %v15078_v62  ;;  %8597 = vmatprep.mubr.bf16.mxu1 %v7933_v45  ;;  %v7507_v58 = vmul.f32 %v6526_v38, %v17950_v29  ;;  %v17980_v33 = vpack.c.bf16 %v15488_v27, %v15485_v32 }
 0x834   : > { %v15840_v21 = vpop.f32.mrb[123].mxu0  ;;  %v15842_v4 = vpop.f32.mrb[219].mxu1  ;;  %vm7249_vm2 = vcmp.gt.f32.partialorder %v15796_v36, 0.0  ;;  %vm7283_vm3 = vcmp.gt.f32.partialorder %v6526_v38, 0.0  ;;  %v7509_v15 = vmul.f32 %v6719_v1, %v17950_v29  ;;  %vm7290_vm4 = vcmp.gt.f32.partialorder %v6530_v20, 0.0 }
 0x835   : > { %8437 = vmatmul.mubr.bf16.gmra.mrb[224].mxu0 %v17980_v33  ;;  %v17982_v19 = vpack.c.bf16 %v15506_v14, %v17981_v22  ;;  %v7473_v51 = vmul.f32 %v15796_v36, %v17950_v29  ;;  %vm7285_vm5 = vcmp.gt.f32.partialorder %v6719_v1, 0.0  ;;  %v7514_v45 = vmul.f32 %v6530_v20, %v17950_v29 }
 0x836   : > { %v6723_v27 = vadd.f32 %v15751_v23, %v14937_v41  ;;  %vm7242_vm9 = vcmp.gt.f32.partialorder %v15788_v34, 0.0  ;;  %vm7244_vm7 = vcmp.gt.f32.partialorder %v15792_v35, 0.0  ;;  %v15871_v32 = vadd.f32 %v15604_v11, %v14962_v16 }
 0x837   : > { %8598 = vmatmul.mubr.bf16.gmra.mrb[64].mxu1 %v17982_v19  ;;  %v15875_v14 = vadd.f32 %v15606_v60, %v15078_v62  ;;  %v15879_v19 = vadd.f32 %v15622_v7, %v14962_v16  ;;  %v7683_v23 = vsel %vm7235_vm13, %v15772_v37, %v7459_v54  ;;  %v15884_v22 = vsel %vm7283_vm3, %v6526_v38, %v7507_v58 }
 0x838   : > { %v15886_v33 = vsel %vm7290_vm4, %v6530_v20, %v7514_v45  ;;  %vm7292_vm11 = vcmp.gt.f32.partialorder %v6723_v27, 0.0  ;;  %v7516_v11 = vmul.f32 %v6723_v27, %v17950_v29  ;;  %v15893_v60 = vsel %vm7285_vm5, %v6719_v1, %v7509_v15 }
 0x839   : > { %v15889_v39 = vpop.f32.mrb[124].mxu0  ;;  %v15891_v46 = vpop.f32.mrb[220].mxu1  ;;  %17983 = vst [vmem:[#allocation64_spill] sm:$0xff] %v15893_v60  ;;  %v7676_v37 = vsel %vm7228_vm1, %v15708_v31, %v15756_v42  ;;  %v7678_v38 = vsel %vm7230_vm6, %v15712_v40, %v15760_v47  ;;  %v7685_v15 = vsel %vm7237_vm14, %v15780_v52, %v7461_v6  ;;  %v6536_v45 = vadd.f32 %v6535_v26, %v14932_v18  ;;  %v17986_v42 = vld [vmem:[#allocation57_spill] sm:$0xff] }
 0x83a   : > { %v15905_v54 = vpop.f32.mrb[125].mxu0  ;;  %v15907_v20 = vpop.f32.mrb[221].mxu1  ;;  %v15909_v58 = vsel %vm7292_vm11, %v6723_v27, %v7516_v11  ;;  %v7938_v1 = vpack.c.bf16 %v7683_v23, %v7676_v37  ;;  %v7475_v40 = vmul.f32 %v15851_v43, %v17950_v29  ;;  %v7940_v47 = vpack.c.bf16 %v7685_v15, %v7678_v38 }
 0x83b   : > { %17984 = vst [vmem:[#allocation27_spill] sm:$0xff] %v15909_v58  ;;  %v15915_v7 = vpop.f32.mrb[126].mxu0  ;;  %v15917_v31 = vpop.f32.mrb[222].mxu1  ;;  %v6729_v27 = vadd.f32 %v6728_v13, %v14937_v41  ;;  %v15930_v52 = vmul.f32 %v15871_v32, %v17950_v29  ;;  %v15934_v26 = vmul.f32 %v15875_v14, %v17950_v29  ;;  %v15938_v6 = vadd.f32 %v15624_v57, %v15078_v62 }
 0x83c   : > { %v15924_v23 = vpop.f32.mrb[127].mxu0  ;;  %v15926_v11 = vpop.f32.mrb[223].mxu1  ;;  %8444 = vmatprep.mubr.bf16.mxu0 %v7938_v1  ;;  %v6540_v37 = vadd.f32 %v6539_v12, %v14932_v18  ;;  %vm7251_vm8 = vcmp.gt.f32.partialorder %v15851_v43, 0.0  ;;  %v15944_v13 = vmul.f32 %v15879_v19, %v17950_v29  ;;  %v15948_v38 = vadd.f32 %v15673_v8, %v14962_v16  ;;  %8605 = vmatprep.mubr.bf16.mxu1 %v7940_v47  ;;  %v17987_v8 = vld [vmem:[#allocation58_spill] sm:$0xff] }
 0x83d   : > { %v7521_v15 = vmul.f32 %v6536_v45, %v17950_v29  ;;  %v17985_v57 = vpack.c.bf16 %v15565_v2, %v15562_v10  ;;  %vm7263_vm10 = vcmp.gt.f32.partialorder %v15879_v19, 0.0  ;;  %v15957_v12 = vadd.f32 %v15675_v44, %v15078_v62 }
 0x83e   : > { %vm7297_vm1 = vcmp.gt.f32.partialorder %v6536_v45, 0.0  ;;  %v7523_v1 = vmul.f32 %v6729_v27, %v17950_v29  ;;  %vm7304_vm6 = vcmp.gt.f32.partialorder %v6540_v37, 0.0  ;;  %v17988_v60 = vpack.c.bf16 %v17986_v42, %v17987_v8 }
 0x83f   : > { %8445 = vmatmul.mubr.bf16.gmra.mrb[228].mxu0 %v17985_v57  ;;  %v15965_v47 = vadd.f32 %v15692_v63, %v14962_v16  ;;  %vm7299_vm12 = vcmp.gt.f32.partialorder %v6729_v27, 0.0  ;;  %v7528_v2 = vmul.f32 %v6540_v37, %v17950_v29  ;;  %v6733_v10 = vadd.f32 %v15829_v55, %v14937_v41 }
 0x840   : > { %8606 = vmatmul.mubr.bf16.gmra.mrb[68].mxu1 %v17988_v60  ;;  %vm7256_vm13 = vcmp.gt.f32.partialorder %v15871_v32, 0.0  ;;  %vm7258_vm14 = vcmp.gt.f32.partialorder %v15875_v14, 0.0  ;;  %v15974_v44 = vadd.f32 %v15694_v59, %v15078_v62  ;;  %v15978_v60 = vadd.f32 %v15743_v50, %v14962_v16 }
 0x841   : > { %v15982_v63 = vadd.f32 %v15745_v17, %v15078_v62  ;;  %v7697_v55 = vsel %vm7249_vm2, %v15796_v36, %v7473_v51  ;;  %v15987_v42 = vpop.f32.mrb[128].mxu0  ;;  %v15989_v57 = vpop.f32.mrb[224].mxu1  ;;  %vm7265_vm3 = vcmp.gt.f32.partialorder %v15938_v6, 0.0  ;;  %v15993_v59 = vsel %vm7297_vm1, %v6536_v45, %v7521_v15 }
 0x842   : > { %17989 = vst [vmem:[#allocation66_spill] sm:$0xff] %v15993_v59  ;;  %v15996_v50 = vsel %vm7304_vm6, %v6540_v37, %v7528_v2  ;;  %vm7306_vm4 = vcmp.gt.f32.partialorder %v6733_v10, 0.0  ;;  %v7530_v17 = vmul.f32 %v6733_v10, %v17950_v29  ;;  %v15999_v8 = vpop.f32.mrb[129].mxu0  ;;  %v6976_v58 = vpop.f32.mrb[225].mxu1  ;;  %v16002_v36 = vsel %vm7299_vm12, %v6729_v27, %v7523_v1 }
 0x843   : > { %17990 = vst [vmem:[#allocation67_spill] sm:$0xff] %v15996_v50  ;;  %17991 = vst [vmem:[#allocation25_spill] sm:$0xff] %v16002_v36  ;;  %v7690_v45 = vsel %vm7242_vm9, %v15788_v34, %v15837_v56  ;;  %v7692_v37 = vsel %vm7244_vm7, %v15792_v35, %v15847_v28  ;;  %v16014_v15 = vpop.f32.mrb[130].mxu0  ;;  %v16016_v2 = vpop.f32.mrb[226].mxu1  ;;  %v7699_v1 = vsel %vm7251_vm8, %v15851_v43, %v7475_v40  ;;  %vm7277_vm2 = vcmp.gt.f32.partialorder %v15965_v47, 0.0 }
 0x844   : > { %v16018_v58 = vsel %vm7306_vm4, %v6733_v10, %v7530_v17  ;;  %v7945_v27 = vpack.c.bf16 %v7697_v55, %v7690_v45  ;;  %v6546_v51 = vadd.f32 %v15889_v39, %v14932_v18  ;;  %v16025_v34 = vpop.f32.mrb[131].mxu0  ;;  %v6979_v56 = vpop.f32.mrb[227].mxu1  ;;  %v7489_v35 = vmul.f32 %v15938_v6, %v17950_v29 }
 0x845   : > { %17992 = vst [vmem:[#allocation26_spill] sm:$0xff] %v16018_v58  ;;  %v7947_v59 = vpack.c.bf16 %v7699_v1, %v7692_v37  ;;  %v6739_v10 = vadd.f32 %v15891_v46, %v14937_v41  ;;  %v16035_v55 = vmul.f32 %v15948_v38, %v17950_v29  ;;  %v16039_v39 = vmul.f32 %v15957_v12, %v17950_v29 }
 0x846   : > { %v16043_v43 = vmul.f32 %v15965_v47, %v17950_v29  ;;  %8452 = vmatprep.mubr.bf16.mxu0 %v7945_v27  ;;  %v6550_v40 = vadd.f32 %v15915_v7, %v14932_v18  ;;  %v16050_v46 = vmul.f32 %v15974_v44, %v17950_v29  ;;  %v16054_v17 = vmul.f32 %v15978_v60, %v17950_v29  ;;  %v17994_v27 = vld [vmem:[#allocation61_spill] sm:$0xff] }
 0x847   : > { %8613 = vmatprep.mubr.bf16.mxu1 %v7947_v59  ;;  %v7535_v45 = vmul.f32 %v6546_v51, %v17950_v29  ;;  %v17993_v37 = vpack.c.bf16 %v15642_v9, %v15639_v25  ;;  %v16062_v18 = vmul.f32 %v15982_v63, %v17950_v29  ;;  %vm7311_vm5 = vcmp.gt.f32.partialorder %v6546_v51, 0.0 }
 0x848   : > { %v7537_v7 = vmul.f32 %v6739_v10, %v17950_v29  ;;  %vm7318_vm9 = vcmp.gt.f32.partialorder %v6550_v40, 0.0  ;;  %v17995_v1 = vpack.c.bf16 %v15655_v0, %v17994_v27  ;;  %vm7270_vm7 = vcmp.gt.f32.partialorder %v15948_v38, 0.0 }
 0x849   : > { %8453 = vmatmul.mubr.bf16.gmra.mrb[232].mxu0 %v17993_v37  ;;  %v16071_v59 = vadd.f32 %v15766_v49, %v14962_v16  ;;  %vm7313_vm11 = vcmp.gt.f32.partialorder %v6739_v10, 0.0  ;;  %v7542_v9 = vmul.f32 %v6550_v40, %v17950_v29  ;;  %v6743_v25 = vadd.f32 %v15917_v31, %v14937_v41  ;;  %v16076_v56 = vpop.f32.mrb[132].mxu0  ;;  %v16078_v37 = vpop.f32.mrb[228].mxu1 }
 0x84a   : > { %8614 = vmatmul.mubr.bf16.gmra.mrb[72].mxu1 %v17995_v1  ;;  %vm7272_vm8 = vcmp.gt.f32.partialorder %v15957_v12, 0.0  ;;  %vm7279_vm1 = vcmp.gt.f32.partialorder %v15974_v44, 0.0  ;;  %v16084_v0 = vadd.f32 %v15768_v5, %v15078_v62  ;;  %v16088_v49 = vadd.f32 %v15821_v24, %v14962_v16  ;;  %v16098_v31 = vpop.f32.mrb[133].mxu0  ;;  %v6984_v1 = vpop.f32.mrb[229].mxu1 }
 0x84b   : > { %v16092_v27 = vadd.f32 %v15823_v30, %v15078_v62  ;;  %v7711_v41 = vsel %vm7263_vm10, %v15879_v19, %v15944_v13  ;;  %v16101_v28 = vsel %vm7311_vm5, %v6546_v51, %v7535_v45  ;;  %v16104_v5 = vsel %vm7318_vm9, %v6550_v40, %v7542_v9  ;;  %v16107_v36 = vpop.f32.mrb[134].mxu0  ;;  %v16109_v30 = vpop.f32.mrb[230].mxu1  ;;  %v16134_v1 = vld [vmem:[%s17446_s15] sm:$0x7f] }
 0x84c   : > { %17996 = vst [vmem:[#allocation63_spill] sm:$0xff] %v16101_v28  ;;  %17997 = vst [vmem:[#allocation62_spill] sm:$0xff] %v16104_v5  ;;  %vm7320_vm6 = vcmp.gt.f32.partialorder %v6743_v25, 0.0  ;;  %v7544_v24 = vmul.f32 %v6743_v25, %v17950_v29  ;;  %v16112_v58 = vsel %vm7313_vm11, %v6739_v10, %v7537_v7  ;;  %v7704_v13 = vsel %vm7256_vm13, %v15871_v32, %v15930_v52  ;;  %v16124_v40 = vpop.f32.mrb[135].mxu0  ;;  %v6987_v45 = vpop.f32.mrb[231].mxu1  ;;  %v18000_v32 = vld [vmem:[#allocation3_spill] sm:$0xff] }
 0x84d   : > { %17998 = vst [vmem:[#allocation59_spill] sm:$0xff] %v16112_v58  ;;  %v7706_v51 = vsel %vm7258_vm14, %v15875_v14, %v15934_v26  ;;  %v7952_v10 = vpack.c.bf16 %v7711_v41, %v7704_v13  ;;  %v7713_v7 = vsel %vm7265_vm3, %v15938_v6, %v7489_v35  ;;  %v18001_v52 = vsub.s32 4, %v18000_v32 }
 0x84e   : > { %v16126_v9 = vsel %vm7320_vm6, %v6743_v25, %v7544_v24  ;;  %v16143_v14 = vmul.f32 %v16071_v59, %v17950_v29  ;;  %v7954_v25 = vpack.c.bf16 %v7713_v7, %v7706_v51  ;;  %v18002_v6 = vsub.s32 6, %v18000_v32 }
 0x84f   : > { %17999 = vst [vmem:[#allocation22_spill] sm:$0xff] %v16126_v9  ;;  %v16139_v19 = vrot.slane %v16134_v1, %v18001_v52  ;;  %v16154_v41 = vmul.f32 %v16084_v0, %v17950_v29  ;;  %v16158_v24 = vmul.f32 %v16088_v49, %v17950_v29  ;;  %8460 = vmatprep.mubr.bf16.mxu0 %v7952_v10  ;;  %vm7284_vm10 = vcmp.gt.f32.partialorder %v15978_v60, 0.0 }
 0x850   : > { %v16150_v35 = vrot.slane %v16134_v1, %v18002_v6  ;;  %v16167_v45 = vmul.f32 %v16092_v27, %v17950_v29  ;;  %v16171_v7 = vadd.f32 %v15840_v21, %v14962_v16  ;;  %8621 = vmatprep.mubr.bf16.mxu1 %v7954_v25  ;;  %vm7286_vm12 = vcmp.gt.f32.partialorder %v15982_v63, 0.0  ;;  %v18004_v25 = vld [vmem:[#allocation23_spill] sm:$0xff]  ;;  %v18005_v6 = vld [vmem:[#allocation60_spill] sm:$0xff] }
 0x851   : > { %v6782_v13 = vadd.f32 %v15987_v42, %v16139_v19  ;;  %v6786_v51 = vadd.f32 %v16014_v15, %v16139_v19  ;;  %vm7291_vm13 = vcmp.gt.f32.partialorder %v16071_v59, 0.0  ;;  %v18003_v21 = vpack.c.bf16 %v15718_v53, %v15716_v61  ;;  %v16187_v26 = vpop.f32.mrb[136].mxu0 }
 0x852   : > { %v6975_v10 = vadd.f32 %v15989_v57, %v16150_v35  ;;  %v6978_v42 = vadd.f32 %v16016_v2, %v16150_v35  ;;  %v18006_v57 = vpack.c.bf16 %v18004_v25, %v18005_v6  ;;  %v16189_v2 = vpop.f32.mrb[232].mxu1  ;;  %vm7293_vm4 = vcmp.gt.f32.partialorder %v16084_v0, 0.0  ;;  %v16201_v61 = vpop.f32.mrb[137].mxu0 }
 0x853   : > { %vm7105_vm14 = vcmp.gt.f32.partialorder %v6782_v13, 0.0  ;;  %v7329_v15 = vmul.f32 %v6782_v13, %v17950_v29  ;;  %vm7112_vm3 = vcmp.gt.f32.partialorder %v6786_v51, 0.0  ;;  %v7336_v52 = vmul.f32 %v6786_v51, %v17950_v29  ;;  %8461 = vmatmul.mubr.bf16.gmra.mrb[236].mxu0 %v18003_v21  ;;  %v6992_v21 = vpop.f32.mrb[233].mxu1 }
 0x854   : > { %8622 = vmatmul.mubr.bf16.gmra.mrb[76].mxu1 %v18006_v57  ;;  %v16194_v58 = vadd.f32 %v15842_v4, %v15078_v62  ;;  %vm7107_vm5 = vcmp.gt.f32.partialorder %v6975_v10, 0.0  ;;  %v7331_v9 = vmul.f32 %v6975_v10, %v17950_v29  ;;  %v7725_v53 = vsel %vm7277_vm2, %v15965_v47, %v16043_v43  ;;  %v16208_v4 = vpop.f32.mrb[138].mxu0  ;;  %v16210_v28 = vpop.f32.mrb[234].mxu1 }
 0x855   : > { %v16203_v25 = vsel %vm7105_vm14, %v6782_v13, %v7329_v15  ;;  %v16205_v6 = vsel %vm7112_vm3, %v6786_v51, %v7336_v52  ;;  %vm7114_vm9 = vcmp.gt.f32.partialorder %v6978_v42, 0.0  ;;  %v7338_v57 = vmul.f32 %v6978_v42, %v17950_v29  ;;  %v16224_v13 = vpop.f32.mrb[139].mxu0  ;;  %v6995_v51 = vpop.f32.mrb[235].mxu1 }
 0x856   : > { %v16214_v5 = vmul.f32 %v16171_v7, %v17950_v29  ;;  %v16216_v50 = vsel %vm7107_vm5, %v6975_v10, %v7331_v9  ;;  %v7878_v47 = vpack.c.bf16 %v16205_v6, %v16203_v25  ;;  %v7718_v43 = vsel %vm7270_vm7, %v15948_v38, %v16035_v55 }
 0x857   : > { %v16226_v15 = vsel %vm7114_vm9, %v6978_v42, %v7338_v57  ;;  %v7959_v52 = vpack.c.bf16 %v7725_v53, %v7718_v43  ;;  %v7720_v9 = vsel %vm7272_vm8, %v15957_v12, %v16039_v39  ;;  %v7727_v10 = vsel %vm7279_vm1, %v15974_v44, %v16050_v46  ;;  %v18008_v57 = vld [vmem:[#allocation33_spill] sm:$0xff] }
 0x858   : > { %v7880_v21 = vpack.c.bf16 %v16226_v15, %v16216_v50  ;;  %v7961_v38 = vpack.c.bf16 %v7727_v10, %v7720_v9  ;;  %v6792_v55 = vadd.f32 %v16076_v56, %v16139_v19  ;;  %v6983_v42 = vadd.f32 %v16078_v37, %v16150_v35  ;;  %v18009_v43 = vld [vmem:[#allocation29_spill] sm:$0xff] }
 0x859   : > { %v16244_v53 = vmul.f32 %v16194_v58, %v17950_v29  ;;  %v16248_v12 = vadd.f32 %v15905_v54, %v14962_v16  ;;  %8468 = vmatprep.mubr.bf16.mxu0 %v7959_v52  ;;  %v6796_v44 = vadd.f32 %v16107_v36, %v16139_v19  ;;  %v6986_v39 = vadd.f32 %v16109_v30, %v16150_v35  ;;  %v16275_v52 = vpop.f32.mrb[140].mxu0  ;;  %v16277_v9 = vpop.f32.mrb[236].mxu1 }
 0x85a   : > { %vm7298_vm2 = vcmp.gt.f32.partialorder %v16088_v49, 0.0  ;;  %vm7300_vm7 = vcmp.gt.f32.partialorder %v16092_v27, 0.0  ;;  %vm7305_vm11 = vcmp.gt.f32.partialorder %v16171_v7, 0.0  ;;  %8629 = vmatprep.mubr.bf16.mxu1 %v7961_v38  ;;  %vm7119_vm8 = vcmp.gt.f32.partialorder %v6792_v55, 0.0  ;;  %v7000_v10 = vpop.f32.mrb[237].mxu1 }
 0x85b   : > { %v7343_v46 = vmul.f32 %v6792_v55, %v17950_v29  ;;  %vm7121_vm1 = vcmp.gt.f32.partialorder %v6983_v42, 0.0  ;;  %v7345_v54 = vmul.f32 %v6983_v42, %v17950_v29  ;;  %vm7307_vm6 = vcmp.gt.f32.partialorder %v16194_v58, 0.0 }
 0x85c   : > { %v16262_v36 = vadd.f32 %v15907_v20, %v15078_v62  ;;  %v16266_v56 = vadd.f32 %v15924_v23, %v14962_v16  ;;  %vm7126_vm14 = vcmp.gt.f32.partialorder %v6796_v44, 0.0  ;;  %v7350_v37 = vmul.f32 %v6796_v44, %v17950_v29 }
 0x85d   : > { %v18007_v30 = vpack.c.bf16 %v15801_v48, %v15799_v3  ;;  %v18010_v51 = vpack.c.bf16 %v18008_v57, %v18009_v43  ;;  %v16281_v20 = vadd.f32 %v15926_v11, %v15078_v62  ;;  %v18011_v16 = vsub.s32 5, %v18000_v32  ;;  %v16289_v48 = vpop.f32.mrb[141].mxu0 }
 0x85e   : > { %vm7128_vm3 = vcmp.gt.f32.partialorder %v6986_v39, 0.0  ;;  %v7352_v3 = vmul.f32 %v6986_v39, %v17950_v29  ;;  %v16292_v38 = vsel %vm7119_vm8, %v6792_v55, %v7343_v46  ;;  %v16297_v57 = vsel %vm7126_vm14, %v6796_v44, %v7350_v37  ;;  %v6815_v11 = vpop.f32.mrb[142].mxu0 }
 0x85f   : > { %8469 = vmatmul.mubr.bf16.gmra.mrb[240].mxu0 %v18007_v30  ;;  %8630 = vmatmul.mubr.bf16.gmra.mrb[80].mxu1 %v18010_v51  ;;  %v16286_v23 = vrot.slane %v16134_v1, %v18011_v16  ;;  %v16295_v30 = vsel %vm7121_vm1, %v6983_v42, %v7345_v54  ;;  %v7732_v62 = vsel %vm7284_vm10, %v15978_v60, %v16054_v17  ;;  %v7001_v1 = vpop.f32.mrb[238].mxu1  ;;  %v16315_v44 = vpop.f32.mrb[143].mxu0  ;;  %vm7312_vm10 = vcmp.gt.f32.partialorder %v16248_v12, 0.0  ;;  %v18013_v16 = vld [vmem:[#allocation27_spill] sm:$0xff] }
 0x860   : > { %v16305_v43 = vsel %vm7128_vm3, %v6986_v39, %v7352_v3  ;;  %v7739_v55 = vsel %vm7291_vm13, %v16071_v59, %v16143_v14  ;;  %v7734_v42 = vsel %vm7286_vm12, %v15982_v63, %v16062_v18  ;;  %v7003_v60 = vpop.f32.mrb[239].mxu1  ;;  %v7741_v39 = vsel %vm7293_vm4, %v16084_v0, %v16154_v41  ;;  %v18014_v3 = vld [vmem:[#allocation64_spill] sm:$0xff] }
 0x861   : > { %v7887_v17 = vpack.c.bf16 %v16305_v43, %v16295_v30  ;;  %v7966_v46 = vpack.c.bf16 %v7739_v55, %v7732_v62  ;;  %v6802_v59 = vadd.f32 %v16187_v26, %v16139_v19  ;;  %v16327_v14 = vmul.f32 %v16248_v12, %v17950_v29  ;;  %v16360_v62 = vpop.f32.mrb[144].mxu0  ;;  %v16362_v55 = vpop.f32.mrb[240].mxu1 }
 0x862   : > { %v7968_v63 = vpack.c.bf16 %v7741_v39, %v7734_v42  ;;  %v6991_v18 = vadd.f32 %v16189_v2, %v16150_v35  ;;  %v6806_v54 = vadd.f32 %v16208_v4, %v16139_v19  ;;  %v16336_v37 = vmul.f32 %v16262_v36, %v17950_v29 }
 0x863   : > { %8476 = vmatprep.mubr.bf16.mxu0 %v7966_v46  ;;  %vm7133_vm12 = vcmp.gt.f32.partialorder %v6802_v59, 0.0  ;;  %v7357_v0 = vmul.f32 %v6802_v59, %v17950_v29  ;;  %v6994_v26 = vadd.f32 %v16210_v28, %v16150_v35  ;;  %vm7314_vm13 = vcmp.gt.f32.partialorder %v16262_v36, 0.0  ;;  %v7008_v46 = vpop.f32.mrb[241].mxu1 }
 0x864   : > { %vm7319_vm4 = vcmp.gt.f32.partialorder %v16266_v56, 0.0  ;;  %v16345_v41 = vmul.f32 %v16266_v56, %v17950_v29  ;;  %8637 = vmatprep.mubr.bf16.mxu1 %v7968_v63  ;;  %vm7135_vm5 = vcmp.gt.f32.partialorder %v6991_v18, 0.0  ;;  %v7359_v2 = vmul.f32 %v6991_v18, %v17950_v29  ;;  %v18016_v46 = vld [vmem:[#allocation67_spill] sm:$0xff] }
 0x865   : > { %vm7321_vm9 = vcmp.gt.f32.partialorder %v16281_v20, 0.0  ;;  %v16351_v4 = vadd.f32 %v15999_v8, %v16286_v23  ;;  %vm7140_vm8 = vcmp.gt.f32.partialorder %v6806_v54, 0.0  ;;  %v7364_v28 = vmul.f32 %v6806_v54, %v17950_v29 }
 0x866   : > { %vm7142_vm1 = vcmp.gt.f32.partialorder %v6994_v26, 0.0  ;;  %v18012_v51 = vpack.c.bf16 %v15886_v33, %v15884_v22  ;;  %v18015_v10 = vpack.c.bf16 %v18013_v16, %v18014_v3  ;;  %v16366_v8 = vadd.f32 %v16025_v34, %v16286_v23  ;;  %v16374_v33 = vpop.f32.mrb[145].mxu0 }
 0x867   : > { %v16369_v42 = vsel %vm7133_vm12, %v6802_v59, %v7357_v0  ;;  %v16371_v60 = vsel %vm7135_vm5, %v6991_v18, %v7359_v2  ;;  %v7366_v22 = vmul.f32 %v6994_v26, %v17950_v29  ;;  %v16376_v39 = vsel %vm7140_vm8, %v6806_v54, %v7364_v28  ;;  %v6825_v18 = vpop.f32.mrb[146].mxu0  ;;  %v7009_v0 = vpop.f32.mrb[242].mxu1 }
 0x868   : > { %8477 = vmatmul.mubr.bf16.gmra.mrb[244].mxu0 %v18012_v51  ;;  %8638 = vmatmul.mubr.bf16.gmra.mrb[84].mxu1 %v18015_v10  ;;  %v7746_v63 = vsel %vm7298_vm2, %v16088_v49, %v16158_v24  ;;  %v7753_v34 = vsel %vm7305_vm11, %v16171_v7, %v16214_v5  ;;  %v7748_v59 = vsel %vm7300_vm7, %v16092_v27, %v16167_v45  ;;  %v16399_v5 = vpop.f32.mrb[147].mxu0  ;;  %v7011_v24 = vpop.f32.mrb[243].mxu1  ;;  %vm7106_vm2 = vcmp.gt.f32.partialorder %v16351_v4, 0.0 }
 0x869   : > { %v16393_v2 = vsel %vm7142_vm1, %v6994_v26, %v7366_v22  ;;  %v7973_v28 = vpack.c.bf16 %v7753_v34, %v7746_v63  ;;  %v7755_v49 = vsel %vm7307_vm6, %v16194_v58, %v16244_v53  ;;  %v6812_v7 = vadd.f32 %v16275_v52, %v16139_v19  ;;  %v18017_v63 = vld [vmem:[#allocation66_spill] sm:$0xff]  ;;  %v6831_v24 = vpop.f32.mrb[148].mxu0 }
 0x86a   : > { %v7894_v27 = vpack.c.bf16 %v16393_v2, %v16371_v60  ;;  %v7975_v45 = vpack.c.bf16 %v7755_v49, %v7748_v59  ;;  %v6999_v26 = vadd.f32 %v16277_v9, %v16150_v35  ;;  %v7545_v51 = vmul.f32 %v16281_v20, %v17950_v29  ;;  %v18019_v59 = vld [vmem:[#allocation26_spill] sm:$0xff] }
 0x86b   : > { %v16411_v16 = vmul.f32 %v16351_v4, %v17950_v29  ;;  %8484 = vmatprep.mubr.bf16.mxu0 %v7973_v28  ;;  %v6816_v58 = vadd.f32 %v6815_v11, %v16139_v19  ;;  %v7002_v53 = vadd.f32 %v7001_v1, %v16150_v35  ;;  %vm7147_vm7 = vcmp.gt.f32.partialorder %v6812_v7, 0.0  ;;  %v18020_v28 = vld [vmem:[#allocation25_spill] sm:$0xff] }
 0x86c   : > { %8645 = vmatprep.mubr.bf16.mxu1 %v7975_v45  ;;  %v7371_v52 = vmul.f32 %v6812_v7, %v17950_v29  ;;  %vm7149_vm11 = vcmp.gt.f32.partialorder %v6999_v26, 0.0  ;;  %v7373_v9 = vmul.f32 %v6999_v26, %v17950_v29  ;;  %vm7113_vm6 = vcmp.gt.f32.partialorder %v16366_v8, 0.0  ;;  %v7014_v45 = vpop.f32.mrb[244].mxu1 }
 0x86d   : > { %v7337_v3 = vmul.f32 %v16366_v8, %v17950_v29  ;;  %vm7154_vm14 = vcmp.gt.f32.partialorder %v6816_v58, 0.0  ;;  %v7378_v10 = vmul.f32 %v6816_v58, %v17950_v29  ;;  %v16424_v11 = vadd.f32 %v16098_v31, %v16286_v23 }
 0x86e   : > { %v16428_v1 = vadd.f32 %v16124_v40, %v16286_v23  ;;  %vm7156_vm3 = vcmp.gt.f32.partialorder %v7002_v53, 0.0  ;;  %v7380_v22 = vmul.f32 %v7002_v53, %v17950_v29  ;;  %v18018_v34 = vpack.c.bf16 %v18016_v46, %v18017_v63  ;;  %v16448_v46 = vpop.f32.mrb[149].mxu0  ;;  %v7016_v63 = vpop.f32.mrb[245].mxu1 }
 0x86f   : > { %v18021_v49 = vpack.c.bf16 %v18019_v59, %v18020_v28  ;;  %v16438_v31 = vsel %vm7147_vm7, %v6812_v7, %v7371_v52  ;;  %v16440_v54 = vsel %vm7149_vm11, %v6999_v26, %v7373_v9  ;;  %v16442_v40 = vsel %vm7154_vm14, %v6816_v58, %v7378_v10  ;;  %v6835_v58 = vpop.f32.mrb[150].mxu0  ;;  %v18023_v63 = vld [vmem:[#allocation63_spill] sm:$0xff] }
 0x870   : > { %8485 = vmatmul.mubr.bf16.gmra.mrb[248].mxu0 %v18018_v34  ;;  %v7760_v32 = vsel %vm7312_vm10, %v16248_v12, %v16327_v14  ;;  %v7899_v34 = vpack.c.bf16 %v16442_v40, %v16438_v31  ;;  %v16452_v59 = vsel %vm7156_vm3, %v7002_v53, %v7380_v22  ;;  %v7767_v7 = vsel %vm7319_vm4, %v16266_v56, %v16345_v41  ;;  %v7017_v12 = vpop.f32.mrb[246].mxu1  ;;  %v16469_v10 = vpop.f32.mrb[151].mxu0 }
 0x871   : > { %8646 = vmatmul.mubr.bf16.gmra.mrb[88].mxu1 %v18021_v49  ;;  %v7762_v26 = vsel %vm7314_vm13, %v16262_v36, %v16336_v37  ;;  %v7901_v14 = vpack.c.bf16 %v16452_v59, %v16440_v54  ;;  %v7980_v52 = vpack.c.bf16 %v7767_v7, %v7760_v32  ;;  %v7769_v53 = vsel %vm7321_vm9, %v16281_v20, %v7545_v51  ;;  %v7019_v56 = vpop.f32.mrb[247].mxu1  ;;  %v18022_v49 = vld [vmem:[#allocation62_spill] sm:$0xff] }
 0x872   : > { %v6822_v9 = vadd.f32 %v16360_v62, %v16139_v19  ;;  %vm7120_vm10 = vcmp.gt.f32.partialorder %v16424_v11, 0.0  ;;  %v7982_v41 = vpack.c.bf16 %v7769_v53, %v7762_v26  ;;  %v7007_v36 = vadd.f32 %v16362_v55, %v16150_v35  ;;  %v18025_v26 = vld [vmem:[#allocation22_spill] sm:$0xff]  ;;  %v6841_v53 = vpop.f32.mrb[152].mxu0  ;;  %v7022_v56 = vpop.f32.mrb[248].mxu1 }
 0x873   : > { %v6826_v37 = vadd.f32 %v6825_v18, %v16139_v19  ;;  %v7344_v32 = vmul.f32 %v16424_v11, %v17950_v29  ;;  %8492 = vmatprep.mubr.bf16.mxu0 %v7980_v52  ;;  %v7010_v62 = vadd.f32 %v7009_v0, %v16150_v35  ;;  %v16481_v51 = vadd.f32 %v16201_v61, %v16286_v23  ;;  %v18026_v52 = vld [vmem:[#allocation59_spill] sm:$0xff] }
 0x874   : > { %vm7161_vm12 = vcmp.gt.f32.partialorder %v6822_v9, 0.0  ;;  %v7385_v20 = vmul.f32 %v6822_v9, %v17950_v29  ;;  %v16485_v22 = vadd.f32 %v16224_v13, %v16286_v23  ;;  %8653 = vmatprep.mubr.bf16.mxu1 %v7982_v41  ;;  %vm7163_vm13 = vcmp.gt.f32.partialorder %v7007_v36, 0.0 }
 0x875   : > { %v7387_v55 = vmul.f32 %v7007_v36, %v17950_v29  ;;  %v16490_v18 = vadd.f32 %v16289_v48, %v16286_v23  ;;  %vm7168_vm4 = vcmp.gt.f32.partialorder %v6826_v37, 0.0  ;;  %v7392_v28 = vmul.f32 %v6826_v37, %v17950_v29 }
 0x876   : > { %vm7170_vm5 = vcmp.gt.f32.partialorder %v7010_v62, 0.0  ;;  %vm7127_vm9 = vcmp.gt.f32.partialorder %v16428_v1, 0.0  ;;  %v16494_v61 = vsel %vm7161_vm12, %v6822_v9, %v7385_v20  ;;  %v7394_v13 = vmul.f32 %v7010_v62, %v17950_v29 }
 0x877   : > { %v16496_v0 = vsel %vm7163_vm13, %v7007_v36, %v7387_v55  ;;  %v18024_v7 = vpack.c.bf16 %v18022_v49, %v18023_v63  ;;  %v18027_v48 = vpack.c.bf16 %v18025_v26, %v18026_v52  ;;  %v16505_v41 = vsel %vm7168_vm4, %v6826_v37, %v7392_v28  ;;  %v16519_v55 = vpop.f32.mrb[153].mxu0  ;;  %v7024_v37 = vpop.f32.mrb[249].mxu1 }
 0x878   : > { %v7554_v9 = vsel %vm7106_vm2, %v16351_v4, %v16411_v16  ;;  %v7561_v36 = vsel %vm7113_vm6, %v16366_v8, %v7337_v3  ;;  %v6832_v20 = vadd.f32 %v6831_v24, %v16139_v19  ;;  %v7906_v28 = vpack.c.bf16 %v16505_v41, %v16494_v61  ;;  %v6845_v8 = vpop.f32.mrb[154].mxu0  ;;  %v7025_v3 = vpop.f32.mrb[250].mxu1 }
 0x879   : > { %8493 = vmatmul.mubr.bf16.gmra.mrb[252].mxu0 %v18024_v7  ;;  %8654 = vmatmul.mubr.bf16.gmra.mrb[92].mxu1 %v18027_v48  ;;  %v16524_v49 = vsel %vm7170_vm5, %v7010_v62, %v7394_v13  ;;  %v7879_v4 = vpack.c.bf16 %v7561_v36, %v7554_v9  ;;  %v7015_v16 = vadd.f32 %v7014_v45, %v16150_v35  ;;  %v16532_v24 = vpop.f32.mrb[155].mxu0  ;;  %v7027_v63 = vpop.f32.mrb[251].mxu1  ;;  %vm7134_vm2 = vcmp.gt.f32.partialorder %v16481_v51, 0.0 }
 0x87a   : > { %10228 = vmatprep.mubr.msk.bf16.mxu1 %vm3029_vm15, %v7880_v21  ;;  %v7351_v50 = vmul.f32 %v16428_v1, %v17950_v29  ;;  %v7908_v15 = vpack.c.bf16 %v16524_v49, %v16496_v0  ;;  %vm7175_vm8 = vcmp.gt.f32.partialorder %v6832_v20, 0.0  ;;  %v7399_v21 = vmul.f32 %v6832_v20, %v17950_v29 }
 0x87b   : > { %8694 = vmatprep.mubr.bf16.mxu0 %v7879_v4  ;;  %vm7177_vm1 = vcmp.gt.f32.partialorder %v7015_v16, 0.0  ;;  %v7401_v62 = vmul.f32 %v7015_v16, %v17950_v29  ;;  %v6836_v45 = vadd.f32 %v6835_v58, %v16139_v19  ;;  %v7018_v13 = vadd.f32 %v7017_v12, %v16150_v35 }
 0x87c   : > { %v7358_v7 = vmul.f32 %v16481_v51, %v17950_v29  ;;  %v7365_v26 = vmul.f32 %v16485_v22, %v17950_v29  ;;  %v16544_v52 = vadd.f32 %v16315_v44, %v16286_v23  ;;  %v16548_v48 = vmul.f32 %v16490_v18, %v17950_v29 }
 0x87d   : > { %vm7182_vm7 = vcmp.gt.f32.partialorder %v6836_v45, 0.0  ;;  %v7406_v58 = vmul.f32 %v6836_v45, %v17950_v29  ;;  %vm7184_vm11 = vcmp.gt.f32.partialorder %v7018_v13, 0.0  ;;  %v16552_v12 = vsel %vm7175_vm8, %v6832_v20, %v7399_v21 }
 0x87e   : > { %v16554_v9 = vsel %vm7177_vm1, %v7015_v16, %v7401_v62  ;;  %v7408_v36 = vmul.f32 %v7018_v13, %v17950_v29  ;;  %v7568_v44 = vsel %vm7120_vm10, %v16424_v11, %v7344_v32  ;;  %vm7141_vm6 = vcmp.gt.f32.partialorder %v16485_v22, 0.0  ;;  %v6851_v11 = vpop.f32.mrb[156].mxu0  ;;  %v7030_v32 = vpop.f32.mrb[252].mxu1 }
 0x87f   : > { %v16561_v37 = vsel %vm7182_vm7, %v6836_v45, %v7406_v58  ;;  %v7575_v20 = vsel %vm7127_vm9, %v16428_v1, %v7351_v50  ;;  %v6842_v4 = vadd.f32 %v6841_v53, %v16139_v19  ;;  %v7023_v6 = vadd.f32 %v7022_v56, %v16150_v35  ;;  %v7032_v30 = vpop.f32.mrb[253].mxu1 }
 0x880   : > { %v7913_v16 = vpack.c.bf16 %v16561_v37, %v16552_v12  ;;  %v16576_v21 = vsel %vm7184_vm11, %v7018_v13, %v7408_v36  ;;  %v7886_v25 = vpack.c.bf16 %v7575_v20, %v7568_v44  ;;  %vm7148_vm14 = vcmp.gt.f32.partialorder %v16490_v18, 0.0  ;;  %v7033_v60 = vpop.f32.mrb[254].mxu1 }
 0x881   : > { %8695 = vmatmul.mubr.bf16.vlgmr.msra.gmra.mrb[0].mxu0 %v7878_v47  ;;  %10229 = vmatmul.mubr.msk.bf16.vlgmr.msra.gmra.mrb[96].mxu1 %vm3029_vm15, %v7887_v17  ;;  %v16583_v47 = vpop.f32.mrb[157].mxu0  ;;  %v7379_v43 = vmul.f32 %v16544_v52, %v17950_v29  ;;  %v7915_v17 = vpack.c.bf16 %v16576_v21, %v16554_v9  ;;  %vm7189_vm3 = vcmp.gt.f32.partialorder %v6842_v4, 0.0  ;;  %v7413_v1 = vmul.f32 %v6842_v4, %v17950_v29  ;;  %v7035_v63 = vpop.f32.mrb[255].mxu1 }
 0x882   : > { %10232 = vmatprep.mubr.msk.bf16.mxu1 %vm3029_vm15, %v7894_v27  ;;  %v6855_v53 = vpop.f32.mrb[158].mxu0  ;;  %8702 = vmatprep.mubr.bf16.mxu0 %v7886_v25  ;;  %vm7191_vm10 = vcmp.gt.f32.partialorder %v7023_v6, 0.0  ;;  %v7415_v2 = vmul.f32 %v7023_v6, %v17950_v29  ;;  %v6846_v27 = vadd.f32 %v6845_v8, %v16139_v19  ;;  %v7026_v56 = vadd.f32 %v7025_v3, %v16150_v35 }
 0x883   : > { %v16594_v50 = vpop.f32.mrb[159].mxu0  ;;  %v16598_v62 = vadd.f32 %v16374_v33, %v16286_v23  ;;  %v16602_v45 = vadd.f32 %v16399_v5, %v16286_v23  ;;  %v16606_v13 = vadd.f32 %v16448_v46, %v16286_v23  ;;  %v16610_v8 = vadd.f32 %v16469_v10, %v16286_v23 }
 0x884   : > { %v16614_v3 = vadd.f32 %v16519_v55, %v16286_v23  ;;  %vm7196_vm12 = vcmp.gt.f32.partialorder %v6846_v27, 0.0  ;;  %v7420_v33 = vmul.f32 %v6846_v27, %v17950_v29  ;;  %vm7198_vm13 = vcmp.gt.f32.partialorder %v7026_v56, 0.0 }
 0x885   : > { %v16618_v58 = vsel %vm7189_vm3, %v6842_v4, %v7413_v1  ;;  %v16620_v5 = vsel %vm7191_vm10, %v7023_v6, %v7415_v2  ;;  %v7422_v46 = vmul.f32 %v7026_v56, %v17950_v29  ;;  %v7582_v10 = vsel %vm7134_vm2, %v16481_v51, %v7358_v7  ;;  %v7038_v7 = vpop.f32.mrb[0].mxu1 }
 0x886   : > { %v16626_v36 = vsel %vm7196_vm12, %v6846_v27, %v7420_v33  ;;  %v7589_v55 = vsel %vm7141_vm6, %v16485_v22, %v7365_v26  ;;  %v6852_v44 = vadd.f32 %v6851_v11, %v16139_v19  ;;  %v7031_v20 = vadd.f32 %v7030_v32, %v16150_v35  ;;  %v6861_v22 = vpop.f32.mrb[160].mxu0 }
 0x887   : > { %vm7155_vm4 = vcmp.gt.f32.partialorder %v16544_v52, 0.0  ;;  %v7920_v4 = vpack.c.bf16 %v16626_v36, %v16618_v58  ;;  %v7646_v25 = vsel %vm7198_vm13, %v7026_v56, %v7422_v46  ;;  %v18028_v6 = vpack.c.bf16 %v16297_v57, %v16292_v38  ;;  %v16652_v38 = vpop.f32.mrb[161].mxu0  ;;  %v7040_v57 = vpop.f32.mrb[1].mxu1 }
 0x888   : > { %v7893_v51 = vpack.c.bf16 %v7589_v55, %v7582_v10  ;;  %vm7162_vm5 = vcmp.gt.f32.partialorder %v16598_v62, 0.0  ;;  %v7386_v26 = vmul.f32 %v16598_v62, %v17950_v29  ;;  %vm7169_vm9 = vcmp.gt.f32.partialorder %v16602_v45, 0.0  ;;  %v6865_v30 = vpop.f32.mrb[162].mxu0  ;;  %v7041_v1 = vpop.f32.mrb[2].mxu1 }
 0x889   : > { %8703 = vmatmul.mubr.bf16.gmra.mrb[4].mxu0 %v18028_v6  ;;  %10233 = vmatmul.mubr.msk.bf16.gmra.mrb[100].mxu1 %vm3029_vm15, %v7901_v14  ;;  %v7922_v11 = vpack.c.bf16 %v7646_v25, %v16620_v5  ;;  %v7393_v54 = vmul.f32 %v16602_v45, %v17950_v29  ;;  %v7427_v59 = vmul.f32 %v6852_v44, %v17950_v29  ;;  %vm7203_vm8 = vcmp.gt.f32.partialorder %v6852_v44, 0.0  ;;  %v16667_v2 = vpop.f32.mrb[163].mxu0  ;;  %v7043_v27 = vpop.f32.mrb[3].mxu1 }
 0x88a   : > { %10236 = vmatprep.mubr.msk.bf16.mxu1 %vm3029_vm15, %v7908_v15  ;;  %8710 = vmatprep.mubr.bf16.mxu0 %v7893_v51  ;;  %v6856_v14 = vadd.f32 %v6855_v53, %v16139_v19  ;;  %v7034_v32 = vadd.f32 %v7033_v60, %v16150_v35  ;;  %v16661_v0 = vmul.f32 %v16606_v13, %v17950_v29  ;;  %vm7205_vm1 = vcmp.gt.f32.partialorder %v7031_v20, 0.0 }
 0x88b   : > { %v7429_v49 = vmul.f32 %v7031_v20, %v17950_v29  ;;  %v7603_v15 = vsel %vm7155_vm4, %v16544_v52, %v7379_v43  ;;  %v16671_v53 = vmul.f32 %v16610_v8, %v17950_v29  ;;  %v16675_v60 = vmul.f32 %v16614_v3, %v17950_v29 }
 0x88c   : > { %vm7210_vm2 = vcmp.gt.f32.partialorder %v6856_v14, 0.0  ;;  %v7434_v56 = vmul.f32 %v6856_v14, %v17950_v29  ;;  %vm7212_vm7 = vcmp.gt.f32.partialorder %v7034_v32, 0.0  ;;  %v7436_v63 = vmul.f32 %v7034_v32, %v17950_v29 }
 0x88d   : > { %v7596_v52 = vsel %vm7148_vm14, %v16490_v18, %v16548_v48  ;;  %v16683_v43 = vsel %vm7203_vm8, %v6852_v44, %v7427_v59  ;;  %v6862_v5 = vadd.f32 %v6861_v22, %v16139_v19  ;;  %v7039_v46 = vadd.f32 %v7038_v7, %v16150_v35  ;;  %v6871_v44 = vpop.f32.mrb[164].mxu0 }
 0x88e   : > { %v7900_v33 = vpack.c.bf16 %v7603_v15, %v7596_v52  ;;  %v7653_v10 = vsel %vm7205_vm1, %v7031_v20, %v7429_v49  ;;  %v16687_v55 = vsel %vm7210_vm2, %v6856_v14, %v7434_v56  ;;  %v7660_v25 = vsel %vm7212_vm7, %v7034_v32, %v7436_v63  ;;  %v7046_v20 = vpop.f32.mrb[4].mxu1  ;;  %v6873_v9 = vpop.f32.mrb[165].mxu0 }
 0x88f   : > { %v6866_v6 = vadd.f32 %v6865_v30, %v16139_v19  ;;  %v7927_v51 = vpack.c.bf16 %v16687_v55, %v16683_v43  ;;  %v7929_v57 = vpack.c.bf16 %v7660_v25, %v7653_v10  ;;  %v18029_v18 = vpack.c.bf16 %v16376_v39, %v16369_v42  ;;  %v7048_v21 = vpop.f32.mrb[5].mxu1  ;;  %v6875_v59 = vpop.f32.mrb[166].mxu0 }
 0x890   : > { %vm7217_vm11 = vcmp.gt.f32.partialorder %v6862_v5, 0.0  ;;  %v7441_v48 = vmul.f32 %v6862_v5, %v17950_v29  ;;  %vm7176_vm6 = vcmp.gt.f32.partialorder %v16606_v13, 0.0  ;;  %vm7183_vm14 = vcmp.gt.f32.partialorder %v16610_v8, 0.0  ;;  %v7049_v14 = vpop.f32.mrb[6].mxu1  ;;  %v16727_v32 = vpop.f32.mrb[167].mxu0 }
 0x891   : > { %8711 = vmatmul.mubr.bf16.gmra.mrb[8].mxu0 %v18029_v18  ;;  %10237 = vmatmul.mubr.msk.bf16.gmra.mrb[104].mxu1 %vm3029_vm15, %v7915_v17  ;;  %v16704_v22 = vadd.f32 %v16532_v24, %v16286_v23  ;;  %v16708_v42 = vadd.f32 %v16583_v47, %v16286_v23  ;;  %v16712_v39 = vadd.f32 %v16594_v50, %v16286_v23  ;;  %vm7224_vm3 = vcmp.gt.f32.partialorder %v6866_v6, 0.0  ;;  %v7051_v30 = vpop.f32.mrb[7].mxu1  ;;  %v6881_v18 = vpop.f32.mrb[168].mxu0 }
 0x892   : > { %8718 = vmatprep.mubr.bf16.mxu0 %v7900_v33  ;;  %10240 = vmatprep.mubr.msk.bf16.mxu1 %vm3029_vm15, %v7922_v11  ;;  %v7443_v17 = vmul.f32 %v7039_v46, %v17950_v29  ;;  %v7448_v7 = vmul.f32 %v6866_v6, %v17950_v29  ;;  %v7042_v24 = vadd.f32 %v7041_v1, %v16150_v35  ;;  %vm7219_vm10 = vcmp.gt.f32.partialorder %v7039_v46, 0.0 }
 0x893   : > { %v16719_v47 = vsel %vm7217_vm11, %v6862_v5, %v7441_v48  ;;  %v7610_v50 = vsel %vm7162_vm5, %v16598_v62, %v7386_v26  ;;  %v7617_v11 = vsel %vm7169_vm9, %v16602_v45, %v7393_v54  ;;  %v16734_v27 = vmul.f32 %v16704_v22, %v17950_v29  ;;  %v7054_v48 = vpop.f32.mrb[8].mxu1 }
 0x894   : > { %v16729_v49 = vsel %vm7224_vm3, %v6866_v6, %v7448_v7  ;;  %vm7226_vm12 = vcmp.gt.f32.partialorder %v7042_v24, 0.0  ;;  %v7450_v1 = vmul.f32 %v7042_v24, %v17950_v29  ;;  %v7907_v15 = vpack.c.bf16 %v7617_v11, %v7610_v50 }
 0x895   : > { %v16738_v62 = vmul.f32 %v16708_v42, %v17950_v29  ;;  %v7934_v45 = vpack.c.bf16 %v16729_v49, %v16719_v47  ;;  %v6872_v26 = vadd.f32 %v6871_v44, %v16139_v19  ;;  %vm7190_vm13 = vcmp.gt.f32.partialorder %v16614_v3, 0.0 }
 0x896   : > { %v7667_v54 = vsel %vm7219_vm10, %v7039_v46, %v7443_v17  ;;  %v7674_v56 = vsel %vm7226_vm12, %v7042_v24, %v7450_v1  ;;  %v7047_v63 = vadd.f32 %v7046_v20, %v16150_v35  ;;  %v6876_v52 = vadd.f32 %v6875_v59, %v16139_v19  ;;  %v7056_v20 = vpop.f32.mrb[9].mxu1 }
 0x897   : > { %v7936_v33 = vpack.c.bf16 %v7674_v56, %v7667_v54  ;;  %vm7231_vm4 = vcmp.gt.f32.partialorder %v6872_v26, 0.0  ;;  %v7455_v5 = vmul.f32 %v6872_v26, %v17950_v29  ;;  %v7050_v10 = vadd.f32 %v7049_v14, %v16150_v35  ;;  %v7057_v17 = vpop.f32.mrb[10].mxu1 }
 0x898   : > { %vm7197_vm5 = vcmp.gt.f32.partialorder %v16704_v22, 0.0  ;;  %v16751_v25 = vmul.f32 %v16712_v39, %v17950_v29  ;;  %v16755_v46 = vadd.f32 %v16652_v38, %v16286_v23  ;;  %v7457_v6 = vmul.f32 %v7047_v63, %v17950_v29  ;;  %v6883_v38 = vpop.f32.mrb[169].mxu0  ;;  %v7059_v50 = vpop.f32.mrb[11].mxu1 }
 0x899   : > { %8719 = vmatmul.mubr.bf16.gmra.mrb[12].mxu0 %v7899_v34  ;;  %10241 = vmatmul.mubr.msk.bf16.gmra.mrb[108].mxu1 %vm3029_vm15, %v7929_v57  ;;  %vm7233_vm9 = vcmp.gt.f32.partialorder %v7047_v63, 0.0  ;;  %vm7238_vm8 = vcmp.gt.f32.partialorder %v6876_v52, 0.0  ;;  %v7462_v44 = vmul.f32 %v6876_v52, %v17950_v29  ;;  %vm7240_vm1 = vcmp.gt.f32.partialorder %v7050_v10, 0.0  ;;  %v6885_v21 = vpop.f32.mrb[170].mxu0  ;;  %v7062_v41 = vpop.f32.mrb[12].mxu1 }
 0x89a   : > { %8726 = vmatprep.mubr.bf16.mxu0 %v7907_v15  ;;  %10244 = vmatprep.mubr.msk.bf16.mxu1 %vm3029_vm15, %v7936_v33  ;;  %v16766_v31 = vadd.f32 %v16667_v2, %v16286_v23  ;;  %v16769_v40 = vsel %vm7231_vm4, %v6872_v26, %v7455_v5  ;;  %v16772_v34 = vadd.f32 %v6873_v9, %v16286_v23  ;;  %v6887_v14 = vpop.f32.mrb[171].mxu0  ;;  %vm7204_vm2 = vcmp.gt.f32.partialorder %v16708_v42, 0.0 }
 0x89b   : > { %v7464_v57 = vmul.f32 %v7050_v10, %v17950_v29  ;;  %v16775_v7 = vsel %vm7238_vm8, %v6876_v52, %v7462_v44  ;;  %v7631_v24 = vsel %vm7183_vm14, %v16610_v8, %v16671_v53  ;;  %v6882_v2 = vadd.f32 %v6881_v18, %v16139_v19 }
 0x89c   : > { %v7055_v59 = vadd.f32 %v7054_v48, %v16150_v35  ;;  %vm7211_vm7 = vcmp.gt.f32.partialorder %v16712_v39, 0.0  ;;  %v7681_v9 = vsel %vm7233_vm9, %v7047_v63, %v7457_v6  ;;  %v7941_v11 = vpack.c.bf16 %v16775_v7, %v16769_v40 }
 0x89d   : > { %v7688_v30 = vsel %vm7240_vm1, %v7050_v10, %v7464_v57  ;;  %v7624_v8 = vsel %vm7176_vm6, %v16606_v13, %v16661_v0  ;;  %vm7245_vm11 = vcmp.gt.f32.partialorder %v6882_v2, 0.0  ;;  %v7469_v15 = vmul.f32 %v6882_v2, %v17950_v29  ;;  %v7064_v57 = vpop.f32.mrb[13].mxu1 }
 0x89e   : > { %v7943_v53 = vpack.c.bf16 %v7688_v30, %v7681_v9  ;;  %v7914_v1 = vpack.c.bf16 %v7631_v24, %v7624_v8  ;;  %vm7218_vm14 = vcmp.gt.f32.partialorder %v16755_v46, 0.0  ;;  %v16797_v26 = vmul.f32 %v16755_v46, %v17950_v29 }
 0x89f   : > { %v16801_v54 = vmul.f32 %v16766_v31, %v17950_v29  ;;  %v7471_v56 = vmul.f32 %v7055_v59, %v17950_v29  ;;  %v6886_v63 = vadd.f32 %v6885_v21, %v16139_v19  ;;  %v16807_v13 = vmul.f32 %v16772_v34, %v17950_v29 }
 0x8a0   : > { %v16811_v0 = vadd.f32 %v16727_v32, %v16286_v23  ;;  %vm7247_vm6 = vcmp.gt.f32.partialorder %v7055_v59, 0.0  ;;  %v7058_v52 = vadd.f32 %v7057_v17, %v16150_v35  ;;  %v16817_v33 = vsel %vm7245_vm11, %v6882_v2, %v7469_v15  ;;  %v6891_v32 = vpop.f32.mrb[172].mxu0 }
 0x8a1   : > { %8727 = vmatmul.mubr.bf16.gmra.mrb[16].mxu0 %v7906_v28  ;;  %v16820_v5 = vadd.f32 %v6883_v38, %v16286_v23  ;;  %vm7252_vm3 = vcmp.gt.f32.partialorder %v6886_v63, 0.0  ;;  %10245 = vmatmul.mubr.msk.bf16.gmra.mrb[112].mxu1 %vm3029_vm15, %v7943_v53  ;;  %v16824_v10 = vadd.f32 %v6887_v14, %v16286_v23  ;;  %v7476_v6 = vmul.f32 %v6886_v63, %v17950_v29  ;;  %v6893_v28 = vpop.f32.mrb[173].mxu0 }
 0x8a2   : > { %8734 = vmatprep.mubr.bf16.mxu0 %v7914_v1  ;;  %vm7254_vm10 = vcmp.gt.f32.partialorder %v7058_v52, 0.0  ;;  %v7478_v18 = vmul.f32 %v7058_v52, %v17950_v29  ;;  %v7638_v61 = vsel %vm7190_vm13, %v16614_v3, %v16675_v60  ;;  %v7695_v48 = vsel %vm7247_vm6, %v7055_v59, %v7471_v56  ;;  %v6895_v21 = vpop.f32.mrb[174].mxu0 }
 0x8a3   : > { %v7645_v44 = vsel %vm7197_vm5, %v16704_v22, %v16734_v27  ;;  %v6892_v38 = vadd.f32 %v6891_v32, %v16139_v19  ;;  %v7063_v20 = vadd.f32 %v7062_v41, %v16150_v35  ;;  %vm7225_vm12 = vcmp.gt.f32.partialorder %v16766_v31, 0.0  ;;  %v7065_v22 = vpop.f32.mrb[14].mxu1  ;;  %v6897_v27 = vpop.f32.mrb[175].mxu0 }
 0x8a4   : > { %vm7232_vm4 = vcmp.gt.f32.partialorder %v16772_v34, 0.0  ;;  %vm7239_vm13 = vcmp.gt.f32.partialorder %v16811_v0, 0.0  ;;  %v16843_v3 = vsel %vm7252_vm3, %v6886_v63, %v7476_v6  ;;  %v7702_v60 = vsel %vm7254_vm10, %v7058_v52, %v7478_v18  ;;  %v7067_v50 = vpop.f32.mrb[15].mxu1  ;;  %v6901_v41 = vpop.f32.mrb[176].mxu0 }
 0x8a5   : > { %v7921_v17 = vpack.c.bf16 %v7645_v44, %v7638_v61  ;;  %v16846_v24 = vadd.f32 %v6893_v28, %v16286_v23  ;;  %v7948_v2 = vpack.c.bf16 %v16843_v3, %v16817_v33  ;;  %v7950_v59 = vpack.c.bf16 %v7702_v60, %v7695_v48  ;;  %v6903_v28 = vpop.f32.mrb[177].mxu0 }
 0x8a6   : > { %vm7259_vm5 = vcmp.gt.f32.partialorder %v6892_v38, 0.0  ;;  %v7483_v14 = vmul.f32 %v6892_v38, %v17950_v29  ;;  %v7463_v9 = vmul.f32 %v16811_v0, %v17950_v29  ;;  %v16855_v30 = vmul.f32 %v16820_v5, %v17950_v29 }
 0x8a7   : > { %v16859_v8 = vmul.f32 %v16824_v10, %v17950_v29  ;;  %v7485_v53 = vmul.f32 %v7063_v20, %v17950_v29  ;;  %vm7261_vm9 = vcmp.gt.f32.partialorder %v7063_v20, 0.0  ;;  %v16864_v1 = vmul.f32 %v16846_v24, %v17950_v29  ;;  %10248 = vmatprep.mubr.msk.bf16.mxu1 %vm3029_vm15, %v7950_v59 }
 0x8a8   : > { %v6896_v15 = vadd.f32 %v6895_v21, %v16139_v19  ;;  %v7066_v56 = vadd.f32 %v7065_v22, %v16150_v35  ;;  %v16869_v63 = vsel %vm7259_vm5, %v6892_v38, %v7483_v14  ;;  %v16872_v52 = vadd.f32 %v6897_v27, %v16286_v23 }
 0x8a9   : > { %v7652_v32 = vsel %vm7204_vm2, %v16708_v42, %v16738_v62  ;;  %v7659_v6 = vsel %vm7211_vm7, %v16712_v39, %v16751_v25  ;;  %vm7253_vm8 = vcmp.gt.f32.partialorder %v16824_v10, 0.0  ;;  %8735 = vmatmul.mubr.bf16.gmra.mrb[20].mxu0 %v7913_v16  ;;  %vm7246_vm2 = vcmp.gt.f32.partialorder %v16820_v5, 0.0  ;;  %v7070_v25 = vpop.f32.mrb[16].mxu1 }
 0x8aa   : > { %vm7266_vm1 = vcmp.gt.f32.partialorder %v6896_v15, 0.0  ;;  %v7490_v18 = vmul.f32 %v6896_v15, %v17950_v29  ;;  %vm7268_vm11 = vcmp.gt.f32.partialorder %v7066_v56, 0.0  ;;  %v7492_v61 = vmul.f32 %v7066_v56, %v17950_v29  ;;  %8742 = vmatprep.mubr.bf16.mxu0 %v7921_v17  ;;  %v7072_v38 = vpop.f32.mrb[17].mxu1 }
 0x8ab   : > { %v7709_v42 = vsel %vm7261_vm9, %v7063_v20, %v7485_v53  ;;  %v7928_v62 = vpack.c.bf16 %v7659_v6, %v7652_v32  ;;  %v6902_v39 = vadd.f32 %v6901_v41, %v16139_v19  ;;  %v16895_v12 = vsel %vm7218_vm14, %v16755_v46, %v16797_v26  ;;  %v6905_v20 = vpop.f32.mrb[178].mxu0  ;;  %v7073_v26 = vpop.f32.mrb[18].mxu1 }
 0x8ac   : > { %v16897_v37 = vsel %vm7266_vm1, %v6896_v15, %v7490_v18  ;;  %v7716_v16 = vsel %vm7268_vm11, %v7066_v56, %v7492_v61  ;;  %v7071_v48 = vadd.f32 %v7070_v25, %v16150_v35  ;;  %v16901_v44 = vadd.f32 %v6903_v28, %v16286_v23  ;;  %v6907_v60 = vpop.f32.mrb[179].mxu0  ;;  %v7075_v27 = vpop.f32.mrb[19].mxu1 }
 0x8ad   : > { %vm7260_vm7 = vcmp.gt.f32.partialorder %v16846_v24, 0.0  ;;  %v7955_v57 = vpack.c.bf16 %v16897_v37, %v16869_v63  ;;  %v7957_v21 = vpack.c.bf16 %v7716_v16, %v7709_v42  ;;  %vm7273_vm6 = vcmp.gt.f32.partialorder %v6902_v39, 0.0  ;;  %v7078_v36 = vpop.f32.mrb[20].mxu1 }
 0x8ae   : > { %v7497_v46 = vmul.f32 %v6902_v39, %v17950_v29  ;;  %vm7267_vm14 = vcmp.gt.f32.partialorder %v16872_v52, 0.0  ;;  %v7491_v17 = vmul.f32 %v16872_v52, %v17950_v29  ;;  %vm7275_vm3 = vcmp.gt.f32.partialorder %v7071_v48, 0.0 }
 0x8af   : > { %v7499_v22 = vmul.f32 %v7071_v48, %v17950_v29  ;;  %v16913_v59 = vmul.f32 %v16901_v44, %v17950_v29  ;;  %v6906_v14 = vadd.f32 %v6905_v20, %v16139_v19  ;;  %v7074_v50 = vadd.f32 %v7073_v26, %v16150_v35  ;;  %10249 = vmatmul.mubr.msk.bf16.gmra.mrb[116].mxu1 %vm3029_vm15, %v7957_v21 }
 0x8b0   : > { %v16919_v53 = vadd.f32 %v6907_v60, %v16286_v23  ;;  %v16921_v15 = vsel %vm7273_vm6, %v6902_v39, %v7497_v46  ;;  %vm7274_vm10 = vcmp.gt.f32.partialorder %v16901_v44, 0.0  ;;  %v7673_v56 = vsel %vm7225_vm12, %v16766_v31, %v16801_v54  ;;  %v6911_v54 = vpop.f32.mrb[180].mxu0 }
 0x8b1   : > { %v16932_v32 = vsel %vm7232_vm4, %v16772_v34, %v16807_v13  ;;  %v16937_v6 = vsel %vm7239_vm13, %v16811_v0, %v7463_v9  ;;  %vm7280_vm5 = vcmp.gt.f32.partialorder %v6906_v14, 0.0  ;;  %v7504_v18 = vmul.f32 %v6906_v14, %v17950_v29  ;;  %8743 = vmatmul.mubr.bf16.gmra.mrb[24].mxu0 %v7920_v4  ;;  %v6913_v4 = vpop.f32.mrb[181].mxu0 }
 0x8b2   : > { %vm7282_vm9 = vcmp.gt.f32.partialorder %v7074_v50, 0.0  ;;  %v7506_v61 = vmul.f32 %v7074_v50, %v17950_v29  ;;  %v7723_v31 = vsel %vm7275_vm3, %v7071_v48, %v7499_v22  ;;  %vm7281_vm12 = vcmp.gt.f32.partialorder %v16919_v53, 0.0  ;;  %8750 = vmatprep.mubr.bf16.mxu0 %v7928_v62  ;;  %v6915_v62 = vpop.f32.mrb[182].mxu0 }
 0x8b3   : > { %v7935_v34 = vpack.c.bf16 %v7673_v56, %v16895_v12  ;;  %v7942_v13 = vpack.c.bf16 %v16937_v6, %v16932_v32  ;;  %v16949_v0 = vsel %vm7280_vm5, %v6906_v14, %v7504_v18  ;;  %v7505_v41 = vmul.f32 %v16919_v53, %v17950_v29  ;;  %v7080_v12 = vpop.f32.mrb[21].mxu1  ;;  %v6917_v20 = vpop.f32.mrb[183].mxu0 }
 0x8b4   : > { %v7730_v9 = vsel %vm7282_vm9, %v7074_v50, %v7506_v61  ;;  %v6912_v58 = vadd.f32 %v6911_v54, %v16139_v19  ;;  %v7962_v42 = vpack.c.bf16 %v16949_v0, %v16921_v15  ;;  %v7079_v25 = vadd.f32 %v7078_v36, %v16150_v35  ;;  %v7081_v38 = vpop.f32.mrb[22].mxu1 }
 0x8b5   : > { %v7964_v39 = vpack.c.bf16 %v7730_v9, %v7723_v31  ;;  %v6914_v28 = vadd.f32 %v6913_v4, %v16286_v23  ;;  %v6916_v48 = vadd.f32 %v6915_v62, %v16139_v19  ;;  %v16964_v21 = vsel %vm7253_vm8, %v16824_v10, %v16859_v8  ;;  %v7083_v26 = vpop.f32.mrb[23].mxu1  ;;  %v6921_v31 = vpop.f32.mrb[184].mxu0 }
 0x8b6   : > { %vm7287_vm4 = vcmp.gt.f32.partialorder %v6912_v58, 0.0  ;;  %v7511_v16 = vmul.f32 %v6912_v58, %v17950_v29  ;;  %vm7289_vm13 = vcmp.gt.f32.partialorder %v7079_v25, 0.0  ;;  %v7513_v46 = vmul.f32 %v7079_v25, %v17950_v29 }
 0x8b7   : > { %vm7288_vm1 = vcmp.gt.f32.partialorder %v6914_v28, 0.0  ;;  %10252 = vmatprep.mubr.msk.bf16.mxu1 %vm3029_vm15, %v7964_v39  ;;  %v16972_v60 = vsel %vm7246_vm2, %v16820_v5, %v16855_v30  ;;  %v7512_v22 = vmul.f32 %v6914_v28, %v17950_v29  ;;  %vm7294_vm11 = vcmp.gt.f32.partialorder %v6916_v48, 0.0 }
 0x8b8   : > { %v7518_v27 = vmul.f32 %v6916_v48, %v17950_v29  ;;  %v7082_v10 = vadd.f32 %v7081_v38, %v16150_v35  ;;  %v16978_v8 = vsel %vm7287_vm4, %v6912_v58, %v7511_v16  ;;  %v6918_v14 = vadd.f32 %v6917_v20, %v16286_v23  ;;  %v6923_v58 = vpop.f32.mrb[185].mxu0 }
 0x8b9   : > { %v7949_v50 = vpack.c.bf16 %v16964_v21, %v16972_v60  ;;  %v16987_v5 = vsel %vm7260_vm7, %v16846_v24, %v16864_v1  ;;  %v16995_v18 = vsel %vm7267_vm14, %v16872_v52, %v7491_v17  ;;  %8751 = vmatmul.mubr.bf16.gmra.mrb[28].mxu0 %v7927_v51  ;;  %v7737_v61 = vsel %vm7289_vm13, %v7079_v25, %v7513_v46  ;;  %v7086_v17 = vpop.f32.mrb[24].mxu1  ;;  %v6925_v39 = vpop.f32.mrb[186].mxu0 }
 0x8ba   : > { %v16989_v30 = vsel %vm7294_vm11, %v6916_v48, %v7518_v27  ;;  %vm7296_vm8 = vcmp.gt.f32.partialorder %v7082_v10, 0.0  ;;  %v7520_v56 = vmul.f32 %v7082_v10, %v17950_v29  ;;  %v7519_v1 = vmul.f32 %v6918_v14, %v17950_v29  ;;  %8758 = vmatprep.mubr.bf16.mxu0 %v7935_v34  ;;  %v7088_v4 = vpop.f32.mrb[25].mxu1  ;;  %v6927_v62 = vpop.f32.mrb[187].mxu0 }
 0x8bb   : > { %v7969_v24 = vpack.c.bf16 %v16989_v30, %v16978_v8  ;;  %v7956_v54 = vpack.c.bf16 %v16995_v18, %v16987_v5  ;;  %v6922_v52 = vadd.f32 %v6921_v31, %v16139_v19  ;;  %v17011_v43 = vsel %vm7274_vm10, %v16901_v44, %v16913_v59  ;;  %v7089_v12 = vpop.f32.mrb[26].mxu1 }
 0x8bc   : > { %v7744_v9 = vsel %vm7296_vm8, %v7082_v10, %v7520_v56  ;;  %v17016_v55 = vsel %vm7281_vm12, %v16919_v53, %v7505_v41  ;;  %v7087_v36 = vadd.f32 %v7086_v17, %v16150_v35  ;;  %v6924_v34 = vadd.f32 %v6923_v58, %v16286_v23  ;;  %v7091_v41 = vpop.f32.mrb[27].mxu1 }
 0x8bd   : > { %v7971_v51 = vpack.c.bf16 %v7744_v9, %v7737_v61  ;;  %v7963_v25 = vpack.c.bf16 %v17016_v55, %v17011_v43  ;;  %vm7295_vm2 = vcmp.gt.f32.partialorder %v6918_v14, 0.0  ;;  %vm7301_vm7 = vcmp.gt.f32.partialorder %v6922_v52, 0.0 }
 0x8be   : > { %v7525_v44 = vmul.f32 %v6922_v52, %v17950_v29  ;;  %v6926_v59 = vadd.f32 %v6925_v39, %v16139_v19  ;;  %vm7303_vm6 = vcmp.gt.f32.partialorder %v7087_v36, 0.0  ;;  %v7527_v53 = vmul.f32 %v7087_v36, %v17950_v29 }
 0x8bf   : > { %10253 = vmatmul.mubr.msk.bf16.gmra.mrb[120].mxu1 %vm3029_vm15, %v7971_v51  ;;  %v17027_v16 = vsel %vm7288_vm1, %v6914_v28, %v7512_v22  ;;  %v7526_v48 = vmul.f32 %v6924_v34, %v17950_v29  ;;  %v7090_v20 = vadd.f32 %v7089_v12, %v16150_v35  ;;  %vm7302_vm3 = vcmp.gt.f32.partialorder %v6924_v34, 0.0 }
 0x8c0   : > { %vm7308_vm14 = vcmp.gt.f32.partialorder %v6926_v59, 0.0  ;;  %v7532_v38 = vmul.f32 %v6926_v59, %v17950_v29  ;;  %v17032_v46 = vsel %vm7301_vm7, %v6922_v52, %v7525_v44  ;;  %v6928_v26 = vadd.f32 %v6927_v62, %v16286_v23  ;;  %v7094_v52 = vpop.f32.mrb[28].mxu1 }
 0x8c1   : > { %v17036_v27 = vsel %vm7295_vm2, %v6918_v14, %v7519_v1  ;;  %vm7310_vm10 = vcmp.gt.f32.partialorder %v7090_v20, 0.0  ;;  %v7534_v28 = vmul.f32 %v7090_v20, %v17950_v29  ;;  %8759 = vmatmul.mubr.bf16.gmra.mrb[32].mxu0 %v7934_v45  ;;  %v6931_v14 = vpop.f32.mrb[188].mxu0  ;;  %v7751_v1 = vsel %vm7303_vm6, %v7087_v36, %v7527_v53  ;;  %v7096_v51 = vpop.f32.mrb[29].mxu1 }
 0x8c2   : > { %v17038_v10 = vsel %vm7308_vm14, %v6926_v59, %v7532_v38  ;;  %v7970_v22 = vpack.c.bf16 %v17036_v27, %v17027_v16  ;;  %vm7309_vm5 = vcmp.gt.f32.partialorder %v6928_v26, 0.0  ;;  %v7533_v61 = vmul.f32 %v6928_v26, %v17950_v29  ;;  %8766 = vmatprep.mubr.bf16.mxu0 %v7942_v13  ;;  %v6933_v17 = vpop.f32.mrb[189].mxu0  ;;  %v7097_v13 = vpop.f32.mrb[30].mxu1 }
 0x8c3   : > { %v7976_v56 = vpack.c.bf16 %v17038_v10, %v17032_v46  ;;  %v7758_v31 = vsel %vm7310_vm10, %v7090_v20, %v7534_v28  ;;  %v6932_v9 = vadd.f32 %v6931_v14, %v16139_v19  ;;  %v17055_v47 = vsel %vm7302_vm3, %v6924_v34, %v7526_v48  ;;  %v6935_v4 = vpop.f32.mrb[190].mxu0  ;;  %v7099_v34 = vpop.f32.mrb[31].mxu1  ;;  %v17088_v14 = vld [vmem:[%s17448_s17] ss:$0 sm:$0xff] }
 0x8c4   : > { %v7978_v49 = vpack.c.bf16 %v7758_v31, %v7751_v1  ;;  %v7095_v45 = vadd.f32 %v7094_v52, %v16150_v35  ;;  %v6934_v58 = vadd.f32 %v6933_v17, %v16286_v23  ;;  %v17059_v39 = vsel %vm7309_vm5, %v6928_v26, %v7533_v61  ;;  %v6937_v36 = vpop.f32.mrb[191].mxu0  ;;  %v9886_v61 = vpop.f32.mrb[32].mxu1 }
 0x8c5   : > { %v7539_v32 = vmul.f32 %v6932_v9, %v17950_v29  ;;  %v6936_v6 = vadd.f32 %v6935_v4, %v16139_v19  ;;  %v7977_v44 = vpack.c.bf16 %v17059_v39, %v17055_v47  ;;  %vm7315_vm9 = vcmp.gt.f32.partialorder %v6932_v9, 0.0  ;;  %v9774_v26 = vpop.f32.mrb[192].mxu0  ;;  %v9887_v1 = vpop.f32.mrb[33].mxu1 }
 0x8c6   : > { %10256 = vmatprep.mubr.msk.bf16.mxu1 %vm3029_vm15, %v7978_v49  ;;  %v7541_v59 = vmul.f32 %v7095_v45, %v17950_v29  ;;  %v7098_v62 = vadd.f32 %v7097_v13, %v16150_v35  ;;  %vm7317_vm4 = vcmp.gt.f32.partialorder %v7095_v45, 0.0  ;;  %vm7316_vm13 = vcmp.gt.f32.partialorder %v6934_v58, 0.0  ;;  %v9775_v40 = vpop.f32.mrb[193].mxu0  ;;  %v9889_v60 = vpop.f32.mrb[34].mxu1 }
 0x8c7   : > { %vm7322_vm12 = vcmp.gt.f32.partialorder %v6936_v6, 0.0  ;;  %v7546_v12 = vmul.f32 %v6936_v6, %v17950_v29  ;;  %v7540_v19 = vmul.f32 %v6934_v58, %v17950_v29  ;;  %v6938_v53 = vadd.f32 %v6937_v36, %v16286_v23  ;;  %v9777_v31 = vpop.f32.mrb[194].mxu0  ;;  %v9890_v51 = vpop.f32.mrb[35].mxu1 }
 0x8c8   : > { %v17071_v41 = vsel %vm7315_vm9, %v6932_v9, %v7539_v32  ;;  %vm7324_vm1 = vcmp.gt.f32.partialorder %v7098_v62, 0.0  ;;  %v7548_v38 = vmul.f32 %v7098_v62, %v17950_v29  ;;  %v7765_v23 = vsel %vm7317_vm4, %v7095_v45, %v7541_v59 }
 0x8c9   : > { %v17073_v48 = vsel %vm7322_vm12, %v6936_v6, %v7546_v12  ;;  %8767 = vmatmul.mubr.bf16.gmra.mrb[36].mxu0 %v7941_v11  ;;  %vm7323_vm11 = vcmp.gt.f32.partialorder %v6938_v53, 0.0  ;;  %v7547_v20 = vmul.f32 %v6938_v53, %v17950_v29  ;;  %v9776_v11 = vadd.f32 %v9775_v40, %v9774_v26  ;;  %v9892_v36 = vpop.f32.mrb[36].mxu1 }
 0x8ca   : > { %v7983_v35 = vpack.c.bf16 %v17073_v48, %v17071_v41  ;;  %8774 = vmatprep.mubr.bf16.mxu0 %v7949_v50  ;;  %v7772_v28 = vsel %vm7324_vm1, %v7098_v62, %v7548_v38  ;;  %v17091_v9 = vsel %vm7316_vm13, %v6934_v58, %v7540_v19  ;;  %v9888_v21 = vadd.f32 %v9887_v1, %v9886_v61  ;;  %v9778_v50 = vpop.f32.mrb[195].mxu0  ;;  %v9893_v12 = vpop.f32.mrb[37].mxu1 }
 0x8cb   : > { %v7985_v7 = vpack.c.bf16 %v7772_v28, %v7765_v23  ;;  %v17093_v52 = vsel %vm7323_vm11, %v6938_v53, %v7547_v20  ;;  %v8375_v49 = vadd.f32 %v9776_v11, %v17088_v14  ;;  %v9779_v45 = vadd.f32 %v9778_v50, %v9777_v31  ;;  %v9780_v13 = vpop.f32.mrb[196].mxu0  ;;  %v9895_v53 = vpop.f32.mrb[38].mxu1 }
 0x8cc   : > { %v7984_v17 = vpack.c.bf16 %v17093_v52, %v17091_v9  ;;  %v9891_v4 = vadd.f32 %v9890_v51, %v9889_v60  ;;  %v9781_v34 = vpop.f32.mrb[197].mxu0  ;;  %v9894_v19 = vadd.f32 %v9893_v12, %v9892_v36  ;;  %v9896_v33 = vpop.f32.mrb[39].mxu1 }
 0x8cd   : > { %10257 = vmatmul.mubr.msk.bf16.gmra.mrb[124].mxu1 %vm3029_vm15, %v7985_v7  ;;  %v17099_v32 = vadd.f32 %v9888_v21, %v8375_v49  ;;  %v8378_v58 = vadd.f32 %v9779_v45, %v17088_v14  ;;  %v9782_v59 = vadd.f32 %v9781_v34, %v9780_v13  ;;  %v9783_v62 = vpop.f32.mrb[198].mxu0  ;;  %v9897_v3 = vadd.f32 %v9896_v33, %v9895_v53 }
 0x8ce   : > { %v9784_v38 = vpop.f32.mrb[199].mxu0 }
 0x8cf   : > { %v17105_v6 = vadd.f32 %v9891_v4, %v8378_v58  ;;  %v8383_v20 = vadd.f32 %v9782_v59, %v17088_v14  ;;  %v9785_v26 = vadd.f32 %v9784_v38, %v9783_v62 }
 0x8d1   : > { %8775 = vmatmul.mubr.bf16.gmra.mrb[40].mxu0 %v7948_v2  ;;  %v17111_v2 = vadd.f32 %v9894_v19, %v8383_v20  ;;  %v8386_v23 = vadd.f32 %v9785_v26, %v17088_v14  ;;  %v9786_v18 = vpop.f32.mrb[200].mxu0 }
 0x8d2   : > { %8782 = vmatprep.mubr.bf16.mxu0 %v7956_v54  ;;  %v9898_v54 = vpop.f32.mrb[40].mxu1  ;;  %v9787_v28 = vpop.f32.mrb[201].mxu0 }
 0x8d3   : > { %v17117_v5 = vadd.f32 %v9897_v3, %v8386_v23  ;;  %v9788_v61 = vadd.f32 %v9787_v28, %v9786_v18  ;;  %v9899_v40 = vpop.f32.mrb[41].mxu1  ;;  %v9789_v7 = vpop.f32.mrb[202].mxu0 }
 0x8d4   : > { %v9900_v11 = vadd.f32 %v9899_v40, %v9898_v54  ;;  %v9901_v1 = vpop.f32.mrb[42].mxu1  ;;  %v9790_v31 = vpop.f32.mrb[203].mxu0 }
 0x8d5   : > { %v8391_v21 = vadd.f32 %v9788_v61, %v17088_v14  ;;  %v9791_v60 = vadd.f32 %v9790_v31, %v9789_v7  ;;  %v9902_v63 = vpop.f32.mrb[43].mxu1 }
 0x8d6   : > { %v9903_v37 = vadd.f32 %v9902_v63, %v9901_v1 }
 0x8d7   : > { %v8394_v50 = vadd.f32 %v9791_v60, %v17088_v14 }
 0x8d9   : > { %8783 = vmatmul.mubr.bf16.gmra.mrb[44].mxu0 %v7955_v57  ;;  %v17123_v57 = vadd.f32 %v9900_v11, %v8391_v21  ;;  %v17132_v43 = vadd.f32 %v9903_v37, %v8394_v50 }
 0x8da   : > { %8790 = vmatprep.mubr.bf16.mxu0 %v7963_v25  ;;  %v9792_v55 = vpop.f32.mrb[204].mxu0 }
 0x8db   : > { %v9904_v25 = vpop.f32.mrb[44].mxu1  ;;  %v9793_v49 = vpop.f32.mrb[205].mxu0 }
 0x8dc   : > { %v9794_v45 = vadd.f32 %v9793_v49, %v9792_v55  ;;  %v9905_v51 = vpop.f32.mrb[45].mxu1  ;;  %v9795_v4 = vpop.f32.mrb[206].mxu0 }
 0x8dd   : > { %v9906_v58 = vadd.f32 %v9905_v51, %v9904_v25  ;;  %v9907_v13 = vpop.f32.mrb[46].mxu1  ;;  %v9796_v36 = vpop.f32.mrb[207].mxu0 }
 0x8de   : > { %v8399_v34 = vadd.f32 %v9794_v45, %v17088_v14  ;;  %v9797_v59 = vadd.f32 %v9796_v36, %v9795_v4  ;;  %v9908_v15 = vpop.f32.mrb[47].mxu1 }
 0x8df   : > { %v9909_v0 = vadd.f32 %v9908_v15, %v9907_v13 }
 0x8e0   : > { %v8402_v16 = vadd.f32 %v9797_v59, %v17088_v14 }
 0x8e1   : > { %8791 = vmatmul.mubr.bf16.gmra.mrb[48].mxu0 %v7962_v42  ;;  %v17138_v42 = vadd.f32 %v9906_v58, %v8399_v34 }
 0x8e2   : > { %8798 = vmatprep.mubr.bf16.mxu0 %v7970_v22  ;;  %v17144_v27 = vadd.f32 %v9909_v0, %v8402_v16 }
 0x8e3   : > { %v9798_v22 = vpop.f32.mrb[208].mxu0 }
 0x8e4   : > { %v9910_v12 = vpop.f32.mrb[48].mxu1  ;;  %v9799_v62 = vpop.f32.mrb[209].mxu0 }
 0x8e5   : > { %v9800_v19 = vadd.f32 %v9799_v62, %v9798_v22  ;;  %v9911_v53 = vpop.f32.mrb[49].mxu1  ;;  %v9801_v38 = vpop.f32.mrb[210].mxu0 }
 0x8e6   : > { %v9912_v20 = vadd.f32 %v9911_v53, %v9910_v12  ;;  %v9913_v26 = vpop.f32.mrb[50].mxu1  ;;  %v9802_v8 = vpop.f32.mrb[211].mxu0 }
 0x8e7   : > { %v8407_v30 = vadd.f32 %v9800_v19, %v17088_v14  ;;  %v9914_v33 = vpop.f32.mrb[51].mxu1 }
 0x8e8   : > { %v9915_v47 = vadd.f32 %v9914_v33, %v9913_v26 }
 0x8e9   : > { %8799 = vmatmul.mubr.bf16.gmra.mrb[52].mxu0 %v7969_v24  ;;  %v9803_v24 = vadd.f32 %v9802_v8, %v9801_v38  ;;  %v17153_v39 = vadd.f32 %v9912_v20, %v8407_v30 }
 0x8ea   : > { %8806 = vmatprep.mubr.bf16.mxu0 %v7977_v44 }
 0x8eb   : > { %v8410_v44 = vadd.f32 %v9803_v24, %v17088_v14 }
 0x8ec   : > { %v9804_v23 = vpop.f32.mrb[212].mxu0 }
 0x8ed   : > { %v17156_v3 = vadd.f32 %v9915_v47, %v8410_v44  ;;  %v9916_v18 = vpop.f32.mrb[52].mxu1  ;;  %v9805_v54 = vpop.f32.mrb[213].mxu0 }
 0x8ee   : > { %v9806_v28 = vadd.f32 %v9805_v54, %v9804_v23  ;;  %v9917_v61 = vpop.f32.mrb[53].mxu1  ;;  %v9807_v40 = vpop.f32.mrb[214].mxu0 }
 0x8ef   : > { %v9918_v7 = vadd.f32 %v9917_v61, %v9916_v18  ;;  %v9919_v46 = vpop.f32.mrb[54].mxu1  ;;  %v9808_v10 = vpop.f32.mrb[215].mxu0 }
 0x8f0   : > { %v9809_v9 = vadd.f32 %v9808_v10, %v9807_v40  ;;  %v9920_v52 = vpop.f32.mrb[55].mxu1 }
 0x8f1   : > { %8807 = vmatmul.mubr.bf16.gmra.mrb[56].mxu0 %v7976_v56  ;;  %v8415_v56 = vadd.f32 %v9806_v28, %v17088_v14 }
 0x8f2   : > { %8814 = vmatprep.mubr.bf16.mxu0 %v7984_v17  ;;  %v9921_v17 = vadd.f32 %v9920_v52, %v9919_v46  ;;  %v8418_v1 = vadd.f32 %v9809_v9, %v17088_v14 }
 0x8f3   : > { %v17162_v11 = vadd.f32 %v9918_v7, %v8415_v56 }
 0x8f4   : > { %v17165_v31 = vadd.f32 %v9921_v17, %v8418_v1 }
 0x8f5   : > { %v9810_v21 = vpop.f32.mrb[216].mxu0 }
 0x8f6   : > { %v9811_v63 = vpop.f32.mrb[217].mxu0 }
 0x8f7   : > { %v9922_v60 = vpop.f32.mrb[56].mxu1  ;;  %v9812_v37 = vadd.f32 %v9811_v63, %v9810_v21  ;;  %v9813_v55 = vpop.f32.mrb[218].mxu0 }
 0x8f8   : > { %v9923_v50 = vpop.f32.mrb[57].mxu1  ;;  %v9814_v48 = vpop.f32.mrb[219].mxu0 }
 0x8f9   : > { %8815 = vmatmul.mubr.bf16.gmra.mrb[60].mxu0 %v7983_v35  ;;  %v9924_v25 = vadd.f32 %v9923_v50, %v9922_v60  ;;  %v9925_v41 = vpop.f32.mrb[58].mxu1  ;;  %v8423_v35 = vadd.f32 %v9812_v37, %v17088_v14  ;;  %v9815_v49 = vadd.f32 %v9814_v48, %v9813_v55 }
 0x8fa   : > { %v9926_v45 = vpop.f32.mrb[59].mxu1 }
 0x8fb   : > { %v9927_v51 = vadd.f32 %v9926_v45, %v9925_v41  ;;  %v17168_v4 = vadd.f32 %v9924_v25, %v8423_v35  ;;  %v8426_v58 = vadd.f32 %v9815_v49, %v17088_v14 }
 0x8fd   : > { %v17171_v13 = vadd.f32 %v9927_v51, %v8426_v58 }
 0x8ff   : > { %v9816_v36 = vpop.f32.mrb[220].mxu0 }
 0x900   : > { %v9928_v34 = vpop.f32.mrb[60].mxu1  ;;  %v9817_v59 = vpop.f32.mrb[221].mxu0 }
 0x901   : > { %v9818_v15 = vadd.f32 %v9817_v59, %v9816_v36  ;;  %v9929_v0 = vpop.f32.mrb[61].mxu1  ;;  %v9819_v16 = vpop.f32.mrb[222].mxu0 }
 0x902   : > { %v9930_v22 = vadd.f32 %v9929_v0, %v9928_v34  ;;  %v9931_v12 = vpop.f32.mrb[62].mxu1  ;;  %v9820_v62 = vpop.f32.mrb[223].mxu0 }
 0x903   : > { %v8431_v19 = vadd.f32 %v9818_v15, %v17088_v14  ;;  %v9821_v53 = vadd.f32 %v9820_v62, %v9819_v16  ;;  %v9932_v38 = vpop.f32.mrb[63].mxu1 }
 0x904   : > { %v9933_v20 = vadd.f32 %v9932_v38, %v9931_v12 }
 0x905   : > { %v17174_v26 = vadd.f32 %v9930_v22, %v8431_v19  ;;  %v8434_v8 = vadd.f32 %v9821_v53, %v17088_v14 }
 0x907   : > { %v17177_v30 = vadd.f32 %v9933_v20, %v8434_v8 }
 0x908   : > { %v9822_v24 = vpop.f32.mrb[224].mxu0 }
 0x909   : > { %v9823_v47 = vpop.f32.mrb[225].mxu0 }
 0x90a   : > { %v9934_v33 = vpop.f32.mrb[64].mxu1  ;;  %v9824_v44 = vadd.f32 %v9823_v47, %v9822_v24  ;;  %v9825_v18 = vpop.f32.mrb[226].mxu0 }
 0x90b   : > { %v9935_v23 = vpop.f32.mrb[65].mxu1  ;;  %v9826_v61 = vpop.f32.mrb[227].mxu0 }
 0x90c   : > { %v9936_v54 = vadd.f32 %v9935_v23, %v9934_v33  ;;  %v9937_v28 = vpop.f32.mrb[66].mxu1  ;;  %v8439_v40 = vadd.f32 %v9824_v44, %v17088_v14  ;;  %v9827_v7 = vadd.f32 %v9826_v61, %v9825_v18 }
 0x90d   : > { %v9938_v46 = vpop.f32.mrb[67].mxu1 }
 0x90e   : > { %v9939_v10 = vadd.f32 %v9938_v46, %v9937_v28  ;;  %v17180_v56 = vadd.f32 %v9936_v54, %v8439_v40  ;;  %v8442_v9 = vadd.f32 %v9827_v7, %v17088_v14 }
 0x910   : > { %v17183_v52 = vadd.f32 %v9939_v10, %v8442_v9 }
 0x912   : > { %v9828_v17 = vpop.f32.mrb[228].mxu0 }
 0x913   : > { %v9940_v1 = vpop.f32.mrb[68].mxu1  ;;  %v9829_v21 = vpop.f32.mrb[229].mxu0 }
 0x914   : > { %v9830_v60 = vadd.f32 %v9829_v21, %v9828_v17  ;;  %v9941_v63 = vpop.f32.mrb[69].mxu1  ;;  %v9831_v37 = vpop.f32.mrb[230].mxu0 }
 0x915   : > { %v9942_v50 = vadd.f32 %v9941_v63, %v9940_v1  ;;  %v9943_v55 = vpop.f32.mrb[70].mxu1  ;;  %v9832_v25 = vpop.f32.mrb[231].mxu0 }
 0x916   : > { %v8447_v41 = vadd.f32 %v9830_v60, %v17088_v14  ;;  %v9833_v48 = vadd.f32 %v9832_v25, %v9831_v37  ;;  %v9944_v35 = vpop.f32.mrb[71].mxu1 }
 0x917   : > { %v9945_v49 = vadd.f32 %v9944_v35, %v9943_v55 }
 0x918   : > { %v17186_v45 = vadd.f32 %v9942_v50, %v8447_v41  ;;  %v8450_v51 = vadd.f32 %v9833_v48, %v17088_v14 }
 0x91a   : > { %v17189_v58 = vadd.f32 %v9945_v49, %v8450_v51 }
 0x91c   : > { %v9834_v36 = vpop.f32.mrb[232].mxu0 }
 0x91d   : > { %v9946_v34 = vpop.f32.mrb[72].mxu1  ;;  %v9835_v59 = vpop.f32.mrb[233].mxu0 }
 0x91e   : > { %v9836_v15 = vadd.f32 %v9835_v59, %v9834_v36  ;;  %v9947_v0 = vpop.f32.mrb[73].mxu1  ;;  %v9837_v16 = vpop.f32.mrb[234].mxu0 }
 0x91f   : > { %v9948_v22 = vadd.f32 %v9947_v0, %v9946_v34  ;;  %v9949_v12 = vpop.f32.mrb[74].mxu1  ;;  %v9838_v62 = vpop.f32.mrb[235].mxu0 }
 0x920   : > { %v8455_v19 = vadd.f32 %v9836_v15, %v17088_v14  ;;  %v9839_v53 = vadd.f32 %v9838_v62, %v9837_v16  ;;  %v9950_v38 = vpop.f32.mrb[75].mxu1 }
 0x921   : > { %v9951_v20 = vadd.f32 %v9950_v38, %v9949_v12 }
 0x922   : > { %v17192_v8 = vadd.f32 %v9948_v22, %v8455_v19  ;;  %v8458_v24 = vadd.f32 %v9839_v53, %v17088_v14 }
 0x924   : > { %v17195_v33 = vadd.f32 %v9951_v20, %v8458_v24 }
 0x926   : > { %v9840_v47 = vpop.f32.mrb[236].mxu0 }
 0x927   : > { %v9952_v44 = vpop.f32.mrb[76].mxu1  ;;  %v9841_v23 = vpop.f32.mrb[237].mxu0 }
 0x928   : > { %v9953_v18 = vpop.f32.mrb[77].mxu1  ;;  %v9842_v54 = vadd.f32 %v9841_v23, %v9840_v47  ;;  %v9843_v61 = vpop.f32.mrb[238].mxu0 }
 0x929   : > { %v9954_v28 = vadd.f32 %v9953_v18, %v9952_v44  ;;  %v9955_v40 = vpop.f32.mrb[78].mxu1  ;;  %v9844_v7 = vpop.f32.mrb[239].mxu0 }
 0x92a   : > { %v9956_v46 = vpop.f32.mrb[79].mxu1  ;;  %v8463_v10 = vadd.f32 %v9842_v54, %v17088_v14  ;;  %v9845_v9 = vadd.f32 %v9844_v7, %v9843_v61 }
 0x92b   : > { %v9957_v17 = vadd.f32 %v9956_v46, %v9955_v40 }
 0x92c   : > { %v17198_v1 = vadd.f32 %v9954_v28, %v8463_v10  ;;  %v8466_v21 = vadd.f32 %v9845_v9, %v17088_v14 }
 0x92e   : > { %v17201_v60 = vadd.f32 %v9957_v17, %v8466_v21 }
 0x932   : > { %v9846_v63 = vpop.f32.mrb[240].mxu0  ;;  %v9958_v37 = vpop.f32.mrb[80].mxu1 }
 0x933   : > { %v9847_v50 = vpop.f32.mrb[241].mxu0  ;;  %v9959_v55 = vpop.f32.mrb[81].mxu1 }
 0x934   : > { %v9848_v25 = vadd.f32 %v9847_v50, %v9846_v63  ;;  %v9960_v41 = vadd.f32 %v9959_v55, %v9958_v37  ;;  %v9849_v48 = vpop.f32.mrb[242].mxu0  ;;  %v9961_v35 = vpop.f32.mrb[82].mxu1 }
 0x935   : > { %v9850_v49 = vpop.f32.mrb[243].mxu0  ;;  %v9962_v51 = vpop.f32.mrb[83].mxu1 }
 0x936   : > { %v8471_v36 = vadd.f32 %v9848_v25, %v17088_v14  ;;  %v9851_v34 = vadd.f32 %v9850_v49, %v9849_v48  ;;  %v9963_v59 = vadd.f32 %v9962_v51, %v9961_v35 }
 0x938   : > { %v17204_v15 = vadd.f32 %v9960_v41, %v8471_v36  ;;  %v8474_v0 = vadd.f32 %v9851_v34, %v17088_v14 }
 0x93a   : > { %v17207_v16 = vadd.f32 %v9963_v59, %v8474_v0 }
 0x93b   : > { %v9852_v22 = vpop.f32.mrb[244].mxu0  ;;  %v9964_v12 = vpop.f32.mrb[84].mxu1 }
 0x93c   : > { %v9853_v62 = vpop.f32.mrb[245].mxu0  ;;  %v9965_v19 = vpop.f32.mrb[85].mxu1 }
 0x93d   : > { %v9854_v53 = vadd.f32 %v9853_v62, %v9852_v22  ;;  %v9966_v38 = vadd.f32 %v9965_v19, %v9964_v12  ;;  %v9855_v20 = vpop.f32.mrb[246].mxu0  ;;  %v9967_v24 = vpop.f32.mrb[86].mxu1 }
 0x93e   : > { %v9856_v47 = vpop.f32.mrb[247].mxu0  ;;  %v9968_v44 = vpop.f32.mrb[87].mxu1 }
 0x93f   : > { %v8479_v23 = vadd.f32 %v9854_v53, %v17088_v14  ;;  %v9857_v18 = vadd.f32 %v9856_v47, %v9855_v20  ;;  %v9969_v54 = vadd.f32 %v9968_v44, %v9967_v24 }
 0x941   : > { %v17210_v28 = vadd.f32 %v9966_v38, %v8479_v23  ;;  %v8482_v61 = vadd.f32 %v9857_v18, %v17088_v14 }
 0x943   : > { %v17213_v40 = vadd.f32 %v9969_v54, %v8482_v61  ;;  %v9858_v7 = vpop.f32.mrb[248].mxu0 }
 0x944   : > { %v9970_v46 = vpop.f32.mrb[88].mxu1  ;;  %v9859_v10 = vpop.f32.mrb[249].mxu0 }
 0x945   : > { %v9971_v9 = vpop.f32.mrb[89].mxu1  ;;  %v9860_v17 = vadd.f32 %v9859_v10, %v9858_v7  ;;  %v9861_v63 = vpop.f32.mrb[250].mxu0 }
 0x946   : > { %v9972_v21 = vadd.f32 %v9971_v9, %v9970_v46  ;;  %v9973_v37 = vpop.f32.mrb[90].mxu1  ;;  %v9862_v50 = vpop.f32.mrb[251].mxu0 }
 0x947   : > { %v9974_v55 = vpop.f32.mrb[91].mxu1  ;;  %v8487_v25 = vadd.f32 %v9860_v17, %v17088_v14  ;;  %v9863_v41 = vadd.f32 %v9862_v50, %v9861_v63 }
 0x948   : > { %v9975_v48 = vadd.f32 %v9974_v55, %v9973_v37 }
 0x949   : > { %v17216_v35 = vadd.f32 %v9972_v21, %v8487_v25  ;;  %v8490_v49 = vadd.f32 %v9863_v41, %v17088_v14 }
 0x94b   : > { %v17219_v51 = vadd.f32 %v9975_v48, %v8490_v49 }
 0x94c   : > { %v9864_v36 = vpop.f32.mrb[252].mxu0  ;;  %v9976_v34 = vpop.f32.mrb[92].mxu1 }
 0x94d   : > { %v9865_v59 = vpop.f32.mrb[253].mxu0  ;;  %v9977_v0 = vpop.f32.mrb[93].mxu1 }
 0x94e   : > { %v9866_v22 = vadd.f32 %v9865_v59, %v9864_v36  ;;  %v9978_v12 = vadd.f32 %v9977_v0, %v9976_v34  ;;  %v9867_v62 = vpop.f32.mrb[254].mxu0  ;;  %v9979_v19 = vpop.f32.mrb[94].mxu1 }
 0x94f   : > { %v9868_v53 = vpop.f32.mrb[255].mxu0  ;;  %v9980_v38 = vpop.f32.mrb[95].mxu1 }
 0x950   : > { %v8495_v20 = vadd.f32 %v9866_v22, %v17088_v14  ;;  %v9869_v24 = vadd.f32 %v9868_v53, %v9867_v62  ;;  %v9981_v47 = vadd.f32 %v9980_v38, %v9979_v19 }
 0x952   : > { %v17222_v44 = vadd.f32 %v9978_v12, %v8495_v20  ;;  %v8498_v23 = vadd.f32 %v9869_v24, %v17088_v14 }
 0x954   : > { %v17225_v18 = vadd.f32 %v9981_v47, %v8498_v23  ;;  %v9998_v54 = vpop.f32.mrb[0].mxu0  ;;  %v10230_v61 = vpop.f32.mrb[96].mxu1 }
 0x955   : > { %v9999_v7 = vpop.f32.mrb[1].mxu0  ;;  %v8857_v46 = vpop.f32.mrb[97].mxu1 }
 0x956   : > { %v10000_v10 = vadd.f32 %v9999_v7, %v9998_v54  ;;  %v10001_v9 = vpop.f32.mrb[2].mxu0  ;;  %v10231_v17 = vpop.f32.mrb[98].mxu1 }
 0x957   : > { %v10002_v21 = vpop.f32.mrb[3].mxu0  ;;  %v8860_v63 = vpop.f32.mrb[99].mxu1 }
 0x958   : > { %v8697_v37 = vadd.f32 %v10000_v10, %v17099_v32  ;;  %v10003_v50 = vadd.f32 %v10002_v21, %v10001_v9 }
 0x95a   : > { %v8858_v55 = vadd.f32 %v8857_v46, %v8697_v37  ;;  %v8700_v25 = vadd.f32 %v10003_v50, %v17105_v6 }
 0x95c   : > { %vm8984_vm15 = vcmp.gt.f32.partialorder %v8858_v55, 0.0  ;;  %v9016_v14 = vmul.f32 %v8858_v55, %v17950_v29  ;;  %v8861_v41 = vadd.f32 %v8860_v63, %v8700_v25  ;;  %v10004_v48 = vpop.f32.mrb[4].mxu0  ;;  %v10234_v49 = vpop.f32.mrb[100].mxu1 }
 0x95d   : > { %v10005_v36 = vpop.f32.mrb[5].mxu0  ;;  %v8873_v32 = vpop.f32.mrb[101].mxu1 }
 0x95e   : > { %v9048_v34 = vsel %vm8984_vm15, %v8858_v55, %v9016_v14  ;;  %vm8985_vm8 = vcmp.gt.f32.partialorder %v8861_v41, 0.0  ;;  %v9017_v6 = vmul.f32 %v8861_v41, %v17950_v29  ;;  %v10006_v59 = vadd.f32 %v10005_v36, %v10004_v48  ;;  %v10007_v0 = vpop.f32.mrb[6].mxu0  ;;  %v10235_v22 = vpop.f32.mrb[102].mxu1 }
 0x95f   : > { %9080 = vst.msk [vmem:[%s17234_s1] sm:$0xff] %vm843_vm0, %v9048_v34  ;;  %v10008_v12 = vpop.f32.mrb[7].mxu0  ;;  %v8876_v62 = vpop.f32.mrb[103].mxu1 }
 0x960   : > { %v9049_v19 = vsel %vm8985_vm8, %v8861_v41, %v9017_v6  ;;  %v8705_v53 = vadd.f32 %v10006_v59, %v17111_v2  ;;  %v10009_v38 = vadd.f32 %v10008_v12, %v10007_v0 }
 0x961   : > { %9081 = vst.msk [vmem:[%s17234_s1 + $0x8] sm:$0xff] %vm843_vm0, %v9049_v19 }
 0x962   : > { %v8866_v20 = vadd.f32 %v10230_v61, %v8705_v53  ;;  %v8708_v24 = vadd.f32 %v10009_v38, %v17117_v5 }
 0x964   : > { %vm8986_vm2 = vcmp.gt.f32.partialorder %v8866_v20, 0.0  ;;  %v9018_v47 = vmul.f32 %v8866_v20, %v17950_v29  ;;  %v8869_v23 = vadd.f32 %v10231_v17, %v8708_v24  ;;  %v10010_v54 = vpop.f32.mrb[8].mxu0  ;;  %v17245_v7 = vpop.f32.mrb[104].mxu1 }
 0x965   : > { %v10011_v46 = vpop.f32.mrb[9].mxu0  ;;  %v8889_v10 = vpop.f32.mrb[105].mxu1 }
 0x966   : > { %v9050_v9 = vsel %vm8986_vm2, %v8866_v20, %v9018_v47  ;;  %vm8987_vm7 = vcmp.gt.f32.partialorder %v8869_v23, 0.0  ;;  %v9019_v2 = vmul.f32 %v8869_v23, %v17950_v29  ;;  %v10012_v21 = vadd.f32 %v10011_v46, %v10010_v54  ;;  %v10013_v63 = vpop.f32.mrb[10].mxu0  ;;  %v17248_v37 = vpop.f32.mrb[106].mxu1 }
 0x967   : > { %9082 = vst.msk [vmem:[%s17234_s1 + $0x10] sm:$0xff] %vm843_vm0, %v9050_v9  ;;  %v10014_v5 = vpop.f32.mrb[11].mxu0  ;;  %v8892_v61 = vpop.f32.mrb[107].mxu1 }
 0x968   : > { %v9051_v50 = vsel %vm8987_vm7, %v8869_v23, %v9019_v2  ;;  %v8713_v17 = vadd.f32 %v10012_v21, %v17123_v57  ;;  %v10015_v55 = vadd.f32 %v10014_v5, %v10013_v63 }
 0x969   : > { %9083 = vst.msk [vmem:[%s17234_s1 + $0x18] sm:$0xff] %vm843_vm0, %v9051_v50 }
 0x96a   : > { %v8874_v25 = vadd.f32 %v8873_v32, %v8713_v17  ;;  %v8716_v14 = vadd.f32 %v10015_v55, %v17132_v43 }
 0x96c   : > { %vm8988_vm6 = vcmp.gt.f32.partialorder %v8874_v25, 0.0  ;;  %v9020_v41 = vmul.f32 %v8874_v25, %v17950_v29  ;;  %v8877_v48 = vadd.f32 %v8876_v62, %v8716_v14  ;;  %v10016_v36 = vpop.f32.mrb[12].mxu0  ;;  %v17257_v34 = vpop.f32.mrb[108].mxu1 }
 0x96d   : > { %v10017_v6 = vpop.f32.mrb[13].mxu0  ;;  %v17259_v59 = vpop.f32.mrb[109].mxu1 }
 0x96e   : > { %v9052_v0 = vsel %vm8988_vm6, %v8874_v25, %v9020_v41  ;;  %vm8989_vm14 = vcmp.gt.f32.partialorder %v8877_v48, 0.0  ;;  %v9021_v57 = vmul.f32 %v8877_v48, %v17950_v29  ;;  %v10018_v12 = vadd.f32 %v10017_v6, %v10016_v36  ;;  %v10019_v19 = vpop.f32.mrb[14].mxu0  ;;  %v17262_v32 = vpop.f32.mrb[110].mxu1 }
 0x96f   : > { %9084 = vst.msk [vmem:[%s17234_s1 + $0x20] sm:$0xff] %vm843_vm0, %v9052_v0  ;;  %v10020_v43 = vpop.f32.mrb[15].mxu0  ;;  %v17266_v53 = vpop.f32.mrb[111].mxu1 }
 0x970   : > { %v9053_v62 = vsel %vm8989_vm14, %v8877_v48, %v9021_v57  ;;  %v8721_v38 = vadd.f32 %v10018_v12, %v17138_v42  ;;  %v10021_v20 = vadd.f32 %v10020_v43, %v10019_v19 }
 0x971   : > { %9085 = vst.msk [vmem:[%s17234_s1 + $0x28] sm:$0xff] %vm843_vm0, %v9053_v62 }
 0x972   : > { %v8882_v24 = vadd.f32 %v10234_v49, %v8721_v38  ;;  %v8724_v47 = vadd.f32 %v10021_v20, %v17144_v27 }
 0x974   : > { %vm8990_vm3 = vcmp.gt.f32.partialorder %v8882_v24, 0.0  ;;  %v9022_v23 = vmul.f32 %v8882_v24, %v17950_v29  ;;  %v8885_v54 = vadd.f32 %v10235_v22, %v8724_v47  ;;  %v10022_v46 = vpop.f32.mrb[16].mxu0  ;;  %v17273_v9 = vpop.f32.mrb[112].mxu1 }
 0x975   : > { %v10023_v2 = vpop.f32.mrb[17].mxu0  ;;  %v17275_v21 = vpop.f32.mrb[113].mxu1 }
 0x976   : > { %v9054_v63 = vsel %vm8990_vm3, %v8882_v24, %v9022_v23  ;;  %vm8991_vm10 = vcmp.gt.f32.partialorder %v8885_v54, 0.0  ;;  %v9023_v42 = vmul.f32 %v8885_v54, %v17950_v29  ;;  %v10024_v5 = vadd.f32 %v10023_v2, %v10022_v46  ;;  %v10025_v50 = vpop.f32.mrb[18].mxu0  ;;  %v17278_v49 = vpop.f32.mrb[114].mxu1 }
 0x977   : > { %9086 = vst.msk [vmem:[%s17234_s1 + $0x30] sm:$0xff] %vm843_vm0, %v9054_v63  ;;  %v10026_v27 = vpop.f32.mrb[19].mxu0  ;;  %v17282_v17 = vpop.f32.mrb[115].mxu1 }
 0x978   : > { %v9055_v22 = vsel %vm8991_vm10, %v8885_v54, %v9023_v42  ;;  %v8729_v55 = vadd.f32 %v10024_v5, %v17153_v39  ;;  %v10027_v25 = vadd.f32 %v10026_v27, %v10025_v50 }
 0x979   : > { %9087 = vst.msk [vmem:[%s17234_s1 + $0x38] sm:$0xff] %vm843_vm0, %v9055_v22 }
 0x97a   : > { %v8890_v14 = vadd.f32 %v8889_v10, %v8729_v55  ;;  %v8732_v41 = vadd.f32 %v10027_v25, %v17156_v3 }
 0x97c   : > { %vm8992_vm5 = vcmp.gt.f32.partialorder %v8890_v14, 0.0  ;;  %v9024_v48 = vmul.f32 %v8890_v14, %v17950_v29  ;;  %v8893_v36 = vadd.f32 %v8892_v61, %v8732_v41  ;;  %v10028_v6 = vpop.f32.mrb[20].mxu0 }
 0x97d   : > { %v10029_v0 = vpop.f32.mrb[21].mxu0 }
 0x97e   : > { %v9056_v57 = vsel %vm8992_vm5, %v8890_v14, %v9024_v48  ;;  %vm8993_vm9 = vcmp.gt.f32.partialorder %v8893_v36, 0.0  ;;  %v9025_v12 = vmul.f32 %v8893_v36, %v17950_v29  ;;  %v10030_v19 = vadd.f32 %v10029_v0, %v10028_v6  ;;  %v10031_v43 = vpop.f32.mrb[22].mxu0 }
 0x97f   : > { %9088 = vst.msk [vmem:[%s17234_s1 + $0x40] sm:$0xff] %vm843_vm0, %v9056_v57  ;;  %v10032_v39 = vpop.f32.mrb[23].mxu0 }
 0x980   : > { %v9057_v62 = vsel %vm8993_vm9, %v8893_v36, %v9025_v12  ;;  %v8737_v10 = vadd.f32 %v10030_v19, %v17162_v11  ;;  %v10033_v3 = vadd.f32 %v10032_v39, %v10031_v43 }
 0x981   : > { %9089 = vst.msk [vmem:[%s17234_s1 + $0x48] sm:$0xff] %vm843_vm0, %v9057_v62 }
 0x982   : > { %v17295_v38 = vpop.f32.mrb[116].mxu1  ;;  %v8898_v61 = vadd.f32 %v17245_v7, %v8737_v10  ;;  %v8740_v20 = vadd.f32 %v10033_v3, %v17165_v31 }
 0x983   : > { %v17299_v24 = vpop.f32.mrb[117].mxu1 }
 0x984   : > { %v17301_v47 = vpop.f32.mrb[118].mxu1  ;;  %vm8994_vm12 = vcmp.gt.f32.partialorder %v8898_v61, 0.0  ;;  %v9026_v23 = vmul.f32 %v8898_v61, %v17950_v29  ;;  %v8901_v11 = vadd.f32 %v17248_v37, %v8740_v20  ;;  %v10034_v54 = vpop.f32.mrb[24].mxu0 }
 0x985   : > { %v17305_v46 = vpop.f32.mrb[119].mxu1  ;;  %v10035_v2 = vpop.f32.mrb[25].mxu0 }
 0x986   : > { %v9058_v63 = vsel %vm8994_vm12, %v8898_v61, %v9026_v23  ;;  %vm8995_vm4 = vcmp.gt.f32.partialorder %v8901_v11, 0.0  ;;  %v9027_v7 = vmul.f32 %v8901_v11, %v17950_v29  ;;  %v10036_v42 = vadd.f32 %v10035_v2, %v10034_v54  ;;  %v10037_v31 = vpop.f32.mrb[26].mxu0 }
 0x987   : > { %9090 = vst.msk [vmem:[%s17234_s1 + $0x50] sm:$0xff] %vm843_vm0, %v9058_v63  ;;  %v10038_v5 = vpop.f32.mrb[27].mxu0 }
 0x988   : > { %v9059_v50 = vsel %vm8995_vm4, %v8901_v11, %v9027_v7  ;;  %v8745_v27 = vadd.f32 %v10036_v42, %v17168_v4  ;;  %v10039_v22 = vadd.f32 %v10038_v5, %v10037_v31 }
 0x989   : > { %9091 = vst.msk [vmem:[%s17234_s1 + $0x58] sm:$0xff] %vm843_vm0, %v9059_v50 }
 0x98a   : > { %v8906_v37 = vadd.f32 %v17259_v59, %v8745_v27  ;;  %v8748_v55 = vadd.f32 %v10039_v22, %v17171_v13 }
 0x98c   : > { %vm8996_vm13 = vcmp.gt.f32.partialorder %v8906_v37, 0.0  ;;  %v9028_v25 = vmul.f32 %v8906_v37, %v17950_v29  ;;  %v8909_v14 = vadd.f32 %v17266_v53, %v8748_v55  ;;  %v10040_v41 = vpop.f32.mrb[28].mxu0 }
 0x98d   : > { %v10041_v48 = vpop.f32.mrb[29].mxu0 }
 0x98e   : > { %v9060_v36 = vsel %vm8996_vm13, %v8906_v37, %v9028_v25  ;;  %vm8997_vm1 = vcmp.gt.f32.partialorder %v8909_v14, 0.0  ;;  %v9029_v6 = vmul.f32 %v8909_v14, %v17950_v29  ;;  %v10042_v4 = vadd.f32 %v10041_v48, %v10040_v41  ;;  %v10043_v0 = vpop.f32.mrb[30].mxu0 }
 0x98f   : > { %9092 = vst.msk [vmem:[%s17234_s1 + $0x60] sm:$0xff] %vm843_vm0, %v9060_v36  ;;  %v10044_v57 = vpop.f32.mrb[31].mxu0 }
 0x990   : > { %v9061_v59 = vsel %vm8997_vm1, %v8909_v14, %v9029_v6  ;;  %v8753_v13 = vadd.f32 %v10042_v4, %v17174_v26  ;;  %v10045_v12 = vadd.f32 %v10044_v57, %v10043_v0 }
 0x991   : > { %9093 = vst.msk [vmem:[%s17234_s1 + $0x68] sm:$0xff] %vm843_vm0, %v9061_v59 }
 0x992   : > { %v17321_v19 = vpop.f32.mrb[120].mxu1  ;;  %v8914_v43 = vadd.f32 %v17257_v34, %v8753_v13  ;;  %v8756_v39 = vadd.f32 %v10045_v12, %v17177_v30 }
 0x993   : > { %v17325_v53 = vpop.f32.mrb[121].mxu1 }
 0x994   : > { %v17329_v62 = vpop.f32.mrb[122].mxu1  ;;  %vm8998_vm11 = vcmp.gt.f32.partialorder %v8914_v43, 0.0  ;;  %v9030_v26 = vmul.f32 %v8914_v43, %v17950_v29  ;;  %v8917_v3 = vadd.f32 %v17262_v32, %v8756_v39  ;;  %v10046_v61 = vpop.f32.mrb[32].mxu0 }
 0x995   : > { %v17331_v10 = vpop.f32.mrb[123].mxu1  ;;  %v10047_v20 = vpop.f32.mrb[33].mxu0 }
 0x996   : > { %v9062_v23 = vsel %vm8998_vm11, %v8914_v43, %v9030_v26  ;;  %vm8999_vm15 = vcmp.gt.f32.partialorder %v8917_v3, 0.0  ;;  %v9031_v11 = vmul.f32 %v8917_v3, %v17950_v29  ;;  %v10048_v54 = vadd.f32 %v10047_v20, %v10046_v61  ;;  %v10049_v34 = vpop.f32.mrb[34].mxu0 }
 0x997   : > { %9094 = vst.msk [vmem:[%s17234_s1 + $0x70] sm:$0xff] %vm843_vm0, %v9062_v23  ;;  %v10050_v30 = vpop.f32.mrb[35].mxu0 }
 0x998   : > { %v9063_v2 = vsel %vm8999_vm15, %v8917_v3, %v9031_v11  ;;  %v8761_v63 = vadd.f32 %v10048_v54, %v17180_v56  ;;  %v10051_v7 = vadd.f32 %v10050_v30, %v10049_v34 }
 0x999   : > { %9095 = vst.msk [vmem:[%s17234_s1 + $0x78] sm:$0xff] %vm843_vm0, %v9063_v2 }
 0x99a   : > { %v8922_v32 = vadd.f32 %v17275_v21, %v8761_v63  ;;  %v8764_v42 = vadd.f32 %v10051_v7, %v17183_v52 }
 0x99c   : > { %vm9000_vm8 = vcmp.gt.f32.partialorder %v8922_v32, 0.0  ;;  %v9032_v31 = vmul.f32 %v8922_v32, %v17950_v29  ;;  %v8925_v5 = vadd.f32 %v17282_v17, %v8764_v42  ;;  %v10052_v50 = vpop.f32.mrb[36].mxu0 }
 0x99d   : > { %v10053_v27 = vpop.f32.mrb[37].mxu0 }
 0x99e   : > { %v9064_v22 = vsel %vm9000_vm8, %v8922_v32, %v9032_v31  ;;  %vm9001_vm2 = vcmp.gt.f32.partialorder %v8925_v5, 0.0  ;;  %v9033_v37 = vmul.f32 %v8925_v5, %v17950_v29  ;;  %v10054_v56 = vadd.f32 %v10053_v27, %v10052_v50  ;;  %v10055_v55 = vpop.f32.mrb[38].mxu0 }
 0x99f   : > { %9096 = vst.msk [vmem:[%s17234_s1 + $0x80] sm:$0xff] %vm843_vm0, %v9064_v22  ;;  %v10056_v25 = vpop.f32.mrb[39].mxu0 }
 0x9a0   : > { %v9065_v21 = vsel %vm9001_vm2, %v8925_v5, %v9033_v37  ;;  %v8769_v52 = vadd.f32 %v10054_v56, %v17186_v45  ;;  %v10057_v14 = vadd.f32 %v10056_v25, %v10055_v55  ;;  %v17349_v41 = vpop.f32.mrb[124].mxu1 }
 0x9a1   : > { %9097 = vst.msk [vmem:[%s17234_s1 + $0x88] sm:$0xff] %vm843_vm0, %v9065_v21  ;;  %v17353_v17 = vpop.f32.mrb[125].mxu1 }
 0x9a2   : > { %v8930_v48 = vadd.f32 %v17273_v9, %v8769_v52  ;;  %v8772_v36 = vadd.f32 %v10057_v14, %v17189_v58  ;;  %v17357_v6 = vpop.f32.mrb[126].mxu1 }
 0x9a3   : > { %v17359_v4 = vpop.f32.mrb[127].mxu1 }
 0x9a4   : > { %vm9002_vm7 = vcmp.gt.f32.partialorder %v8930_v48, 0.0  ;;  %v9034_v45 = vmul.f32 %v8930_v48, %v17950_v29  ;;  %v8933_v0 = vadd.f32 %v17278_v49, %v8772_v36  ;;  %v10058_v57 = vpop.f32.mrb[40].mxu0 }
 0x9a5   : > { %v10059_v59 = vpop.f32.mrb[41].mxu0 }
 0x9a6   : > { %v9066_v13 = vsel %vm9002_vm7, %v8930_v48, %v9034_v45  ;;  %vm9003_vm6 = vcmp.gt.f32.partialorder %v8933_v0, 0.0  ;;  %v9035_v12 = vmul.f32 %v8933_v0, %v17950_v29  ;;  %v10060_v43 = vadd.f32 %v10059_v59, %v10058_v57  ;;  %v10061_v9 = vpop.f32.mrb[42].mxu0 }
 0x9a7   : > { %9098 = vst.msk [vmem:[%s17234_s1 + $0x90] sm:$0xff] %vm843_vm0, %v9066_v13  ;;  %v10062_v58 = vpop.f32.mrb[43].mxu0 }
 0x9a8   : > { %v9067_v39 = vsel %vm9003_vm6, %v8933_v0, %v9035_v12  ;;  %v8777_v26 = vadd.f32 %v10060_v43, %v17192_v8  ;;  %v10063_v3 = vadd.f32 %v10062_v58, %v10061_v9 }
 0x9a9   : > { %9099 = vst.msk [vmem:[%s17234_s1 + $0x98] sm:$0xff] %vm843_vm0, %v9067_v39 }
 0x9aa   : > { %v8938_v49 = vadd.f32 %v17299_v24, %v8777_v26  ;;  %v8780_v61 = vadd.f32 %v10063_v3, %v17195_v33 }
 0x9ac   : > { %vm9004_vm14 = vcmp.gt.f32.partialorder %v8938_v49, 0.0  ;;  %v9036_v20 = vmul.f32 %v8938_v49, %v17950_v29  ;;  %v8941_v23 = vadd.f32 %v17305_v46, %v8780_v61  ;;  %v10064_v11 = vpop.f32.mrb[44].mxu0 }
 0x9ad   : > { %v10065_v54 = vpop.f32.mrb[45].mxu0 }
 0x9ae   : > { %v9068_v34 = vsel %vm9004_vm14, %v8938_v49, %v9036_v20  ;;  %vm9005_vm3 = vcmp.gt.f32.partialorder %v8941_v23, 0.0  ;;  %v9037_v30 = vmul.f32 %v8941_v23, %v17950_v29  ;;  %v10066_v8 = vadd.f32 %v10065_v54, %v10064_v11  ;;  %v10067_v2 = vpop.f32.mrb[46].mxu0 }
 0x9af   : > { %9100 = vst.msk [vmem:[%s17234_s1 + $0xa0] sm:$0xff] %vm843_vm0, %v9068_v34  ;;  %v10068_v63 = vpop.f32.mrb[47].mxu0 }
 0x9b0   : > { %v9069_v24 = vsel %vm9005_vm3, %v8941_v23, %v9037_v30  ;;  %v8785_v33 = vadd.f32 %v10066_v8, %v17198_v1  ;;  %v10069_v7 = vadd.f32 %v10068_v63, %v10067_v2 }
 0x9b1   : > { %9101 = vst.msk [vmem:[%s17234_s1 + $0xa8] sm:$0xff] %vm843_vm0, %v9069_v24 }
 0x9b2   : > { %v8946_v46 = vadd.f32 %v17295_v38, %v8785_v33  ;;  %v8788_v32 = vadd.f32 %v10069_v7, %v17201_v60 }
 0x9b4   : > { %vm9006_vm10 = vcmp.gt.f32.partialorder %v8946_v46, 0.0  ;;  %v9038_v42 = vmul.f32 %v8946_v46, %v17950_v29  ;;  %v8949_v31 = vadd.f32 %v17301_v47, %v8788_v32  ;;  %v10070_v5 = vpop.f32.mrb[48].mxu0 }
 0x9b5   : > { %v10071_v50 = vpop.f32.mrb[49].mxu0 }
 0x9b6   : > { %v9070_v27 = vsel %vm9006_vm10, %v8946_v46, %v9038_v42  ;;  %vm9007_vm5 = vcmp.gt.f32.partialorder %v8949_v31, 0.0  ;;  %v9039_v22 = vmul.f32 %v8949_v31, %v17950_v29  ;;  %v10072_v1 = vadd.f32 %v10071_v50, %v10070_v5  ;;  %v10073_v37 = vpop.f32.mrb[50].mxu0 }
 0x9b7   : > { %9102 = vst.msk [vmem:[%s17234_s1 + $0xb0] sm:$0xff] %vm843_vm0, %v9070_v27  ;;  %v10074_v56 = vpop.f32.mrb[51].mxu0 }
 0x9b8   : > { %v9071_v38 = vsel %vm9007_vm5, %v8949_v31, %v9039_v22  ;;  %v8793_v60 = vadd.f32 %v10072_v1, %v17204_v15  ;;  %v10075_v55 = vadd.f32 %v10074_v56, %v10073_v37 }
 0x9b9   : > { %9103 = vst.msk [vmem:[%s17234_s1 + $0xb8] sm:$0xff] %vm843_vm0, %v9071_v38 }
 0x9ba   : > { %v8954_v47 = vadd.f32 %v17325_v53, %v8793_v60  ;;  %v8796_v25 = vadd.f32 %v10075_v55, %v17207_v16 }
 0x9bc   : > { %vm9008_vm9 = vcmp.gt.f32.partialorder %v8954_v47, 0.0  ;;  %v9040_v21 = vmul.f32 %v8954_v47, %v17950_v29  ;;  %v8957_v52 = vadd.f32 %v17331_v10, %v8796_v25  ;;  %v10076_v14 = vpop.f32.mrb[52].mxu0 }
 0x9bd   : > { %v10077_v48 = vpop.f32.mrb[53].mxu0 }
 0x9be   : > { %v9072_v36 = vsel %vm9008_vm9, %v8954_v47, %v9040_v21  ;;  %vm9009_vm12 = vcmp.gt.f32.partialorder %v8957_v52, 0.0  ;;  %v9041_v45 = vmul.f32 %v8957_v52, %v17950_v29  ;;  %v10078_v15 = vadd.f32 %v10077_v48, %v10076_v14  ;;  %v10079_v0 = vpop.f32.mrb[54].mxu0 }
 0x9bf   : > { %9104 = vst.msk [vmem:[%s17234_s1 + $0xc0] sm:$0xff] %vm843_vm0, %v9072_v36  ;;  %v10080_v57 = vpop.f32.mrb[55].mxu0 }
 0x9c0   : > { %v9073_v53 = vsel %vm9009_vm12, %v8957_v52, %v9041_v45  ;;  %v8801_v16 = vadd.f32 %v10078_v15, %v17210_v28  ;;  %v10081_v59 = vadd.f32 %v10080_v57, %v10079_v0 }
 0x9c1   : > { %9105 = vst.msk [vmem:[%s17234_s1 + $0xc8] sm:$0xff] %vm843_vm0, %v9073_v53 }
 0x9c2   : > { %v8962_v10 = vadd.f32 %v17321_v19, %v8801_v16  ;;  %v8804_v13 = vadd.f32 %v10081_v59, %v17213_v40 }
 0x9c4   : > { %vm9010_vm4 = vcmp.gt.f32.partialorder %v8962_v10, 0.0  ;;  %v9042_v12 = vmul.f32 %v8962_v10, %v17950_v29  ;;  %v8965_v43 = vadd.f32 %v17329_v62, %v8804_v13  ;;  %v10082_v9 = vpop.f32.mrb[56].mxu0 }
 0x9c5   : > { %v10083_v58 = vpop.f32.mrb[57].mxu0 }
 0x9c6   : > { %v9074_v39 = vsel %vm9010_vm4, %v8962_v10, %v9042_v12  ;;  %vm9011_vm13 = vcmp.gt.f32.partialorder %v8965_v43, 0.0  ;;  %v9043_v26 = vmul.f32 %v8965_v43, %v17950_v29  ;;  %v10084_v28 = vadd.f32 %v10083_v58, %v10082_v9  ;;  %v10085_v3 = vpop.f32.mrb[58].mxu0 }
 0x9c7   : > { %9106 = vst.msk [vmem:[%s17234_s1 + $0xd0] sm:$0xff] %vm843_vm0, %v9074_v39  ;;  %v10086_v49 = vpop.f32.mrb[59].mxu0 }
 0x9c8   : > { %v9075_v19 = vsel %vm9011_vm13, %v8965_v43, %v9043_v26  ;;  %v8809_v40 = vadd.f32 %v10084_v28, %v17216_v35  ;;  %v10087_v61 = vadd.f32 %v10086_v49, %v10085_v3 }
 0x9c9   : > { %9107 = vst.msk [vmem:[%s17234_s1 + $0xd8] sm:$0xff] %vm843_vm0, %v9075_v19 }
 0x9ca   : > { %v8970_v62 = vadd.f32 %v17353_v17, %v8809_v40  ;;  %v8812_v20 = vadd.f32 %v10087_v61, %v17219_v51 }
 0x9cc   : > { %vm9012_vm1 = vcmp.gt.f32.partialorder %v8970_v62, 0.0  ;;  %v9044_v23 = vmul.f32 %v8970_v62, %v17950_v29  ;;  %v8973_v11 = vadd.f32 %v17359_v4, %v8812_v20  ;;  %v10088_v54 = vpop.f32.mrb[60].mxu0 }
 0x9cd   : > { %v10089_v34 = vpop.f32.mrb[61].mxu0 }
 0x9ce   : > { %v9076_v30 = vsel %vm9012_vm1, %v8970_v62, %v9044_v23  ;;  %vm9013_vm11 = vcmp.gt.f32.partialorder %v8973_v11, 0.0  ;;  %v9045_v8 = vmul.f32 %v8973_v11, %v17950_v29  ;;  %v10090_v35 = vadd.f32 %v10089_v34, %v10088_v54  ;;  %v10091_v2 = vpop.f32.mrb[62].mxu0 }
 0x9cf   : > { %9108 = vst.msk [vmem:[%s17234_s1 + $0xe0] sm:$0xff] %vm843_vm0, %v9076_v30  ;;  %v10092_v17 = vpop.f32.mrb[63].mxu0 }
 0x9d0   : > { %v9077_v51 = vsel %vm9013_vm11, %v8973_v11, %v9045_v8  ;;  %v8817_v63 = vadd.f32 %v10090_v35, %v17222_v44  ;;  %v10093_v24 = vadd.f32 %v10092_v17, %v10091_v2 }
 0x9d1   : > { %9109 = vst.msk [vmem:[%s17234_s1 + $0xe8] sm:$0xff] %vm843_vm0, %v9077_v51 }
 0x9d2   : > { %v8978_v4 = vadd.f32 %v17349_v41, %v8817_v63  ;;  %v8820_v33 = vadd.f32 %v10093_v24, %v17225_v18 }
 0x9d4   : > { %vm9014_vm15 = vcmp.gt.f32.partialorder %v8978_v4, 0.0  ;;  %v9046_v7 = vmul.f32 %v8978_v4, %v17950_v29  ;;  %v8981_v46 = vadd.f32 %v17357_v6, %v8820_v33 }
 0x9d6   : > { %v9078_v32 = vsel %vm9014_vm15, %v8978_v4, %v9046_v7  ;;  %vm9015_vm8 = vcmp.gt.f32.partialorder %v8981_v46, 0.0  ;;  %v9047_v42 = vmul.f32 %v8981_v46, %v17950_v29 }
 0x9d7   : > { %9110 = vst.msk [vmem:[%s17234_s1 + $0xf0] sm:$0xff] %vm843_vm0, %v9078_v32 }
 0x9d8   : > { %v9079_v31 = vsel %vm9015_vm8, %v8981_v46, %v9047_v42 }
 0x9d9   : > { %9111 = vst.msk [vmem:[%s17234_s1 + $0xf8] sm:$0xff] %vm843_vm0, %v9079_v31 }
 0x9da PF: > { %s29_s30 = sadd.s32 1, %s10926_s30  }
 0x9db   : > { %p26_p4 = scmp.ge.s32.totalorder %s29_s30, 4  }
 0x9dd   :  { %28 = sbr.rel (!%p26_p4) target bundleno = 9 (0x9), region = 122 }

</bundles_post_ra>
